<compile_context>
chip_gen: v6e
topology: v6e:2x2x1
jax: 0.10.0
libtpu: 0.0.40
codegen_flags: <defaults>
</compile_context>

<pallas_src>
import math
import functools

import jax
import jax.numpy as jnp
from jax.experimental import pallas as pl
from jax.experimental.pallas import tpu as pltpu

D_MODEL = 64
NHEAD = 4
NUM_LAYERS = 4
DIM_FF = 2048          # PyTorch TransformerEncoderLayer default dim_feedforward
HEAD_DIM = D_MODEL // NHEAD
LN_EPS = 1e-5          # PyTorch LayerNorm default eps
MAX_LEN = 512

# order of the stacked weight arrays passed to the fused kernel
_WEIGHT_NAMES = ("wq", "bq", "wk", "bk", "wv", "bv", "wo", "bo",
                 "ln1_g", "ln1_b", "w1", "b1", "w2", "b2", "ln2_g", "ln2_b",
                 "dec_w", "dec_b")

_COMPILER_PARAMS = pltpu.CompilerParams(
    dimension_semantics=("parallel",),          # batch grid axis -> both TCs on v7x
    vmem_limit_bytes=32 * 1024 * 1024,          # actual usage is only a few MiB
)


# ------------------------------ fused whole-model kernel ------------------------------

def _layer_norm(h, g, b):
    mean = jnp.mean(h, axis=-1, keepdims=True)
    var = jnp.mean(jnp.square(h - mean), axis=-1, keepdims=True)
    return (h - mean) * jax.lax.rsqrt(var + LN_EPS) * g + b


def _model_kernel(x_ref, pe_ref,
                  wq, bq, wk, bk, wv, bv, wo, bo,
                  ln1_g, ln1_b, w1, b1, w2, b2, ln2_g, ln2_b,
                  dec_w, dec_b, o_ref, *, ff_chunk):
    """PE add + all NUM_LAYERS post-norm encoder layers + Linear(d,1) for one sequence."""
    x = x_ref[0] + pe_ref[...]                               # (S, d) f32, fused PE add
    S = x.shape[0]

    for L in range(NUM_LAYERS):                              # fully fused layer stack
        x_bf = x.astype(jnp.bfloat16)

        # ---- multi-head self-attention: per-head projections addressed only via
        #      leading-dim indexing (no 16-lane activation slices, no concat) ----
        attn = jnp.zeros((S, D_MODEL), jnp.float32)
        for h in range(NHEAD):
            q = jnp.dot(x_bf, wq[L, h], preferred_element_type=jnp.float32) + bq[L, h]
            k = jnp.dot(x_bf, wk[L, h], preferred_element_type=jnp.float32) + bk[L, h]
            v = jnp.dot(x_bf, wv[L, h], preferred_element_type=jnp.float32) + bv[L, h]
            # scores = q @ k^T (1/sqrt(hd) already folded into wq/bq)
            s = jax.lax.dot_general(q.astype(jnp.bfloat16), k.astype(jnp.bfloat16),
                                    (((1,), (1,)), ((), ())),
                                    preferred_element_type=jnp.float32)      # (S, S)
            s = s - jnp.max(s, axis=-1, keepdims=True)
            p = jnp.exp(s)
            p = p * pl.reciprocal(jnp.sum(p, axis=-1, keepdims=True), approx=True)
            o_h = jnp.dot(p.astype(jnp.bfloat16), v.astype(jnp.bfloat16),
                          preferred_element_type=jnp.float32)                # (S, hd)
            # fold the out-projection per head -> immediate MXU consumer with N=d
            attn = attn + jnp.dot(o_h.astype(jnp.bfloat16), wo[L, h],
                                  preferred_element_type=jnp.float32)        # (S, d)
        attn = attn + bo[L]

        x1 = _layer_norm(x + attn, ln1_g[L], ln1_b[L])       # norm1(x + attn), f32

        # ---- feed-forward, chunked over DIM_FF to cap the (S, ff) f32 intermediate ----
        x1_bf = x1.astype(jnp.bfloat16)
        f = jnp.zeros((S, D_MODEL), jnp.float32)
        for c in range(DIM_FF // ff_chunk):
            lo = c * ff_chunk                                # static, lane/sublane aligned
            h1 = jnp.dot(x1_bf, w1[L, :, lo:lo + ff_chunk],
                         preferred_element_type=jnp.float32) + b1[L, :, lo:lo + ff_chunk]
            h1 = jnp.maximum(h1, 0.0)                        # ReLU (f32, v5e-friendly)
            f = f + jnp.dot(h1.astype(jnp.bfloat16), w2[L, lo:lo + ff_chunk, :],
                            preferred_element_type=jnp.float32)
        f = f + b2[L]

        x = _layer_norm(x1 + f, ln2_g[L], ln2_b[L])          # norm2(x1 + ffn), f32

    # ---- fused decoder Linear(d_model, 1): produce a lane-dense (1, S) row ----
    row = jax.lax.dot_general(dec_w[...], x, (((1,), (1,)), ((), ())),
                              preferred_element_type=jnp.float32)            # (1, S)
    o_ref[0] = row + dec_b[...]


def _const_spec(shape):
    # whole-array block with constant index_map -> DMA'd once, resident in VMEM
    zeros = (0,) * len(shape)
    return pl.BlockSpec(shape, lambda b, _z=zeros: _z)


def _pick_ff_chunk(rows):
    # largest DIM_FF chunk whose (rows, chunk) f32 intermediate stays <= ~2 MiB
    for chunk in (DIM_FF, DIM_FF // 2, DIM_FF // 4):
        if rows * chunk * 4 <= 2 * 1024 * 1024:
            return chunk
    return DIM_FF // 4


# ------------------------------ parameters ------------------------------

def _dense_init(key, din, dout):
    kw, kb = jax.random.split(key)
    w = jax.random.normal(kw, (din, dout), jnp.float32) * (1.0 / math.sqrt(din))
    b = jax.random.normal(kb, (dout,), jnp.float32) * 0.01
    return w, b


def make_positional_encoding(d_model=D_MODEL, max_len=MAX_LEN):
    position = jnp.arange(max_len, dtype=jnp.float32)[:, None]
    div_term = jnp.exp(jnp.arange(0, d_model, 2, dtype=jnp.float32)
                       * (-math.log(10000.0) / d_model))
    pe = jnp.zeros((max_len, 1, d_model), jnp.float32)
    pe = pe.at[:, 0, 0::2].set(jnp.sin(position * div_term))
    pe = pe.at[:, 0, 1::2].set(jnp.cos(position * div_term))
    return pe


def init_params(key):
    keys = jax.random.split(key, NUM_LAYERS + 1)
    scale = 1.0 / math.sqrt(HEAD_DIM)

    per_layer = {n: [] for n in _WEIGHT_NAMES[:-2]}
    for lk in keys[:NUM_LAYERS]:
        k_in, k_out, k_ff1, k_ff2 = jax.random.split(lk, 4)
        in_w, in_b = _dense_init(k_in, D_MODEL, 3 * D_MODEL)      # packed QKV proj
        out_w, out_b = _dense_init(k_out, D_MODEL, D_MODEL)       # attn out proj
        w1, b1 = _dense_init(k_ff1, D_MODEL, DIM_FF)
        w2, b2 = _dense_init(k_ff2, DIM_FF, D_MODEL)

        # split the packed QKV projection per head: (d, d) -> (H, d, hd);
        # fold the 1/sqrt(head_dim) attention scale into the Q slab (exact rewrite)
        head_w = lambda w: w.reshape(D_MODEL, NHEAD, HEAD_DIM).transpose(1, 0, 2)
        head_b = lambda b: b.reshape(NHEAD, 1, HEAD_DIM)
        per_layer["wq"].append(head_w(in_w[:, 0:D_MODEL] * scale))
        per_layer["wk"].append(head_w(in_w[:, D_MODEL:2 * D_MODEL]))
        per_layer["wv"].append(head_w(in_w[:, 2 * D_MODEL:3 * D_MODEL]))
        per_layer["bq"].append(head_b(in_b[0:D_MODEL] * scale))
        per_layer["bk"].append(head_b(in_b[D_MODEL:2 * D_MODEL]))
        per_layer["bv"].append(head_b(in_b[2 * D_MODEL:3 * D_MODEL]))
        # per-head row-slab of the out projection: (H, hd, d)
        per_layer["wo"].append(out_w.reshape(NHEAD, HEAD_DIM, D_MODEL))
        per_layer["bo"].append(out_b[None, :])
        per_layer["ln1_g"].append(jnp.ones((1, D_MODEL), jnp.float32))
        per_layer["ln1_b"].append(jnp.zeros((1, D_MODEL), jnp.float32))
        per_layer["w1"].append(w1)
        per_layer["b1"].append(b1[None, :])
        per_layer["w2"].append(w2)
        per_layer["b2"].append(b2[None, :])
        per_layer["ln2_g"].append(jnp.ones((1, D_MODEL), jnp.float32))
        per_layer["ln2_b"].append(jnp.zeros((1, D_MODEL), jnp.float32))

    params = {"pe": make_positional_encoding()}
    bf16_names = {"wq", "wk", "wv", "wo", "w1", "w2"}   # MXU operands; f32 accumulation
    for n, vals in per_layer.items():
        stacked = jnp.stack(vals)                        # leading NUM_LAYERS axis
        params[n] = stacked.astype(jnp.bfloat16) if n in bf16_names else stacked

    dec_w, dec_b = _dense_init(keys[-1], D_MODEL, 1)
    params["dec_w"] = dec_w.T                            # (1, d) f32 for the (1, S) row-dot
    params["dec_b"] = dec_b.reshape(1, 1)
    return params


# ------------------------------ forward ------------------------------

@jax.jit
def transformer_encoder_forward(src, params):
    # src: (S, B, d_model), seq-first (PyTorch batch_first=False default)
    S, B, d = src.shape
    pe = params["pe"][:S, 0, :]                          # (S, d), added inside the kernel
    weights = [params[n] for n in _WEIGHT_NAMES]
    ff_chunk = _pick_ff_chunk(S)

    # Single XLA pass: (S,B,d) -> (B,S,d) so each grid step gets a tile-aligned
    # (1,S,d) block (per-batch blocking of the seq-first layout is not tile-legal).
    x = jnp.transpose(src, (1, 0, 2))

    out = pl.pallas_call(
        functools.partial(_model_kernel, ff_chunk=ff_chunk),
        out_shape=jax.ShapeDtypeStruct((B, 1, S), jnp.float32),
        grid=(B,),
        in_specs=[pl.BlockSpec((1, S, d), lambda b: (b, 0, 0)),   # one sequence / step
                  _const_spec(pe.shape)]
                 + [_const_spec(w.shape) for w in weights],
        out_specs=pl.BlockSpec((1, 1, S), lambda b: (b, 0, 0)),   # lane-dense output row
        compiler_params=_COMPILER_PARAMS,
    )(x, pe, *weights)

    # tiny (B,1,S) -> (S,B,1) relayout outside the kernel (S*B floats)
    return jnp.transpose(out, (2, 0, 1))


# ------------------------------ main ------------------------------

if __name__ == "__main__":
    key = jax.random.PRNGKey(0)
    k_param, k_in = jax.random.split(key)
    params = init_params(k_param)

    S, B = 8, 2
    src = jax.random.normal(k_in, (S, B, D_MODEL), jnp.float32)

    out = transformer_encoder_forward(src, params)
    jax.block_until_ready(out)
    assert out.shape == (S, B, 1), out.shape
    print("KERNEL_OK")
</pallas_src>

<mosaic_0001>
module attributes {stable_mosaic.version = 11 : i64} {
  func.func @_model_kernel(%arg0: i32, %arg1: memref<1x8x64xf32, #tpu.memory_space<vmem>>, %arg2: memref<8x64xf32, #tpu.memory_space<vmem>>, %arg3: memref<4x4x64x16xbf16, #tpu.memory_space<vmem>>, %arg4: memref<4x4x1x16xf32, #tpu.memory_space<vmem>>, %arg5: memref<4x4x64x16xbf16, #tpu.memory_space<vmem>>, %arg6: memref<4x4x1x16xf32, #tpu.memory_space<vmem>>, %arg7: memref<4x4x64x16xbf16, #tpu.memory_space<vmem>>, %arg8: memref<4x4x1x16xf32, #tpu.memory_space<vmem>>, %arg9: memref<4x4x16x64xbf16, #tpu.memory_space<vmem>>, %arg10: memref<4x1x64xf32, #tpu.memory_space<vmem>>, %arg11: memref<4x1x64xf32, #tpu.memory_space<vmem>>, %arg12: memref<4x1x64xf32, #tpu.memory_space<vmem>>, %arg13: memref<4x64x2048xbf16, #tpu.memory_space<vmem>>, %arg14: memref<4x1x2048xf32, #tpu.memory_space<vmem>>, %arg15: memref<4x2048x64xbf16, #tpu.memory_space<vmem>>, %arg16: memref<4x1x64xf32, #tpu.memory_space<vmem>>, %arg17: memref<4x1x64xf32, #tpu.memory_space<vmem>>, %arg18: memref<4x1x64xf32, #tpu.memory_space<vmem>>, %arg19: memref<1x64xf32, #tpu.memory_space<vmem>>, %arg20: memref<1x1xf32, #tpu.memory_space<vmem>>, %arg21: memref<1x1x8xf32, #tpu.memory_space<vmem>>) attributes {dimension_semantics = [#tpu.dimension_semantics<parallel>], iteration_bounds = array<i64: 2>, scalar_prefetch = 0 : i64, scratch_operands = 0 : i64, tpu.core_type = #tpu.core_type<tc>, window_params = [{transform_indices = @transform_0, window_bounds = array<i64: 1, 8, 64>}, {pipeline_mode = #tpu.pipeline_mode<synchronous>, transform_indices = @transform_1, window_bounds = array<i64: 8, 64>}, {pipeline_mode = #tpu.pipeline_mode<synchronous>, transform_indices = @transform_2, window_bounds = array<i64: 4, 4, 64, 16>}, {pipeline_mode = #tpu.pipeline_mode<synchronous>, transform_indices = @transform_3, window_bounds = array<i64: 4, 4, 1, 16>}, {pipeline_mode = #tpu.pipeline_mode<synchronous>, transform_indices = @transform_4, window_bounds = array<i64: 4, 4, 64, 16>}, {pipeline_mode = #tpu.pipeline_mode<synchronous>, transform_indices = @transform_5, window_bounds = array<i64: 4, 4, 1, 16>}, {pipeline_mode = #tpu.pipeline_mode<synchronous>, transform_indices = @transform_6, window_bounds = array<i64: 4, 4, 64, 16>}, {pipeline_mode = #tpu.pipeline_mode<synchronous>, transform_indices = @transform_7, window_bounds = array<i64: 4, 4, 1, 16>}, {pipeline_mode = #tpu.pipeline_mode<synchronous>, transform_indices = @transform_8, window_bounds = array<i64: 4, 4, 16, 64>}, {pipeline_mode = #tpu.pipeline_mode<synchronous>, transform_indices = @transform_9, window_bounds = array<i64: 4, 1, 64>}, {pipeline_mode = #tpu.pipeline_mode<synchronous>, transform_indices = @transform_10, window_bounds = array<i64: 4, 1, 64>}, {pipeline_mode = #tpu.pipeline_mode<synchronous>, transform_indices = @transform_11, window_bounds = array<i64: 4, 1, 64>}, {pipeline_mode = #tpu.pipeline_mode<synchronous>, transform_indices = @transform_12, window_bounds = array<i64: 4, 64, 2048>}, {pipeline_mode = #tpu.pipeline_mode<synchronous>, transform_indices = @transform_13, window_bounds = array<i64: 4, 1, 2048>}, {pipeline_mode = #tpu.pipeline_mode<synchronous>, transform_indices = @transform_14, window_bounds = array<i64: 4, 2048, 64>}, {pipeline_mode = #tpu.pipeline_mode<synchronous>, transform_indices = @transform_15, window_bounds = array<i64: 4, 1, 64>}, {pipeline_mode = #tpu.pipeline_mode<synchronous>, transform_indices = @transform_16, window_bounds = array<i64: 4, 1, 64>}, {pipeline_mode = #tpu.pipeline_mode<synchronous>, transform_indices = @transform_17, window_bounds = array<i64: 4, 1, 64>}, {pipeline_mode = #tpu.pipeline_mode<synchronous>, transform_indices = @transform_18, window_bounds = array<i64: 1, 64>}, {pipeline_mode = #tpu.pipeline_mode<synchronous>, transform_indices = @transform_19, window_bounds = array<i64: 1, 1>}, {transform_indices = @transform_20, window_bounds = array<i64: 1, 1, 8>}]} {
    %c0 = arith.constant 0 : index
    %c0_0 = arith.constant 0 : index
    %c0_1 = arith.constant 0 : index
    %0 = vector.load %arg1[%c0, %c0_0, %c0_1] : memref<1x8x64xf32, #tpu.memory_space<vmem>>, vector<1x8x64xf32>
    %1 = vector.shape_cast %0 : vector<1x8x64xf32> to vector<8x64xf32>
    %c0_2 = arith.constant 0 : index
    %c0_3 = arith.constant 0 : index
    %2 = vector.load %arg2[%c0_2, %c0_3] : memref<8x64xf32, #tpu.memory_space<vmem>>, vector<8x64xf32>
    %3 = arith.addf %1, %2 : vector<8x64xf32>
    %4 = arith.truncf %3 : vector<8x64xf32> to vector<8x64xbf16>
    %cst = arith.constant 0.000000e+00 : f32
    %5 = vector.broadcast %cst : f32 to vector<8x64xf32>
    %c0_4 = arith.constant 0 : index
    %c0_5 = arith.constant 0 : index
    %c0_6 = arith.constant 0 : index
    %c0_7 = arith.constant 0 : index
    %6 = vector.load %arg3[%c0_4, %c0_5, %c0_6, %c0_7] : memref<4x4x64x16xbf16, #tpu.memory_space<vmem>>, vector<1x1x64x16xbf16>
    %7 = vector.shape_cast %6 : vector<1x1x64x16xbf16> to vector<64x16xbf16>
    %cst_8 = arith.constant dense<0.000000e+00> : vector<8x16xf32>
    %8 = tpu.matmul %4, %7, %cst_8 {dimension_numbers = #tpu.dot_dimension_numbers<[1], [0], [0], [1], [0, 0, 1, 1], [], []>} : vector<8x64xbf16>, vector<64x16xbf16>, vector<8x16xf32> -> vector<8x16xf32>
    %c0_9 = arith.constant 0 : index
    %c0_10 = arith.constant 0 : index
    %c0_11 = arith.constant 0 : index
    %c0_12 = arith.constant 0 : index
    %9 = vector.load %arg4[%c0_9, %c0_10, %c0_11, %c0_12] : memref<4x4x1x16xf32, #tpu.memory_space<vmem>>, vector<1x1x1x16xf32>
    %10 = vector.shape_cast %9 : vector<1x1x1x16xf32> to vector<1x16xf32>
    %11 = vector.broadcast %10 : vector<1x16xf32> to vector<8x16xf32>
    %12 = arith.addf %8, %11 : vector<8x16xf32>
    %c0_13 = arith.constant 0 : index
    %c0_14 = arith.constant 0 : index
    %c0_15 = arith.constant 0 : index
    %c0_16 = arith.constant 0 : index
    %13 = vector.load %arg5[%c0_13, %c0_14, %c0_15, %c0_16] : memref<4x4x64x16xbf16, #tpu.memory_space<vmem>>, vector<1x1x64x16xbf16>
    %14 = vector.shape_cast %13 : vector<1x1x64x16xbf16> to vector<64x16xbf16>
    %cst_17 = arith.constant dense<0.000000e+00> : vector<8x16xf32>
    %15 = tpu.matmul %4, %14, %cst_17 {dimension_numbers = #tpu.dot_dimension_numbers<[1], [0], [0], [1], [0, 0, 1, 1], [], []>} : vector<8x64xbf16>, vector<64x16xbf16>, vector<8x16xf32> -> vector<8x16xf32>
    %c0_18 = arith.constant 0 : index
    %c0_19 = arith.constant 0 : index
    %c0_20 = arith.constant 0 : index
    %c0_21 = arith.constant 0 : index
    %16 = vector.load %arg6[%c0_18, %c0_19, %c0_20, %c0_21] : memref<4x4x1x16xf32, #tpu.memory_space<vmem>>, vector<1x1x1x16xf32>
    %17 = vector.shape_cast %16 : vector<1x1x1x16xf32> to vector<1x16xf32>
    %18 = vector.broadcast %17 : vector<1x16xf32> to vector<8x16xf32>
    %19 = arith.addf %15, %18 : vector<8x16xf32>
    %c0_22 = arith.constant 0 : index
    %c0_23 = arith.constant 0 : index
    %c0_24 = arith.constant 0 : index
    %c0_25 = arith.constant 0 : index
    %20 = vector.load %arg7[%c0_22, %c0_23, %c0_24, %c0_25] : memref<4x4x64x16xbf16, #tpu.memory_space<vmem>>, vector<1x1x64x16xbf16>
    %21 = vector.shape_cast %20 : vector<1x1x64x16xbf16> to vector<64x16xbf16>
    %cst_26 = arith.constant dense<0.000000e+00> : vector<8x16xf32>
    %22 = tpu.matmul %4, %21, %cst_26 {dimension_numbers = #tpu.dot_dimension_numbers<[1], [0], [0], [1], [0, 0, 1, 1], [], []>} : vector<8x64xbf16>, vector<64x16xbf16>, vector<8x16xf32> -> vector<8x16xf32>
    %c0_27 = arith.constant 0 : index
    %c0_28 = arith.constant 0 : index
    %c0_29 = arith.constant 0 : index
    %c0_30 = arith.constant 0 : index
    %23 = vector.load %arg8[%c0_27, %c0_28, %c0_29, %c0_30] : memref<4x4x1x16xf32, #tpu.memory_space<vmem>>, vector<1x1x1x16xf32>
    %24 = vector.shape_cast %23 : vector<1x1x1x16xf32> to vector<1x16xf32>
    %25 = vector.broadcast %24 : vector<1x16xf32> to vector<8x16xf32>
    %26 = arith.addf %22, %25 : vector<8x16xf32>
    %27 = arith.truncf %12 : vector<8x16xf32> to vector<8x16xbf16>
    %28 = arith.truncf %19 : vector<8x16xf32> to vector<8x16xbf16>
    %cst_31 = arith.constant dense<0.000000e+00> : vector<8x8xf32>
    %29 = tpu.matmul %27, %28, %cst_31 {dimension_numbers = #tpu.dot_dimension_numbers<[1], [1], [0], [0], [0, 0, 1, 0], [], []>} : vector<8x16xbf16>, vector<8x16xbf16>, vector<8x8xf32> -> vector<8x8xf32>
    %cst_32 = arith.constant dense<0xFF800000> : vector<8xf32>
    %30 = vector.multi_reduction <maximumf>, %29, %cst_32 [1] : vector<8x8xf32> to vector<8xf32>
    %31 = vector.shape_cast %30 : vector<8xf32> to vector<8x1xf32>
    %32 = vector.broadcast %31 : vector<8x1xf32> to vector<8x8xf32>
    %33 = arith.subf %29, %32 : vector<8x8xf32>
    %34 = math.exp %33 : vector<8x8xf32>
    %cst_33 = arith.constant dense<0.000000e+00> : vector<8xf32>
    %35 = vector.multi_reduction <add>, %34, %cst_33 [1] : vector<8x8xf32> to vector<8xf32>
    %36 = vector.shape_cast %35 : vector<8xf32> to vector<8x1xf32>
    %37 = tpu.reciprocal %36 {approx = true} : vector<8x1xf32> -> vector<8x1xf32>
    %38 = vector.broadcast %37 : vector<8x1xf32> to vector<8x8xf32>
    %39 = arith.mulf %34, %38 : vector<8x8xf32>
    %40 = arith.truncf %39 : vector<8x8xf32> to vector<8x8xbf16>
    %41 = arith.truncf %26 : vector<8x16xf32> to vector<8x16xbf16>
    %cst_34 = arith.constant dense<0.000000e+00> : vector<8x16xf32>
    %42 = tpu.matmul %40, %41, %cst_34 {dimension_numbers = #tpu.dot_dimension_numbers<[1], [0], [0], [1], [0, 0, 1, 1], [], []>} : vector<8x8xbf16>, vector<8x16xbf16>, vector<8x16xf32> -> vector<8x16xf32>
    %43 = arith.truncf %42 : vector<8x16xf32> to vector<8x16xbf16>
    %c0_35 = arith.constant 0 : index
    %c0_36 = arith.constant 0 : index
    %c0_37 = arith.constant 0 : index
    %c0_38 = arith.constant 0 : index
    %44 = vector.load %arg9[%c0_35, %c0_36, %c0_37, %c0_38] : memref<4x4x16x64xbf16, #tpu.memory_space<vmem>>, vector<1x1x16x64xbf16>
    %45 = vector.shape_cast %44 : vector<1x1x16x64xbf16> to vector<16x64xbf16>
    %cst_39 = arith.constant dense<0.000000e+00> : vector<8x64xf32>
    %46 = tpu.matmul %43, %45, %cst_39 {dimension_numbers = #tpu.dot_dimension_numbers<[1], [0], [0], [1], [0, 0, 1, 1], [], []>} : vector<8x16xbf16>, vector<16x64xbf16>, vector<8x64xf32> -> vector<8x64xf32>
    %47 = arith.addf %5, %46 : vector<8x64xf32>
    %c0_40 = arith.constant 0 : index
    %c1 = arith.constant 1 : index
    %c0_41 = arith.constant 0 : index
    %c0_42 = arith.constant 0 : index
    %48 = vector.load %arg3[%c0_40, %c1, %c0_41, %c0_42] : memref<4x4x64x16xbf16, #tpu.memory_space<vmem>>, vector<1x1x64x16xbf16>
    %49 = vector.shape_cast %48 : vector<1x1x64x16xbf16> to vector<64x16xbf16>
    %cst_43 = arith.constant dense<0.000000e+00> : vector<8x16xf32>
    %50 = tpu.matmul %4, %49, %cst_43 {dimension_numbers = #tpu.dot_dimension_numbers<[1], [0], [0], [1], [0, 0, 1, 1], [], []>} : vector<8x64xbf16>, vector<64x16xbf16>, vector<8x16xf32> -> vector<8x16xf32>
    %c0_44 = arith.constant 0 : index
    %c1_45 = arith.constant 1 : index
    %c0_46 = arith.constant 0 : index
    %c0_47 = arith.constant 0 : index
    %51 = vector.load %arg4[%c0_44, %c1_45, %c0_46, %c0_47] : memref<4x4x1x16xf32, #tpu.memory_space<vmem>>, vector<1x1x1x16xf32>
    %52 = vector.shape_cast %51 : vector<1x1x1x16xf32> to vector<1x16xf32>
    %53 = vector.broadcast %52 : vector<1x16xf32> to vector<8x16xf32>
    %54 = arith.addf %50, %53 : vector<8x16xf32>
    %c0_48 = arith.constant 0 : index
    %c1_49 = arith.constant 1 : index
    %c0_50 = arith.constant 0 : index
    %c0_51 = arith.constant 0 : index
    %55 = vector.load %arg5[%c0_48, %c1_49, %c0_50, %c0_51] : memref<4x4x64x16xbf16, #tpu.memory_space<vmem>>, vector<1x1x64x16xbf16>
    %56 = vector.shape_cast %55 : vector<1x1x64x16xbf16> to vector<64x16xbf16>
    %cst_52 = arith.constant dense<0.000000e+00> : vector<8x16xf32>
    %57 = tpu.matmul %4, %56, %cst_52 {dimension_numbers = #tpu.dot_dimension_numbers<[1], [0], [0], [1], [0, 0, 1, 1], [], []>} : vector<8x64xbf16>, vector<64x16xbf16>, vector<8x16xf32> -> vector<8x16xf32>
    %c0_53 = arith.constant 0 : index
    %c1_54 = arith.constant 1 : index
    %c0_55 = arith.constant 0 : index
    %c0_56 = arith.constant 0 : index
    %58 = vector.load %arg6[%c0_53, %c1_54, %c0_55, %c0_56] : memref<4x4x1x16xf32, #tpu.memory_space<vmem>>, vector<1x1x1x16xf32>
    %59 = vector.shape_cast %58 : vector<1x1x1x16xf32> to vector<1x16xf32>
    %60 = vector.broadcast %59 : vector<1x16xf32> to vector<8x16xf32>
    %61 = arith.addf %57, %60 : vector<8x16xf32>
    %c0_57 = arith.constant 0 : index
    %c1_58 = arith.constant 1 : index
    %c0_59 = arith.constant 0 : index
    %c0_60 = arith.constant 0 : index
    %62 = vector.load %arg7[%c0_57, %c1_58, %c0_59, %c0_60] : memref<4x4x64x16xbf16, #tpu.memory_space<vmem>>, vector<1x1x64x16xbf16>
    %63 = vector.shape_cast %62 : vector<1x1x64x16xbf16> to vector<64x16xbf16>
    %cst_61 = arith.constant dense<0.000000e+00> : vector<8x16xf32>
    %64 = tpu.matmul %4, %63, %cst_61 {dimension_numbers = #tpu.dot_dimension_numbers<[1], [0], [0], [1], [0, 0, 1, 1], [], []>} : vector<8x64xbf16>, vector<64x16xbf16>, vector<8x16xf32> -> vector<8x16xf32>
    %c0_62 = arith.constant 0 : index
    %c1_63 = arith.constant 1 : index
    %c0_64 = arith.constant 0 : index
    %c0_65 = arith.constant 0 : index
    %65 = vector.load %arg8[%c0_62, %c1_63, %c0_64, %c0_65] : memref<4x4x1x16xf32, #tpu.memory_space<vmem>>, vector<1x1x1x16xf32>
    %66 = vector.shape_cast %65 : vector<1x1x1x16xf32> to vector<1x16xf32>
    %67 = vector.broadcast %66 : vector<1x16xf32> to vector<8x16xf32>
    %68 = arith.addf %64, %67 : vector<8x16xf32>
    %69 = arith.truncf %54 : vector<8x16xf32> to vector<8x16xbf16>
    %70 = arith.truncf %61 : vector<8x16xf32> to vector<8x16xbf16>
    %cst_66 = arith.constant dense<0.000000e+00> : vector<8x8xf32>
    %71 = tpu.matmul %69, %70, %cst_66 {dimension_numbers = #tpu.dot_dimension_numbers<[1], [1], [0], [0], [0, 0, 1, 0], [], []>} : vector<8x16xbf16>, vector<8x16xbf16>, vector<8x8xf32> -> vector<8x8xf32>
    %cst_67 = arith.constant dense<0xFF800000> : vector<8xf32>
    %72 = vector.multi_reduction <maximumf>, %71, %cst_67 [1] : vector<8x8xf32> to vector<8xf32>
    %73 = vector.shape_cast %72 : vector<8xf32> to vector<8x1xf32>
    %74 = vector.broadcast %73 : vector<8x1xf32> to vector<8x8xf32>
    %75 = arith.subf %71, %74 : vector<8x8xf32>
    %76 = math.exp %75 : vector<8x8xf32>
    %cst_68 = arith.constant dense<0.000000e+00> : vector<8xf32>
    %77 = vector.multi_reduction <add>, %76, %cst_68 [1] : vector<8x8xf32> to vector<8xf32>
    %78 = vector.shape_cast %77 : vector<8xf32> to vector<8x1xf32>
    %79 = tpu.reciprocal %78 {approx = true} : vector<8x1xf32> -> vector<8x1xf32>
    %80 = vector.broadcast %79 : vector<8x1xf32> to vector<8x8xf32>
    %81 = arith.mulf %76, %80 : vector<8x8xf32>
    %82 = arith.truncf %81 : vector<8x8xf32> to vector<8x8xbf16>
    %83 = arith.truncf %68 : vector<8x16xf32> to vector<8x16xbf16>
    %cst_69 = arith.constant dense<0.000000e+00> : vector<8x16xf32>
    %84 = tpu.matmul %82, %83, %cst_69 {dimension_numbers = #tpu.dot_dimension_numbers<[1], [0], [0], [1], [0, 0, 1, 1], [], []>} : vector<8x8xbf16>, vector<8x16xbf16>, vector<8x16xf32> -> vector<8x16xf32>
    %85 = arith.truncf %84 : vector<8x16xf32> to vector<8x16xbf16>
    %c0_70 = arith.constant 0 : index
    %c1_71 = arith.constant 1 : index
    %c0_72 = arith.constant 0 : index
    %c0_73 = arith.constant 0 : index
    %86 = vector.load %arg9[%c0_70, %c1_71, %c0_72, %c0_73] : memref<4x4x16x64xbf16, #tpu.memory_space<vmem>>, vector<1x1x16x64xbf16>
    %87 = vector.shape_cast %86 : vector<1x1x16x64xbf16> to vector<16x64xbf16>
    %cst_74 = arith.constant dense<0.000000e+00> : vector<8x64xf32>
    %88 = tpu.matmul %85, %87, %cst_74 {dimension_numbers = #tpu.dot_dimension_numbers<[1], [0], [0], [1], [0, 0, 1, 1], [], []>} : vector<8x16xbf16>, vector<16x64xbf16>, vector<8x64xf32> -> vector<8x64xf32>
    %89 = arith.addf %47, %88 : vector<8x64xf32>
    %c0_75 = arith.constant 0 : index
    %c2 = arith.constant 2 : index
    %c0_76 = arith.constant 0 : index
    %c0_77 = arith.constant 0 : index
    %90 = vector.load %arg3[%c0_75, %c2, %c0_76, %c0_77] : memref<4x4x64x16xbf16, #tpu.memory_space<vmem>>, vector<1x1x64x16xbf16>
    %91 = vector.shape_cast %90 : vector<1x1x64x16xbf16> to vector<64x16xbf16>
    %cst_78 = arith.constant dense<0.000000e+00> : vector<8x16xf32>
    %92 = tpu.matmul %4, %91, %cst_78 {dimension_numbers = #tpu.dot_dimension_numbers<[1], [0], [0], [1], [0, 0, 1, 1], [], []>} : vector<8x64xbf16>, vector<64x16xbf16>, vector<8x16xf32> -> vector<8x16xf32>
    %c0_79 = arith.constant 0 : index
    %c2_80 = arith.constant 2 : index
    %c0_81 = arith.constant 0 : index
    %c0_82 = arith.constant 0 : index
    %93 = vector.load %arg4[%c0_79, %c2_80, %c0_81, %c0_82] : memref<4x4x1x16xf32, #tpu.memory_space<vmem>>, vector<1x1x1x16xf32>
    %94 = vector.shape_cast %93 : vector<1x1x1x16xf32> to vector<1x16xf32>
    %95 = vector.broadcast %94 : vector<1x16xf32> to vector<8x16xf32>
    %96 = arith.addf %92, %95 : vector<8x16xf32>
    %c0_83 = arith.constant 0 : index
    %c2_84 = arith.constant 2 : index
    %c0_85 = arith.constant 0 : index
    %c0_86 = arith.constant 0 : index
    %97 = vector.load %arg5[%c0_83, %c2_84, %c0_85, %c0_86] : memref<4x4x64x16xbf16, #tpu.memory_space<vmem>>, vector<1x1x64x16xbf16>
    %98 = vector.shape_cast %97 : vector<1x1x64x16xbf16> to vector<64x16xbf16>
    %cst_87 = arith.constant dense<0.000000e+00> : vector<8x16xf32>
    %99 = tpu.matmul %4, %98, %cst_87 {dimension_numbers = #tpu.dot_dimension_numbers<[1], [0], [0], [1], [0, 0, 1, 1], [], []>} : vector<8x64xbf16>, vector<64x16xbf16>, vector<8x16xf32> -> vector<8x16xf32>
    %c0_88 = arith.constant 0 : index
    %c2_89 = arith.constant 2 : index
    %c0_90 = arith.constant 0 : index
    %c0_91 = arith.constant 0 : index
    %100 = vector.load %arg6[%c0_88, %c2_89, %c0_90, %c0_91] : memref<4x4x1x16xf32, #tpu.memory_space<vmem>>, vector<1x1x1x16xf32>
    %101 = vector.shape_cast %100 : vector<1x1x1x16xf32> to vector<1x16xf32>
    %102 = vector.broadcast %101 : vector<1x16xf32> to vector<8x16xf32>
    %103 = arith.addf %99, %102 : vector<8x16xf32>
    %c0_92 = arith.constant 0 : index
    %c2_93 = arith.constant 2 : index
    %c0_94 = arith.constant 0 : index
    %c0_95 = arith.constant 0 : index
    %104 = vector.load %arg7[%c0_92, %c2_93, %c0_94, %c0_95] : memref<4x4x64x16xbf16, #tpu.memory_space<vmem>>, vector<1x1x64x16xbf16>
    %105 = vector.shape_cast %104 : vector<1x1x64x16xbf16> to vector<64x16xbf16>
    %cst_96 = arith.constant dense<0.000000e+00> : vector<8x16xf32>
    %106 = tpu.matmul %4, %105, %cst_96 {dimension_numbers = #tpu.dot_dimension_numbers<[1], [0], [0], [1], [0, 0, 1, 1], [], []>} : vector<8x64xbf16>, vector<64x16xbf16>, vector<8x16xf32> -> vector<8x16xf32>
    %c0_97 = arith.constant 0 : index
    %c2_98 = arith.constant 2 : index
    %c0_99 = arith.constant 0 : index
    %c0_100 = arith.constant 0 : index
    %107 = vector.load %arg8[%c0_97, %c2_98, %c0_99, %c0_100] : memref<4x4x1x16xf32, #tpu.memory_space<vmem>>, vector<1x1x1x16xf32>
    %108 = vector.shape_cast %107 : vector<1x1x1x16xf32> to vector<1x16xf32>
    %109 = vector.broadcast %108 : vector<1x16xf32> to vector<8x16xf32>
    %110 = arith.addf %106, %109 : vector<8x16xf32>
    %111 = arith.truncf %96 : vector<8x16xf32> to vector<8x16xbf16>
    %112 = arith.truncf %103 : vector<8x16xf32> to vector<8x16xbf16>
    %cst_101 = arith.constant dense<0.000000e+00> : vector<8x8xf32>
    %113 = tpu.matmul %111, %112, %cst_101 {dimension_numbers = #tpu.dot_dimension_numbers<[1], [1], [0], [0], [0, 0, 1, 0], [], []>} : vector<8x16xbf16>, vector<8x16xbf16>, vector<8x8xf32> -> vector<8x8xf32>
    %cst_102 = arith.constant dense<0xFF800000> : vector<8xf32>
    %114 = vector.multi_reduction <maximumf>, %113, %cst_102 [1] : vector<8x8xf32> to vector<8xf32>
    %115 = vector.shape_cast %114 : vector<8xf32> to vector<8x1xf32>
    %116 = vector.broadcast %115 : vector<8x1xf32> to vector<8x8xf32>
    %117 = arith.subf %113, %116 : vector<8x8xf32>
    %118 = math.exp %117 : vector<8x8xf32>
    %cst_103 = arith.constant dense<0.000000e+00> : vector<8xf32>
    %119 = vector.multi_reduction <add>, %118, %cst_103 [1] : vector<8x8xf32> to vector<8xf32>
    %120 = vector.shape_cast %119 : vector<8xf32> to vector<8x1xf32>
    %121 = tpu.reciprocal %120 {approx = true} : vector<8x1xf32> -> vector<8x1xf32>
    %122 = vector.broadcast %121 : vector<8x1xf32> to vector<8x8xf32>
    %123 = arith.mulf %118, %122 : vector<8x8xf32>
    %124 = arith.truncf %123 : vector<8x8xf32> to vector<8x8xbf16>
    %125 = arith.truncf %110 : vector<8x16xf32> to vector<8x16xbf16>
    %cst_104 = arith.constant dense<0.000000e+00> : vector<8x16xf32>
    %126 = tpu.matmul %124, %125, %cst_104 {dimension_numbers = #tpu.dot_dimension_numbers<[1], [0], [0], [1], [0, 0, 1, 1], [], []>} : vector<8x8xbf16>, vector<8x16xbf16>, vector<8x16xf32> -> vector<8x16xf32>
    %127 = arith.truncf %126 : vector<8x16xf32> to vector<8x16xbf16>
    %c0_105 = arith.constant 0 : index
    %c2_106 = arith.constant 2 : index
    %c0_107 = arith.constant 0 : index
    %c0_108 = arith.constant 0 : index
    %128 = vector.load %arg9[%c0_105, %c2_106, %c0_107, %c0_108] : memref<4x4x16x64xbf16, #tpu.memory_space<vmem>>, vector<1x1x16x64xbf16>
    %129 = vector.shape_cast %128 : vector<1x1x16x64xbf16> to vector<16x64xbf16>
    %cst_109 = arith.constant dense<0.000000e+00> : vector<8x64xf32>
    %130 = tpu.matmul %127, %129, %cst_109 {dimension_numbers = #tpu.dot_dimension_numbers<[1], [0], [0], [1], [0, 0, 1, 1], [], []>} : vector<8x16xbf16>, vector<16x64xbf16>, vector<8x64xf32> -> vector<8x64xf32>
    %131 = arith.addf %89, %130 : vector<8x64xf32>
    %c0_110 = arith.constant 0 : index
    %c3 = arith.constant 3 : index
    %c0_111 = arith.constant 0 : index
    %c0_112 = arith.constant 0 : index
    %132 = vector.load %arg3[%c0_110, %c3, %c0_111, %c0_112] : memref<4x4x64x16xbf16, #tpu.memory_space<vmem>>, vector<1x1x64x16xbf16>
    %133 = vector.shape_cast %132 : vector<1x1x64x16xbf16> to vector<64x16xbf16>
    %cst_113 = arith.constant dense<0.000000e+00> : vector<8x16xf32>
    %134 = tpu.matmul %4, %133, %cst_113 {dimension_numbers = #tpu.dot_dimension_numbers<[1], [0], [0], [1], [0, 0, 1, 1], [], []>} : vector<8x64xbf16>, vector<64x16xbf16>, vector<8x16xf32> -> vector<8x16xf32>
    %c0_114 = arith.constant 0 : index
    %c3_115 = arith.constant 3 : index
    %c0_116 = arith.constant 0 : index
    %c0_117 = arith.constant 0 : index
    %135 = vector.load %arg4[%c0_114, %c3_115, %c0_116, %c0_117] : memref<4x4x1x16xf32, #tpu.memory_space<vmem>>, vector<1x1x1x16xf32>
    %136 = vector.shape_cast %135 : vector<1x1x1x16xf32> to vector<1x16xf32>
    %137 = vector.broadcast %136 : vector<1x16xf32> to vector<8x16xf32>
    %138 = arith.addf %134, %137 : vector<8x16xf32>
    %c0_118 = arith.constant 0 : index
    %c3_119 = arith.constant 3 : index
    %c0_120 = arith.constant 0 : index
    %c0_121 = arith.constant 0 : index
    %139 = vector.load %arg5[%c0_118, %c3_119, %c0_120, %c0_121] : memref<4x4x64x16xbf16, #tpu.memory_space<vmem>>, vector<1x1x64x16xbf16>
    %140 = vector.shape_cast %139 : vector<1x1x64x16xbf16> to vector<64x16xbf16>
    %cst_122 = arith.constant dense<0.000000e+00> : vector<8x16xf32>
    %141 = tpu.matmul %4, %140, %cst_122 {dimension_numbers = #tpu.dot_dimension_numbers<[1], [0], [0], [1], [0, 0, 1, 1], [], []>} : vector<8x64xbf16>, vector<64x16xbf16>, vector<8x16xf32> -> vector<8x16xf32>
    %c0_123 = arith.constant 0 : index
    %c3_124 = arith.constant 3 : index
    %c0_125 = arith.constant 0 : index
    %c0_126 = arith.constant 0 : index
    %142 = vector.load %arg6[%c0_123, %c3_124, %c0_125, %c0_126] : memref<4x4x1x16xf32, #tpu.memory_space<vmem>>, vector<1x1x1x16xf32>
    %143 = vector.shape_cast %142 : vector<1x1x1x16xf32> to vector<1x16xf32>
    %144 = vector.broadcast %143 : vector<1x16xf32> to vector<8x16xf32>
    %145 = arith.addf %141, %144 : vector<8x16xf32>
    %c0_127 = arith.constant 0 : index
    %c3_128 = arith.constant 3 : index
    %c0_129 = arith.constant 0 : index
    %c0_130 = arith.constant 0 : index
    %146 = vector.load %arg7[%c0_127, %c3_128, %c0_129, %c0_130] : memref<4x4x64x16xbf16, #tpu.memory_space<vmem>>, vector<1x1x64x16xbf16>
    %147 = vector.shape_cast %146 : vector<1x1x64x16xbf16> to vector<64x16xbf16>
    %cst_131 = arith.constant dense<0.000000e+00> : vector<8x16xf32>
    %148 = tpu.matmul %4, %147, %cst_131 {dimension_numbers = #tpu.dot_dimension_numbers<[1], [0], [0], [1], [0, 0, 1, 1], [], []>} : vector<8x64xbf16>, vector<64x16xbf16>, vector<8x16xf32> -> vector<8x16xf32>
    %c0_132 = arith.constant 0 : index
    %c3_133 = arith.constant 3 : index
    %c0_134 = arith.constant 0 : index
    %c0_135 = arith.constant 0 : index
    %149 = vector.load %arg8[%c0_132, %c3_133, %c0_134, %c0_135] : memref<4x4x1x16xf32, #tpu.memory_space<vmem>>, vector<1x1x1x16xf32>
    %150 = vector.shape_cast %149 : vector<1x1x1x16xf32> to vector<1x16xf32>
    %151 = vector.broadcast %150 : vector<1x16xf32> to vector<8x16xf32>
    %152 = arith.addf %148, %151 : vector<8x16xf32>
    %153 = arith.truncf %138 : vector<8x16xf32> to vector<8x16xbf16>
    %154 = arith.truncf %145 : vector<8x16xf32> to vector<8x16xbf16>
    %cst_136 = arith.constant dense<0.000000e+00> : vector<8x8xf32>
    %155 = tpu.matmul %153, %154, %cst_136 {dimension_numbers = #tpu.dot_dimension_numbers<[1], [1], [0], [0], [0, 0, 1, 0], [], []>} : vector<8x16xbf16>, vector<8x16xbf16>, vector<8x8xf32> -> vector<8x8xf32>
    %cst_137 = arith.constant dense<0xFF800000> : vector<8xf32>
    %156 = vector.multi_reduction <maximumf>, %155, %cst_137 [1] : vector<8x8xf32> to vector<8xf32>
    %157 = vector.shape_cast %156 : vector<8xf32> to vector<8x1xf32>
    %158 = vector.broadcast %157 : vector<8x1xf32> to vector<8x8xf32>
    %159 = arith.subf %155, %158 : vector<8x8xf32>
    %160 = math.exp %159 : vector<8x8xf32>
    %cst_138 = arith.constant dense<0.000000e+00> : vector<8xf32>
    %161 = vector.multi_reduction <add>, %160, %cst_138 [1] : vector<8x8xf32> to vector<8xf32>
    %162 = vector.shape_cast %161 : vector<8xf32> to vector<8x1xf32>
    %163 = tpu.reciprocal %162 {approx = true} : vector<8x1xf32> -> vector<8x1xf32>
    %164 = vector.broadcast %163 : vector<8x1xf32> to vector<8x8xf32>
    %165 = arith.mulf %160, %164 : vector<8x8xf32>
    %166 = arith.truncf %165 : vector<8x8xf32> to vector<8x8xbf16>
    %167 = arith.truncf %152 : vector<8x16xf32> to vector<8x16xbf16>
    %cst_139 = arith.constant dense<0.000000e+00> : vector<8x16xf32>
    %168 = tpu.matmul %166, %167, %cst_139 {dimension_numbers = #tpu.dot_dimension_numbers<[1], [0], [0], [1], [0, 0, 1, 1], [], []>} : vector<8x8xbf16>, vector<8x16xbf16>, vector<8x16xf32> -> vector<8x16xf32>
    %169 = arith.truncf %168 : vector<8x16xf32> to vector<8x16xbf16>
    %c0_140 = arith.constant 0 : index
    %c3_141 = arith.constant 3 : index
    %c0_142 = arith.constant 0 : index
    %c0_143 = arith.constant 0 : index
    %170 = vector.load %arg9[%c0_140, %c3_141, %c0_142, %c0_143] : memref<4x4x16x64xbf16, #tpu.memory_space<vmem>>, vector<1x1x16x64xbf16>
    %171 = vector.shape_cast %170 : vector<1x1x16x64xbf16> to vector<16x64xbf16>
    %cst_144 = arith.constant dense<0.000000e+00> : vector<8x64xf32>
    %172 = tpu.matmul %169, %171, %cst_144 {dimension_numbers = #tpu.dot_dimension_numbers<[1], [0], [0], [1], [0, 0, 1, 1], [], []>} : vector<8x16xbf16>, vector<16x64xbf16>, vector<8x64xf32> -> vector<8x64xf32>
    %173 = arith.addf %131, %172 : vector<8x64xf32>
    %c0_145 = arith.constant 0 : index
    %c0_146 = arith.constant 0 : index
    %c0_147 = arith.constant 0 : index
    %174 = vector.load %arg10[%c0_145, %c0_146, %c0_147] : memref<4x1x64xf32, #tpu.memory_space<vmem>>, vector<1x1x64xf32>
    %175 = vector.shape_cast %174 : vector<1x1x64xf32> to vector<1x64xf32>
    %176 = vector.broadcast %175 : vector<1x64xf32> to vector<8x64xf32>
    %177 = arith.addf %173, %176 : vector<8x64xf32>
    %178 = arith.addf %3, %177 : vector<8x64xf32>
    %c0_148 = arith.constant 0 : index
    %c0_149 = arith.constant 0 : index
    %c0_150 = arith.constant 0 : index
    %179 = vector.load %arg11[%c0_148, %c0_149, %c0_150] : memref<4x1x64xf32, #tpu.memory_space<vmem>>, vector<1x1x64xf32>
    %180 = vector.shape_cast %179 : vector<1x1x64xf32> to vector<1x64xf32>
    %c0_151 = arith.constant 0 : index
    %c0_152 = arith.constant 0 : index
    %c0_153 = arith.constant 0 : index
    %181 = vector.load %arg12[%c0_151, %c0_152, %c0_153] : memref<4x1x64xf32, #tpu.memory_space<vmem>>, vector<1x1x64xf32>
    %182 = vector.shape_cast %181 : vector<1x1x64xf32> to vector<1x64xf32>
    %cst_154 = arith.constant dense<0.000000e+00> : vector<8xf32>
    %183 = vector.multi_reduction <add>, %178, %cst_154 [1] : vector<8x64xf32> to vector<8xf32>
    %184 = vector.shape_cast %183 : vector<8xf32> to vector<8x1xf32>
    %cst_155 = arith.constant 6.400000e+01 : f32
    %185 = vector.broadcast %cst_155 : f32 to vector<8x1xf32>
    %186 = arith.divf %184, %185 : vector<8x1xf32>
    %187 = vector.broadcast %186 : vector<8x1xf32> to vector<8x64xf32>
    %188 = arith.subf %178, %187 : vector<8x64xf32>
    %189 = arith.mulf %188, %188 : vector<8x64xf32>
    %cst_156 = arith.constant dense<0.000000e+00> : vector<8xf32>
    %190 = vector.multi_reduction <add>, %189, %cst_156 [1] : vector<8x64xf32> to vector<8xf32>
    %191 = vector.shape_cast %190 : vector<8xf32> to vector<8x1xf32>
    %cst_157 = arith.constant 6.400000e+01 : f32
    %192 = vector.broadcast %cst_157 : f32 to vector<8x1xf32>
    %193 = arith.divf %191, %192 : vector<8x1xf32>
    %194 = vector.broadcast %186 : vector<8x1xf32> to vector<8x64xf32>
    %195 = arith.subf %178, %194 : vector<8x64xf32>
    %cst_158 = arith.constant 9.99999974E-6 : f32
    %196 = vector.broadcast %cst_158 : f32 to vector<8x1xf32>
    %197 = arith.addf %193, %196 : vector<8x1xf32>
    %198 = math.rsqrt %197 : vector<8x1xf32>
    %199 = vector.broadcast %198 : vector<8x1xf32> to vector<8x64xf32>
    %200 = arith.mulf %195, %199 : vector<8x64xf32>
    %201 = vector.broadcast %180 : vector<1x64xf32> to vector<8x64xf32>
    %202 = arith.mulf %200, %201 : vector<8x64xf32>
    %203 = vector.broadcast %182 : vector<1x64xf32> to vector<8x64xf32>
    %204 = arith.addf %202, %203 : vector<8x64xf32>
    %205 = arith.truncf %204 : vector<8x64xf32> to vector<8x64xbf16>
    %cst_159 = arith.constant 0.000000e+00 : f32
    %206 = vector.broadcast %cst_159 : f32 to vector<8x64xf32>
    %c0_160 = arith.constant 0 : index
    %c0_161 = arith.constant 0 : index
    %c0_162 = arith.constant 0 : index
    %207 = vector.load %arg13[%c0_160, %c0_161, %c0_162] : memref<4x64x2048xbf16, #tpu.memory_space<vmem>>, vector<1x64x2048xbf16>
    %208 = vector.shape_cast %207 : vector<1x64x2048xbf16> to vector<64x2048xbf16>
    %cst_163 = arith.constant dense<0.000000e+00> : vector<8x2048xf32>
    %209 = tpu.matmul %205, %208, %cst_163 {dimension_numbers = #tpu.dot_dimension_numbers<[1], [0], [0], [1], [0, 0, 1, 1], [], []>} : vector<8x64xbf16>, vector<64x2048xbf16>, vector<8x2048xf32> -> vector<8x2048xf32>
    %c0_164 = arith.constant 0 : index
    %c0_165 = arith.constant 0 : index
    %c0_166 = arith.constant 0 : index
    %210 = vector.load %arg14[%c0_164, %c0_165, %c0_166] : memref<4x1x2048xf32, #tpu.memory_space<vmem>>, vector<1x1x2048xf32>
    %211 = vector.shape_cast %210 : vector<1x1x2048xf32> to vector<1x2048xf32>
    %212 = vector.broadcast %211 : vector<1x2048xf32> to vector<8x2048xf32>
    %213 = arith.addf %209, %212 : vector<8x2048xf32>
    %cst_167 = arith.constant 0.000000e+00 : f32
    %214 = vector.broadcast %cst_167 : f32 to vector<8x2048xf32>
    %215 = arith.maximumf %213, %214 : vector<8x2048xf32>
    %216 = arith.truncf %215 : vector<8x2048xf32> to vector<8x2048xbf16>
    %c0_168 = arith.constant 0 : index
    %c0_169 = arith.constant 0 : index
    %c0_170 = arith.constant 0 : index
    %217 = vector.load %arg15[%c0_168, %c0_169, %c0_170] : memref<4x2048x64xbf16, #tpu.memory_space<vmem>>, vector<1x2048x64xbf16>
    %218 = vector.shape_cast %217 : vector<1x2048x64xbf16> to vector<2048x64xbf16>
    %cst_171 = arith.constant dense<0.000000e+00> : vector<8x64xf32>
    %219 = tpu.matmul %216, %218, %cst_171 {dimension_numbers = #tpu.dot_dimension_numbers<[1], [0], [0], [1], [0, 0, 1, 1], [], []>} : vector<8x2048xbf16>, vector<2048x64xbf16>, vector<8x64xf32> -> vector<8x64xf32>
    %220 = arith.addf %206, %219 : vector<8x64xf32>
    %c0_172 = arith.constant 0 : index
    %c0_173 = arith.constant 0 : index
    %c0_174 = arith.constant 0 : index
    %221 = vector.load %arg16[%c0_172, %c0_173, %c0_174] : memref<4x1x64xf32, #tpu.memory_space<vmem>>, vector<1x1x64xf32>
    %222 = vector.shape_cast %221 : vector<1x1x64xf32> to vector<1x64xf32>
    %223 = vector.broadcast %222 : vector<1x64xf32> to vector<8x64xf32>
    %224 = arith.addf %220, %223 : vector<8x64xf32>
    %225 = arith.addf %204, %224 : vector<8x64xf32>
    %c0_175 = arith.constant 0 : index
    %c0_176 = arith.constant 0 : index
    %c0_177 = arith.constant 0 : index
    %226 = vector.load %arg17[%c0_175, %c0_176, %c0_177] : memref<4x1x64xf32, #tpu.memory_space<vmem>>, vector<1x1x64xf32>
    %227 = vector.shape_cast %226 : vector<1x1x64xf32> to vector<1x64xf32>
    %c0_178 = arith.constant 0 : index
    %c0_179 = arith.constant 0 : index
    %c0_180 = arith.constant 0 : index
    %228 = vector.load %arg18[%c0_178, %c0_179, %c0_180] : memref<4x1x64xf32, #tpu.memory_space<vmem>>, vector<1x1x64xf32>
    %229 = vector.shape_cast %228 : vector<1x1x64xf32> to vector<1x64xf32>
    %cst_181 = arith.constant dense<0.000000e+00> : vector<8xf32>
    %230 = vector.multi_reduction <add>, %225, %cst_181 [1] : vector<8x64xf32> to vector<8xf32>
    %231 = vector.shape_cast %230 : vector<8xf32> to vector<8x1xf32>
    %cst_182 = arith.constant 6.400000e+01 : f32
    %232 = vector.broadcast %cst_182 : f32 to vector<8x1xf32>
    %233 = arith.divf %231, %232 : vector<8x1xf32>
    %234 = vector.broadcast %233 : vector<8x1xf32> to vector<8x64xf32>
    %235 = arith.subf %225, %234 : vector<8x64xf32>
    %236 = arith.mulf %235, %235 : vector<8x64xf32>
    %cst_183 = arith.constant dense<0.000000e+00> : vector<8xf32>
    %237 = vector.multi_reduction <add>, %236, %cst_183 [1] : vector<8x64xf32> to vector<8xf32>
    %238 = vector.shape_cast %237 : vector<8xf32> to vector<8x1xf32>
    %cst_184 = arith.constant 6.400000e+01 : f32
    %239 = vector.broadcast %cst_184 : f32 to vector<8x1xf32>
    %240 = arith.divf %238, %239 : vector<8x1xf32>
    %241 = vector.broadcast %233 : vector<8x1xf32> to vector<8x64xf32>
    %242 = arith.subf %225, %241 : vector<8x64xf32>
    %cst_185 = arith.constant 9.99999974E-6 : f32
    %243 = vector.broadcast %cst_185 : f32 to vector<8x1xf32>
    %244 = arith.addf %240, %243 : vector<8x1xf32>
    %245 = math.rsqrt %244 : vector<8x1xf32>
    %246 = vector.broadcast %245 : vector<8x1xf32> to vector<8x64xf32>
    %247 = arith.mulf %242, %246 : vector<8x64xf32>
    %248 = vector.broadcast %227 : vector<1x64xf32> to vector<8x64xf32>
    %249 = arith.mulf %247, %248 : vector<8x64xf32>
    %250 = vector.broadcast %229 : vector<1x64xf32> to vector<8x64xf32>
    %251 = arith.addf %249, %250 : vector<8x64xf32>
    %252 = arith.truncf %251 : vector<8x64xf32> to vector<8x64xbf16>
    %cst_186 = arith.constant 0.000000e+00 : f32
    %253 = vector.broadcast %cst_186 : f32 to vector<8x64xf32>
    %c1_187 = arith.constant 1 : index
    %c0_188 = arith.constant 0 : index
    %c0_189 = arith.constant 0 : index
    %c0_190 = arith.constant 0 : index
    %254 = vector.load %arg3[%c1_187, %c0_188, %c0_189, %c0_190] : memref<4x4x64x16xbf16, #tpu.memory_space<vmem>>, vector<1x1x64x16xbf16>
    %255 = vector.shape_cast %254 : vector<1x1x64x16xbf16> to vector<64x16xbf16>
    %cst_191 = arith.constant dense<0.000000e+00> : vector<8x16xf32>
    %256 = tpu.matmul %252, %255, %cst_191 {dimension_numbers = #tpu.dot_dimension_numbers<[1], [0], [0], [1], [0, 0, 1, 1], [], []>} : vector<8x64xbf16>, vector<64x16xbf16>, vector<8x16xf32> -> vector<8x16xf32>
    %c1_192 = arith.constant 1 : index
    %c0_193 = arith.constant 0 : index
    %c0_194 = arith.constant 0 : index
    %c0_195 = arith.constant 0 : index
    %257 = vector.load %arg4[%c1_192, %c0_193, %c0_194, %c0_195] : memref<4x4x1x16xf32, #tpu.memory_space<vmem>>, vector<1x1x1x16xf32>
    %258 = vector.shape_cast %257 : vector<1x1x1x16xf32> to vector<1x16xf32>
    %259 = vector.broadcast %258 : vector<1x16xf32> to vector<8x16xf32>
    %260 = arith.addf %256, %259 : vector<8x16xf32>
    %c1_196 = arith.constant 1 : index
    %c0_197 = arith.constant 0 : index
    %c0_198 = arith.constant 0 : index
    %c0_199 = arith.constant 0 : index
    %261 = vector.load %arg5[%c1_196, %c0_197, %c0_198, %c0_199] : memref<4x4x64x16xbf16, #tpu.memory_space<vmem>>, vector<1x1x64x16xbf16>
    %262 = vector.shape_cast %261 : vector<1x1x64x16xbf16> to vector<64x16xbf16>
    %cst_200 = arith.constant dense<0.000000e+00> : vector<8x16xf32>
    %263 = tpu.matmul %252, %262, %cst_200 {dimension_numbers = #tpu.dot_dimension_numbers<[1], [0], [0], [1], [0, 0, 1, 1], [], []>} : vector<8x64xbf16>, vector<64x16xbf16>, vector<8x16xf32> -> vector<8x16xf32>
    %c1_201 = arith.constant 1 : index
    %c0_202 = arith.constant 0 : index
    %c0_203 = arith.constant 0 : index
    %c0_204 = arith.constant 0 : index
    %264 = vector.load %arg6[%c1_201, %c0_202, %c0_203, %c0_204] : memref<4x4x1x16xf32, #tpu.memory_space<vmem>>, vector<1x1x1x16xf32>
    %265 = vector.shape_cast %264 : vector<1x1x1x16xf32> to vector<1x16xf32>
    %266 = vector.broadcast %265 : vector<1x16xf32> to vector<8x16xf32>
    %267 = arith.addf %263, %266 : vector<8x16xf32>
    %c1_205 = arith.constant 1 : index
    %c0_206 = arith.constant 0 : index
    %c0_207 = arith.constant 0 : index
    %c0_208 = arith.constant 0 : index
    %268 = vector.load %arg7[%c1_205, %c0_206, %c0_207, %c0_208] : memref<4x4x64x16xbf16, #tpu.memory_space<vmem>>, vector<1x1x64x16xbf16>
    %269 = vector.shape_cast %268 : vector<1x1x64x16xbf16> to vector<64x16xbf16>
    %cst_209 = arith.constant dense<0.000000e+00> : vector<8x16xf32>
    %270 = tpu.matmul %252, %269, %cst_209 {dimension_numbers = #tpu.dot_dimension_numbers<[1], [0], [0], [1], [0, 0, 1, 1], [], []>} : vector<8x64xbf16>, vector<64x16xbf16>, vector<8x16xf32> -> vector<8x16xf32>
    %c1_210 = arith.constant 1 : index
    %c0_211 = arith.constant 0 : index
    %c0_212 = arith.constant 0 : index
    %c0_213 = arith.constant 0 : index
    %271 = vector.load %arg8[%c1_210, %c0_211, %c0_212, %c0_213] : memref<4x4x1x16xf32, #tpu.memory_space<vmem>>, vector<1x1x1x16xf32>
    %272 = vector.shape_cast %271 : vector<1x1x1x16xf32> to vector<1x16xf32>
    %273 = vector.broadcast %272 : vector<1x16xf32> to vector<8x16xf32>
    %274 = arith.addf %270, %273 : vector<8x16xf32>
    %275 = arith.truncf %260 : vector<8x16xf32> to vector<8x16xbf16>
    %276 = arith.truncf %267 : vector<8x16xf32> to vector<8x16xbf16>
    %cst_214 = arith.constant dense<0.000000e+00> : vector<8x8xf32>
    %277 = tpu.matmul %275, %276, %cst_214 {dimension_numbers = #tpu.dot_dimension_numbers<[1], [1], [0], [0], [0, 0, 1, 0], [], []>} : vector<8x16xbf16>, vector<8x16xbf16>, vector<8x8xf32> -> vector<8x8xf32>
    %cst_215 = arith.constant dense<0xFF800000> : vector<8xf32>
    %278 = vector.multi_reduction <maximumf>, %277, %cst_215 [1] : vector<8x8xf32> to vector<8xf32>
    %279 = vector.shape_cast %278 : vector<8xf32> to vector<8x1xf32>
    %280 = vector.broadcast %279 : vector<8x1xf32> to vector<8x8xf32>
    %281 = arith.subf %277, %280 : vector<8x8xf32>
    %282 = math.exp %281 : vector<8x8xf32>
    %cst_216 = arith.constant dense<0.000000e+00> : vector<8xf32>
    %283 = vector.multi_reduction <add>, %282, %cst_216 [1] : vector<8x8xf32> to vector<8xf32>
    %284 = vector.shape_cast %283 : vector<8xf32> to vector<8x1xf32>
    %285 = tpu.reciprocal %284 {approx = true} : vector<8x1xf32> -> vector<8x1xf32>
    %286 = vector.broadcast %285 : vector<8x1xf32> to vector<8x8xf32>
    %287 = arith.mulf %282, %286 : vector<8x8xf32>
    %288 = arith.truncf %287 : vector<8x8xf32> to vector<8x8xbf16>
    %289 = arith.truncf %274 : vector<8x16xf32> to vector<8x16xbf16>
    %cst_217 = arith.constant dense<0.000000e+00> : vector<8x16xf32>
    %290 = tpu.matmul %288, %289, %cst_217 {dimension_numbers = #tpu.dot_dimension_numbers<[1], [0], [0], [1], [0, 0, 1, 1], [], []>} : vector<8x8xbf16>, vector<8x16xbf16>, vector<8x16xf32> -> vector<8x16xf32>
    %291 = arith.truncf %290 : vector<8x16xf32> to vector<8x16xbf16>
    %c1_218 = arith.constant 1 : index
    %c0_219 = arith.constant 0 : index
    %c0_220 = arith.constant 0 : index
    %c0_221 = arith.constant 0 : index
    %292 = vector.load %arg9[%c1_218, %c0_219, %c0_220, %c0_221] : memref<4x4x16x64xbf16, #tpu.memory_space<vmem>>, vector<1x1x16x64xbf16>
    %293 = vector.shape_cast %292 : vector<1x1x16x64xbf16> to vector<16x64xbf16>
    %cst_222 = arith.constant dense<0.000000e+00> : vector<8x64xf32>
    %294 = tpu.matmul %291, %293, %cst_222 {dimension_numbers = #tpu.dot_dimension_numbers<[1], [0], [0], [1], [0, 0, 1, 1], [], []>} : vector<8x16xbf16>, vector<16x64xbf16>, vector<8x64xf32> -> vector<8x64xf32>
    %295 = arith.addf %253, %294 : vector<8x64xf32>
    %c1_223 = arith.constant 1 : index
    %c1_224 = arith.constant 1 : index
    %c0_225 = arith.constant 0 : index
    %c0_226 = arith.constant 0 : index
    %296 = vector.load %arg3[%c1_223, %c1_224, %c0_225, %c0_226] : memref<4x4x64x16xbf16, #tpu.memory_space<vmem>>, vector<1x1x64x16xbf16>
    %297 = vector.shape_cast %296 : vector<1x1x64x16xbf16> to vector<64x16xbf16>
    %cst_227 = arith.constant dense<0.000000e+00> : vector<8x16xf32>
    %298 = tpu.matmul %252, %297, %cst_227 {dimension_numbers = #tpu.dot_dimension_numbers<[1], [0], [0], [1], [0, 0, 1, 1], [], []>} : vector<8x64xbf16>, vector<64x16xbf16>, vector<8x16xf32> -> vector<8x16xf32>
    %c1_228 = arith.constant 1 : index
    %c1_229 = arith.constant 1 : index
    %c0_230 = arith.constant 0 : index
    %c0_231 = arith.constant 0 : index
    %299 = vector.load %arg4[%c1_228, %c1_229, %c0_230, %c0_231] : memref<4x4x1x16xf32, #tpu.memory_space<vmem>>, vector<1x1x1x16xf32>
    %300 = vector.shape_cast %299 : vector<1x1x1x16xf32> to vector<1x16xf32>
    %301 = vector.broadcast %300 : vector<1x16xf32> to vector<8x16xf32>
    %302 = arith.addf %298, %301 : vector<8x16xf32>
    %c1_232 = arith.constant 1 : index
    %c1_233 = arith.constant 1 : index
    %c0_234 = arith.constant 0 : index
    %c0_235 = arith.constant 0 : index
    %303 = vector.load %arg5[%c1_232, %c1_233, %c0_234, %c0_235] : memref<4x4x64x16xbf16, #tpu.memory_space<vmem>>, vector<1x1x64x16xbf16>
    %304 = vector.shape_cast %303 : vector<1x1x64x16xbf16> to vector<64x16xbf16>
    %cst_236 = arith.constant dense<0.000000e+00> : vector<8x16xf32>
    %305 = tpu.matmul %252, %304, %cst_236 {dimension_numbers = #tpu.dot_dimension_numbers<[1], [0], [0], [1], [0, 0, 1, 1], [], []>} : vector<8x64xbf16>, vector<64x16xbf16>, vector<8x16xf32> -> vector<8x16xf32>
    %c1_237 = arith.constant 1 : index
    %c1_238 = arith.constant 1 : index
    %c0_239 = arith.constant 0 : index
    %c0_240 = arith.constant 0 : index
    %306 = vector.load %arg6[%c1_237, %c1_238, %c0_239, %c0_240] : memref<4x4x1x16xf32, #tpu.memory_space<vmem>>, vector<1x1x1x16xf32>
    %307 = vector.shape_cast %306 : vector<1x1x1x16xf32> to vector<1x16xf32>
    %308 = vector.broadcast %307 : vector<1x16xf32> to vector<8x16xf32>
    %309 = arith.addf %305, %308 : vector<8x16xf32>
    %c1_241 = arith.constant 1 : index
    %c1_242 = arith.constant 1 : index
    %c0_243 = arith.constant 0 : index
    %c0_244 = arith.constant 0 : index
    %310 = vector.load %arg7[%c1_241, %c1_242, %c0_243, %c0_244] : memref<4x4x64x16xbf16, #tpu.memory_space<vmem>>, vector<1x1x64x16xbf16>
    %311 = vector.shape_cast %310 : vector<1x1x64x16xbf16> to vector<64x16xbf16>
    %cst_245 = arith.constant dense<0.000000e+00> : vector<8x16xf32>
    %312 = tpu.matmul %252, %311, %cst_245 {dimension_numbers = #tpu.dot_dimension_numbers<[1], [0], [0], [1], [0, 0, 1, 1], [], []>} : vector<8x64xbf16>, vector<64x16xbf16>, vector<8x16xf32> -> vector<8x16xf32>
    %c1_246 = arith.constant 1 : index
    %c1_247 = arith.constant 1 : index
    %c0_248 = arith.constant 0 : index
    %c0_249 = arith.constant 0 : index
    %313 = vector.load %arg8[%c1_246, %c1_247, %c0_248, %c0_249] : memref<4x4x1x16xf32, #tpu.memory_space<vmem>>, vector<1x1x1x16xf32>
    %314 = vector.shape_cast %313 : vector<1x1x1x16xf32> to vector<1x16xf32>
    %315 = vector.broadcast %314 : vector<1x16xf32> to vector<8x16xf32>
    %316 = arith.addf %312, %315 : vector<8x16xf32>
    %317 = arith.truncf %302 : vector<8x16xf32> to vector<8x16xbf16>
    %318 = arith.truncf %309 : vector<8x16xf32> to vector<8x16xbf16>
    %cst_250 = arith.constant dense<0.000000e+00> : vector<8x8xf32>
    %319 = tpu.matmul %317, %318, %cst_250 {dimension_numbers = #tpu.dot_dimension_numbers<[1], [1], [0], [0], [0, 0, 1, 0], [], []>} : vector<8x16xbf16>, vector<8x16xbf16>, vector<8x8xf32> -> vector<8x8xf32>
    %cst_251 = arith.constant dense<0xFF800000> : vector<8xf32>
    %320 = vector.multi_reduction <maximumf>, %319, %cst_251 [1] : vector<8x8xf32> to vector<8xf32>
    %321 = vector.shape_cast %320 : vector<8xf32> to vector<8x1xf32>
    %322 = vector.broadcast %321 : vector<8x1xf32> to vector<8x8xf32>
    %323 = arith.subf %319, %322 : vector<8x8xf32>
    %324 = math.exp %323 : vector<8x8xf32>
    %cst_252 = arith.constant dense<0.000000e+00> : vector<8xf32>
    %325 = vector.multi_reduction <add>, %324, %cst_252 [1] : vector<8x8xf32> to vector<8xf32>
    %326 = vector.shape_cast %325 : vector<8xf32> to vector<8x1xf32>
    %327 = tpu.reciprocal %326 {approx = true} : vector<8x1xf32> -> vector<8x1xf32>
    %328 = vector.broadcast %327 : vector<8x1xf32> to vector<8x8xf32>
    %329 = arith.mulf %324, %328 : vector<8x8xf32>
    %330 = arith.truncf %329 : vector<8x8xf32> to vector<8x8xbf16>
    %331 = arith.truncf %316 : vector<8x16xf32> to vector<8x16xbf16>
    %cst_253 = arith.constant dense<0.000000e+00> : vector<8x16xf32>
    %332 = tpu.matmul %330, %331, %cst_253 {dimension_numbers = #tpu.dot_dimension_numbers<[1], [0], [0], [1], [0, 0, 1, 1], [], []>} : vector<8x8xbf16>, vector<8x16xbf16>, vector<8x16xf32> -> vector<8x16xf32>
    %333 = arith.truncf %332 : vector<8x16xf32> to vector<8x16xbf16>
    %c1_254 = arith.constant 1 : index
    %c1_255 = arith.constant 1 : index
    %c0_256 = arith.constant 0 : index
    %c0_257 = arith.constant 0 : index
    %334 = vector.load %arg9[%c1_254, %c1_255, %c0_256, %c0_257] : memref<4x4x16x64xbf16, #tpu.memory_space<vmem>>, vector<1x1x16x64xbf16>
    %335 = vector.shape_cast %334 : vector<1x1x16x64xbf16> to vector<16x64xbf16>
    %cst_258 = arith.constant dense<0.000000e+00> : vector<8x64xf32>
    %336 = tpu.matmul %333, %335, %cst_258 {dimension_numbers = #tpu.dot_dimension_numbers<[1], [0], [0], [1], [0, 0, 1, 1], [], []>} : vector<8x16xbf16>, vector<16x64xbf16>, vector<8x64xf32> -> vector<8x64xf32>
    %337 = arith.addf %295, %336 : vector<8x64xf32>
    %c1_259 = arith.constant 1 : index
    %c2_260 = arith.constant 2 : index
    %c0_261 = arith.constant 0 : index
    %c0_262 = arith.constant 0 : index
    %338 = vector.load %arg3[%c1_259, %c2_260, %c0_261, %c0_262] : memref<4x4x64x16xbf16, #tpu.memory_space<vmem>>, vector<1x1x64x16xbf16>
    %339 = vector.shape_cast %338 : vector<1x1x64x16xbf16> to vector<64x16xbf16>
    %cst_263 = arith.constant dense<0.000000e+00> : vector<8x16xf32>
    %340 = tpu.matmul %252, %339, %cst_263 {dimension_numbers = #tpu.dot_dimension_numbers<[1], [0], [0], [1], [0, 0, 1, 1], [], []>} : vector<8x64xbf16>, vector<64x16xbf16>, vector<8x16xf32> -> vector<8x16xf32>
    %c1_264 = arith.constant 1 : index
    %c2_265 = arith.constant 2 : index
    %c0_266 = arith.constant 0 : index
    %c0_267 = arith.constant 0 : index
    %341 = vector.load %arg4[%c1_264, %c2_265, %c0_266, %c0_267] : memref<4x4x1x16xf32, #tpu.memory_space<vmem>>, vector<1x1x1x16xf32>
    %342 = vector.shape_cast %341 : vector<1x1x1x16xf32> to vector<1x16xf32>
    %343 = vector.broadcast %342 : vector<1x16xf32> to vector<8x16xf32>
    %344 = arith.addf %340, %343 : vector<8x16xf32>
    %c1_268 = arith.constant 1 : index
    %c2_269 = arith.constant 2 : index
    %c0_270 = arith.constant 0 : index
    %c0_271 = arith.constant 0 : index
    %345 = vector.load %arg5[%c1_268, %c2_269, %c0_270, %c0_271] : memref<4x4x64x16xbf16, #tpu.memory_space<vmem>>, vector<1x1x64x16xbf16>
    %346 = vector.shape_cast %345 : vector<1x1x64x16xbf16> to vector<64x16xbf16>
    %cst_272 = arith.constant dense<0.000000e+00> : vector<8x16xf32>
    %347 = tpu.matmul %252, %346, %cst_272 {dimension_numbers = #tpu.dot_dimension_numbers<[1], [0], [0], [1], [0, 0, 1, 1], [], []>} : vector<8x64xbf16>, vector<64x16xbf16>, vector<8x16xf32> -> vector<8x16xf32>
    %c1_273 = arith.constant 1 : index
    %c2_274 = arith.constant 2 : index
    %c0_275 = arith.constant 0 : index
    %c0_276 = arith.constant 0 : index
    %348 = vector.load %arg6[%c1_273, %c2_274, %c0_275, %c0_276] : memref<4x4x1x16xf32, #tpu.memory_space<vmem>>, vector<1x1x1x16xf32>
    %349 = vector.shape_cast %348 : vector<1x1x1x16xf32> to vector<1x16xf32>
    %350 = vector.broadcast %349 : vector<1x16xf32> to vector<8x16xf32>
    %351 = arith.addf %347, %350 : vector<8x16xf32>
    %c1_277 = arith.constant 1 : index
    %c2_278 = arith.constant 2 : index
    %c0_279 = arith.constant 0 : index
    %c0_280 = arith.constant 0 : index
    %352 = vector.load %arg7[%c1_277, %c2_278, %c0_279, %c0_280] : memref<4x4x64x16xbf16, #tpu.memory_space<vmem>>, vector<1x1x64x16xbf16>
    %353 = vector.shape_cast %352 : vector<1x1x64x16xbf16> to vector<64x16xbf16>
    %cst_281 = arith.constant dense<0.000000e+00> : vector<8x16xf32>
    %354 = tpu.matmul %252, %353, %cst_281 {dimension_numbers = #tpu.dot_dimension_numbers<[1], [0], [0], [1], [0, 0, 1, 1], [], []>} : vector<8x64xbf16>, vector<64x16xbf16>, vector<8x16xf32> -> vector<8x16xf32>
    %c1_282 = arith.constant 1 : index
    %c2_283 = arith.constant 2 : index
    %c0_284 = arith.constant 0 : index
    %c0_285 = arith.constant 0 : index
    %355 = vector.load %arg8[%c1_282, %c2_283, %c0_284, %c0_285] : memref<4x4x1x16xf32, #tpu.memory_space<vmem>>, vector<1x1x1x16xf32>
    %356 = vector.shape_cast %355 : vector<1x1x1x16xf32> to vector<1x16xf32>
    %357 = vector.broadcast %356 : vector<1x16xf32> to vector<8x16xf32>
    %358 = arith.addf %354, %357 : vector<8x16xf32>
    %359 = arith.truncf %344 : vector<8x16xf32> to vector<8x16xbf16>
    %360 = arith.truncf %351 : vector<8x16xf32> to vector<8x16xbf16>
    %cst_286 = arith.constant dense<0.000000e+00> : vector<8x8xf32>
    %361 = tpu.matmul %359, %360, %cst_286 {dimension_numbers = #tpu.dot_dimension_numbers<[1], [1], [0], [0], [0, 0, 1, 0], [], []>} : vector<8x16xbf16>, vector<8x16xbf16>, vector<8x8xf32> -> vector<8x8xf32>
    %cst_287 = arith.constant dense<0xFF800000> : vector<8xf32>
    %362 = vector.multi_reduction <maximumf>, %361, %cst_287 [1] : vector<8x8xf32> to vector<8xf32>
    %363 = vector.shape_cast %362 : vector<8xf32> to vector<8x1xf32>
    %364 = vector.broadcast %363 : vector<8x1xf32> to vector<8x8xf32>
    %365 = arith.subf %361, %364 : vector<8x8xf32>
    %366 = math.exp %365 : vector<8x8xf32>
    %cst_288 = arith.constant dense<0.000000e+00> : vector<8xf32>
    %367 = vector.multi_reduction <add>, %366, %cst_288 [1] : vector<8x8xf32> to vector<8xf32>
    %368 = vector.shape_cast %367 : vector<8xf32> to vector<8x1xf32>
    %369 = tpu.reciprocal %368 {approx = true} : vector<8x1xf32> -> vector<8x1xf32>
    %370 = vector.broadcast %369 : vector<8x1xf32> to vector<8x8xf32>
    %371 = arith.mulf %366, %370 : vector<8x8xf32>
    %372 = arith.truncf %371 : vector<8x8xf32> to vector<8x8xbf16>
    %373 = arith.truncf %358 : vector<8x16xf32> to vector<8x16xbf16>
    %cst_289 = arith.constant dense<0.000000e+00> : vector<8x16xf32>
    %374 = tpu.matmul %372, %373, %cst_289 {dimension_numbers = #tpu.dot_dimension_numbers<[1], [0], [0], [1], [0, 0, 1, 1], [], []>} : vector<8x8xbf16>, vector<8x16xbf16>, vector<8x16xf32> -> vector<8x16xf32>
    %375 = arith.truncf %374 : vector<8x16xf32> to vector<8x16xbf16>
    %c1_290 = arith.constant 1 : index
    %c2_291 = arith.constant 2 : index
    %c0_292 = arith.constant 0 : index
    %c0_293 = arith.constant 0 : index
    %376 = vector.load %arg9[%c1_290, %c2_291, %c0_292, %c0_293] : memref<4x4x16x64xbf16, #tpu.memory_space<vmem>>, vector<1x1x16x64xbf16>
    %377 = vector.shape_cast %376 : vector<1x1x16x64xbf16> to vector<16x64xbf16>
    %cst_294 = arith.constant dense<0.000000e+00> : vector<8x64xf32>
    %378 = tpu.matmul %375, %377, %cst_294 {dimension_numbers = #tpu.dot_dimension_numbers<[1], [0], [0], [1], [0, 0, 1, 1], [], []>} : vector<8x16xbf16>, vector<16x64xbf16>, vector<8x64xf32> -> vector<8x64xf32>
    %379 = arith.addf %337, %378 : vector<8x64xf32>
    %c1_295 = arith.constant 1 : index
    %c3_296 = arith.constant 3 : index
    %c0_297 = arith.constant 0 : index
    %c0_298 = arith.constant 0 : index
    %380 = vector.load %arg3[%c1_295, %c3_296, %c0_297, %c0_298] : memref<4x4x64x16xbf16, #tpu.memory_space<vmem>>, vector<1x1x64x16xbf16>
    %381 = vector.shape_cast %380 : vector<1x1x64x16xbf16> to vector<64x16xbf16>
    %cst_299 = arith.constant dense<0.000000e+00> : vector<8x16xf32>
    %382 = tpu.matmul %252, %381, %cst_299 {dimension_numbers = #tpu.dot_dimension_numbers<[1], [0], [0], [1], [0, 0, 1, 1], [], []>} : vector<8x64xbf16>, vector<64x16xbf16>, vector<8x16xf32> -> vector<8x16xf32>
    %c1_300 = arith.constant 1 : index
    %c3_301 = arith.constant 3 : index
    %c0_302 = arith.constant 0 : index
    %c0_303 = arith.constant 0 : index
    %383 = vector.load %arg4[%c1_300, %c3_301, %c0_302, %c0_303] : memref<4x4x1x16xf32, #tpu.memory_space<vmem>>, vector<1x1x1x16xf32>
    %384 = vector.shape_cast %383 : vector<1x1x1x16xf32> to vector<1x16xf32>
    %385 = vector.broadcast %384 : vector<1x16xf32> to vector<8x16xf32>
    %386 = arith.addf %382, %385 : vector<8x16xf32>
    %c1_304 = arith.constant 1 : index
    %c3_305 = arith.constant 3 : index
    %c0_306 = arith.constant 0 : index
    %c0_307 = arith.constant 0 : index
    %387 = vector.load %arg5[%c1_304, %c3_305, %c0_306, %c0_307] : memref<4x4x64x16xbf16, #tpu.memory_space<vmem>>, vector<1x1x64x16xbf16>
    %388 = vector.shape_cast %387 : vector<1x1x64x16xbf16> to vector<64x16xbf16>
    %cst_308 = arith.constant dense<0.000000e+00> : vector<8x16xf32>
    %389 = tpu.matmul %252, %388, %cst_308 {dimension_numbers = #tpu.dot_dimension_numbers<[1], [0], [0], [1], [0, 0, 1, 1], [], []>} : vector<8x64xbf16>, vector<64x16xbf16>, vector<8x16xf32> -> vector<8x16xf32>
    %c1_309 = arith.constant 1 : index
    %c3_310 = arith.constant 3 : index
    %c0_311 = arith.constant 0 : index
    %c0_312 = arith.constant 0 : index
    %390 = vector.load %arg6[%c1_309, %c3_310, %c0_311, %c0_312] : memref<4x4x1x16xf32, #tpu.memory_space<vmem>>, vector<1x1x1x16xf32>
    %391 = vector.shape_cast %390 : vector<1x1x1x16xf32> to vector<1x16xf32>
    %392 = vector.broadcast %391 : vector<1x16xf32> to vector<8x16xf32>
    %393 = arith.addf %389, %392 : vector<8x16xf32>
    %c1_313 = arith.constant 1 : index
    %c3_314 = arith.constant 3 : index
    %c0_315 = arith.constant 0 : index
    %c0_316 = arith.constant 0 : index
    %394 = vector.load %arg7[%c1_313, %c3_314, %c0_315, %c0_316] : memref<4x4x64x16xbf16, #tpu.memory_space<vmem>>, vector<1x1x64x16xbf16>
    %395 = vector.shape_cast %394 : vector<1x1x64x16xbf16> to vector<64x16xbf16>
    %cst_317 = arith.constant dense<0.000000e+00> : vector<8x16xf32>
    %396 = tpu.matmul %252, %395, %cst_317 {dimension_numbers = #tpu.dot_dimension_numbers<[1], [0], [0], [1], [0, 0, 1, 1], [], []>} : vector<8x64xbf16>, vector<64x16xbf16>, vector<8x16xf32> -> vector<8x16xf32>
    %c1_318 = arith.constant 1 : index
    %c3_319 = arith.constant 3 : index
    %c0_320 = arith.constant 0 : index
    %c0_321 = arith.constant 0 : index
    %397 = vector.load %arg8[%c1_318, %c3_319, %c0_320, %c0_321] : memref<4x4x1x16xf32, #tpu.memory_space<vmem>>, vector<1x1x1x16xf32>
    %398 = vector.shape_cast %397 : vector<1x1x1x16xf32> to vector<1x16xf32>
    %399 = vector.broadcast %398 : vector<1x16xf32> to vector<8x16xf32>
    %400 = arith.addf %396, %399 : vector<8x16xf32>
    %401 = arith.truncf %386 : vector<8x16xf32> to vector<8x16xbf16>
    %402 = arith.truncf %393 : vector<8x16xf32> to vector<8x16xbf16>
    %cst_322 = arith.constant dense<0.000000e+00> : vector<8x8xf32>
    %403 = tpu.matmul %401, %402, %cst_322 {dimension_numbers = #tpu.dot_dimension_numbers<[1], [1], [0], [0], [0, 0, 1, 0], [], []>} : vector<8x16xbf16>, vector<8x16xbf16>, vector<8x8xf32> -> vector<8x8xf32>
    %cst_323 = arith.constant dense<0xFF800000> : vector<8xf32>
    %404 = vector.multi_reduction <maximumf>, %403, %cst_323 [1] : vector<8x8xf32> to vector<8xf32>
    %405 = vector.shape_cast %404 : vector<8xf32> to vector<8x1xf32>
    %406 = vector.broadcast %405 : vector<8x1xf32> to vector<8x8xf32>
    %407 = arith.subf %403, %406 : vector<8x8xf32>
    %408 = math.exp %407 : vector<8x8xf32>
    %cst_324 = arith.constant dense<0.000000e+00> : vector<8xf32>
    %409 = vector.multi_reduction <add>, %408, %cst_324 [1] : vector<8x8xf32> to vector<8xf32>
    %410 = vector.shape_cast %409 : vector<8xf32> to vector<8x1xf32>
    %411 = tpu.reciprocal %410 {approx = true} : vector<8x1xf32> -> vector<8x1xf32>
    %412 = vector.broadcast %411 : vector<8x1xf32> to vector<8x8xf32>
    %413 = arith.mulf %408, %412 : vector<8x8xf32>
    %414 = arith.truncf %413 : vector<8x8xf32> to vector<8x8xbf16>
    %415 = arith.truncf %400 : vector<8x16xf32> to vector<8x16xbf16>
    %cst_325 = arith.constant dense<0.000000e+00> : vector<8x16xf32>
    %416 = tpu.matmul %414, %415, %cst_325 {dimension_numbers = #tpu.dot_dimension_numbers<[1], [0], [0], [1], [0, 0, 1, 1], [], []>} : vector<8x8xbf16>, vector<8x16xbf16>, vector<8x16xf32> -> vector<8x16xf32>
    %417 = arith.truncf %416 : vector<8x16xf32> to vector<8x16xbf16>
    %c1_326 = arith.constant 1 : index
    %c3_327 = arith.constant 3 : index
    %c0_328 = arith.constant 0 : index
    %c0_329 = arith.constant 0 : index
    %418 = vector.load %arg9[%c1_326, %c3_327, %c0_328, %c0_329] : memref<4x4x16x64xbf16, #tpu.memory_space<vmem>>, vector<1x1x16x64xbf16>
    %419 = vector.shape_cast %418 : vector<1x1x16x64xbf16> to vector<16x64xbf16>
    %cst_330 = arith.constant dense<0.000000e+00> : vector<8x64xf32>
    %420 = tpu.matmul %417, %419, %cst_330 {dimension_numbers = #tpu.dot_dimension_numbers<[1], [0], [0], [1], [0, 0, 1, 1], [], []>} : vector<8x16xbf16>, vector<16x64xbf16>, vector<8x64xf32> -> vector<8x64xf32>
    %421 = arith.addf %379, %420 : vector<8x64xf32>
    %c1_331 = arith.constant 1 : index
    %c0_332 = arith.constant 0 : index
    %c0_333 = arith.constant 0 : index
    %422 = vector.load %arg10[%c1_331, %c0_332, %c0_333] : memref<4x1x64xf32, #tpu.memory_space<vmem>>, vector<1x1x64xf32>
    %423 = vector.shape_cast %422 : vector<1x1x64xf32> to vector<1x64xf32>
    %424 = vector.broadcast %423 : vector<1x64xf32> to vector<8x64xf32>
    %425 = arith.addf %421, %424 : vector<8x64xf32>
    %426 = arith.addf %251, %425 : vector<8x64xf32>
    %c1_334 = arith.constant 1 : index
    %c0_335 = arith.constant 0 : index
    %c0_336 = arith.constant 0 : index
    %427 = vector.load %arg11[%c1_334, %c0_335, %c0_336] : memref<4x1x64xf32, #tpu.memory_space<vmem>>, vector<1x1x64xf32>
    %428 = vector.shape_cast %427 : vector<1x1x64xf32> to vector<1x64xf32>
    %c1_337 = arith.constant 1 : index
    %c0_338 = arith.constant 0 : index
    %c0_339 = arith.constant 0 : index
    %429 = vector.load %arg12[%c1_337, %c0_338, %c0_339] : memref<4x1x64xf32, #tpu.memory_space<vmem>>, vector<1x1x64xf32>
    %430 = vector.shape_cast %429 : vector<1x1x64xf32> to vector<1x64xf32>
    %cst_340 = arith.constant dense<0.000000e+00> : vector<8xf32>
    %431 = vector.multi_reduction <add>, %426, %cst_340 [1] : vector<8x64xf32> to vector<8xf32>
    %432 = vector.shape_cast %431 : vector<8xf32> to vector<8x1xf32>
    %cst_341 = arith.constant 6.400000e+01 : f32
    %433 = vector.broadcast %cst_341 : f32 to vector<8x1xf32>
    %434 = arith.divf %432, %433 : vector<8x1xf32>
    %435 = vector.broadcast %434 : vector<8x1xf32> to vector<8x64xf32>
    %436 = arith.subf %426, %435 : vector<8x64xf32>
    %437 = arith.mulf %436, %436 : vector<8x64xf32>
    %cst_342 = arith.constant dense<0.000000e+00> : vector<8xf32>
    %438 = vector.multi_reduction <add>, %437, %cst_342 [1] : vector<8x64xf32> to vector<8xf32>
    %439 = vector.shape_cast %438 : vector<8xf32> to vector<8x1xf32>
    %cst_343 = arith.constant 6.400000e+01 : f32
    %440 = vector.broadcast %cst_343 : f32 to vector<8x1xf32>
    %441 = arith.divf %439, %440 : vector<8x1xf32>
    %442 = vector.broadcast %434 : vector<8x1xf32> to vector<8x64xf32>
    %443 = arith.subf %426, %442 : vector<8x64xf32>
    %cst_344 = arith.constant 9.99999974E-6 : f32
    %444 = vector.broadcast %cst_344 : f32 to vector<8x1xf32>
    %445 = arith.addf %441, %444 : vector<8x1xf32>
    %446 = math.rsqrt %445 : vector<8x1xf32>
    %447 = vector.broadcast %446 : vector<8x1xf32> to vector<8x64xf32>
    %448 = arith.mulf %443, %447 : vector<8x64xf32>
    %449 = vector.broadcast %428 : vector<1x64xf32> to vector<8x64xf32>
    %450 = arith.mulf %448, %449 : vector<8x64xf32>
    %451 = vector.broadcast %430 : vector<1x64xf32> to vector<8x64xf32>
    %452 = arith.addf %450, %451 : vector<8x64xf32>
    %453 = arith.truncf %452 : vector<8x64xf32> to vector<8x64xbf16>
    %cst_345 = arith.constant 0.000000e+00 : f32
    %454 = vector.broadcast %cst_345 : f32 to vector<8x64xf32>
    %c1_346 = arith.constant 1 : index
    %c0_347 = arith.constant 0 : index
    %c0_348 = arith.constant 0 : index
    %455 = vector.load %arg13[%c1_346, %c0_347, %c0_348] : memref<4x64x2048xbf16, #tpu.memory_space<vmem>>, vector<1x64x2048xbf16>
    %456 = vector.shape_cast %455 : vector<1x64x2048xbf16> to vector<64x2048xbf16>
    %cst_349 = arith.constant dense<0.000000e+00> : vector<8x2048xf32>
    %457 = tpu.matmul %453, %456, %cst_349 {dimension_numbers = #tpu.dot_dimension_numbers<[1], [0], [0], [1], [0, 0, 1, 1], [], []>} : vector<8x64xbf16>, vector<64x2048xbf16>, vector<8x2048xf32> -> vector<8x2048xf32>
    %c1_350 = arith.constant 1 : index
    %c0_351 = arith.constant 0 : index
    %c0_352 = arith.constant 0 : index
    %458 = vector.load %arg14[%c1_350, %c0_351, %c0_352] : memref<4x1x2048xf32, #tpu.memory_space<vmem>>, vector<1x1x2048xf32>
    %459 = vector.shape_cast %458 : vector<1x1x2048xf32> to vector<1x2048xf32>
    %460 = vector.broadcast %459 : vector<1x2048xf32> to vector<8x2048xf32>
    %461 = arith.addf %457, %460 : vector<8x2048xf32>
    %cst_353 = arith.constant 0.000000e+00 : f32
    %462 = vector.broadcast %cst_353 : f32 to vector<8x2048xf32>
    %463 = arith.maximumf %461, %462 : vector<8x2048xf32>
    %464 = arith.truncf %463 : vector<8x2048xf32> to vector<8x2048xbf16>
    %c1_354 = arith.constant 1 : index
    %c0_355 = arith.constant 0 : index
    %c0_356 = arith.constant 0 : index
    %465 = vector.load %arg15[%c1_354, %c0_355, %c0_356] : memref<4x2048x64xbf16, #tpu.memory_space<vmem>>, vector<1x2048x64xbf16>
    %466 = vector.shape_cast %465 : vector<1x2048x64xbf16> to vector<2048x64xbf16>
    %cst_357 = arith.constant dense<0.000000e+00> : vector<8x64xf32>
    %467 = tpu.matmul %464, %466, %cst_357 {dimension_numbers = #tpu.dot_dimension_numbers<[1], [0], [0], [1], [0, 0, 1, 1], [], []>} : vector<8x2048xbf16>, vector<2048x64xbf16>, vector<8x64xf32> -> vector<8x64xf32>
    %468 = arith.addf %454, %467 : vector<8x64xf32>
    %c1_358 = arith.constant 1 : index
    %c0_359 = arith.constant 0 : index
    %c0_360 = arith.constant 0 : index
    %469 = vector.load %arg16[%c1_358, %c0_359, %c0_360] : memref<4x1x64xf32, #tpu.memory_space<vmem>>, vector<1x1x64xf32>
    %470 = vector.shape_cast %469 : vector<1x1x64xf32> to vector<1x64xf32>
    %471 = vector.broadcast %470 : vector<1x64xf32> to vector<8x64xf32>
    %472 = arith.addf %468, %471 : vector<8x64xf32>
    %473 = arith.addf %452, %472 : vector<8x64xf32>
    %c1_361 = arith.constant 1 : index
    %c0_362 = arith.constant 0 : index
    %c0_363 = arith.constant 0 : index
    %474 = vector.load %arg17[%c1_361, %c0_362, %c0_363] : memref<4x1x64xf32, #tpu.memory_space<vmem>>, vector<1x1x64xf32>
    %475 = vector.shape_cast %474 : vector<1x1x64xf32> to vector<1x64xf32>
    %c1_364 = arith.constant 1 : index
    %c0_365 = arith.constant 0 : index
    %c0_366 = arith.constant 0 : index
    %476 = vector.load %arg18[%c1_364, %c0_365, %c0_366] : memref<4x1x64xf32, #tpu.memory_space<vmem>>, vector<1x1x64xf32>
    %477 = vector.shape_cast %476 : vector<1x1x64xf32> to vector<1x64xf32>
    %cst_367 = arith.constant dense<0.000000e+00> : vector<8xf32>
    %478 = vector.multi_reduction <add>, %473, %cst_367 [1] : vector<8x64xf32> to vector<8xf32>
    %479 = vector.shape_cast %478 : vector<8xf32> to vector<8x1xf32>
    %cst_368 = arith.constant 6.400000e+01 : f32
    %480 = vector.broadcast %cst_368 : f32 to vector<8x1xf32>
    %481 = arith.divf %479, %480 : vector<8x1xf32>
    %482 = vector.broadcast %481 : vector<8x1xf32> to vector<8x64xf32>
    %483 = arith.subf %473, %482 : vector<8x64xf32>
    %484 = arith.mulf %483, %483 : vector<8x64xf32>
    %cst_369 = arith.constant dense<0.000000e+00> : vector<8xf32>
    %485 = vector.multi_reduction <add>, %484, %cst_369 [1] : vector<8x64xf32> to vector<8xf32>
    %486 = vector.shape_cast %485 : vector<8xf32> to vector<8x1xf32>
    %cst_370 = arith.constant 6.400000e+01 : f32
    %487 = vector.broadcast %cst_370 : f32 to vector<8x1xf32>
    %488 = arith.divf %486, %487 : vector<8x1xf32>
    %489 = vector.broadcast %481 : vector<8x1xf32> to vector<8x64xf32>
    %490 = arith.subf %473, %489 : vector<8x64xf32>
    %cst_371 = arith.constant 9.99999974E-6 : f32
    %491 = vector.broadcast %cst_371 : f32 to vector<8x1xf32>
    %492 = arith.addf %488, %491 : vector<8x1xf32>
    %493 = math.rsqrt %492 : vector<8x1xf32>
    %494 = vector.broadcast %493 : vector<8x1xf32> to vector<8x64xf32>
    %495 = arith.mulf %490, %494 : vector<8x64xf32>
    %496 = vector.broadcast %475 : vector<1x64xf32> to vector<8x64xf32>
    %497 = arith.mulf %495, %496 : vector<8x64xf32>
    %498 = vector.broadcast %477 : vector<1x64xf32> to vector<8x64xf32>
    %499 = arith.addf %497, %498 : vector<8x64xf32>
    %500 = arith.truncf %499 : vector<8x64xf32> to vector<8x64xbf16>
    %cst_372 = arith.constant 0.000000e+00 : f32
    %501 = vector.broadcast %cst_372 : f32 to vector<8x64xf32>
    %c2_373 = arith.constant 2 : index
    %c0_374 = arith.constant 0 : index
    %c0_375 = arith.constant 0 : index
    %c0_376 = arith.constant 0 : index
    %502 = vector.load %arg3[%c2_373, %c0_374, %c0_375, %c0_376] : memref<4x4x64x16xbf16, #tpu.memory_space<vmem>>, vector<1x1x64x16xbf16>
    %503 = vector.shape_cast %502 : vector<1x1x64x16xbf16> to vector<64x16xbf16>
    %cst_377 = arith.constant dense<0.000000e+00> : vector<8x16xf32>
    %504 = tpu.matmul %500, %503, %cst_377 {dimension_numbers = #tpu.dot_dimension_numbers<[1], [0], [0], [1], [0, 0, 1, 1], [], []>} : vector<8x64xbf16>, vector<64x16xbf16>, vector<8x16xf32> -> vector<8x16xf32>
    %c2_378 = arith.constant 2 : index
    %c0_379 = arith.constant 0 : index
    %c0_380 = arith.constant 0 : index
    %c0_381 = arith.constant 0 : index
    %505 = vector.load %arg4[%c2_378, %c0_379, %c0_380, %c0_381] : memref<4x4x1x16xf32, #tpu.memory_space<vmem>>, vector<1x1x1x16xf32>
    %506 = vector.shape_cast %505 : vector<1x1x1x16xf32> to vector<1x16xf32>
    %507 = vector.broadcast %506 : vector<1x16xf32> to vector<8x16xf32>
    %508 = arith.addf %504, %507 : vector<8x16xf32>
    %c2_382 = arith.constant 2 : index
    %c0_383 = arith.constant 0 : index
    %c0_384 = arith.constant 0 : index
    %c0_385 = arith.constant 0 : index
    %509 = vector.load %arg5[%c2_382, %c0_383, %c0_384, %c0_385] : memref<4x4x64x16xbf16, #tpu.memory_space<vmem>>, vector<1x1x64x16xbf16>
    %510 = vector.shape_cast %509 : vector<1x1x64x16xbf16> to vector<64x16xbf16>
    %cst_386 = arith.constant dense<0.000000e+00> : vector<8x16xf32>
    %511 = tpu.matmul %500, %510, %cst_386 {dimension_numbers = #tpu.dot_dimension_numbers<[1], [0], [0], [1], [0, 0, 1, 1], [], []>} : vector<8x64xbf16>, vector<64x16xbf16>, vector<8x16xf32> -> vector<8x16xf32>
    %c2_387 = arith.constant 2 : index
    %c0_388 = arith.constant 0 : index
    %c0_389 = arith.constant 0 : index
    %c0_390 = arith.constant 0 : index
    %512 = vector.load %arg6[%c2_387, %c0_388, %c0_389, %c0_390] : memref<4x4x1x16xf32, #tpu.memory_space<vmem>>, vector<1x1x1x16xf32>
    %513 = vector.shape_cast %512 : vector<1x1x1x16xf32> to vector<1x16xf32>
    %514 = vector.broadcast %513 : vector<1x16xf32> to vector<8x16xf32>
    %515 = arith.addf %511, %514 : vector<8x16xf32>
    %c2_391 = arith.constant 2 : index
    %c0_392 = arith.constant 0 : index
    %c0_393 = arith.constant 0 : index
    %c0_394 = arith.constant 0 : index
    %516 = vector.load %arg7[%c2_391, %c0_392, %c0_393, %c0_394] : memref<4x4x64x16xbf16, #tpu.memory_space<vmem>>, vector<1x1x64x16xbf16>
    %517 = vector.shape_cast %516 : vector<1x1x64x16xbf16> to vector<64x16xbf16>
    %cst_395 = arith.constant dense<0.000000e+00> : vector<8x16xf32>
    %518 = tpu.matmul %500, %517, %cst_395 {dimension_numbers = #tpu.dot_dimension_numbers<[1], [0], [0], [1], [0, 0, 1, 1], [], []>} : vector<8x64xbf16>, vector<64x16xbf16>, vector<8x16xf32> -> vector<8x16xf32>
    %c2_396 = arith.constant 2 : index
    %c0_397 = arith.constant 0 : index
    %c0_398 = arith.constant 0 : index
    %c0_399 = arith.constant 0 : index
    %519 = vector.load %arg8[%c2_396, %c0_397, %c0_398, %c0_399] : memref<4x4x1x16xf32, #tpu.memory_space<vmem>>, vector<1x1x1x16xf32>
    %520 = vector.shape_cast %519 : vector<1x1x1x16xf32> to vector<1x16xf32>
    %521 = vector.broadcast %520 : vector<1x16xf32> to vector<8x16xf32>
    %522 = arith.addf %518, %521 : vector<8x16xf32>
    %523 = arith.truncf %508 : vector<8x16xf32> to vector<8x16xbf16>
    %524 = arith.truncf %515 : vector<8x16xf32> to vector<8x16xbf16>
    %cst_400 = arith.constant dense<0.000000e+00> : vector<8x8xf32>
    %525 = tpu.matmul %523, %524, %cst_400 {dimension_numbers = #tpu.dot_dimension_numbers<[1], [1], [0], [0], [0, 0, 1, 0], [], []>} : vector<8x16xbf16>, vector<8x16xbf16>, vector<8x8xf32> -> vector<8x8xf32>
    %cst_401 = arith.constant dense<0xFF800000> : vector<8xf32>
    %526 = vector.multi_reduction <maximumf>, %525, %cst_401 [1] : vector<8x8xf32> to vector<8xf32>
    %527 = vector.shape_cast %526 : vector<8xf32> to vector<8x1xf32>
    %528 = vector.broadcast %527 : vector<8x1xf32> to vector<8x8xf32>
    %529 = arith.subf %525, %528 : vector<8x8xf32>
    %530 = math.exp %529 : vector<8x8xf32>
    %cst_402 = arith.constant dense<0.000000e+00> : vector<8xf32>
    %531 = vector.multi_reduction <add>, %530, %cst_402 [1] : vector<8x8xf32> to vector<8xf32>
    %532 = vector.shape_cast %531 : vector<8xf32> to vector<8x1xf32>
    %533 = tpu.reciprocal %532 {approx = true} : vector<8x1xf32> -> vector<8x1xf32>
    %534 = vector.broadcast %533 : vector<8x1xf32> to vector<8x8xf32>
    %535 = arith.mulf %530, %534 : vector<8x8xf32>
    %536 = arith.truncf %535 : vector<8x8xf32> to vector<8x8xbf16>
    %537 = arith.truncf %522 : vector<8x16xf32> to vector<8x16xbf16>
    %cst_403 = arith.constant dense<0.000000e+00> : vector<8x16xf32>
    %538 = tpu.matmul %536, %537, %cst_403 {dimension_numbers = #tpu.dot_dimension_numbers<[1], [0], [0], [1], [0, 0, 1, 1], [], []>} : vector<8x8xbf16>, vector<8x16xbf16>, vector<8x16xf32> -> vector<8x16xf32>
    %539 = arith.truncf %538 : vector<8x16xf32> to vector<8x16xbf16>
    %c2_404 = arith.constant 2 : index
    %c0_405 = arith.constant 0 : index
    %c0_406 = arith.constant 0 : index
    %c0_407 = arith.constant 0 : index
    %540 = vector.load %arg9[%c2_404, %c0_405, %c0_406, %c0_407] : memref<4x4x16x64xbf16, #tpu.memory_space<vmem>>, vector<1x1x16x64xbf16>
    %541 = vector.shape_cast %540 : vector<1x1x16x64xbf16> to vector<16x64xbf16>
    %cst_408 = arith.constant dense<0.000000e+00> : vector<8x64xf32>
    %542 = tpu.matmul %539, %541, %cst_408 {dimension_numbers = #tpu.dot_dimension_numbers<[1], [0], [0], [1], [0, 0, 1, 1], [], []>} : vector<8x16xbf16>, vector<16x64xbf16>, vector<8x64xf32> -> vector<8x64xf32>
    %543 = arith.addf %501, %542 : vector<8x64xf32>
    %c2_409 = arith.constant 2 : index
    %c1_410 = arith.constant 1 : index
    %c0_411 = arith.constant 0 : index
    %c0_412 = arith.constant 0 : index
    %544 = vector.load %arg3[%c2_409, %c1_410, %c0_411, %c0_412] : memref<4x4x64x16xbf16, #tpu.memory_space<vmem>>, vector<1x1x64x16xbf16>
    %545 = vector.shape_cast %544 : vector<1x1x64x16xbf16> to vector<64x16xbf16>
    %cst_413 = arith.constant dense<0.000000e+00> : vector<8x16xf32>
    %546 = tpu.matmul %500, %545, %cst_413 {dimension_numbers = #tpu.dot_dimension_numbers<[1], [0], [0], [1], [0, 0, 1, 1], [], []>} : vector<8x64xbf16>, vector<64x16xbf16>, vector<8x16xf32> -> vector<8x16xf32>
    %c2_414 = arith.constant 2 : index
    %c1_415 = arith.constant 1 : index
    %c0_416 = arith.constant 0 : index
    %c0_417 = arith.constant 0 : index
    %547 = vector.load %arg4[%c2_414, %c1_415, %c0_416, %c0_417] : memref<4x4x1x16xf32, #tpu.memory_space<vmem>>, vector<1x1x1x16xf32>
    %548 = vector.shape_cast %547 : vector<1x1x1x16xf32> to vector<1x16xf32>
    %549 = vector.broadcast %548 : vector<1x16xf32> to vector<8x16xf32>
    %550 = arith.addf %546, %549 : vector<8x16xf32>
    %c2_418 = arith.constant 2 : index
    %c1_419 = arith.constant 1 : index
    %c0_420 = arith.constant 0 : index
    %c0_421 = arith.constant 0 : index
    %551 = vector.load %arg5[%c2_418, %c1_419, %c0_420, %c0_421] : memref<4x4x64x16xbf16, #tpu.memory_space<vmem>>, vector<1x1x64x16xbf16>
    %552 = vector.shape_cast %551 : vector<1x1x64x16xbf16> to vector<64x16xbf16>
    %cst_422 = arith.constant dense<0.000000e+00> : vector<8x16xf32>
    %553 = tpu.matmul %500, %552, %cst_422 {dimension_numbers = #tpu.dot_dimension_numbers<[1], [0], [0], [1], [0, 0, 1, 1], [], []>} : vector<8x64xbf16>, vector<64x16xbf16>, vector<8x16xf32> -> vector<8x16xf32>
    %c2_423 = arith.constant 2 : index
    %c1_424 = arith.constant 1 : index
    %c0_425 = arith.constant 0 : index
    %c0_426 = arith.constant 0 : index
    %554 = vector.load %arg6[%c2_423, %c1_424, %c0_425, %c0_426] : memref<4x4x1x16xf32, #tpu.memory_space<vmem>>, vector<1x1x1x16xf32>
    %555 = vector.shape_cast %554 : vector<1x1x1x16xf32> to vector<1x16xf32>
    %556 = vector.broadcast %555 : vector<1x16xf32> to vector<8x16xf32>
    %557 = arith.addf %553, %556 : vector<8x16xf32>
    %c2_427 = arith.constant 2 : index
    %c1_428 = arith.constant 1 : index
    %c0_429 = arith.constant 0 : index
    %c0_430 = arith.constant 0 : index
    %558 = vector.load %arg7[%c2_427, %c1_428, %c0_429, %c0_430] : memref<4x4x64x16xbf16, #tpu.memory_space<vmem>>, vector<1x1x64x16xbf16>
    %559 = vector.shape_cast %558 : vector<1x1x64x16xbf16> to vector<64x16xbf16>
    %cst_431 = arith.constant dense<0.000000e+00> : vector<8x16xf32>
    %560 = tpu.matmul %500, %559, %cst_431 {dimension_numbers = #tpu.dot_dimension_numbers<[1], [0], [0], [1], [0, 0, 1, 1], [], []>} : vector<8x64xbf16>, vector<64x16xbf16>, vector<8x16xf32> -> vector<8x16xf32>
    %c2_432 = arith.constant 2 : index
    %c1_433 = arith.constant 1 : index
    %c0_434 = arith.constant 0 : index
    %c0_435 = arith.constant 0 : index
    %561 = vector.load %arg8[%c2_432, %c1_433, %c0_434, %c0_435] : memref<4x4x1x16xf32, #tpu.memory_space<vmem>>, vector<1x1x1x16xf32>
    %562 = vector.shape_cast %561 : vector<1x1x1x16xf32> to vector<1x16xf32>
    %563 = vector.broadcast %562 : vector<1x16xf32> to vector<8x16xf32>
    %564 = arith.addf %560, %563 : vector<8x16xf32>
    %565 = arith.truncf %550 : vector<8x16xf32> to vector<8x16xbf16>
    %566 = arith.truncf %557 : vector<8x16xf32> to vector<8x16xbf16>
    %cst_436 = arith.constant dense<0.000000e+00> : vector<8x8xf32>
    %567 = tpu.matmul %565, %566, %cst_436 {dimension_numbers = #tpu.dot_dimension_numbers<[1], [1], [0], [0], [0, 0, 1, 0], [], []>} : vector<8x16xbf16>, vector<8x16xbf16>, vector<8x8xf32> -> vector<8x8xf32>
    %cst_437 = arith.constant dense<0xFF800000> : vector<8xf32>
    %568 = vector.multi_reduction <maximumf>, %567, %cst_437 [1] : vector<8x8xf32> to vector<8xf32>
    %569 = vector.shape_cast %568 : vector<8xf32> to vector<8x1xf32>
    %570 = vector.broadcast %569 : vector<8x1xf32> to vector<8x8xf32>
    %571 = arith.subf %567, %570 : vector<8x8xf32>
    %572 = math.exp %571 : vector<8x8xf32>
    %cst_438 = arith.constant dense<0.000000e+00> : vector<8xf32>
    %573 = vector.multi_reduction <add>, %572, %cst_438 [1] : vector<8x8xf32> to vector<8xf32>
    %574 = vector.shape_cast %573 : vector<8xf32> to vector<8x1xf32>
    %575 = tpu.reciprocal %574 {approx = true} : vector<8x1xf32> -> vector<8x1xf32>
    %576 = vector.broadcast %575 : vector<8x1xf32> to vector<8x8xf32>
    %577 = arith.mulf %572, %576 : vector<8x8xf32>
    %578 = arith.truncf %577 : vector<8x8xf32> to vector<8x8xbf16>
    %579 = arith.truncf %564 : vector<8x16xf32> to vector<8x16xbf16>
    %cst_439 = arith.constant dense<0.000000e+00> : vector<8x16xf32>
    %580 = tpu.matmul %578, %579, %cst_439 {dimension_numbers = #tpu.dot_dimension_numbers<[1], [0], [0], [1], [0, 0, 1, 1], [], []>} : vector<8x8xbf16>, vector<8x16xbf16>, vector<8x16xf32> -> vector<8x16xf32>
    %581 = arith.truncf %580 : vector<8x16xf32> to vector<8x16xbf16>
    %c2_440 = arith.constant 2 : index
    %c1_441 = arith.constant 1 : index
    %c0_442 = arith.constant 0 : index
    %c0_443 = arith.constant 0 : index
    %582 = vector.load %arg9[%c2_440, %c1_441, %c0_442, %c0_443] : memref<4x4x16x64xbf16, #tpu.memory_space<vmem>>, vector<1x1x16x64xbf16>
    %583 = vector.shape_cast %582 : vector<1x1x16x64xbf16> to vector<16x64xbf16>
    %cst_444 = arith.constant dense<0.000000e+00> : vector<8x64xf32>
    %584 = tpu.matmul %581, %583, %cst_444 {dimension_numbers = #tpu.dot_dimension_numbers<[1], [0], [0], [1], [0, 0, 1, 1], [], []>} : vector<8x16xbf16>, vector<16x64xbf16>, vector<8x64xf32> -> vector<8x64xf32>
    %585 = arith.addf %543, %584 : vector<8x64xf32>
    %c2_445 = arith.constant 2 : index
    %c2_446 = arith.constant 2 : index
    %c0_447 = arith.constant 0 : index
    %c0_448 = arith.constant 0 : index
    %586 = vector.load %arg3[%c2_445, %c2_446, %c0_447, %c0_448] : memref<4x4x64x16xbf16, #tpu.memory_space<vmem>>, vector<1x1x64x16xbf16>
    %587 = vector.shape_cast %586 : vector<1x1x64x16xbf16> to vector<64x16xbf16>
    %cst_449 = arith.constant dense<0.000000e+00> : vector<8x16xf32>
    %588 = tpu.matmul %500, %587, %cst_449 {dimension_numbers = #tpu.dot_dimension_numbers<[1], [0], [0], [1], [0, 0, 1, 1], [], []>} : vector<8x64xbf16>, vector<64x16xbf16>, vector<8x16xf32> -> vector<8x16xf32>
    %c2_450 = arith.constant 2 : index
    %c2_451 = arith.constant 2 : index
    %c0_452 = arith.constant 0 : index
    %c0_453 = arith.constant 0 : index
    %589 = vector.load %arg4[%c2_450, %c2_451, %c0_452, %c0_453] : memref<4x4x1x16xf32, #tpu.memory_space<vmem>>, vector<1x1x1x16xf32>
    %590 = vector.shape_cast %589 : vector<1x1x1x16xf32> to vector<1x16xf32>
    %591 = vector.broadcast %590 : vector<1x16xf32> to vector<8x16xf32>
    %592 = arith.addf %588, %591 : vector<8x16xf32>
    %c2_454 = arith.constant 2 : index
    %c2_455 = arith.constant 2 : index
    %c0_456 = arith.constant 0 : index
    %c0_457 = arith.constant 0 : index
    %593 = vector.load %arg5[%c2_454, %c2_455, %c0_456, %c0_457] : memref<4x4x64x16xbf16, #tpu.memory_space<vmem>>, vector<1x1x64x16xbf16>
    %594 = vector.shape_cast %593 : vector<1x1x64x16xbf16> to vector<64x16xbf16>
    %cst_458 = arith.constant dense<0.000000e+00> : vector<8x16xf32>
    %595 = tpu.matmul %500, %594, %cst_458 {dimension_numbers = #tpu.dot_dimension_numbers<[1], [0], [0], [1], [0, 0, 1, 1], [], []>} : vector<8x64xbf16>, vector<64x16xbf16>, vector<8x16xf32> -> vector<8x16xf32>
    %c2_459 = arith.constant 2 : index
    %c2_460 = arith.constant 2 : index
    %c0_461 = arith.constant 0 : index
    %c0_462 = arith.constant 0 : index
    %596 = vector.load %arg6[%c2_459, %c2_460, %c0_461, %c0_462] : memref<4x4x1x16xf32, #tpu.memory_space<vmem>>, vector<1x1x1x16xf32>
    %597 = vector.shape_cast %596 : vector<1x1x1x16xf32> to vector<1x16xf32>
    %598 = vector.broadcast %597 : vector<1x16xf32> to vector<8x16xf32>
    %599 = arith.addf %595, %598 : vector<8x16xf32>
    %c2_463 = arith.constant 2 : index
    %c2_464 = arith.constant 2 : index
    %c0_465 = arith.constant 0 : index
    %c0_466 = arith.constant 0 : index
    %600 = vector.load %arg7[%c2_463, %c2_464, %c0_465, %c0_466] : memref<4x4x64x16xbf16, #tpu.memory_space<vmem>>, vector<1x1x64x16xbf16>
    %601 = vector.shape_cast %600 : vector<1x1x64x16xbf16> to vector<64x16xbf16>
    %cst_467 = arith.constant dense<0.000000e+00> : vector<8x16xf32>
    %602 = tpu.matmul %500, %601, %cst_467 {dimension_numbers = #tpu.dot_dimension_numbers<[1], [0], [0], [1], [0, 0, 1, 1], [], []>} : vector<8x64xbf16>, vector<64x16xbf16>, vector<8x16xf32> -> vector<8x16xf32>
    %c2_468 = arith.constant 2 : index
    %c2_469 = arith.constant 2 : index
    %c0_470 = arith.constant 0 : index
    %c0_471 = arith.constant 0 : index
    %603 = vector.load %arg8[%c2_468, %c2_469, %c0_470, %c0_471] : memref<4x4x1x16xf32, #tpu.memory_space<vmem>>, vector<1x1x1x16xf32>
    %604 = vector.shape_cast %603 : vector<1x1x1x16xf32> to vector<1x16xf32>
    %605 = vector.broadcast %604 : vector<1x16xf32> to vector<8x16xf32>
    %606 = arith.addf %602, %605 : vector<8x16xf32>
    %607 = arith.truncf %592 : vector<8x16xf32> to vector<8x16xbf16>
    %608 = arith.truncf %599 : vector<8x16xf32> to vector<8x16xbf16>
    %cst_472 = arith.constant dense<0.000000e+00> : vector<8x8xf32>
    %609 = tpu.matmul %607, %608, %cst_472 {dimension_numbers = #tpu.dot_dimension_numbers<[1], [1], [0], [0], [0, 0, 1, 0], [], []>} : vector<8x16xbf16>, vector<8x16xbf16>, vector<8x8xf32> -> vector<8x8xf32>
    %cst_473 = arith.constant dense<0xFF800000> : vector<8xf32>
    %610 = vector.multi_reduction <maximumf>, %609, %cst_473 [1] : vector<8x8xf32> to vector<8xf32>
    %611 = vector.shape_cast %610 : vector<8xf32> to vector<8x1xf32>
    %612 = vector.broadcast %611 : vector<8x1xf32> to vector<8x8xf32>
    %613 = arith.subf %609, %612 : vector<8x8xf32>
    %614 = math.exp %613 : vector<8x8xf32>
    %cst_474 = arith.constant dense<0.000000e+00> : vector<8xf32>
    %615 = vector.multi_reduction <add>, %614, %cst_474 [1] : vector<8x8xf32> to vector<8xf32>
    %616 = vector.shape_cast %615 : vector<8xf32> to vector<8x1xf32>
    %617 = tpu.reciprocal %616 {approx = true} : vector<8x1xf32> -> vector<8x1xf32>
    %618 = vector.broadcast %617 : vector<8x1xf32> to vector<8x8xf32>
    %619 = arith.mulf %614, %618 : vector<8x8xf32>
    %620 = arith.truncf %619 : vector<8x8xf32> to vector<8x8xbf16>
    %621 = arith.truncf %606 : vector<8x16xf32> to vector<8x16xbf16>
    %cst_475 = arith.constant dense<0.000000e+00> : vector<8x16xf32>
    %622 = tpu.matmul %620, %621, %cst_475 {dimension_numbers = #tpu.dot_dimension_numbers<[1], [0], [0], [1], [0, 0, 1, 1], [], []>} : vector<8x8xbf16>, vector<8x16xbf16>, vector<8x16xf32> -> vector<8x16xf32>
    %623 = arith.truncf %622 : vector<8x16xf32> to vector<8x16xbf16>
    %c2_476 = arith.constant 2 : index
    %c2_477 = arith.constant 2 : index
    %c0_478 = arith.constant 0 : index
    %c0_479 = arith.constant 0 : index
    %624 = vector.load %arg9[%c2_476, %c2_477, %c0_478, %c0_479] : memref<4x4x16x64xbf16, #tpu.memory_space<vmem>>, vector<1x1x16x64xbf16>
    %625 = vector.shape_cast %624 : vector<1x1x16x64xbf16> to vector<16x64xbf16>
    %cst_480 = arith.constant dense<0.000000e+00> : vector<8x64xf32>
    %626 = tpu.matmul %623, %625, %cst_480 {dimension_numbers = #tpu.dot_dimension_numbers<[1], [0], [0], [1], [0, 0, 1, 1], [], []>} : vector<8x16xbf16>, vector<16x64xbf16>, vector<8x64xf32> -> vector<8x64xf32>
    %627 = arith.addf %585, %626 : vector<8x64xf32>
    %c2_481 = arith.constant 2 : index
    %c3_482 = arith.constant 3 : index
    %c0_483 = arith.constant 0 : index
    %c0_484 = arith.constant 0 : index
    %628 = vector.load %arg3[%c2_481, %c3_482, %c0_483, %c0_484] : memref<4x4x64x16xbf16, #tpu.memory_space<vmem>>, vector<1x1x64x16xbf16>
    %629 = vector.shape_cast %628 : vector<1x1x64x16xbf16> to vector<64x16xbf16>
    %cst_485 = arith.constant dense<0.000000e+00> : vector<8x16xf32>
    %630 = tpu.matmul %500, %629, %cst_485 {dimension_numbers = #tpu.dot_dimension_numbers<[1], [0], [0], [1], [0, 0, 1, 1], [], []>} : vector<8x64xbf16>, vector<64x16xbf16>, vector<8x16xf32> -> vector<8x16xf32>
    %c2_486 = arith.constant 2 : index
    %c3_487 = arith.constant 3 : index
    %c0_488 = arith.constant 0 : index
    %c0_489 = arith.constant 0 : index
    %631 = vector.load %arg4[%c2_486, %c3_487, %c0_488, %c0_489] : memref<4x4x1x16xf32, #tpu.memory_space<vmem>>, vector<1x1x1x16xf32>
    %632 = vector.shape_cast %631 : vector<1x1x1x16xf32> to vector<1x16xf32>
    %633 = vector.broadcast %632 : vector<1x16xf32> to vector<8x16xf32>
    %634 = arith.addf %630, %633 : vector<8x16xf32>
    %c2_490 = arith.constant 2 : index
    %c3_491 = arith.constant 3 : index
    %c0_492 = arith.constant 0 : index
    %c0_493 = arith.constant 0 : index
    %635 = vector.load %arg5[%c2_490, %c3_491, %c0_492, %c0_493] : memref<4x4x64x16xbf16, #tpu.memory_space<vmem>>, vector<1x1x64x16xbf16>
    %636 = vector.shape_cast %635 : vector<1x1x64x16xbf16> to vector<64x16xbf16>
    %cst_494 = arith.constant dense<0.000000e+00> : vector<8x16xf32>
    %637 = tpu.matmul %500, %636, %cst_494 {dimension_numbers = #tpu.dot_dimension_numbers<[1], [0], [0], [1], [0, 0, 1, 1], [], []>} : vector<8x64xbf16>, vector<64x16xbf16>, vector<8x16xf32> -> vector<8x16xf32>
    %c2_495 = arith.constant 2 : index
    %c3_496 = arith.constant 3 : index
    %c0_497 = arith.constant 0 : index
    %c0_498 = arith.constant 0 : index
    %638 = vector.load %arg6[%c2_495, %c3_496, %c0_497, %c0_498] : memref<4x4x1x16xf32, #tpu.memory_space<vmem>>, vector<1x1x1x16xf32>
    %639 = vector.shape_cast %638 : vector<1x1x1x16xf32> to vector<1x16xf32>
    %640 = vector.broadcast %639 : vector<1x16xf32> to vector<8x16xf32>
    %641 = arith.addf %637, %640 : vector<8x16xf32>
    %c2_499 = arith.constant 2 : index
    %c3_500 = arith.constant 3 : index
    %c0_501 = arith.constant 0 : index
    %c0_502 = arith.constant 0 : index
    %642 = vector.load %arg7[%c2_499, %c3_500, %c0_501, %c0_502] : memref<4x4x64x16xbf16, #tpu.memory_space<vmem>>, vector<1x1x64x16xbf16>
    %643 = vector.shape_cast %642 : vector<1x1x64x16xbf16> to vector<64x16xbf16>
    %cst_503 = arith.constant dense<0.000000e+00> : vector<8x16xf32>
    %644 = tpu.matmul %500, %643, %cst_503 {dimension_numbers = #tpu.dot_dimension_numbers<[1], [0], [0], [1], [0, 0, 1, 1], [], []>} : vector<8x64xbf16>, vector<64x16xbf16>, vector<8x16xf32> -> vector<8x16xf32>
    %c2_504 = arith.constant 2 : index
    %c3_505 = arith.constant 3 : index
    %c0_506 = arith.constant 0 : index
    %c0_507 = arith.constant 0 : index
    %645 = vector.load %arg8[%c2_504, %c3_505, %c0_506, %c0_507] : memref<4x4x1x16xf32, #tpu.memory_space<vmem>>, vector<1x1x1x16xf32>
    %646 = vector.shape_cast %645 : vector<1x1x1x16xf32> to vector<1x16xf32>
    %647 = vector.broadcast %646 : vector<1x16xf32> to vector<8x16xf32>
    %648 = arith.addf %644, %647 : vector<8x16xf32>
    %649 = arith.truncf %634 : vector<8x16xf32> to vector<8x16xbf16>
    %650 = arith.truncf %641 : vector<8x16xf32> to vector<8x16xbf16>
    %cst_508 = arith.constant dense<0.000000e+00> : vector<8x8xf32>
    %651 = tpu.matmul %649, %650, %cst_508 {dimension_numbers = #tpu.dot_dimension_numbers<[1], [1], [0], [0], [0, 0, 1, 0], [], []>} : vector<8x16xbf16>, vector<8x16xbf16>, vector<8x8xf32> -> vector<8x8xf32>
    %cst_509 = arith.constant dense<0xFF800000> : vector<8xf32>
    %652 = vector.multi_reduction <maximumf>, %651, %cst_509 [1] : vector<8x8xf32> to vector<8xf32>
    %653 = vector.shape_cast %652 : vector<8xf32> to vector<8x1xf32>
    %654 = vector.broadcast %653 : vector<8x1xf32> to vector<8x8xf32>
    %655 = arith.subf %651, %654 : vector<8x8xf32>
    %656 = math.exp %655 : vector<8x8xf32>
    %cst_510 = arith.constant dense<0.000000e+00> : vector<8xf32>
    %657 = vector.multi_reduction <add>, %656, %cst_510 [1] : vector<8x8xf32> to vector<8xf32>
    %658 = vector.shape_cast %657 : vector<8xf32> to vector<8x1xf32>
    %659 = tpu.reciprocal %658 {approx = true} : vector<8x1xf32> -> vector<8x1xf32>
    %660 = vector.broadcast %659 : vector<8x1xf32> to vector<8x8xf32>
    %661 = arith.mulf %656, %660 : vector<8x8xf32>
    %662 = arith.truncf %661 : vector<8x8xf32> to vector<8x8xbf16>
    %663 = arith.truncf %648 : vector<8x16xf32> to vector<8x16xbf16>
    %cst_511 = arith.constant dense<0.000000e+00> : vector<8x16xf32>
    %664 = tpu.matmul %662, %663, %cst_511 {dimension_numbers = #tpu.dot_dimension_numbers<[1], [0], [0], [1], [0, 0, 1, 1], [], []>} : vector<8x8xbf16>, vector<8x16xbf16>, vector<8x16xf32> -> vector<8x16xf32>
    %665 = arith.truncf %664 : vector<8x16xf32> to vector<8x16xbf16>
    %c2_512 = arith.constant 2 : index
    %c3_513 = arith.constant 3 : index
    %c0_514 = arith.constant 0 : index
    %c0_515 = arith.constant 0 : index
    %666 = vector.load %arg9[%c2_512, %c3_513, %c0_514, %c0_515] : memref<4x4x16x64xbf16, #tpu.memory_space<vmem>>, vector<1x1x16x64xbf16>
    %667 = vector.shape_cast %666 : vector<1x1x16x64xbf16> to vector<16x64xbf16>
    %cst_516 = arith.constant dense<0.000000e+00> : vector<8x64xf32>
    %668 = tpu.matmul %665, %667, %cst_516 {dimension_numbers = #tpu.dot_dimension_numbers<[1], [0], [0], [1], [0, 0, 1, 1], [], []>} : vector<8x16xbf16>, vector<16x64xbf16>, vector<8x64xf32> -> vector<8x64xf32>
    %669 = arith.addf %627, %668 : vector<8x64xf32>
    %c2_517 = arith.constant 2 : index
    %c0_518 = arith.constant 0 : index
    %c0_519 = arith.constant 0 : index
    %670 = vector.load %arg10[%c2_517, %c0_518, %c0_519] : memref<4x1x64xf32, #tpu.memory_space<vmem>>, vector<1x1x64xf32>
    %671 = vector.shape_cast %670 : vector<1x1x64xf32> to vector<1x64xf32>
    %672 = vector.broadcast %671 : vector<1x64xf32> to vector<8x64xf32>
    %673 = arith.addf %669, %672 : vector<8x64xf32>
    %674 = arith.addf %499, %673 : vector<8x64xf32>
    %c2_520 = arith.constant 2 : index
    %c0_521 = arith.constant 0 : index
    %c0_522 = arith.constant 0 : index
    %675 = vector.load %arg11[%c2_520, %c0_521, %c0_522] : memref<4x1x64xf32, #tpu.memory_space<vmem>>, vector<1x1x64xf32>
    %676 = vector.shape_cast %675 : vector<1x1x64xf32> to vector<1x64xf32>
    %c2_523 = arith.constant 2 : index
    %c0_524 = arith.constant 0 : index
    %c0_525 = arith.constant 0 : index
    %677 = vector.load %arg12[%c2_523, %c0_524, %c0_525] : memref<4x1x64xf32, #tpu.memory_space<vmem>>, vector<1x1x64xf32>
    %678 = vector.shape_cast %677 : vector<1x1x64xf32> to vector<1x64xf32>
    %cst_526 = arith.constant dense<0.000000e+00> : vector<8xf32>
    %679 = vector.multi_reduction <add>, %674, %cst_526 [1] : vector<8x64xf32> to vector<8xf32>
    %680 = vector.shape_cast %679 : vector<8xf32> to vector<8x1xf32>
    %cst_527 = arith.constant 6.400000e+01 : f32
    %681 = vector.broadcast %cst_527 : f32 to vector<8x1xf32>
    %682 = arith.divf %680, %681 : vector<8x1xf32>
    %683 = vector.broadcast %682 : vector<8x1xf32> to vector<8x64xf32>
    %684 = arith.subf %674, %683 : vector<8x64xf32>
    %685 = arith.mulf %684, %684 : vector<8x64xf32>
    %cst_528 = arith.constant dense<0.000000e+00> : vector<8xf32>
    %686 = vector.multi_reduction <add>, %685, %cst_528 [1] : vector<8x64xf32> to vector<8xf32>
    %687 = vector.shape_cast %686 : vector<8xf32> to vector<8x1xf32>
    %cst_529 = arith.constant 6.400000e+01 : f32
    %688 = vector.broadcast %cst_529 : f32 to vector<8x1xf32>
    %689 = arith.divf %687, %688 : vector<8x1xf32>
    %690 = vector.broadcast %682 : vector<8x1xf32> to vector<8x64xf32>
    %691 = arith.subf %674, %690 : vector<8x64xf32>
    %cst_530 = arith.constant 9.99999974E-6 : f32
    %692 = vector.broadcast %cst_530 : f32 to vector<8x1xf32>
    %693 = arith.addf %689, %692 : vector<8x1xf32>
    %694 = math.rsqrt %693 : vector<8x1xf32>
    %695 = vector.broadcast %694 : vector<8x1xf32> to vector<8x64xf32>
    %696 = arith.mulf %691, %695 : vector<8x64xf32>
    %697 = vector.broadcast %676 : vector<1x64xf32> to vector<8x64xf32>
    %698 = arith.mulf %696, %697 : vector<8x64xf32>
    %699 = vector.broadcast %678 : vector<1x64xf32> to vector<8x64xf32>
    %700 = arith.addf %698, %699 : vector<8x64xf32>
    %701 = arith.truncf %700 : vector<8x64xf32> to vector<8x64xbf16>
    %cst_531 = arith.constant 0.000000e+00 : f32
    %702 = vector.broadcast %cst_531 : f32 to vector<8x64xf32>
    %c2_532 = arith.constant 2 : index
    %c0_533 = arith.constant 0 : index
    %c0_534 = arith.constant 0 : index
    %703 = vector.load %arg13[%c2_532, %c0_533, %c0_534] : memref<4x64x2048xbf16, #tpu.memory_space<vmem>>, vector<1x64x2048xbf16>
    %704 = vector.shape_cast %703 : vector<1x64x2048xbf16> to vector<64x2048xbf16>
    %cst_535 = arith.constant dense<0.000000e+00> : vector<8x2048xf32>
    %705 = tpu.matmul %701, %704, %cst_535 {dimension_numbers = #tpu.dot_dimension_numbers<[1], [0], [0], [1], [0, 0, 1, 1], [], []>} : vector<8x64xbf16>, vector<64x2048xbf16>, vector<8x2048xf32> -> vector<8x2048xf32>
    %c2_536 = arith.constant 2 : index
    %c0_537 = arith.constant 0 : index
    %c0_538 = arith.constant 0 : index
    %706 = vector.load %arg14[%c2_536, %c0_537, %c0_538] : memref<4x1x2048xf32, #tpu.memory_space<vmem>>, vector<1x1x2048xf32>
    %707 = vector.shape_cast %706 : vector<1x1x2048xf32> to vector<1x2048xf32>
    %708 = vector.broadcast %707 : vector<1x2048xf32> to vector<8x2048xf32>
    %709 = arith.addf %705, %708 : vector<8x2048xf32>
    %cst_539 = arith.constant 0.000000e+00 : f32
    %710 = vector.broadcast %cst_539 : f32 to vector<8x2048xf32>
    %711 = arith.maximumf %709, %710 : vector<8x2048xf32>
    %712 = arith.truncf %711 : vector<8x2048xf32> to vector<8x2048xbf16>
    %c2_540 = arith.constant 2 : index
    %c0_541 = arith.constant 0 : index
    %c0_542 = arith.constant 0 : index
    %713 = vector.load %arg15[%c2_540, %c0_541, %c0_542] : memref<4x2048x64xbf16, #tpu.memory_space<vmem>>, vector<1x2048x64xbf16>
    %714 = vector.shape_cast %713 : vector<1x2048x64xbf16> to vector<2048x64xbf16>
    %cst_543 = arith.constant dense<0.000000e+00> : vector<8x64xf32>
    %715 = tpu.matmul %712, %714, %cst_543 {dimension_numbers = #tpu.dot_dimension_numbers<[1], [0], [0], [1], [0, 0, 1, 1], [], []>} : vector<8x2048xbf16>, vector<2048x64xbf16>, vector<8x64xf32> -> vector<8x64xf32>
    %716 = arith.addf %702, %715 : vector<8x64xf32>
    %c2_544 = arith.constant 2 : index
    %c0_545 = arith.constant 0 : index
    %c0_546 = arith.constant 0 : index
    %717 = vector.load %arg16[%c2_544, %c0_545, %c0_546] : memref<4x1x64xf32, #tpu.memory_space<vmem>>, vector<1x1x64xf32>
    %718 = vector.shape_cast %717 : vector<1x1x64xf32> to vector<1x64xf32>
    %719 = vector.broadcast %718 : vector<1x64xf32> to vector<8x64xf32>
    %720 = arith.addf %716, %719 : vector<8x64xf32>
    %721 = arith.addf %700, %720 : vector<8x64xf32>
    %c2_547 = arith.constant 2 : index
    %c0_548 = arith.constant 0 : index
    %c0_549 = arith.constant 0 : index
    %722 = vector.load %arg17[%c2_547, %c0_548, %c0_549] : memref<4x1x64xf32, #tpu.memory_space<vmem>>, vector<1x1x64xf32>
    %723 = vector.shape_cast %722 : vector<1x1x64xf32> to vector<1x64xf32>
    %c2_550 = arith.constant 2 : index
    %c0_551 = arith.constant 0 : index
    %c0_552 = arith.constant 0 : index
    %724 = vector.load %arg18[%c2_550, %c0_551, %c0_552] : memref<4x1x64xf32, #tpu.memory_space<vmem>>, vector<1x1x64xf32>
    %725 = vector.shape_cast %724 : vector<1x1x64xf32> to vector<1x64xf32>
    %cst_553 = arith.constant dense<0.000000e+00> : vector<8xf32>
    %726 = vector.multi_reduction <add>, %721, %cst_553 [1] : vector<8x64xf32> to vector<8xf32>
    %727 = vector.shape_cast %726 : vector<8xf32> to vector<8x1xf32>
    %cst_554 = arith.constant 6.400000e+01 : f32
    %728 = vector.broadcast %cst_554 : f32 to vector<8x1xf32>
    %729 = arith.divf %727, %728 : vector<8x1xf32>
    %730 = vector.broadcast %729 : vector<8x1xf32> to vector<8x64xf32>
    %731 = arith.subf %721, %730 : vector<8x64xf32>
    %732 = arith.mulf %731, %731 : vector<8x64xf32>
    %cst_555 = arith.constant dense<0.000000e+00> : vector<8xf32>
    %733 = vector.multi_reduction <add>, %732, %cst_555 [1] : vector<8x64xf32> to vector<8xf32>
    %734 = vector.shape_cast %733 : vector<8xf32> to vector<8x1xf32>
    %cst_556 = arith.constant 6.400000e+01 : f32
    %735 = vector.broadcast %cst_556 : f32 to vector<8x1xf32>
    %736 = arith.divf %734, %735 : vector<8x1xf32>
    %737 = vector.broadcast %729 : vector<8x1xf32> to vector<8x64xf32>
    %738 = arith.subf %721, %737 : vector<8x64xf32>
    %cst_557 = arith.constant 9.99999974E-6 : f32
    %739 = vector.broadcast %cst_557 : f32 to vector<8x1xf32>
    %740 = arith.addf %736, %739 : vector<8x1xf32>
    %741 = math.rsqrt %740 : vector<8x1xf32>
    %742 = vector.broadcast %741 : vector<8x1xf32> to vector<8x64xf32>
    %743 = arith.mulf %738, %742 : vector<8x64xf32>
    %744 = vector.broadcast %723 : vector<1x64xf32> to vector<8x64xf32>
    %745 = arith.mulf %743, %744 : vector<8x64xf32>
    %746 = vector.broadcast %725 : vector<1x64xf32> to vector<8x64xf32>
    %747 = arith.addf %745, %746 : vector<8x64xf32>
    %748 = arith.truncf %747 : vector<8x64xf32> to vector<8x64xbf16>
    %cst_558 = arith.constant 0.000000e+00 : f32
    %749 = vector.broadcast %cst_558 : f32 to vector<8x64xf32>
    %c3_559 = arith.constant 3 : index
    %c0_560 = arith.constant 0 : index
    %c0_561 = arith.constant 0 : index
    %c0_562 = arith.constant 0 : index
    %750 = vector.load %arg3[%c3_559, %c0_560, %c0_561, %c0_562] : memref<4x4x64x16xbf16, #tpu.memory_space<vmem>>, vector<1x1x64x16xbf16>
    %751 = vector.shape_cast %750 : vector<1x1x64x16xbf16> to vector<64x16xbf16>
    %cst_563 = arith.constant dense<0.000000e+00> : vector<8x16xf32>
    %752 = tpu.matmul %748, %751, %cst_563 {dimension_numbers = #tpu.dot_dimension_numbers<[1], [0], [0], [1], [0, 0, 1, 1], [], []>} : vector<8x64xbf16>, vector<64x16xbf16>, vector<8x16xf32> -> vector<8x16xf32>
    %c3_564 = arith.constant 3 : index
    %c0_565 = arith.constant 0 : index
    %c0_566 = arith.constant 0 : index
    %c0_567 = arith.constant 0 : index
    %753 = vector.load %arg4[%c3_564, %c0_565, %c0_566, %c0_567] : memref<4x4x1x16xf32, #tpu.memory_space<vmem>>, vector<1x1x1x16xf32>
    %754 = vector.shape_cast %753 : vector<1x1x1x16xf32> to vector<1x16xf32>
    %755 = vector.broadcast %754 : vector<1x16xf32> to vector<8x16xf32>
    %756 = arith.addf %752, %755 : vector<8x16xf32>
    %c3_568 = arith.constant 3 : index
    %c0_569 = arith.constant 0 : index
    %c0_570 = arith.constant 0 : index
    %c0_571 = arith.constant 0 : index
    %757 = vector.load %arg5[%c3_568, %c0_569, %c0_570, %c0_571] : memref<4x4x64x16xbf16, #tpu.memory_space<vmem>>, vector<1x1x64x16xbf16>
    %758 = vector.shape_cast %757 : vector<1x1x64x16xbf16> to vector<64x16xbf16>
    %cst_572 = arith.constant dense<0.000000e+00> : vector<8x16xf32>
    %759 = tpu.matmul %748, %758, %cst_572 {dimension_numbers = #tpu.dot_dimension_numbers<[1], [0], [0], [1], [0, 0, 1, 1], [], []>} : vector<8x64xbf16>, vector<64x16xbf16>, vector<8x16xf32> -> vector<8x16xf32>
    %c3_573 = arith.constant 3 : index
    %c0_574 = arith.constant 0 : index
    %c0_575 = arith.constant 0 : index
    %c0_576 = arith.constant 0 : index
    %760 = vector.load %arg6[%c3_573, %c0_574, %c0_575, %c0_576] : memref<4x4x1x16xf32, #tpu.memory_space<vmem>>, vector<1x1x1x16xf32>
    %761 = vector.shape_cast %760 : vector<1x1x1x16xf32> to vector<1x16xf32>
    %762 = vector.broadcast %761 : vector<1x16xf32> to vector<8x16xf32>
    %763 = arith.addf %759, %762 : vector<8x16xf32>
    %c3_577 = arith.constant 3 : index
    %c0_578 = arith.constant 0 : index
    %c0_579 = arith.constant 0 : index
    %c0_580 = arith.constant 0 : index
    %764 = vector.load %arg7[%c3_577, %c0_578, %c0_579, %c0_580] : memref<4x4x64x16xbf16, #tpu.memory_space<vmem>>, vector<1x1x64x16xbf16>
    %765 = vector.shape_cast %764 : vector<1x1x64x16xbf16> to vector<64x16xbf16>
    %cst_581 = arith.constant dense<0.000000e+00> : vector<8x16xf32>
    %766 = tpu.matmul %748, %765, %cst_581 {dimension_numbers = #tpu.dot_dimension_numbers<[1], [0], [0], [1], [0, 0, 1, 1], [], []>} : vector<8x64xbf16>, vector<64x16xbf16>, vector<8x16xf32> -> vector<8x16xf32>
    %c3_582 = arith.constant 3 : index
    %c0_583 = arith.constant 0 : index
    %c0_584 = arith.constant 0 : index
    %c0_585 = arith.constant 0 : index
    %767 = vector.load %arg8[%c3_582, %c0_583, %c0_584, %c0_585] : memref<4x4x1x16xf32, #tpu.memory_space<vmem>>, vector<1x1x1x16xf32>
    %768 = vector.shape_cast %767 : vector<1x1x1x16xf32> to vector<1x16xf32>
    %769 = vector.broadcast %768 : vector<1x16xf32> to vector<8x16xf32>
    %770 = arith.addf %766, %769 : vector<8x16xf32>
    %771 = arith.truncf %756 : vector<8x16xf32> to vector<8x16xbf16>
    %772 = arith.truncf %763 : vector<8x16xf32> to vector<8x16xbf16>
    %cst_586 = arith.constant dense<0.000000e+00> : vector<8x8xf32>
    %773 = tpu.matmul %771, %772, %cst_586 {dimension_numbers = #tpu.dot_dimension_numbers<[1], [1], [0], [0], [0, 0, 1, 0], [], []>} : vector<8x16xbf16>, vector<8x16xbf16>, vector<8x8xf32> -> vector<8x8xf32>
    %cst_587 = arith.constant dense<0xFF800000> : vector<8xf32>
    %774 = vector.multi_reduction <maximumf>, %773, %cst_587 [1] : vector<8x8xf32> to vector<8xf32>
    %775 = vector.shape_cast %774 : vector<8xf32> to vector<8x1xf32>
    %776 = vector.broadcast %775 : vector<8x1xf32> to vector<8x8xf32>
    %777 = arith.subf %773, %776 : vector<8x8xf32>
    %778 = math.exp %777 : vector<8x8xf32>
    %cst_588 = arith.constant dense<0.000000e+00> : vector<8xf32>
    %779 = vector.multi_reduction <add>, %778, %cst_588 [1] : vector<8x8xf32> to vector<8xf32>
    %780 = vector.shape_cast %779 : vector<8xf32> to vector<8x1xf32>
    %781 = tpu.reciprocal %780 {approx = true} : vector<8x1xf32> -> vector<8x1xf32>
    %782 = vector.broadcast %781 : vector<8x1xf32> to vector<8x8xf32>
    %783 = arith.mulf %778, %782 : vector<8x8xf32>
    %784 = arith.truncf %783 : vector<8x8xf32> to vector<8x8xbf16>
    %785 = arith.truncf %770 : vector<8x16xf32> to vector<8x16xbf16>
    %cst_589 = arith.constant dense<0.000000e+00> : vector<8x16xf32>
    %786 = tpu.matmul %784, %785, %cst_589 {dimension_numbers = #tpu.dot_dimension_numbers<[1], [0], [0], [1], [0, 0, 1, 1], [], []>} : vector<8x8xbf16>, vector<8x16xbf16>, vector<8x16xf32> -> vector<8x16xf32>
    %787 = arith.truncf %786 : vector<8x16xf32> to vector<8x16xbf16>
    %c3_590 = arith.constant 3 : index
    %c0_591 = arith.constant 0 : index
    %c0_592 = arith.constant 0 : index
    %c0_593 = arith.constant 0 : index
    %788 = vector.load %arg9[%c3_590, %c0_591, %c0_592, %c0_593] : memref<4x4x16x64xbf16, #tpu.memory_space<vmem>>, vector<1x1x16x64xbf16>
    %789 = vector.shape_cast %788 : vector<1x1x16x64xbf16> to vector<16x64xbf16>
    %cst_594 = arith.constant dense<0.000000e+00> : vector<8x64xf32>
    %790 = tpu.matmul %787, %789, %cst_594 {dimension_numbers = #tpu.dot_dimension_numbers<[1], [0], [0], [1], [0, 0, 1, 1], [], []>} : vector<8x16xbf16>, vector<16x64xbf16>, vector<8x64xf32> -> vector<8x64xf32>
    %791 = arith.addf %749, %790 : vector<8x64xf32>
    %c3_595 = arith.constant 3 : index
    %c1_596 = arith.constant 1 : index
    %c0_597 = arith.constant 0 : index
    %c0_598 = arith.constant 0 : index
    %792 = vector.load %arg3[%c3_595, %c1_596, %c0_597, %c0_598] : memref<4x4x64x16xbf16, #tpu.memory_space<vmem>>, vector<1x1x64x16xbf16>
    %793 = vector.shape_cast %792 : vector<1x1x64x16xbf16> to vector<64x16xbf16>
    %cst_599 = arith.constant dense<0.000000e+00> : vector<8x16xf32>
    %794 = tpu.matmul %748, %793, %cst_599 {dimension_numbers = #tpu.dot_dimension_numbers<[1], [0], [0], [1], [0, 0, 1, 1], [], []>} : vector<8x64xbf16>, vector<64x16xbf16>, vector<8x16xf32> -> vector<8x16xf32>
    %c3_600 = arith.constant 3 : index
    %c1_601 = arith.constant 1 : index
    %c0_602 = arith.constant 0 : index
    %c0_603 = arith.constant 0 : index
    %795 = vector.load %arg4[%c3_600, %c1_601, %c0_602, %c0_603] : memref<4x4x1x16xf32, #tpu.memory_space<vmem>>, vector<1x1x1x16xf32>
    %796 = vector.shape_cast %795 : vector<1x1x1x16xf32> to vector<1x16xf32>
    %797 = vector.broadcast %796 : vector<1x16xf32> to vector<8x16xf32>
    %798 = arith.addf %794, %797 : vector<8x16xf32>
    %c3_604 = arith.constant 3 : index
    %c1_605 = arith.constant 1 : index
    %c0_606 = arith.constant 0 : index
    %c0_607 = arith.constant 0 : index
    %799 = vector.load %arg5[%c3_604, %c1_605, %c0_606, %c0_607] : memref<4x4x64x16xbf16, #tpu.memory_space<vmem>>, vector<1x1x64x16xbf16>
    %800 = vector.shape_cast %799 : vector<1x1x64x16xbf16> to vector<64x16xbf16>
    %cst_608 = arith.constant dense<0.000000e+00> : vector<8x16xf32>
    %801 = tpu.matmul %748, %800, %cst_608 {dimension_numbers = #tpu.dot_dimension_numbers<[1], [0], [0], [1], [0, 0, 1, 1], [], []>} : vector<8x64xbf16>, vector<64x16xbf16>, vector<8x16xf32> -> vector<8x16xf32>
    %c3_609 = arith.constant 3 : index
    %c1_610 = arith.constant 1 : index
    %c0_611 = arith.constant 0 : index
    %c0_612 = arith.constant 0 : index
    %802 = vector.load %arg6[%c3_609, %c1_610, %c0_611, %c0_612] : memref<4x4x1x16xf32, #tpu.memory_space<vmem>>, vector<1x1x1x16xf32>
    %803 = vector.shape_cast %802 : vector<1x1x1x16xf32> to vector<1x16xf32>
    %804 = vector.broadcast %803 : vector<1x16xf32> to vector<8x16xf32>
    %805 = arith.addf %801, %804 : vector<8x16xf32>
    %c3_613 = arith.constant 3 : index
    %c1_614 = arith.constant 1 : index
    %c0_615 = arith.constant 0 : index
    %c0_616 = arith.constant 0 : index
    %806 = vector.load %arg7[%c3_613, %c1_614, %c0_615, %c0_616] : memref<4x4x64x16xbf16, #tpu.memory_space<vmem>>, vector<1x1x64x16xbf16>
    %807 = vector.shape_cast %806 : vector<1x1x64x16xbf16> to vector<64x16xbf16>
    %cst_617 = arith.constant dense<0.000000e+00> : vector<8x16xf32>
    %808 = tpu.matmul %748, %807, %cst_617 {dimension_numbers = #tpu.dot_dimension_numbers<[1], [0], [0], [1], [0, 0, 1, 1], [], []>} : vector<8x64xbf16>, vector<64x16xbf16>, vector<8x16xf32> -> vector<8x16xf32>
    %c3_618 = arith.constant 3 : index
    %c1_619 = arith.constant 1 : index
    %c0_620 = arith.constant 0 : index
    %c0_621 = arith.constant 0 : index
    %809 = vector.load %arg8[%c3_618, %c1_619, %c0_620, %c0_621] : memref<4x4x1x16xf32, #tpu.memory_space<vmem>>, vector<1x1x1x16xf32>
    %810 = vector.shape_cast %809 : vector<1x1x1x16xf32> to vector<1x16xf32>
    %811 = vector.broadcast %810 : vector<1x16xf32> to vector<8x16xf32>
    %812 = arith.addf %808, %811 : vector<8x16xf32>
    %813 = arith.truncf %798 : vector<8x16xf32> to vector<8x16xbf16>
    %814 = arith.truncf %805 : vector<8x16xf32> to vector<8x16xbf16>
    %cst_622 = arith.constant dense<0.000000e+00> : vector<8x8xf32>
    %815 = tpu.matmul %813, %814, %cst_622 {dimension_numbers = #tpu.dot_dimension_numbers<[1], [1], [0], [0], [0, 0, 1, 0], [], []>} : vector<8x16xbf16>, vector<8x16xbf16>, vector<8x8xf32> -> vector<8x8xf32>
    %cst_623 = arith.constant dense<0xFF800000> : vector<8xf32>
    %816 = vector.multi_reduction <maximumf>, %815, %cst_623 [1] : vector<8x8xf32> to vector<8xf32>
    %817 = vector.shape_cast %816 : vector<8xf32> to vector<8x1xf32>
    %818 = vector.broadcast %817 : vector<8x1xf32> to vector<8x8xf32>
    %819 = arith.subf %815, %818 : vector<8x8xf32>
    %820 = math.exp %819 : vector<8x8xf32>
    %cst_624 = arith.constant dense<0.000000e+00> : vector<8xf32>
    %821 = vector.multi_reduction <add>, %820, %cst_624 [1] : vector<8x8xf32> to vector<8xf32>
    %822 = vector.shape_cast %821 : vector<8xf32> to vector<8x1xf32>
    %823 = tpu.reciprocal %822 {approx = true} : vector<8x1xf32> -> vector<8x1xf32>
    %824 = vector.broadcast %823 : vector<8x1xf32> to vector<8x8xf32>
    %825 = arith.mulf %820, %824 : vector<8x8xf32>
    %826 = arith.truncf %825 : vector<8x8xf32> to vector<8x8xbf16>
    %827 = arith.truncf %812 : vector<8x16xf32> to vector<8x16xbf16>
    %cst_625 = arith.constant dense<0.000000e+00> : vector<8x16xf32>
    %828 = tpu.matmul %826, %827, %cst_625 {dimension_numbers = #tpu.dot_dimension_numbers<[1], [0], [0], [1], [0, 0, 1, 1], [], []>} : vector<8x8xbf16>, vector<8x16xbf16>, vector<8x16xf32> -> vector<8x16xf32>
    %829 = arith.truncf %828 : vector<8x16xf32> to vector<8x16xbf16>
    %c3_626 = arith.constant 3 : index
    %c1_627 = arith.constant 1 : index
    %c0_628 = arith.constant 0 : index
    %c0_629 = arith.constant 0 : index
    %830 = vector.load %arg9[%c3_626, %c1_627, %c0_628, %c0_629] : memref<4x4x16x64xbf16, #tpu.memory_space<vmem>>, vector<1x1x16x64xbf16>
    %831 = vector.shape_cast %830 : vector<1x1x16x64xbf16> to vector<16x64xbf16>
    %cst_630 = arith.constant dense<0.000000e+00> : vector<8x64xf32>
    %832 = tpu.matmul %829, %831, %cst_630 {dimension_numbers = #tpu.dot_dimension_numbers<[1], [0], [0], [1], [0, 0, 1, 1], [], []>} : vector<8x16xbf16>, vector<16x64xbf16>, vector<8x64xf32> -> vector<8x64xf32>
    %833 = arith.addf %791, %832 : vector<8x64xf32>
    %c3_631 = arith.constant 3 : index
    %c2_632 = arith.constant 2 : index
    %c0_633 = arith.constant 0 : index
    %c0_634 = arith.constant 0 : index
    %834 = vector.load %arg3[%c3_631, %c2_632, %c0_633, %c0_634] : memref<4x4x64x16xbf16, #tpu.memory_space<vmem>>, vector<1x1x64x16xbf16>
    %835 = vector.shape_cast %834 : vector<1x1x64x16xbf16> to vector<64x16xbf16>
    %cst_635 = arith.constant dense<0.000000e+00> : vector<8x16xf32>
    %836 = tpu.matmul %748, %835, %cst_635 {dimension_numbers = #tpu.dot_dimension_numbers<[1], [0], [0], [1], [0, 0, 1, 1], [], []>} : vector<8x64xbf16>, vector<64x16xbf16>, vector<8x16xf32> -> vector<8x16xf32>
    %c3_636 = arith.constant 3 : index
    %c2_637 = arith.constant 2 : index
    %c0_638 = arith.constant 0 : index
    %c0_639 = arith.constant 0 : index
    %837 = vector.load %arg4[%c3_636, %c2_637, %c0_638, %c0_639] : memref<4x4x1x16xf32, #tpu.memory_space<vmem>>, vector<1x1x1x16xf32>
    %838 = vector.shape_cast %837 : vector<1x1x1x16xf32> to vector<1x16xf32>
    %839 = vector.broadcast %838 : vector<1x16xf32> to vector<8x16xf32>
    %840 = arith.addf %836, %839 : vector<8x16xf32>
    %c3_640 = arith.constant 3 : index
    %c2_641 = arith.constant 2 : index
    %c0_642 = arith.constant 0 : index
    %c0_643 = arith.constant 0 : index
    %841 = vector.load %arg5[%c3_640, %c2_641, %c0_642, %c0_643] : memref<4x4x64x16xbf16, #tpu.memory_space<vmem>>, vector<1x1x64x16xbf16>
    %842 = vector.shape_cast %841 : vector<1x1x64x16xbf16> to vector<64x16xbf16>
    %cst_644 = arith.constant dense<0.000000e+00> : vector<8x16xf32>
    %843 = tpu.matmul %748, %842, %cst_644 {dimension_numbers = #tpu.dot_dimension_numbers<[1], [0], [0], [1], [0, 0, 1, 1], [], []>} : vector<8x64xbf16>, vector<64x16xbf16>, vector<8x16xf32> -> vector<8x16xf32>
    %c3_645 = arith.constant 3 : index
    %c2_646 = arith.constant 2 : index
    %c0_647 = arith.constant 0 : index
    %c0_648 = arith.constant 0 : index
    %844 = vector.load %arg6[%c3_645, %c2_646, %c0_647, %c0_648] : memref<4x4x1x16xf32, #tpu.memory_space<vmem>>, vector<1x1x1x16xf32>
    %845 = vector.shape_cast %844 : vector<1x1x1x16xf32> to vector<1x16xf32>
    %846 = vector.broadcast %845 : vector<1x16xf32> to vector<8x16xf32>
    %847 = arith.addf %843, %846 : vector<8x16xf32>
    %c3_649 = arith.constant 3 : index
    %c2_650 = arith.constant 2 : index
    %c0_651 = arith.constant 0 : index
    %c0_652 = arith.constant 0 : index
    %848 = vector.load %arg7[%c3_649, %c2_650, %c0_651, %c0_652] : memref<4x4x64x16xbf16, #tpu.memory_space<vmem>>, vector<1x1x64x16xbf16>
    %849 = vector.shape_cast %848 : vector<1x1x64x16xbf16> to vector<64x16xbf16>
    %cst_653 = arith.constant dense<0.000000e+00> : vector<8x16xf32>
    %850 = tpu.matmul %748, %849, %cst_653 {dimension_numbers = #tpu.dot_dimension_numbers<[1], [0], [0], [1], [0, 0, 1, 1], [], []>} : vector<8x64xbf16>, vector<64x16xbf16>, vector<8x16xf32> -> vector<8x16xf32>
    %c3_654 = arith.constant 3 : index
    %c2_655 = arith.constant 2 : index
    %c0_656 = arith.constant 0 : index
    %c0_657 = arith.constant 0 : index
    %851 = vector.load %arg8[%c3_654, %c2_655, %c0_656, %c0_657] : memref<4x4x1x16xf32, #tpu.memory_space<vmem>>, vector<1x1x1x16xf32>
    %852 = vector.shape_cast %851 : vector<1x1x1x16xf32> to vector<1x16xf32>
    %853 = vector.broadcast %852 : vector<1x16xf32> to vector<8x16xf32>
    %854 = arith.addf %850, %853 : vector<8x16xf32>
    %855 = arith.truncf %840 : vector<8x16xf32> to vector<8x16xbf16>
    %856 = arith.truncf %847 : vector<8x16xf32> to vector<8x16xbf16>
    %cst_658 = arith.constant dense<0.000000e+00> : vector<8x8xf32>
    %857 = tpu.matmul %855, %856, %cst_658 {dimension_numbers = #tpu.dot_dimension_numbers<[1], [1], [0], [0], [0, 0, 1, 0], [], []>} : vector<8x16xbf16>, vector<8x16xbf16>, vector<8x8xf32> -> vector<8x8xf32>
    %cst_659 = arith.constant dense<0xFF800000> : vector<8xf32>
    %858 = vector.multi_reduction <maximumf>, %857, %cst_659 [1] : vector<8x8xf32> to vector<8xf32>
    %859 = vector.shape_cast %858 : vector<8xf32> to vector<8x1xf32>
    %860 = vector.broadcast %859 : vector<8x1xf32> to vector<8x8xf32>
    %861 = arith.subf %857, %860 : vector<8x8xf32>
    %862 = math.exp %861 : vector<8x8xf32>
    %cst_660 = arith.constant dense<0.000000e+00> : vector<8xf32>
    %863 = vector.multi_reduction <add>, %862, %cst_660 [1] : vector<8x8xf32> to vector<8xf32>
    %864 = vector.shape_cast %863 : vector<8xf32> to vector<8x1xf32>
    %865 = tpu.reciprocal %864 {approx = true} : vector<8x1xf32> -> vector<8x1xf32>
    %866 = vector.broadcast %865 : vector<8x1xf32> to vector<8x8xf32>
    %867 = arith.mulf %862, %866 : vector<8x8xf32>
    %868 = arith.truncf %867 : vector<8x8xf32> to vector<8x8xbf16>
    %869 = arith.truncf %854 : vector<8x16xf32> to vector<8x16xbf16>
    %cst_661 = arith.constant dense<0.000000e+00> : vector<8x16xf32>
    %870 = tpu.matmul %868, %869, %cst_661 {dimension_numbers = #tpu.dot_dimension_numbers<[1], [0], [0], [1], [0, 0, 1, 1], [], []>} : vector<8x8xbf16>, vector<8x16xbf16>, vector<8x16xf32> -> vector<8x16xf32>
    %871 = arith.truncf %870 : vector<8x16xf32> to vector<8x16xbf16>
    %c3_662 = arith.constant 3 : index
    %c2_663 = arith.constant 2 : index
    %c0_664 = arith.constant 0 : index
    %c0_665 = arith.constant 0 : index
    %872 = vector.load %arg9[%c3_662, %c2_663, %c0_664, %c0_665] : memref<4x4x16x64xbf16, #tpu.memory_space<vmem>>, vector<1x1x16x64xbf16>
    %873 = vector.shape_cast %872 : vector<1x1x16x64xbf16> to vector<16x64xbf16>
    %cst_666 = arith.constant dense<0.000000e+00> : vector<8x64xf32>
    %874 = tpu.matmul %871, %873, %cst_666 {dimension_numbers = #tpu.dot_dimension_numbers<[1], [0], [0], [1], [0, 0, 1, 1], [], []>} : vector<8x16xbf16>, vector<16x64xbf16>, vector<8x64xf32> -> vector<8x64xf32>
    %875 = arith.addf %833, %874 : vector<8x64xf32>
    %c3_667 = arith.constant 3 : index
    %c3_668 = arith.constant 3 : index
    %c0_669 = arith.constant 0 : index
    %c0_670 = arith.constant 0 : index
    %876 = vector.load %arg3[%c3_667, %c3_668, %c0_669, %c0_670] : memref<4x4x64x16xbf16, #tpu.memory_space<vmem>>, vector<1x1x64x16xbf16>
    %877 = vector.shape_cast %876 : vector<1x1x64x16xbf16> to vector<64x16xbf16>
    %cst_671 = arith.constant dense<0.000000e+00> : vector<8x16xf32>
    %878 = tpu.matmul %748, %877, %cst_671 {dimension_numbers = #tpu.dot_dimension_numbers<[1], [0], [0], [1], [0, 0, 1, 1], [], []>} : vector<8x64xbf16>, vector<64x16xbf16>, vector<8x16xf32> -> vector<8x16xf32>
    %c3_672 = arith.constant 3 : index
    %c3_673 = arith.constant 3 : index
    %c0_674 = arith.constant 0 : index
    %c0_675 = arith.constant 0 : index
    %879 = vector.load %arg4[%c3_672, %c3_673, %c0_674, %c0_675] : memref<4x4x1x16xf32, #tpu.memory_space<vmem>>, vector<1x1x1x16xf32>
    %880 = vector.shape_cast %879 : vector<1x1x1x16xf32> to vector<1x16xf32>
    %881 = vector.broadcast %880 : vector<1x16xf32> to vector<8x16xf32>
    %882 = arith.addf %878, %881 : vector<8x16xf32>
    %c3_676 = arith.constant 3 : index
    %c3_677 = arith.constant 3 : index
    %c0_678 = arith.constant 0 : index
    %c0_679 = arith.constant 0 : index
    %883 = vector.load %arg5[%c3_676, %c3_677, %c0_678, %c0_679] : memref<4x4x64x16xbf16, #tpu.memory_space<vmem>>, vector<1x1x64x16xbf16>
    %884 = vector.shape_cast %883 : vector<1x1x64x16xbf16> to vector<64x16xbf16>
    %cst_680 = arith.constant dense<0.000000e+00> : vector<8x16xf32>
    %885 = tpu.matmul %748, %884, %cst_680 {dimension_numbers = #tpu.dot_dimension_numbers<[1], [0], [0], [1], [0, 0, 1, 1], [], []>} : vector<8x64xbf16>, vector<64x16xbf16>, vector<8x16xf32> -> vector<8x16xf32>
    %c3_681 = arith.constant 3 : index
    %c3_682 = arith.constant 3 : index
    %c0_683 = arith.constant 0 : index
    %c0_684 = arith.constant 0 : index
    %886 = vector.load %arg6[%c3_681, %c3_682, %c0_683, %c0_684] : memref<4x4x1x16xf32, #tpu.memory_space<vmem>>, vector<1x1x1x16xf32>
    %887 = vector.shape_cast %886 : vector<1x1x1x16xf32> to vector<1x16xf32>
    %888 = vector.broadcast %887 : vector<1x16xf32> to vector<8x16xf32>
    %889 = arith.addf %885, %888 : vector<8x16xf32>
    %c3_685 = arith.constant 3 : index
    %c3_686 = arith.constant 3 : index
    %c0_687 = arith.constant 0 : index
    %c0_688 = arith.constant 0 : index
    %890 = vector.load %arg7[%c3_685, %c3_686, %c0_687, %c0_688] : memref<4x4x64x16xbf16, #tpu.memory_space<vmem>>, vector<1x1x64x16xbf16>
    %891 = vector.shape_cast %890 : vector<1x1x64x16xbf16> to vector<64x16xbf16>
    %cst_689 = arith.constant dense<0.000000e+00> : vector<8x16xf32>
    %892 = tpu.matmul %748, %891, %cst_689 {dimension_numbers = #tpu.dot_dimension_numbers<[1], [0], [0], [1], [0, 0, 1, 1], [], []>} : vector<8x64xbf16>, vector<64x16xbf16>, vector<8x16xf32> -> vector<8x16xf32>
    %c3_690 = arith.constant 3 : index
    %c3_691 = arith.constant 3 : index
    %c0_692 = arith.constant 0 : index
    %c0_693 = arith.constant 0 : index
    %893 = vector.load %arg8[%c3_690, %c3_691, %c0_692, %c0_693] : memref<4x4x1x16xf32, #tpu.memory_space<vmem>>, vector<1x1x1x16xf32>
    %894 = vector.shape_cast %893 : vector<1x1x1x16xf32> to vector<1x16xf32>
    %895 = vector.broadcast %894 : vector<1x16xf32> to vector<8x16xf32>
    %896 = arith.addf %892, %895 : vector<8x16xf32>
    %897 = arith.truncf %882 : vector<8x16xf32> to vector<8x16xbf16>
    %898 = arith.truncf %889 : vector<8x16xf32> to vector<8x16xbf16>
    %cst_694 = arith.constant dense<0.000000e+00> : vector<8x8xf32>
    %899 = tpu.matmul %897, %898, %cst_694 {dimension_numbers = #tpu.dot_dimension_numbers<[1], [1], [0], [0], [0, 0, 1, 0], [], []>} : vector<8x16xbf16>, vector<8x16xbf16>, vector<8x8xf32> -> vector<8x8xf32>
    %cst_695 = arith.constant dense<0xFF800000> : vector<8xf32>
    %900 = vector.multi_reduction <maximumf>, %899, %cst_695 [1] : vector<8x8xf32> to vector<8xf32>
    %901 = vector.shape_cast %900 : vector<8xf32> to vector<8x1xf32>
    %902 = vector.broadcast %901 : vector<8x1xf32> to vector<8x8xf32>
    %903 = arith.subf %899, %902 : vector<8x8xf32>
    %904 = math.exp %903 : vector<8x8xf32>
    %cst_696 = arith.constant dense<0.000000e+00> : vector<8xf32>
    %905 = vector.multi_reduction <add>, %904, %cst_696 [1] : vector<8x8xf32> to vector<8xf32>
    %906 = vector.shape_cast %905 : vector<8xf32> to vector<8x1xf32>
    %907 = tpu.reciprocal %906 {approx = true} : vector<8x1xf32> -> vector<8x1xf32>
    %908 = vector.broadcast %907 : vector<8x1xf32> to vector<8x8xf32>
    %909 = arith.mulf %904, %908 : vector<8x8xf32>
    %910 = arith.truncf %909 : vector<8x8xf32> to vector<8x8xbf16>
    %911 = arith.truncf %896 : vector<8x16xf32> to vector<8x16xbf16>
    %cst_697 = arith.constant dense<0.000000e+00> : vector<8x16xf32>
    %912 = tpu.matmul %910, %911, %cst_697 {dimension_numbers = #tpu.dot_dimension_numbers<[1], [0], [0], [1], [0, 0, 1, 1], [], []>} : vector<8x8xbf16>, vector<8x16xbf16>, vector<8x16xf32> -> vector<8x16xf32>
    %913 = arith.truncf %912 : vector<8x16xf32> to vector<8x16xbf16>
    %c3_698 = arith.constant 3 : index
    %c3_699 = arith.constant 3 : index
    %c0_700 = arith.constant 0 : index
    %c0_701 = arith.constant 0 : index
    %914 = vector.load %arg9[%c3_698, %c3_699, %c0_700, %c0_701] : memref<4x4x16x64xbf16, #tpu.memory_space<vmem>>, vector<1x1x16x64xbf16>
    %915 = vector.shape_cast %914 : vector<1x1x16x64xbf16> to vector<16x64xbf16>
    %cst_702 = arith.constant dense<0.000000e+00> : vector<8x64xf32>
    %916 = tpu.matmul %913, %915, %cst_702 {dimension_numbers = #tpu.dot_dimension_numbers<[1], [0], [0], [1], [0, 0, 1, 1], [], []>} : vector<8x16xbf16>, vector<16x64xbf16>, vector<8x64xf32> -> vector<8x64xf32>
    %917 = arith.addf %875, %916 : vector<8x64xf32>
    %c3_703 = arith.constant 3 : index
    %c0_704 = arith.constant 0 : index
    %c0_705 = arith.constant 0 : index
    %918 = vector.load %arg10[%c3_703, %c0_704, %c0_705] : memref<4x1x64xf32, #tpu.memory_space<vmem>>, vector<1x1x64xf32>
    %919 = vector.shape_cast %918 : vector<1x1x64xf32> to vector<1x64xf32>
    %920 = vector.broadcast %919 : vector<1x64xf32> to vector<8x64xf32>
    %921 = arith.addf %917, %920 : vector<8x64xf32>
    %922 = arith.addf %747, %921 : vector<8x64xf32>
    %c3_706 = arith.constant 3 : index
    %c0_707 = arith.constant 0 : index
    %c0_708 = arith.constant 0 : index
    %923 = vector.load %arg11[%c3_706, %c0_707, %c0_708] : memref<4x1x64xf32, #tpu.memory_space<vmem>>, vector<1x1x64xf32>
    %924 = vector.shape_cast %923 : vector<1x1x64xf32> to vector<1x64xf32>
    %c3_709 = arith.constant 3 : index
    %c0_710 = arith.constant 0 : index
    %c0_711 = arith.constant 0 : index
    %925 = vector.load %arg12[%c3_709, %c0_710, %c0_711] : memref<4x1x64xf32, #tpu.memory_space<vmem>>, vector<1x1x64xf32>
    %926 = vector.shape_cast %925 : vector<1x1x64xf32> to vector<1x64xf32>
    %cst_712 = arith.constant dense<0.000000e+00> : vector<8xf32>
    %927 = vector.multi_reduction <add>, %922, %cst_712 [1] : vector<8x64xf32> to vector<8xf32>
    %928 = vector.shape_cast %927 : vector<8xf32> to vector<8x1xf32>
    %cst_713 = arith.constant 6.400000e+01 : f32
    %929 = vector.broadcast %cst_713 : f32 to vector<8x1xf32>
    %930 = arith.divf %928, %929 : vector<8x1xf32>
    %931 = vector.broadcast %930 : vector<8x1xf32> to vector<8x64xf32>
    %932 = arith.subf %922, %931 : vector<8x64xf32>
    %933 = arith.mulf %932, %932 : vector<8x64xf32>
    %cst_714 = arith.constant dense<0.000000e+00> : vector<8xf32>
    %934 = vector.multi_reduction <add>, %933, %cst_714 [1] : vector<8x64xf32> to vector<8xf32>
    %935 = vector.shape_cast %934 : vector<8xf32> to vector<8x1xf32>
    %cst_715 = arith.constant 6.400000e+01 : f32
    %936 = vector.broadcast %cst_715 : f32 to vector<8x1xf32>
    %937 = arith.divf %935, %936 : vector<8x1xf32>
    %938 = vector.broadcast %930 : vector<8x1xf32> to vector<8x64xf32>
    %939 = arith.subf %922, %938 : vector<8x64xf32>
    %cst_716 = arith.constant 9.99999974E-6 : f32
    %940 = vector.broadcast %cst_716 : f32 to vector<8x1xf32>
    %941 = arith.addf %937, %940 : vector<8x1xf32>
    %942 = math.rsqrt %941 : vector<8x1xf32>
    %943 = vector.broadcast %942 : vector<8x1xf32> to vector<8x64xf32>
    %944 = arith.mulf %939, %943 : vector<8x64xf32>
    %945 = vector.broadcast %924 : vector<1x64xf32> to vector<8x64xf32>
    %946 = arith.mulf %944, %945 : vector<8x64xf32>
    %947 = vector.broadcast %926 : vector<1x64xf32> to vector<8x64xf32>
    %948 = arith.addf %946, %947 : vector<8x64xf32>
    %949 = arith.truncf %948 : vector<8x64xf32> to vector<8x64xbf16>
    %cst_717 = arith.constant 0.000000e+00 : f32
    %950 = vector.broadcast %cst_717 : f32 to vector<8x64xf32>
    %c3_718 = arith.constant 3 : index
    %c0_719 = arith.constant 0 : index
    %c0_720 = arith.constant 0 : index
    %951 = vector.load %arg13[%c3_718, %c0_719, %c0_720] : memref<4x64x2048xbf16, #tpu.memory_space<vmem>>, vector<1x64x2048xbf16>
    %952 = vector.shape_cast %951 : vector<1x64x2048xbf16> to vector<64x2048xbf16>
    %cst_721 = arith.constant dense<0.000000e+00> : vector<8x2048xf32>
    %953 = tpu.matmul %949, %952, %cst_721 {dimension_numbers = #tpu.dot_dimension_numbers<[1], [0], [0], [1], [0, 0, 1, 1], [], []>} : vector<8x64xbf16>, vector<64x2048xbf16>, vector<8x2048xf32> -> vector<8x2048xf32>
    %c3_722 = arith.constant 3 : index
    %c0_723 = arith.constant 0 : index
    %c0_724 = arith.constant 0 : index
    %954 = vector.load %arg14[%c3_722, %c0_723, %c0_724] : memref<4x1x2048xf32, #tpu.memory_space<vmem>>, vector<1x1x2048xf32>
    %955 = vector.shape_cast %954 : vector<1x1x2048xf32> to vector<1x2048xf32>
    %956 = vector.broadcast %955 : vector<1x2048xf32> to vector<8x2048xf32>
    %957 = arith.addf %953, %956 : vector<8x2048xf32>
    %cst_725 = arith.constant 0.000000e+00 : f32
    %958 = vector.broadcast %cst_725 : f32 to vector<8x2048xf32>
    %959 = arith.maximumf %957, %958 : vector<8x2048xf32>
    %960 = arith.truncf %959 : vector<8x2048xf32> to vector<8x2048xbf16>
    %c3_726 = arith.constant 3 : index
    %c0_727 = arith.constant 0 : index
    %c0_728 = arith.constant 0 : index
    %961 = vector.load %arg15[%c3_726, %c0_727, %c0_728] : memref<4x2048x64xbf16, #tpu.memory_space<vmem>>, vector<1x2048x64xbf16>
    %962 = vector.shape_cast %961 : vector<1x2048x64xbf16> to vector<2048x64xbf16>
    %cst_729 = arith.constant dense<0.000000e+00> : vector<8x64xf32>
    %963 = tpu.matmul %960, %962, %cst_729 {dimension_numbers = #tpu.dot_dimension_numbers<[1], [0], [0], [1], [0, 0, 1, 1], [], []>} : vector<8x2048xbf16>, vector<2048x64xbf16>, vector<8x64xf32> -> vector<8x64xf32>
    %964 = arith.addf %950, %963 : vector<8x64xf32>
    %c3_730 = arith.constant 3 : index
    %c0_731 = arith.constant 0 : index
    %c0_732 = arith.constant 0 : index
    %965 = vector.load %arg16[%c3_730, %c0_731, %c0_732] : memref<4x1x64xf32, #tpu.memory_space<vmem>>, vector<1x1x64xf32>
    %966 = vector.shape_cast %965 : vector<1x1x64xf32> to vector<1x64xf32>
    %967 = vector.broadcast %966 : vector<1x64xf32> to vector<8x64xf32>
    %968 = arith.addf %964, %967 : vector<8x64xf32>
    %969 = arith.addf %948, %968 : vector<8x64xf32>
    %c3_733 = arith.constant 3 : index
    %c0_734 = arith.constant 0 : index
    %c0_735 = arith.constant 0 : index
    %970 = vector.load %arg17[%c3_733, %c0_734, %c0_735] : memref<4x1x64xf32, #tpu.memory_space<vmem>>, vector<1x1x64xf32>
    %971 = vector.shape_cast %970 : vector<1x1x64xf32> to vector<1x64xf32>
    %c3_736 = arith.constant 3 : index
    %c0_737 = arith.constant 0 : index
    %c0_738 = arith.constant 0 : index
    %972 = vector.load %arg18[%c3_736, %c0_737, %c0_738] : memref<4x1x64xf32, #tpu.memory_space<vmem>>, vector<1x1x64xf32>
    %973 = vector.shape_cast %972 : vector<1x1x64xf32> to vector<1x64xf32>
    %cst_739 = arith.constant dense<0.000000e+00> : vector<8xf32>
    %974 = vector.multi_reduction <add>, %969, %cst_739 [1] : vector<8x64xf32> to vector<8xf32>
    %975 = vector.shape_cast %974 : vector<8xf32> to vector<8x1xf32>
    %cst_740 = arith.constant 6.400000e+01 : f32
    %976 = vector.broadcast %cst_740 : f32 to vector<8x1xf32>
    %977 = arith.divf %975, %976 : vector<8x1xf32>
    %978 = vector.broadcast %977 : vector<8x1xf32> to vector<8x64xf32>
    %979 = arith.subf %969, %978 : vector<8x64xf32>
    %980 = arith.mulf %979, %979 : vector<8x64xf32>
    %cst_741 = arith.constant dense<0.000000e+00> : vector<8xf32>
    %981 = vector.multi_reduction <add>, %980, %cst_741 [1] : vector<8x64xf32> to vector<8xf32>
    %982 = vector.shape_cast %981 : vector<8xf32> to vector<8x1xf32>
    %cst_742 = arith.constant 6.400000e+01 : f32
    %983 = vector.broadcast %cst_742 : f32 to vector<8x1xf32>
    %984 = arith.divf %982, %983 : vector<8x1xf32>
    %985 = vector.broadcast %977 : vector<8x1xf32> to vector<8x64xf32>
    %986 = arith.subf %969, %985 : vector<8x64xf32>
    %cst_743 = arith.constant 9.99999974E-6 : f32
    %987 = vector.broadcast %cst_743 : f32 to vector<8x1xf32>
    %988 = arith.addf %984, %987 : vector<8x1xf32>
    %989 = math.rsqrt %988 : vector<8x1xf32>
    %990 = vector.broadcast %989 : vector<8x1xf32> to vector<8x64xf32>
    %991 = arith.mulf %986, %990 : vector<8x64xf32>
    %992 = vector.broadcast %971 : vector<1x64xf32> to vector<8x64xf32>
    %993 = arith.mulf %991, %992 : vector<8x64xf32>
    %994 = vector.broadcast %973 : vector<1x64xf32> to vector<8x64xf32>
    %995 = arith.addf %993, %994 : vector<8x64xf32>
    %c0_744 = arith.constant 0 : index
    %c0_745 = arith.constant 0 : index
    %996 = vector.load %arg19[%c0_744, %c0_745] : memref<1x64xf32, #tpu.memory_space<vmem>>, vector<1x64xf32>
    %cst_746 = arith.constant dense<0.000000e+00> : vector<1x8xf32>
    %997 = tpu.matmul %996, %995, %cst_746 {dimension_numbers = #tpu.dot_dimension_numbers<[1], [1], [0], [0], [0, 0, 1, 0], [], []>} : vector<1x64xf32>, vector<8x64xf32>, vector<1x8xf32> -> vector<1x8xf32>
    %c0_747 = arith.constant 0 : index
    %c0_748 = arith.constant 0 : index
    %998 = vector.load %arg20[%c0_747, %c0_748] : memref<1x1xf32, #tpu.memory_space<vmem>>, vector<1x1xf32>
    %999 = vector.broadcast %998 : vector<1x1xf32> to vector<1x8xf32>
    %1000 = arith.addf %997, %999 : vector<1x8xf32>
    %c0_749 = arith.constant 0 : index
    %c0_750 = arith.constant 0 : index
    %c0_751 = arith.constant 0 : index
    %1001 = vector.load %arg21[%c0_749, %c0_750, %c0_751] : memref<1x1x8xf32, #tpu.memory_space<vmem>>, vector<1x1x8xf32>
    %1002 = vector.shape_cast %1001 : vector<1x1x8xf32> to vector<1x8xf32>
    %1003 = vector.shape_cast %1000 : vector<1x8xf32> to vector<1x1x8xf32>
    tpu.vector_store %arg21[%c0_749, %c0_750, %c0_751], %1003 {strides = array<i32>} : memref<1x1x8xf32, #tpu.memory_space<vmem>>, vector<1x1x8xf32>,
    return
  }
  func.func @transform_0(%arg0: i32) -> (i32, i32, i32) {
    %c0_i32 = arith.constant 0 : i32
    %c0_i32_0 = arith.constant 0 : i32
    %c0_i32_1 = arith.constant 0 : i32
    return %arg0, %c0_i32, %c0_i32_0 : i32, i32, i32
  }
  func.func @transform_1(%arg0: i32) -> (i32, i32) {
    %c0_i32 = arith.constant 0 : i32
    %c0_i32_0 = arith.constant 0 : i32
    %c0_i32_1 = arith.constant 0 : i32
    return %c0_i32, %c0_i32_0 : i32, i32
  }
  func.func @transform_2(%arg0: i32) -> (i32, i32, i32, i32) {
    %c0_i32 = arith.constant 0 : i32
    %c0_i32_0 = arith.constant 0 : i32
    %c0_i32_1 = arith.constant 0 : i32
    %c0_i32_2 = arith.constant 0 : i32
    %c0_i32_3 = arith.constant 0 : i32
    return %c0_i32, %c0_i32_0, %c0_i32_1, %c0_i32_2 : i32, i32, i32, i32
  }
  func.func @transform_3(%arg0: i32) -> (i32, i32, i32, i32) {
    %c0_i32 = arith.constant 0 : i32
    %c0_i32_0 = arith.constant 0 : i32
    %c0_i32_1 = arith.constant 0 : i32
    %c0_i32_2 = arith.constant 0 : i32
    %c0_i32_3 = arith.constant 0 : i32
    return %c0_i32, %c0_i32_0, %c0_i32_1, %c0_i32_2 : i32, i32, i32, i32
  }
  func.func @transform_4(%arg0: i32) -> (i32, i32, i32, i32) {
    %c0_i32 = arith.constant 0 : i32
    %c0_i32_0 = arith.constant 0 : i32
    %c0_i32_1 = arith.constant 0 : i32
    %c0_i32_2 = arith.constant 0 : i32
    %c0_i32_3 = arith.constant 0 : i32
    return %c0_i32, %c0_i32_0, %c0_i32_1, %c0_i32_2 : i32, i32, i32, i32
  }
  func.func @transform_5(%arg0: i32) -> (i32, i32, i32, i32) {
    %c0_i32 = arith.constant 0 : i32
    %c0_i32_0 = arith.constant 0 : i32
    %c0_i32_1 = arith.constant 0 : i32
    %c0_i32_2 = arith.constant 0 : i32
    %c0_i32_3 = arith.constant 0 : i32
    return %c0_i32, %c0_i32_0, %c0_i32_1, %c0_i32_2 : i32, i32, i32, i32
  }
  func.func @transform_6(%arg0: i32) -> (i32, i32, i32, i32) {
    %c0_i32 = arith.constant 0 : i32
    %c0_i32_0 = arith.constant 0 : i32
    %c0_i32_1 = arith.constant 0 : i32
    %c0_i32_2 = arith.constant 0 : i32
    %c0_i32_3 = arith.constant 0 : i32
    return %c0_i32, %c0_i32_0, %c0_i32_1, %c0_i32_2 : i32, i32, i32, i32
  }
  func.func @transform_7(%arg0: i32) -> (i32, i32, i32, i32) {
    %c0_i32 = arith.constant 0 : i32
    %c0_i32_0 = arith.constant 0 : i32
    %c0_i32_1 = arith.constant 0 : i32
    %c0_i32_2 = arith.constant 0 : i32
    %c0_i32_3 = arith.constant 0 : i32
    return %c0_i32, %c0_i32_0, %c0_i32_1, %c0_i32_2 : i32, i32, i32, i32
  }
  func.func @transform_8(%arg0: i32) -> (i32, i32, i32, i32) {
    %c0_i32 = arith.constant 0 : i32
    %c0_i32_0 = arith.constant 0 : i32
    %c0_i32_1 = arith.constant 0 : i32
    %c0_i32_2 = arith.constant 0 : i32
    %c0_i32_3 = arith.constant 0 : i32
    return %c0_i32, %c0_i32_0, %c0_i32_1, %c0_i32_2 : i32, i32, i32, i32
  }
  func.func @transform_9(%arg0: i32) -> (i32, i32, i32) {
    %c0_i32 = arith.constant 0 : i32
    %c0_i32_0 = arith.constant 0 : i32
    %c0_i32_1 = arith.constant 0 : i32
    %c0_i32_2 = arith.constant 0 : i32
    return %c0_i32, %c0_i32_0, %c0_i32_1 : i32, i32, i32
  }
  func.func @transform_10(%arg0: i32) -> (i32, i32, i32) {
    %c0_i32 = arith.constant 0 : i32
    %c0_i32_0 = arith.constant 0 : i32
    %c0_i32_1 = arith.constant 0 : i32
    %c0_i32_2 = arith.constant 0 : i32
    return %c0_i32, %c0_i32_0, %c0_i32_1 : i32, i32, i32
  }
  func.func @transform_11(%arg0: i32) -> (i32, i32, i32) {
    %c0_i32 = arith.constant 0 : i32
    %c0_i32_0 = arith.constant 0 : i32
    %c0_i32_1 = arith.constant 0 : i32
    %c0_i32_2 = arith.constant 0 : i32
    return %c0_i32, %c0_i32_0, %c0_i32_1 : i32, i32, i32
  }
  func.func @transform_12(%arg0: i32) -> (i32, i32, i32) {
    %c0_i32 = arith.constant 0 : i32
    %c0_i32_0 = arith.constant 0 : i32
    %c0_i32_1 = arith.constant 0 : i32
    %c0_i32_2 = arith.constant 0 : i32
    return %c0_i32, %c0_i32_0, %c0_i32_1 : i32, i32, i32
  }
  func.func @transform_13(%arg0: i32) -> (i32, i32, i32) {
    %c0_i32 = arith.constant 0 : i32
    %c0_i32_0 = arith.constant 0 : i32
    %c0_i32_1 = arith.constant 0 : i32
    %c0_i32_2 = arith.constant 0 : i32
    return %c0_i32, %c0_i32_0, %c0_i32_1 : i32, i32, i32
  }
  func.func @transform_14(%arg0: i32) -> (i32, i32, i32) {
    %c0_i32 = arith.constant 0 : i32
    %c0_i32_0 = arith.constant 0 : i32
    %c0_i32_1 = arith.constant 0 : i32
    %c0_i32_2 = arith.constant 0 : i32
    return %c0_i32, %c0_i32_0, %c0_i32_1 : i32, i32, i32
  }
  func.func @transform_15(%arg0: i32) -> (i32, i32, i32) {
    %c0_i32 = arith.constant 0 : i32
    %c0_i32_0 = arith.constant 0 : i32
    %c0_i32_1 = arith.constant 0 : i32
    %c0_i32_2 = arith.constant 0 : i32
    return %c0_i32, %c0_i32_0, %c0_i32_1 : i32, i32, i32
  }
  func.func @transform_16(%arg0: i32) -> (i32, i32, i32) {
    %c0_i32 = arith.constant 0 : i32
    %c0_i32_0 = arith.constant 0 : i32
    %c0_i32_1 = arith.constant 0 : i32
    %c0_i32_2 = arith.constant 0 : i32
    return %c0_i32, %c0_i32_0, %c0_i32_1 : i32, i32, i32
  }
  func.func @transform_17(%arg0: i32) -> (i32, i32, i32) {
    %c0_i32 = arith.constant 0 : i32
    %c0_i32_0 = arith.constant 0 : i32
    %c0_i32_1 = arith.constant 0 : i32
    %c0_i32_2 = arith.constant 0 : i32
    return %c0_i32, %c0_i32_0, %c0_i32_1 : i32, i32, i32
  }
  func.func @transform_18(%arg0: i32) -> (i32, i32) {
    %c0_i32 = arith.constant 0 : i32
    %c0_i32_0 = arith.constant 0 : i32
    %c0_i32_1 = arith.constant 0 : i32
    return %c0_i32, %c0_i32_0 : i32, i32
  }
  func.func @transform_19(%arg0: i32) -> (i32, i32) {
    %c0_i32 = arith.constant 0 : i32
    %c0_i32_0 = arith.constant 0 : i32
    %c0_i32_1 = arith.constant 0 : i32
    return %c0_i32, %c0_i32_0 : i32, i32
  }
  func.func @transform_20(%arg0: i32) -> (i32, i32, i32) {
    %c0_i32 = arith.constant 0 : i32
    %c0_i32_0 = arith.constant 0 : i32
    %c0_i32_1 = arith.constant 0 : i32
    return %arg0, %c0_i32, %c0_i32_0 : i32, i32, i32
  }
}

</mosaic_0001>

<bundles_post_ra>
// kernel: transformer_encoder_forward.1
= control target key start
LH: loop header
LB: loop body
LE: loop exit
PB: predicated region body
PF: predicated region fallthrough
CT: control target
= control target key end

     0   :  { %s26172_s0 = inlined_call_operand.vmem [shape: f32[2,8,64], index: 0, kind: input, shape index: {}]   ;;  %s26173_s1 = inlined_call_operand.vmem [shape: f32[8,64], index: 1, kind: input, shape index: {}]   ;;  %s26174_s2 = inlined_call_operand.vmem [shape: bf16[4,4,64,16], index: 2, kind: input, shape index: {}]   ;;  %s26175_s3 = inlined_call_operand.vmem [shape: f32[4,4,1,16], index: 3, kind: input, shape index: {}]   ;;  %s26176_s4 = inlined_call_operand.vmem [shape: bf16[4,4,64,16], index: 4, kind: input, shape index: {}]   ;;  %s26177_s5 = inlined_call_operand.vmem [shape: f32[4,4,1,16], index: 5, kind: input, shape index: {}]   ;;  %s26178_s6 = inlined_call_operand.vmem [shape: bf16[4,4,64,16], index: 6, kind: input, shape index: {}]   ;;  %s26179_s7 = inlined_call_operand.vmem [shape: f32[4,4,1,16], index: 7, kind: input, shape index: {}]   ;;  %s26180_s8 = inlined_call_operand.vmem [shape: bf16[4,4,16,64], index: 8, kind: input, shape index: {}]   ;;  %s26181_s9 = inlined_call_operand.vmem [shape: f32[4,1,64], index: 9, kind: input, shape index: {}]   ;;  %s26182_s10 = inlined_call_operand.vmem [shape: f32[4,1,64], index: 10, kind: input, shape index: {}]   ;;  %s26183_s11 = inlined_call_operand.vmem [shape: f32[4,1,64], index: 11, kind: input, shape index: {}]   ;;  %s26184_s12 = inlined_call_operand.vmem [shape: bf16[4,64,2048], index: 12, kind: input, shape index: {}]   ;;  %s26185_s13 = inlined_call_operand.vmem [shape: f32[4,1,2048], index: 13, kind: input, shape index: {}]   ;;  %s26186_s14 = inlined_call_operand.vmem [shape: bf16[4,2048,64], index: 14, kind: input, shape index: {}]   ;;  %s26187_s15 = inlined_call_operand.vmem [shape: f32[4,1,64], index: 15, kind: input, shape index: {}]   ;;  %s26188_s16 = inlined_call_operand.vmem [shape: f32[4,1,64], index: 16, kind: input, shape index: {}]   ;;  %s26189_s17 = inlined_call_operand.vmem [shape: f32[4,1,64], index: 17, kind: input, shape index: {}]   ;;  %s26190_s18 = inlined_call_operand.vmem [shape: f32[1,64], index: 18, kind: input, shape index: {}]   ;;  %s26191_s19 = inlined_call_operand.<no memory space> [shape: f32[1,1], index: 19, kind: input, shape index: {}]   ;;  %s26192_s20 = inlined_call_operand.hbm [shape: f32[2,1,8], index: 20, kind: output, shape index: {}]  }
   0x1   :  { %26206 = sst [smem:[#allocation13_spill]] %s26172_s0  ;;  %v25_v0 = vstv %s26191_s19 }
   0x2   :  { %26207 = sst [smem:[#allocation14_spill]] %s26173_s1  ;;  %26 = vst [vmem:[#allocation2] sm:$0x1] %v25_v0 }
   0x3   :  { %26208 = sst [smem:[#allocation15_spill]] %s26174_s2 }
   0x4   :  { %26209 = sst [smem:[#allocation16_spill]] %s26175_s3 }
   0x5   :  { %26210 = sst [smem:[#allocation17_spill]] %s26176_s4 }
   0x6   :  { %26211 = sst [smem:[#allocation18_spill]] %s26190_s18 }
   0x7   :  { %26212 = sst [smem:[#allocation19_spill]] %s26192_s20 }
   0x8   :  { %27 = vsyncpa [#allocation4], 0 }
   0x9   :  { %29 = vsyncpa [#allocation4 + $0x1], 0  ;;  %s21821_s23 = smov 0   ;;  %s21823_s24 = smov 0  }
   0xa   :  { %s21825_s2 = smov 0   ;;  %s21827_s25 = smov 0  }
   0xb LB: > { %26213 = sst [smem:[#allocation6_spill]] %s21695_s23  ;;  %s21842_s19 = sadd.s32 4294967295, %s21707_s25   ;;  %s21707_s25 = sphi %s21827_s25, %s26234_s25   ;;  %s21703_s2 = sphi %s21825_s2, %s26236_s2   ;;  %s21699_s24 = sphi %s21823_s24, %s26238_s24   ;;  %s21695_s23 = sphi %s21821_s23, %s26237_s23  }
   0xc   : > { %26214 = sst [smem:[#allocation7_spill]] %s21703_s2  ;;  %s16288_s3 = sadd.s32 4294967294, %s21707_s25  }
   0xd   : > { %26215 = sst [smem:[#allocation8_spill]] %s21707_s25  ;;  %s21846_s26 = sadd.s32 1, %s21707_s25  }
   0xe   : > { %26216 = sst [smem:[#allocation9_spill]] %s21846_s26  ;;  %s467_s27 = sadd.s32 1, %s21703_s2 }
   0xf   : > { %s464_s28 = ssub.s32 %s21707_s25, %s21846_s26  ;;  %p477_p0 = scmp.ne.s32.totalorder %s21703_s2, %s21699_s24 }
  0x10   : > { %p465_p1 = scmp.eq.s32.totalorder %s464_s28, 0  ;;  %p478_p2 = scmp.eq.s32.totalorder %s21842_s19, 1 }
  0x11   : > { %p483_p3 = scmp.ne.s32.totalorder %s21699_s24, %s21695_s23  ;;  %p484_p4 = scmp.eq.s32.totalorder %s16288_s3, 1 }
  0x12   : > { %s21857_s4 = scalar_select %p465_p1, %s21703_s2, %s467_s27  }
  0x13   : > { %p21859_p5 = por %p478_p2, %p477_p0  ;;  %p21863_p6 = por %p484_p4, %p483_p3 }
  0x14   : > { %26217 = sst [smem:[#allocation10_spill]] %s21857_s4  ;;  %p16291_p7 = scmp.ge.s32.totalorder %s21707_s25, 1 }
  0x15   : > { %s26218_s29 = scalar_select %p21859_p5, 1, 0 }
  0x16   : > { %s26220_s30 = scalar_select %p21863_p6, 1, 0 }
  0x17   : > { %26219 = sst [smem:[#allocation11_spill]] %s26218_s29  ;;  %p566_p8 = scmp.lt.s32.totalorder %s21707_s25, 3 }
  0x18   : > { %26221 = sst [smem:[#allocation12_spill]] %s26220_s30 }
  0x19   : > { %p567_p9 = pnand %p16291_p7, %p566_p8 }
  0x1a   : > { %s26222_s1 = sld [smem:[#allocation17_spill]] (!%p567_p9)  ;;  %p622_p10 = scmp.lt.s32.totalorder (!%p567_p9), %s21842_s19, 1 }
  0x1b   : > { %570 = sbr.rel (%p567_p9) target bundleno = 19430 (0x4be6), region = 100  ;;  %s26223_s27 = sld [smem:[#allocation15_spill]] (!%p567_p9) }
  0x1c   : > { %s26224_s30 = sld [smem:[#allocation13_spill]] (!%p567_p9)  ;;  %s18890_s21 = sshll.u32 (!%p567_p9), %s21842_s19, 4 }
  0x1d   : > { %s26225_s3 = sld [smem:[#allocation14_spill]] (!%p567_p9) }
  0x1e   : > { %s26226_s25 = sld [smem:[#allocation16_spill]] (!%p567_p9) }
  0x1f   : > { %s26230_s20 = sld [smem:[#allocation19_spill]] (!%p567_p9) }
  0x20   : > { %v20847_v1 = vld [vmem:[%s26222_s1 + $0x18] sm:$0xff]   ;;  %v21709_v2 = vmov 0.0   ;;  %v20849_v4 = vld [vmem:[%s26222_s1 + $0x10] sm:$0xff]   ;;  %vm21710_vm0 = vmmov 0   ;;  %s623_s22 = scalar_select %p622_p10, %s21842_s19, 1  ;;  %v20851_v6 = vld [vmem:[%s26222_s1 + $0x8] sm:$0xff]  }
  0x21   : > { %19947 = vmatprep.subr.bf16.mxu1 %v21709_v2  ;;  %19935 = vmatprep.subr.bf16.mxu0 %v21709_v2  ;;  %v20848_v3 = vld [vmem:[%s26223_s27 + $0x18] sm:$0xff]   ;;  %v20850_v5 = vld [vmem:[%s26223_s27 + $0x10] sm:$0xff]   ;;  %v20852_v7 = vld [vmem:[%s26223_s27 + $0x8] sm:$0xff]   ;;  %vm670_vm1 = vcmask 523264   ;;  %vm874_vm2 = vcmask 130048   ;;  %vm921_vm3 = vcmask 64512  }
  0x22   : > { %19948 = vmatpush3.bf16.msra.mxu1 %v20847_v1  ;;  %19955 = vmatprep.mubr.msk.bf16.mxu1 %vm21710_vm0, %v21709_v2  ;;  %s16292_s28 = sshll.u32 %s623_s22, 3  ;;  %v20853_v8 = vld [vmem:[%s26222_s1] sm:$0xff]   ;;  %v20855_v29 = vld [vmem:[%s26178_s6 + $0x18] sm:$0xff]   ;;  %v20856_v30 = vld [vmem:[%s26178_s6 + $0x10] sm:$0xff]   ;;  %vm938_vm4 = vcmask 1043456   ;;  %vm16218_vm5 = vcmask 57344  }
  0x23   : > { %19936 = vmatpush3.bf16.msra.mxu0 %v20848_v3  ;;  %19949 = vmatprep.subr.bf16.mxu1 %v21709_v2  ;;  %s625_s23 = scalar_lea.vmem %s26224_s30, %s16292_s28  ;;  %v628_v10 = vld [vmem:[%s26225_s3] sm:$0xff]  ;;  %v20857_v31 = vld [vmem:[%s26178_s6 + $0x8] sm:$0xff]   ;;  %v20860_v51 = vld [vmem:[%s26223_s27 + $0x38] sm:$0xff]   ;;  %s26228_s30 = sld [smem:[#allocation18_spill]] }
  0x24   : > { %19937 = vmatprep.subr.bf16.mxu0 %v21709_v2  ;;  %19943 = vmatprep.mubr.msk.bf16.mxu0 %vm21710_vm0, %v21709_v2  ;;  %v627_v9 = vld [vmem:[%s625_s23] sm:$0xff]  ;;  %s26227_s26 = smov %s26226_s25  ;;  %v20862_v52 = vld [vmem:[%s26223_s27 + $0x30] sm:$0xff]   ;;  %v20864_v53 = vld [vmem:[%s26223_s27 + $0x28] sm:$0xff]   ;;  %s620_s28 = sand.u32 1, %s21699_s24  }
  0x25   : > { %v20854_v11 = vld [vmem:[%s26223_s27] sm:$0xff]   ;;  %v21911_v12 = vadd.f32 %v628_v10, %v627_v9  ;;  %v20859_v58 = vld [vmem:[%s26222_s1 + $0x38] sm:$0xff]   ;;  %v20861_v60 = vld [vmem:[%s26222_s1 + $0x30] sm:$0xff]   ;;  %s621_s4 = scalar_lea.vmem [#allocation3], %s620_s28  ;;  %s26137_s23 = scalar_lea.hbm %s26230_s20, %s18890_s21 }
  0x26   : > { %19950 = vmatpush3.bf16.msra.mxu1 %v20849_v4  ;;  %v16299_v14 = vld [vmem:[%s26177_s5] ss:$0 sm:$0xff]  ;;  %v20863_v61 = vld [vmem:[%s26222_s1 + $0x28] sm:$0xff]   ;;  %s16233_s22 = sshll.u32 %s621_s4, 4  ;;  %s16221_s2 = scalar_lea.sflag [#allocation4], %s620_s28  ;;  %s16234_s22 = int_to_ptr.vmem [resolvable:$true] %s16233_s22 }
  0x27   : > { %19938 = vmatpush3.bf16.msra.mxu0 %v20850_v5  ;;  %19951 = vmatprep.subr.bf16.mxu1 %v21709_v2  ;;  %v21917_v13 = vpack.c.bf16 %v21911_v12, %v21911_v12  ;;  %v16293_v16 = vld [vmem:[%s26226_s25] ss:$0 sm:$0xff]  ;;  %s21647_s25 = scalar_lea.vmem %s16234_s22, 16  ;;  %s21712_s19 = smov [#allocation3]  }
  0x28   : > { %19939 = vmatprep.subr.bf16.mxu0 %v21709_v2  ;;  %v20858_v32 = vld [vmem:[%s26178_s6] sm:$0xff]   ;;  %p21648_p11 = scmp.ne.s32.totalorder %s16234_s22, %s21647_s25  ;;  %s21651_s29 = sshll.u32 %s21712_s19, 4  ;;  %s21652_s29 = int_to_ptr.vmem [resolvable:$false] %s21651_s29 }
  0x29   : > { %v16305_v43 = vld [vmem:[%s26179_s7] ss:$0 sm:$0xff]  ;;  %p21654_p0 = scmp.lt.s32.totalorder %s16234_s22, %s21652_s29 }
  0x2a   : > { %19952 = vmatpush3.bf16.msra.mxu1 %v20851_v6  ;;  %v20866_v54 = vld [vmem:[%s26223_s27 + $0x20] sm:$0xff]   ;;  %p21649_p12 = pnand %p21648_p11, %p21859_p5 }
  0x2b   : > { %19940 = vmatpush3.bf16.msra.mxu0 %v20852_v7  ;;  %19953 = vmatprep.subr.bf16.mxu1 %v21709_v2  ;;  %v20865_v62 = vld [vmem:[%s26222_s1 + $0x20] sm:$0xff]  }
  0x2c   : > { %19941 = vmatprep.subr.bf16.mxu0 %v21709_v2  ;;  %p21650_p13 = pneg %p21649_p12 }
  0x2e   : > { %19954 = vmatpush3.bf16.msra.mxu1 %v20853_v8  ;;  %v16337_v8 = vld [vmem:[%s26177_s5 + $0x1] ss:$0 sm:$0xff] }
  0x2f   : > { %19942 = vmatpush3.bf16.msra.mxu0 %v20854_v11  ;;  %19971 = vmatprep.subr.bf16.mxu1 %v21709_v2  ;;  %v16322_v11 = vld [vmem:[%s26227_s26 + $0x1] ss:$0 sm:$0xff] }
  0x30   : > { %19959 = vmatprep.subr.bf16.mxu0 %v21709_v2 }
  0x31   : > { %19956 = vmatmul.mubr.msk.bf16.vlgmr.msra.gmra.mxu1 %vm670_vm1, %v21917_v13 }
  0x32   : > { %19944 = vmatmul.mubr.msk.bf16.vlgmr.msra.gmra.mxu0 %vm670_vm1, %v21917_v13  ;;  %19973 = vmatprep.mubr.msk.bf16.mxu1 %vm21710_vm0, %v21709_v2 }
  0x33   : > { %19967 = vmatprep.mubr.msk.bf16.mxu0 %vm21710_vm0, %v21709_v2  ;;  %19960 = vmatpush3.bf16.msra.mxu0 %v20855_v29 }
  0x34   : > { %19961 = vmatprep.subr.bf16.mxu0 %v21709_v2 }
  0x37   : > { %19962 = vmatpush3.bf16.msra.mxu0 %v20856_v30 }
  0x38   : > { %19963 = vmatprep.subr.bf16.mxu0 %v21709_v2 }
  0x3b   : > { %19964 = vmatpush3.bf16.msra.mxu0 %v20857_v31 }
  0x3c   : > { %19965 = vmatprep.subr.bf16.mxu0 %v21709_v2 }
  0x3f   : > { %19966 = vmatpush3.bf16.msra.mxu0 %v20858_v32 }
  0x40   : > { %19983 = vmatprep.subr.bf16.mxu0 %v21709_v2 }
  0x42   : > { %19968 = vmatmul.mubr.msk.bf16.vlgmr.msra.gmra.mxu0 %vm670_vm1, %v21917_v13 }
  0x43   : > { %19991 = vmatprep.mubr.msk.bf16.mxu0 %vm21710_vm0, %v21709_v2  ;;  %19984 = vmatpush3.bf16.msra.mxu0 %v20860_v51  ;;  %v20873_v51 = vld [vmem:[%s26222_s1 + $0x50] sm:$0xff]  }
  0x44   : > { %19985 = vmatprep.subr.bf16.mxu0 %v21709_v2 }
  0x47   : > { %19986 = vmatpush3.bf16.msra.mxu0 %v20862_v52  ;;  %v20874_v52 = vld [vmem:[%s26222_s1 + $0x48] sm:$0xff]  }
  0x48   : > { %19987 = vmatprep.subr.bf16.mxu0 %v21709_v2 }
  0x4b   : > { %19988 = vmatpush3.bf16.msra.mxu0 %v20864_v53  ;;  %v20876_v53 = vld [vmem:[%s26222_s1 + $0x40] sm:$0xff]  }
  0x4c   : > { %19989 = vmatprep.subr.bf16.mxu0 %v21709_v2 }
  0x4f   : > { %19990 = vmatpush3.bf16.msra.mxu0 %v20866_v54 }
  0x50   : > { %20007 = vmatprep.subr.bf16.mxu0 %v21709_v2 }
  0x52   : > { %19992 = vmatmul.mubr.msk.bf16.vlgmr.msra.gmra.mxu0 %vm670_vm1, %v21917_v13 }
  0x53   : > { %20015 = vmatprep.mubr.msk.bf16.mxu0 %vm21710_vm0, %v21709_v2 }
  0xf1   : > { %v787_v15 = vpop.f32.mrf.mxu1 }
  0xf2   : > { %v788_v17 = vadd.f32 %v16299_v14, %v787_v15  ;;  %v708_v18 = vpop.f32.mrf.mxu0 }
  0xf3   : > { %v19957_v19 = vpop.f32.mrf.mxu1  ;;  %v709_v24 = vadd.f32 %v16293_v16, %v708_v18 }
  0xf4   : > { %v873_v20 = vpack.c.bf16 %v788_v17, %v788_v17  ;;  %v19945_v21 = vpop.f32.mrf.mxu0 }
  0xf5   : > { %v790_v22 = vpop.f32.mrf.mxu1  ;;  %v872_v28 = vpack.c.bf16 %v709_v24, %v709_v24  ;;  %v20867_v21 = vld [vmem:[%s26178_s6 + $0x38] sm:$0xff]   ;;  %v20870_v24 = vld [vmem:[%s26178_s6 + $0x20] sm:$0xff]  }
  0xf6   : > { %v879_v23 = vsel %vm874_vm2, %v873_v20, 0  ;;  %v711_v25 = vpop.f32.mrf.mxu0  ;;  %20008 = vmatpush3.bf16.msra.mxu0 %v20867_v21  ;;  %v20868_v22 = vld [vmem:[%s26178_s6 + $0x30] sm:$0xff]  }
  0xf7   : > { %v19958_v26 = vpop.f32.mrf.mxu1  ;;  %19972 = vmatpush3.bf16.xpose.msra.mxu1 %v879_v23  ;;  %20009 = vmatprep.subr.bf16.mxu0 %v21709_v2  ;;  %v20869_v23 = vld [vmem:[%s26178_s6 + $0x28] sm:$0xff]  }
  0xf8   : > { %v19946_v27 = vpop.f32.mrf.mxu0  ;;  %19977 = vmatprep.subr.bf16.mxu1 %v21709_v2 }
  0xfa   : > { %20010 = vmatpush3.bf16.msra.mxu0 %v20868_v22 }
  0xfb   : > { %20011 = vmatprep.subr.bf16.mxu0 %v21709_v2 }
  0xfe   : > { %19974 = vmatmul.mubr.msk.bf16.vlgmr.msra.gmra.mxu1 %vm874_vm2, %v872_v28  ;;  %20012 = vmatpush3.bf16.msra.mxu0 %v20869_v23 }
  0xff   : > { %19979 = vmatprep.mubr.msk.bf16.mxu1 %vm21710_vm0, %v21709_v2  ;;  %20013 = vmatprep.subr.bf16.mxu0 %v21709_v2 }
 0x102   : > { %v866_v44 = vpop.f32.mrf.mxu0  ;;  %20014 = vmatpush3.bf16.msra.mxu0 %v20870_v24 }
 0x103   : > { %v867_v45 = vadd.f32 %v16305_v43, %v866_v44  ;;  %20031 = vmatprep.subr.bf16.mxu0 %v21709_v2  ;;  %v20875_v43 = vld [vmem:[%s26180_s8 + $0x8] sm:$0xff]  }
 0x104   : > { %v19969_v46 = vpop.f32.mrf.mxu0 }
 0x105   : > { %v934_v47 = vpack.c.bf16 %v867_v45, %v867_v45  ;;  %20016 = vmatmul.mubr.msk.bf16.vlgmr.msra.gmra.mxu0 %vm670_vm1, %v21917_v13 }
 0x106   : > { %v869_v48 = vpop.f32.mrf.mxu0  ;;  %20033 = vmatprep.mubr.msk.bf16.mxu0 %vm21710_vm0, %v21709_v2  ;;  %20032 = vmatpush3.bf16.msra.mxu0 %v20875_v43 }
 0x107   : > { %v940_v49 = vsel %vm938_vm4, %v934_v47, 0  ;;  %20043 = vmatprep.subr.bf16.mxu0 %v21709_v2  ;;  %v20871_v47 = vld [vmem:[%s26180_s8] sm:$0xff]  }
 0x108   : > { %v19970_v50 = vpop.f32.mrf.mxu0  ;;  %19978 = vmatpush3.bf16.msra.mxu1 %v940_v49  ;;  %v20872_v49 = vld [vmem:[%s26222_s1 + $0x58] sm:$0xff]  }
 0x109   : > { %19995 = vmatprep.subr.bf16.mxu1 %v21709_v2 }
 0x112   : > { %v1060_v63 = vpop.f32.mrf.mxu0 }
 0x113   : > { %v1061_v18 = vadd.f32 %v16322_v11, %v1060_v63 }
 0x114   : > { %v19993_v0 = vpop.f32.mrf.mxu0 }
 0x115   : > { %v1228_v20 = vpack.c.bf16 %v1061_v18, %v1061_v18  ;;  %v16375_v18 = vld [vmem:[%s26227_s26 + $0x2] ss:$0 sm:$0xff] }
 0x116   : > { %v1063_v1 = vpop.f32.mrf.mxu0 }
 0x117   : > { %v20880_v1 = vld [vmem:[%s26223_s27 + $0x40] sm:$0xff]  }
 0x118   : > { %v19994_v3 = vpop.f32.mrf.mxu0 }
 0x1be   : > { %v915_v33 = vpop.f32.mrf.mxu1 }
 0x1bf   : > { %v922_v34 = vsel %vm921_vm3, %v915_v33, -inf }
 0x1c0   : > { %923 = vmax.xlane.f32.xlu0 %v922_v34  ;;  %v19975_v35 = vpop.f32.mrf.mxu1 }
 0x1c1   : > { %v16352_v35 = vld [vmem:[%s26179_s7 + $0x1] ss:$0 sm:$0xff] }
 0x1c2   : > { %v918_v36 = vpop.f32.mrf.mxu1 }
 0x1c4   : > { %v19976_v37 = vpop.f32.mrf.mxu1 }
 0x1c5   : > { %v1222_v36 = vpop.f32.mrf.mxu0 }
 0x1c6   : > { %v1223_v37 = vadd.f32 %v16352_v35, %v1222_v36 }
 0x249   : > { %v924_v38 = vpop.xlane.xlu0 %923 }
 0x24a   : > { %v925_v39 = vsub.f32 %v915_v33, %v924_v38  ;;  %v20017_v38 = vpop.f32.mrf.mxu0 }
 0x24c   : > { %v926_v40 = vmul.f32 1.442695, %v925_v39  ;;  %v1288_v39 = vpack.c.bf16 %v1223_v37, %v1223_v37 }
 0x24e   : > { %21567 = vpow2.f32 %v926_v40  ;;  %v1225_v40 = vpop.f32.mrf.mxu0 }
 0x25b   : > { %v21568_v41 = vpop.eup %21567 }
 0x25c   : > { %v928_v42 = vsel %vm921_vm3, %v21568_v41, 0.0 }
 0x25d   : > { %929 = vadd.xlane.f32.xlu0 %v928_v42  ;;  %v20018_v42 = vpop.f32.mrf.mxu0 }
 0x2e6   : > { %v930_v55 = vpop.xlane.xlu0 %929 }
 0x2e7   : > { %21569 = vrcp.f32 %v930_v55  ;;  %v20877_v55 = vld [vmem:[%s26223_s27 + $0x58] sm:$0xff]  }
 0x2f4   : > { %v21570_v56 = vpop.eup %21569 }
 0x2f5   : > { %v932_v57 = vmul.f32 %v21570_v56, %v21568_v41  ;;  %v1293_v41 = vsel %vm938_vm4, %v1288_v39, 0  ;;  %v16405_v39 = vld [vmem:[%s26179_s7 + $0x2] ss:$0 sm:$0xff] }
 0x2f7   : > { %v933_v59 = vpack.c.bf16 %v932_v57, %v932_v57 }
 0x2f9   : > { %19980 = vmatmul.mubr.msk.bf16.vlgmr.msra.gmra.mxu1 %vm921_vm3, %v933_v59  ;;  %v20878_v59 = vld [vmem:[%s26223_s27 + $0x50] sm:$0xff]  }
 0x2fa   : > { %19996 = vmatpush3.bf16.msra.mxu1 %v20859_v58  ;;  %20003 = vmatprep.mubr.msk.bf16.mxu1 %vm21710_vm0, %v21709_v2 }
 0x2fb   : > { %19997 = vmatprep.subr.bf16.mxu1 %v21709_v2 }
 0x2fe   : > { %19998 = vmatpush3.bf16.msra.mxu1 %v20861_v60 }
 0x2ff   : > { %19999 = vmatprep.subr.bf16.mxu1 %v21709_v2 }
 0x302   : > { %20000 = vmatpush3.bf16.msra.mxu1 %v20863_v61 }
 0x303   : > { %20001 = vmatprep.subr.bf16.mxu1 %v21709_v2 }
 0x306   : > { %20002 = vmatpush3.bf16.msra.mxu1 %v20865_v62  ;;  %v20879_v62 = vld [vmem:[%s26223_s27 + $0x48] sm:$0xff]  }
 0x307   : > { %20019 = vmatprep.subr.bf16.mxu1 %v21709_v2 }
 0x309   : > { %20004 = vmatmul.mubr.msk.bf16.vlgmr.msra.gmra.mxu1 %vm670_vm1, %v21917_v13 }
 0x30a   : > { %20021 = vmatprep.mubr.msk.bf16.mxu1 %vm21710_vm0, %v21709_v2 }
 0x3b9   : > { %v22010_v4 = vpop.f32.mrf.mxu1 }
 0x3ba   : > { %v982_v50 = vpack.c.bf16 %v22010_v4, %v22010_v4  ;;  %v16390_v4 = vld [vmem:[%s26177_s5 + $0x2] ss:$0 sm:$0xff] }
 0x3bb   : > { %v19981_v5 = vpop.f32.mrf.mxu1 }
 0x3bd   : > { %v979_v6 = vpop.f32.mrf.mxu1 }
 0x3bf   : > { %v19982_v7 = vpop.f32.mrf.mxu1 }
 0x3c9   : > { %v1141_v9 = vpop.f32.mrf.mxu1 }
 0x3ca   : > { %v1142_v10 = vadd.f32 %v16337_v8, %v1141_v9 }
 0x3cb   : > { %v20005_v14 = vpop.f32.mrf.mxu1 }
 0x3cc   : > { %v1229_v15 = vpack.c.bf16 %v1142_v10, %v1142_v10 }
 0x3cd   : > { %v1144_v16 = vpop.f32.mrf.mxu1 }
 0x3ce   : > { %v1234_v17 = vsel %vm874_vm2, %v1229_v15, 0 }
 0x3cf   : > { %v20006_v19 = vpop.f32.mrf.mxu1  ;;  %20020 = vmatpush3.bf16.xpose.msra.mxu1 %v1234_v17 }
 0x3d0   : > { %20025 = vmatprep.subr.bf16.mxu1 %v21709_v2 }
 0x3d6   : > { %20022 = vmatmul.mubr.msk.bf16.vlgmr.msra.gmra.mxu1 %vm874_vm2, %v1228_v20 }
 0x3d7   : > { %20027 = vmatprep.mubr.msk.bf16.mxu1 %vm21710_vm0, %v21709_v2  ;;  %20026 = vmatpush3.bf16.msra.mxu1 %v1293_v41 }
 0x3d8   : > { %20037 = vmatprep.subr.bf16.mxu1 %v21709_v2 }
 0x496   : > { %v1270_v25 = vpop.f32.mrf.mxu1 }
 0x497   : > { %v1276_v26 = vsel %vm921_vm3, %v1270_v25, -inf }
 0x498   : > { %1277 = vmax.xlane.f32.xlu1 %v1276_v26  ;;  %v20023_v27 = vpop.f32.mrf.mxu1  ;;  %v20882_v26 = vld [vmem:[%s26178_s6 + $0x50] sm:$0xff]  }
 0x499   : > { %v20883_v27 = vld [vmem:[%s26178_s6 + $0x48] sm:$0xff]  }
 0x49a   : > { %v1273_v28 = vpop.f32.mrf.mxu1 }
 0x49b   : > { %v20884_v28 = vld [vmem:[%s26178_s6 + $0x40] sm:$0xff]  }
 0x49c   : > { %v20024_v29 = vpop.f32.mrf.mxu1 }
 0x521   : > { %v1278_v30 = vpop.xlane.xlu1 %1277 }
 0x522   : > { %v1279_v31 = vsub.f32 %v1270_v25, %v1278_v30  ;;  %v20881_v25 = vld [vmem:[%s26178_s6 + $0x58] sm:$0xff]  }
 0x524   : > { %v1280_v32 = vmul.f32 1.442695, %v1279_v31 }
 0x526   : > { %21571 = vpow2.f32 %v1280_v32 }
 0x533   : > { %v21572_v33 = vpop.eup %21571 }
 0x534   : > { %v1282_v34 = vsel %vm921_vm3, %v21572_v33, 0.0 }
 0x535   : > { %1283 = vadd.xlane.f32.xlu1 %v1282_v34 }
 0x5be   : > { %v1284_v44 = vpop.xlane.xlu1 %1283 }
 0x5bf   : > { %21573 = vrcp.f32 %v1284_v44 }
 0x5cc   : > { %v21574_v45 = vpop.eup %21573 }
 0x5cd   : > { %v1286_v46 = vmul.f32 %v21574_v45, %v21572_v33 }
 0x5cf   : > { %v1287_v48 = vpack.c.bf16 %v1286_v46, %v1286_v46 }
 0x5d1   : > { %20028 = vmatmul.mubr.msk.bf16.vlgmr.msra.gmra.mxu1 %vm921_vm3, %v1287_v48 }
 0x5d2   : > { %20038 = vmatpush3.bf16.msra.mxu1 %v20871_v47  ;;  %20039 = vmatprep.mubr.msk.bf16.mxu1 %vm21710_vm0, %v21709_v2  ;;  %v20885_v47 = vld [vmem:[%s26180_s8 + $0x10] sm:$0xff]  }
 0x5d3   : > { %20055 = vmatprep.subr.bf16.mxu1 %v21709_v2 }
 0x5d9   : > { %20040 = vmatmul.mubr.msk.bf16.vlgmr.msra.gmra.mxu1 %vm874_vm2, %v982_v50 }
 0x5da   : > { %20056 = vmatpush3.bf16.msra.mxu1 %v20872_v49  ;;  %20063 = vmatprep.mubr.msk.bf16.mxu1 %vm21710_vm0, %v21709_v2 }
 0x5db   : > { %20057 = vmatprep.subr.bf16.mxu1 %v21709_v2 }
 0x5de   : > { %20058 = vmatpush3.bf16.msra.mxu1 %v20873_v51 }
 0x5df   : > { %20059 = vmatprep.subr.bf16.mxu1 %v21709_v2 }
 0x5e2   : > { %20060 = vmatpush3.bf16.msra.mxu1 %v20874_v52  ;;  %v20887_v52 = vld [vmem:[%s26223_s27 + $0x78] sm:$0xff]  }
 0x5e3   : > { %20061 = vmatprep.subr.bf16.mxu1 %v21709_v2 }
 0x5e6   : > { %20062 = vmatpush3.bf16.msra.mxu1 %v20876_v53  ;;  %v20889_v53 = vld [vmem:[%s26223_s27 + $0x70] sm:$0xff]  }
 0x5e7   : > { %20079 = vmatprep.subr.bf16.mxu1 %v21709_v2 }
 0x5e9   : > { %20064 = vmatmul.mubr.msk.bf16.vlgmr.msra.gmra.mxu1 %vm670_vm1, %v21917_v13 }
 0x5ea   : > { %20081 = vmatprep.mubr.msk.bf16.mxu1 %vm21710_vm0, %v21709_v2 }
 0x691   : > { %v1329_v54 = vpop.f32.mrf.mxu1 }
 0x692   : > { %v1335_v56 = vpack.c.bf16 %v1329_v54, %v1329_v54  ;;  %v20891_v54 = vld [vmem:[%s26223_s27 + $0x68] sm:$0xff]  }
 0x693   : > { %v20029_v57 = vpop.f32.mrf.mxu1 }
 0x694   : > { %20034 = vmatmul.mubr.msk.bf16.vlgmr.msra.gmra.mxu0 %vm874_vm2, %v1335_v56  ;;  %v20886_v57 = vld [vmem:[%s26222_s1 + $0x78] sm:$0xff]  }
 0x695   : > { %20044 = vmatpush3.bf16.msra.mxu0 %v20877_v55  ;;  %v1332_v58 = vpop.f32.mrf.mxu1  ;;  %20051 = vmatprep.mubr.msk.bf16.mxu0 %vm21710_vm0, %v21709_v2  ;;  %v20893_v55 = vld [vmem:[%s26223_s27 + $0x60] sm:$0xff]  }
 0x696   : > { %20045 = vmatprep.subr.bf16.mxu0 %v21709_v2 }
 0x697   : > { %v20030_v60 = vpop.f32.mrf.mxu1 }
 0x699   : > { %20046 = vmatpush3.bf16.msra.mxu0 %v20878_v59  ;;  %v22096_v61 = vpop.f32.mrf.mxu1 }
 0x69a   : > { %20047 = vmatprep.subr.bf16.mxu0 %v21709_v2 }
 0x69b   : > { %v20041_v63 = vpop.f32.mrf.mxu1 }
 0x69d   : > { %20048 = vmatpush3.bf16.msra.mxu0 %v20879_v62  ;;  %v1434_v0 = vpop.f32.mrf.mxu1  ;;  %v20888_v62 = vld [vmem:[%s26222_s1 + $0x70] sm:$0xff]  }
 0x69e   : > { %20049 = vmatprep.subr.bf16.mxu0 %v21709_v2  ;;  %v20890_v0 = vld [vmem:[%s26222_s1 + $0x68] sm:$0xff]  }
 0x69f   : > { %v20042_v3 = vpop.f32.mrf.mxu1 }
 0x6a1   : > { %20050 = vmatpush3.bf16.msra.mxu0 %v20880_v1  ;;  %v20892_v1 = vld [vmem:[%s26222_s1 + $0x60] sm:$0xff]  }
 0x6a2   : > { %20067 = vmatprep.subr.bf16.mxu0 %v21709_v2 }
 0x6a4   : > { %20052 = vmatmul.mubr.msk.bf16.vlgmr.msra.gmra.mxu0 %vm670_vm1, %v21917_v13 }
 0x6a5   : > { %20075 = vmatprep.mubr.msk.bf16.mxu0 %vm21710_vm0, %v21709_v2  ;;  %20068 = vmatpush3.bf16.msra.mxu0 %v20881_v25  ;;  %v20894_v25 = vld [vmem:[%s26178_s6 + $0x78] sm:$0xff]  }
 0x6a6   : > { %20069 = vmatprep.subr.bf16.mxu0 %v21709_v2 }
 0x6a9   : > { %v1593_v5 = vpop.f32.mrf.mxu1  ;;  %20070 = vmatpush3.bf16.msra.mxu0 %v20882_v26  ;;  %v20895_v26 = vld [vmem:[%s26178_s6 + $0x70] sm:$0xff]  }
 0x6aa   : > { %v1594_v6 = vadd.f32 %v16390_v4, %v1593_v5  ;;  %20071 = vmatprep.subr.bf16.mxu0 %v21709_v2 }
 0x6ab   : > { %v20065_v7 = vpop.f32.mrf.mxu1 }
 0x6ac   : > { %v1681_v8 = vpack.c.bf16 %v1594_v6, %v1594_v6 }
 0x6ad   : > { %v1596_v9 = vpop.f32.mrf.mxu1  ;;  %20072 = vmatpush3.bf16.msra.mxu0 %v20883_v27  ;;  %v20896_v27 = vld [vmem:[%s26178_s6 + $0x68] sm:$0xff]  }
 0x6ae   : > { %v1686_v10 = vsel %vm874_vm2, %v1681_v8, 0  ;;  %20073 = vmatprep.subr.bf16.mxu0 %v21709_v2 }
 0x6af   : > { %v20066_v11 = vpop.f32.mrf.mxu1  ;;  %20080 = vmatpush3.bf16.xpose.msra.mxu1 %v1686_v10 }
 0x6b0   : > { %20085 = vmatprep.subr.bf16.mxu1 %v21709_v2 }
 0x6b1   : > { %20074 = vmatpush3.bf16.msra.mxu0 %v20884_v28  ;;  %v20897_v28 = vld [vmem:[%s26178_s6 + $0x60] sm:$0xff]  }
 0x6b2   : > { %20091 = vmatprep.subr.bf16.mxu0 %v21709_v2 }
 0x6b4   : > { %20076 = vmatmul.mubr.msk.bf16.vlgmr.msra.gmra.mxu0 %vm670_vm1, %v21917_v13 }
 0x6b5   : > { %20093 = vmatprep.mubr.msk.bf16.mxu0 %vm21710_vm0, %v21709_v2  ;;  %20092 = vmatpush3.bf16.msra.mxu0 %v20885_v47 }
 0x6b6   : > { %20109 = vmatprep.subr.bf16.mxu0 %v21709_v2 }
 0x754   : > { %v22116_v14 = vpop.f32.mrf.mxu0 }
 0x755   : > { %v1432_v7 = vadd.f32 %v22096_v61, %v22116_v14 }
 0x756   : > { %v20035_v15 = vpop.f32.mrf.mxu0 }
 0x758   : > { %v1385_v16 = vpop.f32.mrf.mxu0 }
 0x759   : > { %v16441_v16 = vld [vmem:[%s26177_s5 + $0x3] ss:$0 sm:$0xff] }
 0x75a   : > { %v20036_v17 = vpop.f32.mrf.mxu0 }
 0x764   : > { %v1512_v19 = vpop.f32.mrf.mxu0 }
 0x765   : > { %v1513_v20 = vadd.f32 %v16375_v18, %v1512_v19  ;;  %v16426_v19 = vld [vmem:[%s26227_s26 + $0x3] ss:$0 sm:$0xff] }
 0x766   : > { %v20053_v21 = vpop.f32.mrf.mxu0 }
 0x767   : > { %v1680_v22 = vpack.c.bf16 %v1513_v20, %v1513_v20 }
 0x768   : > { %v1515_v23 = vpop.f32.mrf.mxu0 }
 0x769   : > { %20082 = vmatmul.mubr.msk.bf16.vlgmr.msra.gmra.mxu1 %vm874_vm2, %v1680_v22 }
 0x76a   : > { %v20054_v24 = vpop.f32.mrf.mxu0  ;;  %20087 = vmatprep.mubr.msk.bf16.mxu1 %vm21710_vm0, %v21709_v2 }
 0x774   : > { %v1674_v40 = vpop.f32.mrf.mxu0 }
 0x775   : > { %v1675_v41 = vadd.f32 %v16405_v39, %v1674_v40 }
 0x776   : > { %v20077_v42 = vpop.f32.mrf.mxu0 }
 0x777   : > { %v1740_v43 = vpack.c.bf16 %v1675_v41, %v1675_v41 }
 0x778   : > { %v1677_v44 = vpop.f32.mrf.mxu0 }
 0x779   : > { %v1745_v45 = vsel %vm938_vm4, %v1740_v43, 0 }
 0x77a   : > { %v20078_v46 = vpop.f32.mrf.mxu0  ;;  %20086 = vmatpush3.bf16.msra.mxu1 %v1745_v45 }
 0x77b   : > { %20097 = vmatprep.subr.bf16.mxu1 %v21709_v2 }
 0x829   : > { %v1722_v29 = vpop.f32.mrf.mxu1 }
 0x82a   : > { %v1728_v30 = vsel %vm921_vm3, %v1722_v29, -inf }
 0x82b   : > { %1729 = vmax.xlane.f32.xlu0 %v1728_v30  ;;  %v20083_v31 = vpop.f32.mrf.mxu1 }
 0x82d   : > { %v1725_v32 = vpop.f32.mrf.mxu1 }
 0x82f   : > { %v20084_v33 = vpop.f32.mrf.mxu1 }
 0x8b4   : > { %v1730_v34 = vpop.xlane.xlu0 %1729 }
 0x8b5   : > { %v1731_v35 = vsub.f32 %v1722_v29, %v1730_v34 }
 0x8b7   : > { %v1732_v36 = vmul.f32 1.442695, %v1731_v35 }
 0x8b9   : > { %21575 = vpow2.f32 %v1732_v36 }
 0x8c6   : > { %v21576_v37 = vpop.eup %21575 }
 0x8c7   : > { %v1734_v38 = vsel %vm921_vm3, %v21576_v37, 0.0 }
 0x8c8   : > { %1735 = vadd.xlane.f32.xlu1 %v1734_v38 }
 0x951   : > { %v1736_v48 = vpop.xlane.xlu1 %1735 }
 0x952   : > { %21577 = vrcp.f32 %v1736_v48 }
 0x95f   : > { %v21578_v49 = vpop.eup %21577 }
 0x960   : > { %v1738_v50 = vmul.f32 %v21578_v49, %v21576_v37 }
 0x962   : > { %v1739_v51 = vpack.c.bf16 %v1738_v50, %v1738_v50  ;;  %v20898_v50 = vld [vmem:[%s26180_s8 + $0x18] sm:$0xff]  }
 0x964   : > { %20088 = vmatmul.mubr.msk.bf16.vlgmr.msra.gmra.mxu1 %vm921_vm3, %v1739_v51 }
 0x965   : > { %20105 = vmatprep.mubr.msk.bf16.mxu1 %vm21710_vm0, %v21709_v2  ;;  %20098 = vmatpush3.bf16.msra.mxu1 %v20887_v52 }
 0x966   : > { %20099 = vmatprep.subr.bf16.mxu1 %v21709_v2 }
 0x969   : > { %20100 = vmatpush3.bf16.msra.mxu1 %v20889_v53 }
 0x96a   : > { %20101 = vmatprep.subr.bf16.mxu1 %v21709_v2 }
 0x96d   : > { %20102 = vmatpush3.bf16.msra.mxu1 %v20891_v54 }
 0x96e   : > { %20103 = vmatprep.subr.bf16.mxu1 %v21709_v2 }
 0x971   : > { %20104 = vmatpush3.bf16.msra.mxu1 %v20893_v55 }
 0x972   : > { %20121 = vmatprep.subr.bf16.mxu1 %v21709_v2 }
 0x974   : > { %20106 = vmatmul.mubr.msk.bf16.vlgmr.msra.gmra.mxu1 %vm670_vm1, %v21917_v13 }
 0x975   : > { %20129 = vmatprep.mubr.msk.bf16.mxu1 %vm21710_vm0, %v21709_v2  ;;  %20122 = vmatpush3.bf16.msra.mxu1 %v20894_v25  ;;  %v2309_v25 = vld [vmem:[%s26184_s12 + $0xc0] sm:$0xff] }
 0x976   : > { %20123 = vmatprep.subr.bf16.mxu1 %v21709_v2 }
 0x979   : > { %20124 = vmatpush3.bf16.msra.mxu1 %v20895_v26  ;;  %v2302_v26 = vld [vmem:[%s26184_s12 + $0x88] sm:$0xff] }
 0x97a   : > { %20125 = vmatprep.subr.bf16.mxu1 %v21709_v2 }
 0x97d   : > { %20126 = vmatpush3.bf16.msra.mxu1 %v20896_v27 }
 0x97e   : > { %20127 = vmatprep.subr.bf16.mxu1 %v21709_v2 }
 0x981   : > { %20128 = vmatpush3.bf16.msra.mxu1 %v20897_v28  ;;  %v2310_v28 = vld [vmem:[%s26184_s12 + $0xc8] sm:$0xff] }
 0x982   : > { %20145 = vmatprep.subr.bf16.mxu1 %v21709_v2 }
 0x984   : > { %20130 = vmatmul.mubr.msk.bf16.vlgmr.msra.gmra.mxu1 %vm670_vm1, %v21917_v13 }
 0x985   : > { %20147 = vmatprep.mubr.msk.bf16.mxu1 %vm21710_vm0, %v21709_v2  ;;  %20146 = vmatpush3.bf16.msra.mxu1 %v20898_v50 }
 0xa24   : > { %v1781_v56 = vpop.f32.mrf.mxu1 }
 0xa25   : > { %v1787_v58 = vpack.c.bf16 %v1781_v56, %v1781_v56 }
 0xa26   : > { %v20089_v59 = vpop.f32.mrf.mxu1 }
 0xa27   : > { %20094 = vmatmul.mubr.msk.bf16.vlgmr.msra.gmra.mxu0 %vm874_vm2, %v1787_v58 }
 0xa28   : > { %20110 = vmatpush3.bf16.msra.mxu0 %v20886_v57  ;;  %v1784_v60 = vpop.f32.mrf.mxu1  ;;  %20117 = vmatprep.mubr.msk.bf16.mxu0 %vm21710_vm0, %v21709_v2  ;;  %v16468_v57 = vld [vmem:[%s26181_s9] ss:$0 sm:$0xff] }
 0xa29   : > { %20111 = vmatprep.subr.bf16.mxu0 %v21709_v2 }
 0xa2a   : > { %v20090_v63 = vpop.f32.mrf.mxu1 }
 0xa2c   : > { %20112 = vmatpush3.bf16.msra.mxu0 %v20888_v62 }
 0xa2d   : > { %20113 = vmatprep.subr.bf16.mxu0 %v21709_v2 }
 0xa30   : > { %20114 = vmatpush3.bf16.msra.mxu0 %v20890_v0 }
 0xa31   : > { %20115 = vmatprep.subr.bf16.mxu0 %v21709_v2 }
 0xa34   : > { %20116 = vmatpush3.bf16.msra.mxu0 %v20892_v1  ;;  %v1916_v3 = vpop.f32.mrf.mxu1 }
 0xa35   : > { %20133 = vmatprep.subr.bf16.mxu0 %v21709_v2  ;;  %v1917_v14 = vadd.f32 %v16426_v19, %v1916_v3  ;;  %v2325_v19 = vld [vmem:[%s26184_s12 + $0x140] sm:$0xff] }
 0xa36   : > { %v20107_v4 = vpop.f32.mrf.mxu1 }
 0xa37   : > { %20118 = vmatmul.mubr.msk.bf16.vlgmr.msra.gmra.mxu0 %vm670_vm1, %v21917_v13  ;;  %v2084_v24 = vpack.c.bf16 %v1917_v14, %v1917_v14  ;;  %v16456_v13 = vld [vmem:[%s26179_s7 + $0x3] ss:$0 sm:$0xff] }
 0xa38   : > { %20135 = vmatprep.mubr.msk.bf16.mxu0 %vm21710_vm0, %v21709_v2  ;;  %v1919_v5 = vpop.f32.mrf.mxu1 }
 0xa3a   : > { %v20108_v6 = vpop.f32.mrf.mxu1 }
 0xa44   : > { %v2078_v39 = vpop.f32.mrf.mxu1 }
 0xa45   : > { %v2079_v40 = vadd.f32 %v16456_v13, %v2078_v39  ;;  %v2335_v39 = vld [vmem:[%s26184_s12 + $0x190] sm:$0xff] }
 0xa46   : > { %v20131_v41 = vpop.f32.mrf.mxu1 }
 0xa47   : > { %v2144_v42 = vpack.c.bf16 %v2079_v40, %v2079_v40  ;;  %v2343_v40 = vld [vmem:[%s26184_s12 + $0x1d0] sm:$0xff]  ;;  %v2336_v41 = vld [vmem:[%s26184_s12 + $0x198] sm:$0xff] }
 0xa48   : > { %v2081_v43 = vpop.f32.mrf.mxu1 }
 0xa49   : > { %v2149_v44 = vsel %vm938_vm4, %v2144_v42, 0  ;;  %v16524_v42 = vcombine.high %v2335_v39, %v2343_v40  ;;  %v2344_v43 = vld [vmem:[%s26184_s12 + $0x1d8] sm:$0xff] }
 0xa4a   : > { %v20132_v45 = vpop.f32.mrf.mxu1 }
 0xa4b   : > { %v16525_v45 = vcombine.low %v2336_v41, %v2344_v43 }
 0xae7   : > { %v1834_v8 = vpop.f32.mrf.mxu0 }
 0xae8   : > { %v22203_v9 = vadd.f32 %v1834_v8, %v1432_v7  ;;  %v2333_v8 = vld [vmem:[%s26184_s12 + $0x180] sm:$0xff] }
 0xae9   : > { %v20095_v10 = vpop.f32.mrf.mxu0 }
 0xaeb   : > { %v1837_v11 = vpop.f32.mrf.mxu0 }
 0xaec   : > { %v2342_v11 = vld [vmem:[%s26184_s12 + $0x1c8] sm:$0xff] }
 0xaed   : > { %v20096_v15 = vpop.f32.mrf.mxu0 }
 0xaf7   : > { %v1997_v17 = vpop.f32.mrf.mxu0 }
 0xaf8   : > { %v1998_v18 = vadd.f32 %v16441_v16, %v1997_v17 }
 0xaf9   : > { %v20119_v20 = vpop.f32.mrf.mxu0 }
 0xafa   : > { %v2085_v21 = vpack.c.bf16 %v1998_v18, %v1998_v18  ;;  %v2317_v18 = vld [vmem:[%s26184_s12 + $0x100] sm:$0xff]  ;;  %v2318_v20 = vld [vmem:[%s26184_s12 + $0x108] sm:$0xff] }
 0xafb   : > { %v2000_v22 = vpop.f32.mrf.mxu0 }
 0xafc   : > { %v2090_v61 = vsel %vm874_vm2, %v2085_v21, 0  ;;  %v16504_v21 = vcombine.high %v2317_v18, %v2325_v19  ;;  %v2326_v22 = vld [vmem:[%s26184_s12 + $0x148] sm:$0xff] }
 0xafd   : > { %v20120_v23 = vpop.f32.mrf.mxu0  ;;  %20134 = vmatpush3.bf16.xpose.msra.mxu0 %v2090_v61  ;;  %v16503_v61 = vcombine.low %v2317_v18, %v2325_v19  ;;  %v16505_v14 = vcombine.low %v2318_v20, %v2326_v22 }
 0xafe   : > { %20139 = vmatprep.subr.bf16.mxu0 %v21709_v2  ;;  %v16506_v23 = vcombine.high %v2318_v20, %v2326_v22  ;;  %v2337_v20 = vld [vmem:[%s26184_s12 + $0x1a0] sm:$0xff]  ;;  %v2338_v22 = vld [vmem:[%s26184_s12 + $0x1a8] sm:$0xff] }
 0xb04   : > { %20136 = vmatmul.mubr.msk.bf16.vlgmr.msra.gmra.mxu0 %vm874_vm2, %v2084_v24  ;;  %v2301_v24 = vld [vmem:[%s26184_s12 + $0x80] sm:$0xff] }
 0xb05   : > { %20141 = vmatprep.mubr.msk.bf16.mxu0 %vm21710_vm0, %v21709_v2  ;;  %20140 = vmatpush3.bf16.msra.mxu0 %v2149_v44  ;;  %v16488_v27 = vcombine.high %v2301_v24, %v2309_v25  ;;  %v16523_v44 = vcombine.low %v2335_v39, %v2343_v40 }
 0xbc4   : > { %v2126_v29 = vpop.f32.mrf.mxu0 }
 0xbc5   : > { %v2132_v30 = vsel %vm921_vm3, %v2126_v29, -inf }
 0xbc6   : > { %2133 = vmax.xlane.f32.xlu0 %v2132_v30  ;;  %v20137_v31 = vpop.f32.mrf.mxu0  ;;  %v16489_v30 = vcombine.low %v2302_v26, %v2310_v28 }
 0xbc7   : > { %v16490_v31 = vcombine.high %v2302_v26, %v2310_v28  ;;  %v2321_v26 = vld [vmem:[%s26184_s12 + $0x120] sm:$0xff]  ;;  %v2322_v28 = vld [vmem:[%s26184_s12 + $0x128] sm:$0xff] }
 0xbc8   : > { %v2129_v32 = vpop.f32.mrf.mxu0 }
 0xbc9   : > { %v2285_v32 = vld [vmem:[%s26184_s12] sm:$0xff] }
 0xbca   : > { %v20138_v33 = vpop.f32.mrf.mxu0 }
 0xbcb   : > { %v2293_v33 = vld [vmem:[%s26184_s12 + $0x40] sm:$0xff] }
 0xc4f   : > { %v2134_v34 = vpop.xlane.xlu0 %2133 }
 0xc50   : > { %v2135_v35 = vsub.f32 %v2126_v29, %v2134_v34  ;;  %v16487_v29 = vcombine.low %v2301_v24, %v2309_v25  ;;  %v2286_v34 = vld [vmem:[%s26184_s12 + $0x8] sm:$0xff] }
 0xc52   : > { %v2136_v36 = vmul.f32 1.442695, %v2135_v35  ;;  %v16472_v35 = vcombine.high %v2285_v32, %v2293_v33 }
 0xc54   : > { %21579 = vpow2.f32 %v2136_v36  ;;  %v2294_v36 = vld [vmem:[%s26184_s12 + $0x48] sm:$0xff] }
 0xc55   : > { %v16474_v13 = vcombine.high %v2286_v34, %v2294_v36 }
 0xc61   : > { %v21580_v37 = vpop.eup %21579 }
 0xc62   : > { %v2138_v38 = vsel %vm921_vm3, %v21580_v37, 0.0 }
 0xc63   : > { %2139 = vadd.xlane.f32.xlu1 %v2138_v38  ;;  %v16473_v38 = vcombine.low %v2286_v34, %v2294_v36  ;;  %v2305_v34 = vld [vmem:[%s26184_s12 + $0xa0] sm:$0xff]  ;;  %v2306_v36 = vld [vmem:[%s26184_s12 + $0xa8] sm:$0xff] }
 0xcec   : > { %v2140_v46 = vpop.xlane.xlu1 %2139 }
 0xced   : > { %21581 = vrcp.f32 %v2140_v46  ;;  %v16526_v46 = vcombine.high %v2336_v41, %v2344_v43  ;;  %v2289_v41 = vld [vmem:[%s26184_s12 + $0x20] sm:$0xff]  ;;  %v2290_v43 = vld [vmem:[%s26184_s12 + $0x28] sm:$0xff] }
 0xcfa   : > { %v21582_v47 = vpop.eup %21581 }
 0xcfb   : > { %v2142_v48 = vmul.f32 %v21582_v47, %v21580_v37  ;;  %v16471_v37 = vcombine.low %v2285_v32, %v2293_v33  ;;  %v21711_v47 = vmov 0  }
 0xcfc   : > { %20846 = vset.pattern.permute.xlu0 %v21711_v47 }
 0xcfd   : > { %v2143_v49 = vpack.c.bf16 %v2142_v48, %v2142_v48 }
 0xcff   : > { %20142 = vmatmul.mubr.msk.bf16.vlgmr.msra.gmra.mxu0 %vm921_vm3, %v2143_v49 }
 0xd00   : > { %2788 = vmatprep.mubr.bf16.mxu0 %v21711_v47 }
 0xdbf   : > { %v2185_v51 = vpop.f32.mrf.mxu0 }
 0xdc0   : > { %v2191_v52 = vpack.c.bf16 %v2185_v51, %v2185_v51 }
 0xdc1   : > { %v20143_v53 = vpop.f32.mrf.mxu0 }
 0xdc2   : > { %20148 = vmatmul.mubr.msk.bf16.vlgmr.msra.gmra.mxu1 %vm874_vm2, %v2191_v52  ;;  %v16469_v52 = vld [vmem:[%s26182_s10] ss:$0 sm:$0xff] }
 0xdc3   : > { %v2188_v54 = vpop.f32.mrf.mxu0  ;;  %2829 = vmatprep.mubr.bf16.mxu1 %v21711_v47 }
 0xdc4   : > { %v16470_v54 = vld [vmem:[%s26183_s11] ss:$0 sm:$0xff] }
 0xdc5   : > { %v20144_v55 = vpop.f32.mrf.mxu0 }
 0xe82   : > { %v2238_v56 = vpop.f32.mrf.mxu1 }
 0xe83   : > { %v2244_v58 = vadd.f32 %v2238_v56, %v22203_v9  ;;  %v2334_v9 = vld [vmem:[%s26184_s12 + $0x188] sm:$0xff]  ;;  %v2319_v56 = vld [vmem:[%s26184_s12 + $0x110] sm:$0xff] }
 0xe84   : > { %v20149_v59 = vpop.f32.mrf.mxu1  ;;  %v16521_v16 = vcombine.low %v2334_v9, %v2342_v11  ;;  %v16522_v17 = vcombine.high %v2334_v9, %v2342_v11  ;;  %v2287_v9 = vld [vmem:[%s26184_s12 + $0x10] sm:$0xff]  ;;  %v2288_v11 = vld [vmem:[%s26184_s12 + $0x18] sm:$0xff] }
 0xe85   : > { %v2252_v60 = vadd.f32 %v16468_v57, %v2244_v58  ;;  %v2327_v57 = vld [vmem:[%s26184_s12 + $0x150] sm:$0xff]  ;;  %v2320_v58 = vld [vmem:[%s26184_s12 + $0x118] sm:$0xff] }
 0xe86   : > { %v2241_v62 = vpop.f32.mrf.mxu1  ;;  %2805 = vmatprep.subr.bf16.mxu1 %v16522_v17  ;;  %v2328_v59 = vld [vmem:[%s26184_s12 + $0x158] sm:$0xff] }
 0xe87   : > { %v2253_v63 = vadd.f32 %v2252_v60, %v21911_v12  ;;  %v2341_v12 = vld [vmem:[%s26184_s12 + $0x1c0] sm:$0xff]  ;;  %2806 = vmatpush1.bf16.msra.mxu1 %v16521_v16 }
 0xe88   : > { %v20150_v0 = vpop.f32.mrf.mxu1  ;;  %v16520_v10 = vcombine.high %v2333_v8, %v2341_v12  ;;  %v16519_v15 = vcombine.low %v2333_v8, %v2341_v12  ;;  %2807 = vmatprep.subr.bf16.mxu1 %v16506_v23 }
 0xe89   : > { %v2256_v1 = vsel %vm670_vm1, %v2253_v63, 0.0  ;;  %v16510_v0 = vcombine.high %v2320_v58, %v2328_v59 }
 0xe8a   : > { %2257 = vadd.xlane.f32.xlu0 %v2256_v1  ;;  %2764 = vmatprep.subr.bf16.mxu0 %v16520_v10  ;;  %v2303_v1 = vld [vmem:[%s26184_s12 + $0x90] sm:$0xff] }
 0xe8b   : > { %2765 = vmatpush1.bf16.msra.mxu0 %v16519_v15  ;;  %2808 = vmatpush1.bf16.msra.mxu1 %v16505_v14  ;;  %v2295_v10 = vld [vmem:[%s26184_s12 + $0x50] sm:$0xff]  ;;  %v2296_v15 = vld [vmem:[%s26184_s12 + $0x58] sm:$0xff] }
 0xe8c   : > { %2766 = vmatprep.subr.bf16.mxu0 %v16504_v21  ;;  %2809 = vmatprep.subr.bf16.mxu1 %v16490_v31  ;;  %v16476_v18 = vcombine.high %v2287_v9, %v2295_v10  ;;  %v16478_v19 = vcombine.high %v2288_v11, %v2296_v15  ;;  %v2345_v21 = vld [vmem:[%s26184_s12 + $0x1e0] sm:$0xff]  ;;  %v16475_v14 = vcombine.low %v2287_v9, %v2295_v10 }
 0xe8d   : > { %v16477_v23 = vcombine.low %v2288_v11, %v2296_v15  ;;  %v16528_v24 = vcombine.high %v2337_v20, %v2345_v21 }
 0xe8f   : > { %2767 = vmatpush1.bf16.msra.mxu0 %v16503_v61  ;;  %2810 = vmatpush1.bf16.msra.mxu1 %v16489_v30  ;;  %v2346_v61 = vld [vmem:[%s26184_s12 + $0x1e8] sm:$0xff]  ;;  %v16527_v30 = vcombine.low %v2337_v20, %v2345_v21 }
 0xe90   : > { %2768 = vmatprep.subr.bf16.mxu0 %v16488_v27  ;;  %2811 = vmatprep.subr.bf16.mxu1 %v16474_v13  ;;  %v16530_v25 = vcombine.high %v2338_v22, %v2346_v61  ;;  %v2329_v27 = vld [vmem:[%s26184_s12 + $0x160] sm:$0xff]  ;;  %v16529_v31 = vcombine.low %v2338_v22, %v2346_v61 }
 0xe91   : > { %v16512_v32 = vcombine.high %v2321_v26, %v2329_v27 }
 0xe93   : > { %2769 = vmatpush1.bf16.msra.mxu0 %v16487_v29  ;;  %2812 = vmatpush1.bf16.msra.mxu1 %v16473_v38  ;;  %v2330_v29 = vld [vmem:[%s26184_s12 + $0x168] sm:$0xff]  ;;  %v16511_v38 = vcombine.low %v2321_v26, %v2329_v27  ;;  %v20901_v26 = vld [vmem:[%s26186_s14 + $0x38] sm:$0xff]  }
 0xe94   : > { %2770 = vmatprep.subr.bf16.mxu0 %v16472_v35  ;;  %2887 = vmatprep.subr.bf16.mxu1 %v16526_v46  ;;  %v16514_v33 = vcombine.high %v2322_v28, %v2330_v29  ;;  %v2313_v35 = vld [vmem:[%s26184_s12 + $0xe0] sm:$0xff]  ;;  %v16513_v13 = vcombine.low %v2322_v28, %v2330_v29  ;;  %v20902_v27 = vld [vmem:[%s26186_s14 + $0xb8] sm:$0xff]   ;;  %v20903_v28 = vld [vmem:[%s26186_s14 + $0x70] sm:$0xff]  }
 0xe95   : > { %v16496_v39 = vcombine.high %v2305_v34, %v2313_v35  ;;  %v20904_v29 = vld [vmem:[%s26186_s14 + $0xf0] sm:$0xff]  }
 0xe97   : > { %2771 = vmatpush1.bf16.msra.mxu0 %v16471_v37  ;;  %v2314_v37 = vld [vmem:[%s26184_s12 + $0xe8] sm:$0xff] }
 0xe98   : > { %2846 = vmatprep.subr.bf16.mxu0 %v16524_v42  ;;  %v16498_v40 = vcombine.high %v2306_v36, %v2314_v37  ;;  %v2297_v42 = vld [vmem:[%s26184_s12 + $0x60] sm:$0xff]  ;;  %v16497_v46 = vcombine.low %v2306_v36, %v2314_v37 }
 0xe99   : > { %v20912_v36 = vld [vmem:[%s26186_s14 + $0xe0] sm:$0xff]  }
 0xe9a   : > { %v20913_v37 = vld [vmem:[%s26186_s14 + $0x20] sm:$0xff]  }
 0xf13   : > { %v2258_v3 = vpop.xlane.xlu0 %2257 }
 0xf14   : > { %v2260_v4 = vmul.f32 0.015625, %v2258_v3  ;;  %v2311_v3 = vld [vmem:[%s26184_s12 + $0xd0] sm:$0xff] }
 0xf15   : > { %v16492_v8 = vcombine.high %v2303_v1, %v2311_v3  ;;  %v16491_v16 = vcombine.low %v2303_v1, %v2311_v3 }
 0xf16   : > { %v22253_v5 = vsub.f32 %v2253_v63, %v2260_v4  ;;  %v16508_v63 = vcombine.high %v2319_v56, %v2327_v57  ;;  %v2304_v4 = vld [vmem:[%s26184_s12 + $0x98] sm:$0xff] }
 0xf18   : > { %v2262_v6 = vmul.f32 %v22253_v5, %v22253_v5 }
 0xf1a   : > { %v2263_v7 = vsel %vm670_vm1, %v2262_v6, 0.0  ;;  %v16507_v6 = vcombine.low %v2319_v56, %v2327_v57 }
 0xf1b   : > { %2264 = vadd.xlane.f32.xlu1 %v2263_v7  ;;  %v16509_v7 = vcombine.low %v2320_v58, %v2328_v59  ;;  %v2323_v58 = vld [vmem:[%s26184_s12 + $0x130] sm:$0xff] }
 0xf1c   : > { %v2331_v59 = vld [vmem:[%s26184_s12 + $0x170] sm:$0xff] }
 0xf1d   : > { %v16515_v9 = vcombine.low %v2323_v58, %v2331_v59 }
 0xfa4   : > { %v2265_v48 = vpop.xlane.xlu1 %2264 }
 0xfa5   : > { %v2266_v49 = vmul.f32 0.015625, %v2265_v48  ;;  %v16480_v48 = vcombine.high %v2289_v41, %v2297_v42 }
 0xfa7   : > { %v2267_v50 = vadd.f32 1e-05, %v2266_v49 }
 0xfa9   : > { %21583 = vrsqrt.f32 %v2267_v50  ;;  %v2339_v50 = vld [vmem:[%s26184_s12 + $0x1b0] sm:$0xff] }
 0xfb6   : > { %v21584_v51 = vpop.eup %21583 }
 0xfb7   : > { %v2269_v53 = vmul.f32 %v21584_v51, %v22253_v5  ;;  %v2312_v5 = vld [vmem:[%s26184_s12 + $0xd8] sm:$0xff]  ;;  %v2347_v51 = vld [vmem:[%s26184_s12 + $0x1f0] sm:$0xff] }
 0xfb8   : > { %v16494_v12 = vcombine.high %v2304_v4, %v2312_v5  ;;  %v16493_v17 = vcombine.low %v2304_v4, %v2312_v5  ;;  %v16532_v56 = vcombine.high %v2339_v50, %v2347_v51  ;;  %v16531_v1 = vcombine.low %v2339_v50, %v2347_v51  ;;  %v20926_v50 = vld [vmem:[%s26186_s14 + $0x88] sm:$0xff]   ;;  %v20927_v51 = vld [vmem:[%s26186_s14 + $0x40] sm:$0xff]  }
 0xfb9   : > { %v2276_v55 = vmul.f32 %v16469_v52, %v2269_v53  ;;  %v2340_v52 = vld [vmem:[%s26184_s12 + $0x1b8] sm:$0xff]  ;;  %v16516_v4 = vcombine.high %v2323_v58, %v2331_v59 }
 0xfba   : > { %v2348_v53 = vld [vmem:[%s26184_s12 + $0x1f8] sm:$0xff] }
 0xfbb   : > { %v22340_v60 = vadd.f32 %v16470_v54, %v2276_v55  ;;  %v16479_v54 = vcombine.low %v2289_v41, %v2297_v42  ;;  %v16534_v57 = vcombine.high %v2340_v52, %v2348_v53  ;;  %v16533_v3 = vcombine.low %v2340_v52, %v2348_v53  ;;  %v20918_v41 = vld [vmem:[%s26186_s14 + $0x98] sm:$0xff]   ;;  %v20919_v42 = vld [vmem:[%s26186_s14 + $0x50] sm:$0xff]   ;;  %v20928_v52 = vld [vmem:[%s26186_s14 + $0xc0] sm:$0xff]  }
 0xfbc   : > { %v20929_v53 = vld [vmem:[%s26186_s14] sm:$0xff]  }
 0xfbd   : > { %v22344_v62 = vpack.c.bf16 %v22340_v60, %v22340_v60 }
 0xfbf   : > { %16535 = vmatmul.mubr.msk.bf16.vlgmr.msra.gmra.mxu0 %vm670_vm1, %v22344_v62  ;;  %16536 = vmatmul.mubr.msk.bf16.vlgmr.msra.gmra.mxu1 %vm670_vm1, %v22344_v62 }
 0xfc0   : > { %2847 = vmatpush1.bf16.msra.mxu0 %v16523_v44  ;;  %2888 = vmatpush1.bf16.msra.mxu1 %v16525_v45  ;;  %v2298_v44 = vld [vmem:[%s26184_s12 + $0x68] sm:$0xff]  ;;  %v16495_v45 = vcombine.low %v2305_v34, %v2313_v35  ;;  %v20911_v35 = vld [vmem:[%s26186_s14 + $0x60] sm:$0xff]  }
 0xfc1   : > { %2848 = vmatprep.subr.bf16.mxu0 %v16508_v63  ;;  %2889 = vmatprep.subr.bf16.mxu1 %v16510_v0  ;;  %v16482_v49 = vcombine.high %v2290_v43, %v2298_v44  ;;  %v16481_v55 = vcombine.low %v2290_v43, %v2298_v44  ;;  %v2324_v63 = vld [vmem:[%s26184_s12 + $0x138] sm:$0xff]  ;;  %v20910_v34 = vld [vmem:[%s26186_s14 + $0xa8] sm:$0xff]   ;;  %v20920_v43 = vld [vmem:[%s26186_s14 + $0xd0] sm:$0xff]  }
 0xfc2   : > { %2870 = vmatprep.mubr.bf16.mxu0 %v21711_v47  ;;  %2911 = vmatprep.mubr.bf16.mxu1 %v21711_v47  ;;  %v2332_v0 = vld [vmem:[%s26184_s12 + $0x178] sm:$0xff]  ;;  %v20921_v44 = vld [vmem:[%s26186_s14 + $0x10] sm:$0xff]  }
 0xfc3   : > { %v16518_v5 = vcombine.high %v2324_v63, %v2332_v0  ;;  %v16517_v10 = vcombine.low %v2324_v63, %v2332_v0  ;;  %v22601_v0 = vld [vmem:[%s26185_s13] sm:$0xff] }
 0xfc4   : > { %2849 = vmatpush1.bf16.msra.mxu0 %v16507_v6  ;;  %2890 = vmatpush1.bf16.msra.mxu1 %v16509_v7  ;;  %v2307_v6 = vld [vmem:[%s26184_s12 + $0xb0] sm:$0xff] }
 0xfc5   : > { %2850 = vmatprep.subr.bf16.mxu0 %v16492_v8  ;;  %2891 = vmatprep.subr.bf16.mxu1 %v16494_v12  ;;  %v2315_v7 = vld [vmem:[%s26184_s12 + $0xf0] sm:$0xff]  ;;  %v2308_v8 = vld [vmem:[%s26184_s12 + $0xb8] sm:$0xff] }
 0xfc6   : > { %v2316_v12 = vld [vmem:[%s26184_s12 + $0xf8] sm:$0xff]  ;;  %v16500_v11 = vcombine.high %v2307_v6, %v2315_v7  ;;  %v16499_v20 = vcombine.low %v2307_v6, %v2315_v7 }
 0xfc7   : > { %v16502_v15 = vcombine.high %v2308_v8, %v2316_v12  ;;  %v16501_v21 = vcombine.low %v2308_v8, %v2316_v12 }
 0xfc8   : > { %2851 = vmatpush1.bf16.msra.mxu0 %v16491_v16  ;;  %2892 = vmatpush1.bf16.msra.mxu1 %v16493_v17  ;;  %v2291_v16 = vld [vmem:[%s26184_s12 + $0x30] sm:$0xff] }
 0xfc9   : > { %2852 = vmatprep.subr.bf16.mxu0 %v16476_v18  ;;  %2893 = vmatprep.subr.bf16.mxu1 %v16478_v19  ;;  %v2299_v17 = vld [vmem:[%s26184_s12 + $0x70] sm:$0xff]  ;;  %v2292_v18 = vld [vmem:[%s26184_s12 + $0x38] sm:$0xff] }
 0xfca   : > { %v2300_v19 = vld [vmem:[%s26184_s12 + $0x78] sm:$0xff]  ;;  %v16484_v22 = vcombine.high %v2291_v16, %v2299_v17 }
 0xfcb   : > { %v16486_v61 = vcombine.high %v2292_v18, %v2300_v19 }
 0xfcc   : > { %2853 = vmatpush1.bf16.msra.mxu0 %v16475_v14  ;;  %2894 = vmatpush1.bf16.msra.mxu1 %v16477_v23  ;;  %v16483_v14 = vcombine.low %v2291_v16, %v2299_v17  ;;  %v16485_v23 = vcombine.low %v2292_v18, %v2300_v19 }
 0xfcd   : > { %2928 = vmatprep.subr.bf16.mxu0 %v16528_v24  ;;  %2969 = vmatprep.subr.bf16.mxu1 %v16530_v25  ;;  %v20899_v24 = vld [vmem:[%s26186_s14 + $0x78] sm:$0xff]  }
 0xfce   : > { %v20900_v25 = vld [vmem:[%s26186_s14 + $0xf8] sm:$0xff]  }
 0xfcf   : > { %16537 = vmatmul.mubr.msk.bf16.vlgmr.msra.gmra.mxu0 %vm670_vm1, %v22344_v62  ;;  %16538 = vmatmul.mubr.msk.bf16.vlgmr.msra.gmra.mxu1 %vm670_vm1, %v22344_v62 }
 0xfd0   : > { %2929 = vmatpush1.bf16.msra.mxu0 %v16527_v30  ;;  %2970 = vmatpush1.bf16.msra.mxu1 %v16529_v31  ;;  %v20905_v30 = vld [vmem:[%s26186_s14 + $0x30] sm:$0xff]  }
 0xfd1   : > { %2930 = vmatprep.subr.bf16.mxu0 %v16512_v32  ;;  %2971 = vmatprep.subr.bf16.mxu1 %v16514_v33  ;;  %v20906_v31 = vld [vmem:[%s26186_s14 + $0xb0] sm:$0xff]   ;;  %v20907_v32 = vld [vmem:[%s26186_s14 + $0x68] sm:$0xff]  }
 0xfd2   : > { %2952 = vmatprep.mubr.bf16.mxu0 %v21711_v47  ;;  %2993 = vmatprep.mubr.bf16.mxu1 %v21711_v47  ;;  %v20909_v33 = vld [vmem:[%s26186_s14 + $0x28] sm:$0xff]  }
 0xfd4   : > { %2931 = vmatpush1.bf16.msra.mxu0 %v16511_v38  ;;  %2972 = vmatpush1.bf16.msra.mxu1 %v16513_v13  ;;  %v20914_v38 = vld [vmem:[%s26186_s14 + $0xa0] sm:$0xff]   ;;  %v20915_v13 = vld [vmem:[%s26186_s14 + $0x58] sm:$0xff]  }
 0xfd5   : > { %2932 = vmatprep.subr.bf16.mxu0 %v16496_v39  ;;  %2973 = vmatprep.subr.bf16.mxu1 %v16498_v40  ;;  %v20916_v39 = vld [vmem:[%s26186_s14 + $0xd8] sm:$0xff]  }
 0xfd6   : > { %v20917_v40 = vld [vmem:[%s26186_s14 + $0x18] sm:$0xff]  }
 0xfd8   : > { %2933 = vmatpush1.bf16.msra.mxu0 %v16495_v45  ;;  %2974 = vmatpush1.bf16.msra.mxu1 %v16497_v46  ;;  %v20922_v45 = vld [vmem:[%s26186_s14 + $0x90] sm:$0xff]   ;;  %v20923_v46 = vld [vmem:[%s26186_s14 + $0x48] sm:$0xff]  }
 0xfd9   : > { %2934 = vmatprep.subr.bf16.mxu0 %v16480_v48  ;;  %2975 = vmatprep.subr.bf16.mxu1 %v16482_v49  ;;  %v20924_v48 = vld [vmem:[%s26186_s14 + $0xc8] sm:$0xff]  }
 0xfda   : > { %v20925_v49 = vld [vmem:[%s26186_s14 + $0x8] sm:$0xff]  }
 0xfdc   : > { %2935 = vmatpush1.bf16.msra.mxu0 %v16479_v54  ;;  %2976 = vmatpush1.bf16.msra.mxu1 %v16481_v55  ;;  %v20930_v54 = vld [vmem:[%s26186_s14 + $0x80] sm:$0xff]   ;;  %v20931_v55 = vld [vmem:[%s26186_s14 + $0x178] sm:$0xff]  }
 0xfdd   : > { %3010 = vmatprep.subr.bf16.mxu0 %v16532_v56  ;;  %3051 = vmatprep.subr.bf16.mxu1 %v16534_v57  ;;  %v20932_v56 = vld [vmem:[%s26186_s14 + $0x1f8] sm:$0xff]   ;;  %v2353_v57 = vlaneseq }
 0xfdf   : > { %16539 = vmatmul.mubr.msk.bf16.vlgmr.msra.gmra.mxu0 %vm670_vm1, %v22344_v62  ;;  %16540 = vmatmul.mubr.msk.bf16.vlgmr.msra.gmra.mxu1 %vm670_vm1, %v22344_v62  ;;  %v22590_v58 = vshrl.u32 %v2353_v57, 7 }
 0xfe0   : > { %3011 = vmatpush1.bf16.msra.mxu0 %v16531_v1  ;;  %3052 = vmatpush1.bf16.msra.mxu1 %v16533_v3 }
 0xfe1   : > { %3012 = vmatprep.subr.bf16.mxu0 %v16516_v4  ;;  %3053 = vmatprep.subr.bf16.mxu1 %v16518_v5  ;;  %v22593_v59 = vsub.s32 0, %v22590_v58  ;;  %v22596_v63 = vsub.s32 2, %v22590_v58  ;;  %v22604_v1 = vsub.s32 1, %v22590_v58  ;;  %v22607_v3 = vsub.s32 3, %v22590_v58 }
 0xfe2   : > { %3034 = vmatprep.mubr.bf16.mxu0 %v21711_v47  ;;  %3075 = vmatprep.mubr.bf16.mxu1 %v21711_v47 }
 0xfe3   : > { %v2356_v4 = vrot.slane %v22601_v0, %v22593_v59  ;;  %v2364_v5 = vrot.slane %v22601_v0, %v22596_v63  ;;  %v2360_v6 = vrot.slane %v22601_v0, %v22604_v1  ;;  %v2368_v7 = vrot.slane %v22601_v0, %v22607_v3 }
 0xfe4   : > { %3013 = vmatpush1.bf16.msra.mxu0 %v16515_v9  ;;  %3054 = vmatpush1.bf16.msra.mxu1 %v16517_v10 }
 0xfe5   : > { %3014 = vmatprep.subr.bf16.mxu0 %v16500_v11  ;;  %3055 = vmatprep.subr.bf16.mxu1 %v16502_v15 }
 0xfe8   : > { %3015 = vmatpush1.bf16.msra.mxu0 %v16499_v20  ;;  %3056 = vmatpush1.bf16.msra.mxu1 %v16501_v21 }
 0xfe9   : > { %3016 = vmatprep.subr.bf16.mxu0 %v16484_v22  ;;  %3057 = vmatprep.subr.bf16.mxu1 %v16486_v61 }
 0xfec   : > { %3017 = vmatpush1.bf16.msra.mxu0 %v16483_v14  ;;  %3058 = vmatpush1.bf16.msra.mxu1 %v16485_v23 }
 0xfed   : > { %18977 = vmatprep.subr.bf16.mxu0 %v20899_v24  ;;  %18999 = vmatprep.subr.bf16.mxu1 %v20900_v25 }
 0xfef   : > { %16541 = vmatmul.mubr.msk.bf16.vlgmr.msra.gmra.mxu0 %vm670_vm1, %v22344_v62  ;;  %16542 = vmatmul.mubr.msk.bf16.vlgmr.msra.gmra.mxu1 %vm670_vm1, %v22344_v62  ;;  %v20908_v62 = vld [vmem:[%s26186_s14 + $0xe8] sm:$0xff]  }
 0xff0   : > { %18978 = vmatpush3.bf16.msra.mxu0 %v20901_v26  ;;  %19000 = vmatpush3.bf16.msra.mxu1 %v20902_v27  ;;  %v20933_v26 = vld [vmem:[%s26186_s14 + $0x138] sm:$0xff]  }
 0xff1   : > { %18979 = vmatprep.subr.bf16.mxu0 %v20903_v28  ;;  %19001 = vmatprep.subr.bf16.mxu1 %v20904_v29  ;;  %v20934_v27 = vld [vmem:[%s26186_s14 + $0x1b8] sm:$0xff]  }
 0xff4   : > { %18980 = vmatpush3.bf16.msra.mxu0 %v20905_v30  ;;  %19002 = vmatpush3.bf16.msra.mxu1 %v20906_v31  ;;  %v20935_v30 = vld [vmem:[%s26186_s14 + $0x170] sm:$0xff]  }
 0xff5   : > { %18981 = vmatprep.subr.bf16.mxu0 %v20907_v32  ;;  %19003 = vmatprep.subr.bf16.mxu1 %v20908_v62  ;;  %v20936_v31 = vld [vmem:[%s26186_s14 + $0x1f0] sm:$0xff]  }
 0xff6   : > { %v20937_v32 = vld [vmem:[%s26186_s14 + $0x130] sm:$0xff]  }
 0xff7   : > { %v20938_v62 = vld [vmem:[%s26186_s14 + $0x1b0] sm:$0xff]  }
 0xff8   : > { %18982 = vmatpush3.bf16.msra.mxu0 %v20909_v33  ;;  %19004 = vmatpush3.bf16.msra.mxu1 %v20910_v34  ;;  %v22636_v33 = vsub.s32 5, %v22590_v58  ;;  %v22639_v34 = vsub.s32 7, %v22590_v58 }
 0xff9   : > { %18983 = vmatprep.subr.bf16.mxu0 %v20911_v35  ;;  %19005 = vmatprep.subr.bf16.mxu1 %v20912_v36  ;;  %v20939_v35 = vld [vmem:[%s26186_s14 + $0x168] sm:$0xff]  }
 0xffa   : > { %v20940_v36 = vld [vmem:[%s26186_s14 + $0x1e8] sm:$0xff]  }
 0xffc   : > { %18984 = vmatpush3.bf16.msra.mxu0 %v20913_v37  ;;  %19006 = vmatpush3.bf16.msra.mxu1 %v20914_v38  ;;  %v2376_v37 = vrot.slane %v22601_v0, %v22636_v33  ;;  %v2384_v38 = vrot.slane %v22601_v0, %v22639_v34 }
 0xffd   : > { %18985 = vmatprep.subr.bf16.mxu0 %v20915_v13  ;;  %19007 = vmatprep.subr.bf16.mxu1 %v20916_v39  ;;  %v20941_v13 = vld [vmem:[%s26186_s14 + $0x128] sm:$0xff]  }
 0xffe   : > { %v20942_v39 = vld [vmem:[%s26186_s14 + $0x1a8] sm:$0xff]  }
0x1000   : > { %18986 = vmatpush3.bf16.msra.mxu0 %v20917_v40  ;;  %19008 = vmatpush3.bf16.msra.mxu1 %v20918_v41 }
0x1001   : > { %18987 = vmatprep.subr.bf16.mxu0 %v20919_v42  ;;  %19009 = vmatprep.subr.bf16.mxu1 %v20920_v43  ;;  %v20943_v42 = vld [vmem:[%s26186_s14 + $0x160] sm:$0xff]  }
0x1002   : > { %v20944_v43 = vld [vmem:[%s26186_s14 + $0x1e0] sm:$0xff]  }
0x1004   : > { %18988 = vmatpush3.bf16.msra.mxu0 %v20921_v44  ;;  %19010 = vmatpush3.bf16.msra.mxu1 %v20922_v45 }
0x1005   : > { %18989 = vmatprep.subr.bf16.mxu0 %v20923_v46  ;;  %19011 = vmatprep.subr.bf16.mxu1 %v20924_v48 }
0x1008   : > { %18990 = vmatpush3.bf16.msra.mxu0 %v20925_v49  ;;  %19012 = vmatpush3.bf16.msra.mxu1 %v20926_v50  ;;  %v20945_v49 = vld [vmem:[%s26186_s14 + $0x120] sm:$0xff]  }
0x1009   : > { %18991 = vmatprep.subr.bf16.mxu0 %v20927_v51  ;;  %19013 = vmatprep.subr.bf16.mxu1 %v20928_v52  ;;  %v20946_v50 = vld [vmem:[%s26186_s14 + $0x1a0] sm:$0xff]  }
0x100c   : > { %18992 = vmatpush3.bf16.msra.mxu0 %v20929_v53  ;;  %19014 = vmatpush3.bf16.msra.mxu1 %v20930_v54  ;;  %v20947_v53 = vld [vmem:[%s26186_s14 + $0x158] sm:$0xff]  }
0x100d   : > { %19021 = vmatprep.subr.bf16.mxu0 %v20931_v55  ;;  %19043 = vmatprep.subr.bf16.mxu1 %v20932_v56  ;;  %v20948_v54 = vld [vmem:[%s26186_s14 + $0x1d8] sm:$0xff]  }
0x107f   : > { %v2790_v8 = vpop.f32.mrf.mxu0  ;;  %v2831_v12 = vpop.f32.mrf.mxu1 }
0x1080   : > { %v2791_v9 = vadd.f32 %v2790_v8, %v2356_v4  ;;  %v2832_v10 = vadd.f32 %v2831_v12, %v2364_v5  ;;  %v20950_v8 = vld [vmem:[%s26186_s14 + $0x198] sm:$0xff]   ;;  %v22682_v12 = vsub.s32 4, %v22590_v58 }
0x1081   : > { %v2792_v11 = vpop.f32.mrf.mxu0  ;;  %v2833_v15 = vpop.f32.mrf.mxu1 }
0x1082   : > { %v2793_v16 = vadd.f32 %v2792_v11, %v2360_v6  ;;  %v2834_v17 = vadd.f32 %v2833_v15, %v2368_v7  ;;  %v3084_v18 = vmax.f32 %v2791_v9, 0.0  ;;  %v3086_v19 = vmax.f32 %v2832_v10, 0.0  ;;  %v20949_v7 = vld [vmem:[%s26186_s14 + $0x118] sm:$0xff]   ;;  %v20951_v10 = vld [vmem:[%s26186_s14 + $0x150] sm:$0xff]  }
0x1083   : > { %v2794_v20 = vpop.f32.mrf.mxu0  ;;  %v2835_v21 = vpop.f32.mrf.mxu1  ;;  %v22685_v9 = vsub.s32 6, %v22590_v58  ;;  %v20952_v11 = vld [vmem:[%s26186_s14 + $0x1d0] sm:$0xff]  }
0x1084   : > { %v3085_v22 = vmax.f32 %v2793_v16, 0.0  ;;  %v3087_v61 = vmax.f32 %v2834_v17, 0.0  ;;  %v3100_v28 = vpack.c.bf16 %v3084_v18, %v3084_v18  ;;  %v3102_v29 = vpack.c.bf16 %v3086_v19, %v3086_v19  ;;  %v20953_v15 = vld [vmem:[%s26186_s14 + $0x110] sm:$0xff]   ;;  %v20955_v18 = vld [vmem:[%s26186_s14 + $0x148] sm:$0xff]  }
0x1085   : > { %v2795_v14 = vpop.f32.mrf.mxu0  ;;  %v2836_v23 = vpop.f32.mrf.mxu1  ;;  %v20954_v58 = vld [vmem:[%s26186_s14 + $0x190] sm:$0xff]   ;;  %v2372_v16 = vrot.slane %v22601_v0, %v22682_v12  ;;  %v2380_v17 = vrot.slane %v22601_v0, %v22685_v9  ;;  %v20956_v19 = vld [vmem:[%s26186_s14 + $0x1c8] sm:$0xff]  }
0x1086   : > { %v3101_v24 = vpack.c.bf16 %v3085_v22, %v3085_v22  ;;  %v3103_v25 = vpack.c.bf16 %v3087_v61, %v3087_v61  ;;  %v22712_v20 = vld [vmem:[%s26185_s13 + $0x8] sm:$0xff] }
0x1087   : > { %v2392_v0 = vrot.slane %v22712_v20, %v22604_v1  ;;  %v2400_v21 = vrot.slane %v22712_v20, %v22607_v3  ;;  %v20957_v22 = vld [vmem:[%s26186_s14 + $0x108] sm:$0xff]  }
0x1088   : > { %4179 = vmatprep.mubr.bf16.mxu0 %v3101_v24  ;;  %4219 = vmatprep.mubr.bf16.mxu1 %v3103_v25  ;;  %v20958_v61 = vld [vmem:[%s26186_s14 + $0x188] sm:$0xff]  }
0x1089   : > { %4180 = vmatmul.mubr.bf16.vlgmr.msra.gmra.mxu0 %v3100_v28  ;;  %4220 = vmatmul.mubr.bf16.vlgmr.msra.gmra.mxu1 %v3102_v29 }
0x108a   : > { %19022 = vmatpush3.bf16.msra.mxu0 %v20933_v26  ;;  %19044 = vmatpush3.bf16.msra.mxu1 %v20934_v27  ;;  %v20959_v26 = vld [vmem:[%s26186_s14 + $0x140] sm:$0xff]  }
0x108b   : > { %19023 = vmatprep.subr.bf16.mxu0 %v20935_v30  ;;  %19045 = vmatprep.subr.bf16.mxu1 %v20936_v31  ;;  %v20960_v27 = vld [vmem:[%s26186_s14 + $0x1c0] sm:$0xff]  }
0x108e   : > { %19024 = vmatpush3.bf16.msra.mxu0 %v20937_v32  ;;  %19046 = vmatpush3.bf16.msra.mxu1 %v20938_v62  ;;  %v20961_v32 = vld [vmem:[%s26186_s14 + $0x100] sm:$0xff]  }
0x108f   : > { %v2872_v40 = vpop.f32.mrf.mxu0  ;;  %v2913_v41 = vpop.f32.mrf.mxu1  ;;  %19025 = vmatprep.subr.bf16.mxu0 %v20939_v35  ;;  %19047 = vmatprep.subr.bf16.mxu1 %v20940_v36  ;;  %v20962_v62 = vld [vmem:[%s26186_s14 + $0x180] sm:$0xff]  }
0x1090   : > { %v2873_v14 = vadd.f32 %v2872_v40, %v2372_v16  ;;  %v2914_v23 = vadd.f32 %v2913_v41, %v2380_v17  ;;  %v20978_v17 = vld [vmem:[%s26186_s14 + $0x2a0] sm:$0xff]  }
0x1091   : > { %v2874_v44 = vpop.f32.mrf.mxu0  ;;  %v2915_v45 = vpop.f32.mrf.mxu1 }
0x1092   : > { %v2875_v46 = vadd.f32 %v2874_v44, %v2376_v37  ;;  %v2916_v48 = vadd.f32 %v2915_v45, %v2384_v38  ;;  %19026 = vmatpush3.bf16.msra.mxu0 %v20941_v13  ;;  %19048 = vmatpush3.bf16.msra.mxu1 %v20942_v39  ;;  %v3088_v35 = vmax.f32 %v2873_v14, 0.0  ;;  %v3090_v36 = vmax.f32 %v2914_v23, 0.0  ;;  %v20963_v13 = vld [vmem:[%s26186_s14 + $0x278] sm:$0xff]   ;;  %v20983_v14 = vld [vmem:[%s26186_s14 + $0x250] sm:$0xff]  }
0x1093   : > { %v2876_v51 = vpop.f32.mrf.mxu0  ;;  %v2917_v52 = vpop.f32.mrf.mxu1  ;;  %19027 = vmatprep.subr.bf16.mxu0 %v20943_v42  ;;  %19049 = vmatprep.subr.bf16.mxu1 %v20944_v43  ;;  %v20964_v39 = vld [vmem:[%s26186_s14 + $0x2f8] sm:$0xff]   ;;  %v20984_v23 = vld [vmem:[%s26186_s14 + $0x2d0] sm:$0xff]  }
0x1094   : > { %v3089_v55 = vmax.f32 %v2875_v46, 0.0  ;;  %v3091_v56 = vmax.f32 %v2916_v48, 0.0  ;;  %v20965_v44 = vld [vmem:[%s26186_s14 + $0x238] sm:$0xff]   ;;  %v3104_v45 = vpack.c.bf16 %v3088_v35, %v3088_v35  ;;  %v3106_v46 = vpack.c.bf16 %v3090_v36, %v3090_v36  ;;  %v20968_v51 = vld [vmem:[%s26186_s14 + $0x2f0] sm:$0xff]   ;;  %v20989_v35 = vld [vmem:[%s26186_s14 + $0x208] sm:$0xff]  }
0x1095   : > { %v2877_v57 = vpop.f32.mrf.mxu0  ;;  %v2918_v4 = vpop.f32.mrf.mxu1  ;;  %v20966_v48 = vld [vmem:[%s26186_s14 + $0x2b8] sm:$0xff]  }
0x1096   : > { %v3105_v5 = vpack.c.bf16 %v3089_v55, %v3089_v55  ;;  %v3107_v6 = vpack.c.bf16 %v3091_v56, %v3091_v56  ;;  %19028 = vmatpush3.bf16.msra.mxu0 %v20945_v49  ;;  %19050 = vmatpush3.bf16.msra.mxu1 %v20946_v50  ;;  %v20967_v50 = vld [vmem:[%s26186_s14 + $0x270] sm:$0xff]   ;;  %v20971_v55 = vld [vmem:[%s26186_s14 + $0x268] sm:$0xff]  }
0x1097   : > { %19029 = vmatprep.subr.bf16.mxu0 %v20947_v53  ;;  %19051 = vmatprep.subr.bf16.mxu1 %v20948_v54  ;;  %v20969_v53 = vld [vmem:[%s26186_s14 + $0x230] sm:$0xff]   ;;  %v20972_v56 = vld [vmem:[%s26186_s14 + $0x2e8] sm:$0xff]  }
0x1098   : > { %4259 = vmatprep.mubr.bf16.mxu0 %v3105_v5  ;;  %4299 = vmatprep.mubr.bf16.mxu1 %v3107_v6  ;;  %v20970_v54 = vld [vmem:[%s26186_s14 + $0x2b0] sm:$0xff]   ;;  %v20973_v57 = vld [vmem:[%s26186_s14 + $0x228] sm:$0xff]  }
0x1099   : > { %v20974_v6 = vld [vmem:[%s26186_s14 + $0x2a8] sm:$0xff]  }
0x109a   : > { %19030 = vmatpush3.bf16.msra.mxu0 %v20949_v7  ;;  %19052 = vmatpush3.bf16.msra.mxu1 %v20950_v8  ;;  %v20975_v7 = vld [vmem:[%s26186_s14 + $0x260] sm:$0xff]  }
0x109b   : > { %19031 = vmatprep.subr.bf16.mxu0 %v20951_v10  ;;  %19053 = vmatprep.subr.bf16.mxu1 %v20952_v11  ;;  %v20976_v8 = vld [vmem:[%s26186_s14 + $0x2e0] sm:$0xff]  }
0x109e   : > { %19032 = vmatpush3.bf16.msra.mxu0 %v20953_v15  ;;  %19054 = vmatpush3.bf16.msra.mxu1 %v20954_v58  ;;  %v20977_v15 = vld [vmem:[%s26186_s14 + $0x220] sm:$0xff]  }
0x109f   : > { %v22724_v24 = vpop.f32.mrf.mxu0  ;;  %v22726_v25 = vpop.f32.mrf.mxu1  ;;  %19033 = vmatprep.subr.bf16.mxu0 %v20955_v18  ;;  %19055 = vmatprep.subr.bf16.mxu1 %v20956_v19  ;;  %v20979_v18 = vld [vmem:[%s26186_s14 + $0x258] sm:$0xff]  }
0x10a0   : > { %v20980_v19 = vld [vmem:[%s26186_s14 + $0x2d8] sm:$0xff]  }
0x10a1   : > { %v2956_v28 = vpop.f32.mrf.mxu0  ;;  %v2997_v29 = vpop.f32.mrf.mxu1 }
0x10a2   : > { %v2957_v30 = vadd.f32 %v2956_v28, %v2392_v0  ;;  %v2998_v31 = vadd.f32 %v2997_v29, %v2400_v21  ;;  %19034 = vmatpush3.bf16.msra.mxu0 %v20957_v22  ;;  %19056 = vmatpush3.bf16.msra.mxu1 %v20958_v61  ;;  %v20981_v22 = vld [vmem:[%s26186_s14 + $0x218] sm:$0xff]   ;;  %v20986_v28 = vld [vmem:[%s26186_s14 + $0x290] sm:$0xff]   ;;  %v20987_v29 = vld [vmem:[%s26186_s14 + $0x248] sm:$0xff]  }
0x10a3   : > { %v2958_v37 = vpop.f32.mrf.mxu0  ;;  %v2999_v38 = vpop.f32.mrf.mxu1  ;;  %19035 = vmatprep.subr.bf16.mxu0 %v20959_v26  ;;  %19057 = vmatprep.subr.bf16.mxu1 %v20960_v27  ;;  %v20982_v61 = vld [vmem:[%s26186_s14 + $0x298] sm:$0xff]   ;;  %v20985_v26 = vld [vmem:[%s26186_s14 + $0x210] sm:$0xff]   ;;  %v2388_v27 = vrot.slane %v22712_v20, %v22593_v59 }
0x10a4   : > { %v3093_v40 = vmax.f32 %v2957_v30, 0.0  ;;  %v3095_v41 = vmax.f32 %v2998_v31, 0.0  ;;  %v2396_v30 = vrot.slane %v22712_v20, %v22596_v63  ;;  %v20988_v31 = vld [vmem:[%s26186_s14 + $0x2c8] sm:$0xff]   ;;  %v20991_v38 = vld [vmem:[%s26186_s14 + $0x240] sm:$0xff]  }
0x10a5   : > { %v2959_v42 = vpop.f32.mrf.mxu0  ;;  %v3000_v43 = vpop.f32.mrf.mxu1  ;;  %v2955_v36 = vadd.f32 %v22724_v24, %v2388_v27  ;;  %v20990_v37 = vld [vmem:[%s26186_s14 + $0x288] sm:$0xff]   ;;  %v20993_v24 = vld [vmem:[%s26186_s14 + $0x200] sm:$0xff]  }
0x10a6   : > { %19036 = vmatpush3.bf16.msra.mxu0 %v20961_v32  ;;  %19058 = vmatpush3.bf16.msra.mxu1 %v20962_v62  ;;  %v3109_v49 = vpack.c.bf16 %v3093_v40, %v3093_v40  ;;  %v3111_v52 = vpack.c.bf16 %v3095_v41, %v3095_v41  ;;  %v2408_v32 = vrot.slane %v22712_v20, %v22636_v33  ;;  %v20994_v43 = vld [vmem:[%s26186_s14 + $0x280] sm:$0xff]   ;;  %v21019_v27 = vld [vmem:[%s26186_s14 + $0x348] sm:$0xff]  }
0x10a7   : > { %19065 = vmatprep.subr.bf16.mxu0 %v20963_v13  ;;  %19087 = vmatprep.subr.bf16.mxu1 %v20964_v39  ;;  %v2416_v62 = vrot.slane %v22712_v20, %v22639_v34  ;;  %v2996_v13 = vadd.f32 %v22726_v25, %v2396_v30  ;;  %v20992_v39 = vld [vmem:[%s26186_s14 + $0x2c0] sm:$0xff]   ;;  %v3092_v42 = vmax.f32 %v2955_v36, 0.0  ;;  %v20995_v25 = vld [vmem:[%s26186_s14 + $0x378] sm:$0xff]   ;;  %v21021_v30 = vld [vmem:[%s26186_s14 + $0x308] sm:$0xff]  }
0x10a9   : > { %4260 = vmatmul.mubr.bf16.vlgmr.msra.gmra.mxu0 %v3104_v45  ;;  %4300 = vmatmul.mubr.bf16.vlgmr.msra.gmra.mxu1 %v3106_v46  ;;  %v20996_v45 = vld [vmem:[%s26186_s14 + $0x3f8] sm:$0xff]  }
0x10aa   : > { %19066 = vmatpush3.bf16.msra.mxu0 %v20965_v44  ;;  %4339 = vmatprep.mubr.bf16.mxu0 %v3109_v49  ;;  %v3094_v44 = vmax.f32 %v2996_v13, 0.0  ;;  %v20997_v49 = vld [vmem:[%s26186_s14 + $0x338] sm:$0xff]  }
0x10ab   : > { %19088 = vmatpush3.bf16.msra.mxu1 %v20966_v48  ;;  %4379 = vmatprep.mubr.bf16.mxu1 %v3111_v52 }
0x10ac   : > { %19067 = vmatprep.subr.bf16.mxu0 %v20967_v50  ;;  %19089 = vmatprep.subr.bf16.mxu1 %v20968_v51  ;;  %v3108_v50 = vpack.c.bf16 %v3092_v42, %v3092_v42  ;;  %v20998_v51 = vld [vmem:[%s26186_s14 + $0x3b8] sm:$0xff]   ;;  %v3110_v52 = vpack.c.bf16 %v3094_v44, %v3094_v44 }
0x10ae   : > { %19068 = vmatpush3.bf16.msra.mxu0 %v20969_v53  ;;  %v20999_v53 = vld [vmem:[%s26186_s14 + $0x370] sm:$0xff]  }
0x10af   : > { %19090 = vmatpush3.bf16.msra.mxu1 %v20970_v54  ;;  %v22773_v4 = vpop.f32.mrf.mxu0  ;;  %v22775_v5 = vpop.f32.mrf.mxu1  ;;  %19069 = vmatprep.subr.bf16.mxu0 %v20971_v55  ;;  %v21000_v55 = vld [vmem:[%s26186_s14 + $0x3f0] sm:$0xff]  }
0x10b0   : > { %19091 = vmatprep.subr.bf16.mxu1 %v20972_v56 }
0x10b1   : > { %v3038_v10 = vpop.f32.mrf.mxu0  ;;  %v3079_v11 = vpop.f32.mrf.mxu1 }
0x10b2   : > { %19070 = vmatpush3.bf16.msra.mxu0 %v20973_v57  ;;  %v3039_v40 = vadd.f32 %v3038_v10, %v2408_v32  ;;  %v3080_v41 = vadd.f32 %v3079_v11, %v2416_v62  ;;  %v21001_v57 = vld [vmem:[%s26186_s14 + $0x330] sm:$0xff]   ;;  %v21005_v10 = vld [vmem:[%s26186_s14 + $0x328] sm:$0xff]  }
0x10b3   : > { %19092 = vmatpush3.bf16.msra.mxu1 %v20974_v6  ;;  %v3040_v58 = vpop.f32.mrf.mxu0  ;;  %v3081_v16 = vpop.f32.mrf.mxu1  ;;  %19071 = vmatprep.subr.bf16.mxu0 %v20975_v7  ;;  %v21002_v6 = vld [vmem:[%s26186_s14 + $0x3b0] sm:$0xff]   ;;  %v21003_v7 = vld [vmem:[%s26186_s14 + $0x368] sm:$0xff]  }
0x10b4   : > { %19093 = vmatprep.subr.bf16.mxu1 %v20976_v8  ;;  %v3097_v46 = vmax.f32 %v3039_v40, 0.0  ;;  %v3099_v48 = vmax.f32 %v3080_v41, 0.0  ;;  %v21004_v8 = vld [vmem:[%s26186_s14 + $0x3e8] sm:$0xff]   ;;  %v21008_v58 = vld [vmem:[%s26186_s14 + $0x3e0] sm:$0xff]  }
0x10b5   : > { %v3041_v0 = vpop.f32.mrf.mxu0  ;;  %v3082_v21 = vpop.f32.mrf.mxu1  ;;  %v21006_v11 = vld [vmem:[%s26186_s14 + $0x3a8] sm:$0xff]   ;;  %v21009_v16 = vld [vmem:[%s26186_s14 + $0x320] sm:$0xff]  }
0x10b6   : > { %19072 = vmatpush3.bf16.msra.mxu0 %v20977_v15  ;;  %v3113_v54 = vpack.c.bf16 %v3097_v46, %v3097_v46  ;;  %v3115_v56 = vpack.c.bf16 %v3099_v48, %v3099_v48  ;;  %v21007_v15 = vld [vmem:[%s26186_s14 + $0x360] sm:$0xff]   ;;  %v21013_v0 = vld [vmem:[%s26186_s14 + $0x318] sm:$0xff]   ;;  %v21022_v32 = vld [vmem:[%s26186_s14 + $0x388] sm:$0xff]  }
0x10b7   : > { %19094 = vmatpush3.bf16.msra.mxu1 %v20978_v17  ;;  %19073 = vmatprep.subr.bf16.mxu0 %v20979_v18  ;;  %v21010_v17 = vld [vmem:[%s26186_s14 + $0x3a0] sm:$0xff]   ;;  %v21011_v18 = vld [vmem:[%s26186_s14 + $0x358] sm:$0xff]  }
0x10b8   : > { %19095 = vmatprep.subr.bf16.mxu1 %v20980_v19  ;;  %v21012_v19 = vld [vmem:[%s26186_s14 + $0x3d8] sm:$0xff]   ;;  %v16543_v41 = vld [vmem:[%s26187_s15] ss:$0 sm:$0xff] }
0x10b9   : > { %v21014_v21 = vld [vmem:[%s26186_s14 + $0x398] sm:$0xff]  }
0x10ba   : > { %19074 = vmatpush3.bf16.msra.mxu0 %v20981_v22  ;;  %v21015_v22 = vld [vmem:[%s26186_s14 + $0x350] sm:$0xff]  }
0x10bb   : > { %19096 = vmatpush3.bf16.msra.mxu1 %v20982_v61  ;;  %19075 = vmatprep.subr.bf16.mxu0 %v20983_v14  ;;  %v21016_v61 = vld [vmem:[%s26186_s14 + $0x3d0] sm:$0xff]  }
0x10bc   : > { %19097 = vmatprep.subr.bf16.mxu1 %v20984_v23  ;;  %v21017_v14 = vld [vmem:[%s26186_s14 + $0x310] sm:$0xff]   ;;  %v2404_v23 = vrot.slane %v22712_v20, %v22682_v12 }
0x10be   : > { %19076 = vmatpush3.bf16.msra.mxu0 %v20985_v26  ;;  %v21018_v26 = vld [vmem:[%s26186_s14 + $0x390] sm:$0xff]  }
0x10bf   : > { %19098 = vmatpush3.bf16.msra.mxu1 %v20986_v28  ;;  %19077 = vmatprep.subr.bf16.mxu0 %v20987_v29  ;;  %v2412_v28 = vrot.slane %v22712_v20, %v22685_v9  ;;  %v21020_v29 = vld [vmem:[%s26186_s14 + $0x3c8] sm:$0xff]   ;;  %v21023_v20 = vld [vmem:[%s26186_s14 + $0x340] sm:$0xff]  }
0x10c0   : > { %19099 = vmatprep.subr.bf16.mxu1 %v20988_v31  ;;  %v3037_v31 = vadd.f32 %v22773_v4, %v2404_v23  ;;  %v21025_v4 = vld [vmem:[%s26186_s14 + $0x300] sm:$0xff]  }
0x10c1   : > { %v3078_v62 = vadd.f32 %v22775_v5, %v2412_v28 }
0x10c2   : > { %19078 = vmatpush3.bf16.msra.mxu0 %v20989_v35  ;;  %v21024_v35 = vld [vmem:[%s26186_s14 + $0x3c0] sm:$0xff]   ;;  %v3096_v36 = vmax.f32 %v3037_v31, 0.0 }
0x10c3   : > { %19100 = vmatpush3.bf16.msra.mxu1 %v20990_v37  ;;  %19079 = vmatprep.subr.bf16.mxu0 %v20991_v38  ;;  %v21026_v37 = vld [vmem:[%s26186_s14 + $0x380] sm:$0xff]   ;;  %v3098_v38 = vmax.f32 %v3078_v62, 0.0 }
0x10c4   : > { %19101 = vmatprep.subr.bf16.mxu1 %v20992_v39  ;;  %v3112_v5 = vpack.c.bf16 %v3096_v36, %v3096_v36 }
0x10c5   : > { %v3114_v13 = vpack.c.bf16 %v3098_v38, %v3098_v38 }
0x10c6   : > { %19080 = vmatpush3.bf16.msra.mxu0 %v20993_v24 }
0x10c7   : > { %19102 = vmatpush3.bf16.msra.mxu1 %v20994_v43  ;;  %19109 = vmatprep.subr.bf16.mxu0 %v20995_v25 }
0x10c8   : > { %19131 = vmatprep.subr.bf16.mxu1 %v20996_v45 }
0x10c9   : > { %4340 = vmatmul.mubr.bf16.vlgmr.msra.gmra.mxu0 %v3108_v50 }
0x10ca   : > { %4380 = vmatmul.mubr.bf16.vlgmr.msra.gmra.mxu1 %v3110_v52  ;;  %19110 = vmatpush3.bf16.msra.mxu0 %v20997_v49 }
0x10cb   : > { %4419 = vmatprep.mubr.bf16.mxu0 %v3113_v54  ;;  %19132 = vmatpush3.bf16.msra.mxu1 %v20998_v51 }
0x10cc   : > { %4459 = vmatprep.mubr.bf16.mxu1 %v3115_v56  ;;  %19111 = vmatprep.subr.bf16.mxu0 %v20999_v53 }
0x10cd   : > { %19133 = vmatprep.subr.bf16.mxu1 %v21000_v55 }
0x10ce   : > { %19112 = vmatpush3.bf16.msra.mxu0 %v21001_v57 }
0x10cf   : > { %19134 = vmatpush3.bf16.msra.mxu1 %v21002_v6  ;;  %19113 = vmatprep.subr.bf16.mxu0 %v21003_v7 }
0x10d0   : > { %19135 = vmatprep.subr.bf16.mxu1 %v21004_v8 }
0x10d2   : > { %19114 = vmatpush3.bf16.msra.mxu0 %v21005_v10 }
0x10d3   : > { %19136 = vmatpush3.bf16.msra.mxu1 %v21006_v11  ;;  %19115 = vmatprep.subr.bf16.mxu0 %v21007_v15 }
0x10d4   : > { %19137 = vmatprep.subr.bf16.mxu1 %v21008_v58 }
0x10d6   : > { %19116 = vmatpush3.bf16.msra.mxu0 %v21009_v16 }
0x10d7   : > { %19138 = vmatpush3.bf16.msra.mxu1 %v21010_v17  ;;  %19117 = vmatprep.subr.bf16.mxu0 %v21011_v18 }
0x10d8   : > { %19139 = vmatprep.subr.bf16.mxu1 %v21012_v19 }
0x10da   : > { %19118 = vmatpush3.bf16.msra.mxu0 %v21013_v0 }
0x10db   : > { %19140 = vmatpush3.bf16.msra.mxu1 %v21014_v21  ;;  %19119 = vmatprep.subr.bf16.mxu0 %v21015_v22 }
0x10dc   : > { %19141 = vmatprep.subr.bf16.mxu1 %v21016_v61 }
0x10de   : > { %19120 = vmatpush3.bf16.msra.mxu0 %v21017_v14 }
0x10df   : > { %19142 = vmatpush3.bf16.msra.mxu1 %v21018_v26  ;;  %19121 = vmatprep.subr.bf16.mxu0 %v21019_v27 }
0x10e0   : > { %19143 = vmatprep.subr.bf16.mxu1 %v21020_v29 }
0x10e2   : > { %19122 = vmatpush3.bf16.msra.mxu0 %v21021_v30 }
0x10e3   : > { %19144 = vmatpush3.bf16.msra.mxu1 %v21022_v32  ;;  %19123 = vmatprep.subr.bf16.mxu0 %v21023_v20 }
0x10e4   : > { %19145 = vmatprep.subr.bf16.mxu1 %v21024_v35 }
0x10e6   : > { %19124 = vmatpush3.bf16.msra.mxu0 %v21025_v4 }
0x10e7   : > { %19146 = vmatpush3.bf16.msra.mxu1 %v21026_v37  ;;  %20151 = vmatprep.subr.bf16.mxu0 %v21709_v2 }
0x10e8   : > { %20163 = vmatprep.subr.bf16.mxu1 %v21709_v2 }
0x10e9   : > { %4420 = vmatmul.mubr.bf16.vlgmr.msra.gmra.mxu0 %v3112_v5 }
0x10ea   : > { %4460 = vmatmul.mubr.bf16.vlgmr.msra.gmra.mxu1 %v3114_v13  ;;  %20159 = vmatprep.mubr.msk.bf16.mxu0 %vm21710_vm0, %v21709_v2 }
0x10eb   : > { %20171 = vmatprep.mubr.msk.bf16.mxu1 %vm21710_vm0, %v21709_v2 }
0x1149   : > { %v18993_v39 = vpop.f32.mrf.mxu0  ;;  %v19015_v40 = vpop.f32.mrf.mxu1 }
0x114b   : > { %v18994_v24 = vpop.f32.mrf.mxu0  ;;  %v19016_v42 = vpop.f32.mrf.mxu1 }
0x114c   : > { %v18995_v43 = vadd.f32 %v18994_v24, %v18993_v39  ;;  %v19017_v25 = vadd.f32 %v19016_v42, %v19015_v40  ;;  %v21027_v24 = vld [vmem:[%s26223_s27 + $0x98] sm:$0xff]  }
0x114d   : > { %v18996_v44 = vpop.f32.mrf.mxu0  ;;  %v19018_v45 = vpop.f32.mrf.mxu1  ;;  %v21028_v42 = vld [vmem:[%s26222_s1 + $0x98] sm:$0xff]   ;;  %20152 = vmatpush3.bf16.msra.mxu0 %v21027_v24 }
0x114e   : > { %v4182_v46 = vadd.f32 %v18995_v43, %v16543_v41  ;;  %20164 = vmatpush3.bf16.msra.mxu1 %v21028_v42  ;;  %20153 = vmatprep.subr.bf16.mxu0 %v21709_v2  ;;  %v21030_v43 = vld [vmem:[%s26222_s1 + $0x90] sm:$0xff]   ;;  %v21032_v44 = vld [vmem:[%s26222_s1 + $0x88] sm:$0xff]   ;;  %v21033_v45 = vld [vmem:[%s26223_s27 + $0x80] sm:$0xff]  }
0x114f   : > { %v18997_v48 = vpop.f32.mrf.mxu0  ;;  %v19019_v49 = vpop.f32.mrf.mxu1  ;;  %20165 = vmatprep.subr.bf16.mxu1 %v21709_v2 }
0x1150   : > { %v4222_v50 = vadd.f32 %v19017_v25, %v4182_v46  ;;  %v21031_v25 = vld [vmem:[%s26223_s27 + $0x88] sm:$0xff]   ;;  %v21034_v46 = vld [vmem:[%s26222_s1 + $0x80] sm:$0xff]  }
0x1152   : > { %20166 = vmatpush3.bf16.msra.mxu1 %v21030_v43 }
0x1153   : > { %20167 = vmatprep.subr.bf16.mxu1 %v21709_v2 }
0x1156   : > { %20168 = vmatpush3.bf16.msra.mxu1 %v21032_v44 }
0x1157   : > { %20169 = vmatprep.subr.bf16.mxu1 %v21709_v2 }
0x115a   : > { %20170 = vmatpush3.bf16.msra.mxu1 %v21034_v46 }
0x115b   : > { %20187 = vmatprep.subr.bf16.mxu1 %v21709_v2 }
0x1169   : > { %v19037_v51 = vpop.f32.mrf.mxu0  ;;  %v19059_v52 = vpop.f32.mrf.mxu1 }
0x116b   : > { %v19038_v53 = vpop.f32.mrf.mxu0  ;;  %v19060_v54 = vpop.f32.mrf.mxu1 }
0x116c   : > { %v19039_v18 = vadd.f32 %v19038_v53, %v19037_v51  ;;  %v19061_v0 = vadd.f32 %v19060_v54, %v19059_v52  ;;  %v16672_v52 = vld [vmem:[%s26188_s16] ss:$0 sm:$0xff] }
0x116d   : > { %v19040_v55 = vpop.f32.mrf.mxu0  ;;  %v19062_v56 = vpop.f32.mrf.mxu1  ;;  %v16673_v54 = vld [vmem:[%s26189_s17] ss:$0 sm:$0xff] }
0x116e   : > { %v4262_v19 = vadd.f32 %v19039_v18, %v4222_v50  ;;  %v21044_v18 = vld [vmem:[%s26178_s6 + $0xb0] sm:$0xff]  }
0x116f   : > { %v19041_v57 = vpop.f32.mrf.mxu0  ;;  %v19063_v6 = vpop.f32.mrf.mxu1 }
0x1170   : > { %v4302_v22 = vadd.f32 %v19061_v0, %v4262_v19  ;;  %v21035_v57 = vld [vmem:[%s26178_s6 + $0x98] sm:$0xff]   ;;  %v21045_v19 = vld [vmem:[%s26178_s6 + $0xa8] sm:$0xff]   ;;  %v21046_v0 = vld [vmem:[%s26178_s6 + $0xa0] sm:$0xff]  }
0x1189   : > { %v19081_v7 = vpop.f32.mrf.mxu0 }
0x118a   : > { %v19103_v8 = vpop.f32.mrf.mxu1 }
0x118b   : > { %v19082_v10 = vpop.f32.mrf.mxu0 }
0x118c   : > { %v19104_v11 = vpop.f32.mrf.mxu1  ;;  %v19083_v21 = vadd.f32 %v19082_v10, %v19081_v7  ;;  %v21036_v7 = vld [vmem:[%s26178_s6 + $0x90] sm:$0xff]   ;;  %v21038_v10 = vld [vmem:[%s26178_s6 + $0x80] sm:$0xff]  }
0x118d   : > { %v19084_v15 = vpop.f32.mrf.mxu0  ;;  %v19105_v23 = vadd.f32 %v19104_v11, %v19103_v8  ;;  %v21037_v8 = vld [vmem:[%s26178_s6 + $0x88] sm:$0xff]   ;;  %v21039_v11 = vld [vmem:[%s26223_s27 + $0xb8] sm:$0xff]  }
0x118e   : > { %v19106_v58 = vpop.f32.mrf.mxu1  ;;  %v4342_v61 = vadd.f32 %v19083_v21, %v4302_v22  ;;  %v21040_v15 = vld [vmem:[%s26223_s27 + $0xb0] sm:$0xff]   ;;  %v16698_v21 = vld [vmem:[%s26177_s5 + $0x4] ss:$0 sm:$0xff] }
0x118f   : > { %v19085_v16 = vpop.f32.mrf.mxu0  ;;  %v21041_v58 = vld [vmem:[%s26223_s27 + $0xa8] sm:$0xff]  }
0x1190   : > { %v19107_v17 = vpop.f32.mrf.mxu1  ;;  %v4382_v28 = vadd.f32 %v19105_v23, %v4342_v61  ;;  %v21042_v16 = vld [vmem:[%s26223_s27 + $0xa0] sm:$0xff]  }
0x1191   : > { %v21043_v17 = vld [vmem:[%s26178_s6 + $0xb8] sm:$0xff]  }
0x11a9   : > { %v19125_v14 = vpop.f32.mrf.mxu0 }
0x11aa   : > { %v19147_v26 = vpop.f32.mrf.mxu1 }
0x11ab   : > { %v19126_v27 = vpop.f32.mrf.mxu0 }
0x11ac   : > { %v19127_v29 = vadd.f32 %v19126_v27, %v19125_v14  ;;  %v19148_v30 = vpop.f32.mrf.mxu1 }
0x11ad   : > { %v19128_v31 = vpop.f32.mrf.mxu0  ;;  %v19149_v20 = vadd.f32 %v19148_v30, %v19147_v26 }
0x11ae   : > { %v4422_v32 = vadd.f32 %v19127_v29, %v4382_v28  ;;  %v19150_v62 = vpop.f32.mrf.mxu1  ;;  %v16683_v28 = vld [vmem:[%s26227_s26 + $0x4] ss:$0 sm:$0xff] }
0x11af   : > { %v19129_v35 = vpop.f32.mrf.mxu0 }
0x11b0   : > { %v4462_v4 = vadd.f32 %v19149_v20, %v4422_v32  ;;  %v19151_v36 = vpop.f32.mrf.mxu1 }
0x11b2   : > { %v4467_v37 = vadd.f32 %v4462_v4, %v22340_v60  ;;  %v21029_v60 = vld [vmem:[%s26223_s27 + $0x90] sm:$0xff]   ;;  %v16713_v4 = vld [vmem:[%s26179_s7 + $0x4] ss:$0 sm:$0xff] }
0x11b3   : > { %20154 = vmatpush3.bf16.msra.mxu0 %v21029_v60 }
0x11b4   : > { %v4470_v38 = vsel %vm670_vm1, %v4467_v37, 0.0  ;;  %20155 = vmatprep.subr.bf16.mxu0 %v21709_v2 }
0x11b5   : > { %4471 = vadd.xlane.f32.xlu0 %v4470_v38 }
0x11b7   : > { %20156 = vmatpush3.bf16.msra.mxu0 %v21031_v25 }
0x11b8   : > { %20157 = vmatprep.subr.bf16.mxu0 %v21709_v2 }
0x11bb   : > { %20158 = vmatpush3.bf16.msra.mxu0 %v21033_v45 }
0x11bc   : > { %20175 = vmatprep.subr.bf16.mxu0 %v21709_v2 }
0x123e   : > { %v4472_v5 = vpop.xlane.xlu0 %4471 }
0x123f   : > { %v4473_v13 = vmul.f32 0.015625, %v4472_v5 }
0x1241   : > { %v4474_v39 = vsub.f32 %v4467_v37, %v4473_v13 }
0x1243   : > { %v4475_v40 = vmul.f32 %v4474_v39, %v4474_v39 }
0x1245   : > { %v4476_v41 = vsel %vm670_vm1, %v4475_v40, 0.0 }
0x1246   : > { %4477 = vadd.xlane.f32.xlu1 %v4476_v41 }
0x12cf   : > { %v4478_v48 = vpop.xlane.xlu1 %4477 }
0x12d0   : > { %v4479_v49 = vmul.f32 0.015625, %v4478_v48 }
0x12d2   : > { %v4480_v50 = vadd.f32 1e-05, %v4479_v49 }
0x12d4   : > { %21585 = vrsqrt.f32 %v4480_v50 }
0x12e1   : > { %v21586_v51 = vpop.eup %21585 }
0x12e2   : > { %v4482_v53 = vmul.f32 %v21586_v51, %v4474_v39 }
0x12e4   : > { %v4489_v55 = vmul.f32 %v16672_v52, %v4482_v53 }
0x12e6   : > { %v23002_v56 = vadd.f32 %v16673_v54, %v4489_v55 }
0x12e8   : > { %v23009_v6 = vpack.c.bf16 %v23002_v56, %v23002_v56 }
0x12ea   : > { %20160 = vmatmul.mubr.msk.bf16.vlgmr.msra.gmra.mxu0 %vm670_vm1, %v23009_v6  ;;  %20172 = vmatmul.mubr.msk.bf16.vlgmr.msra.gmra.mxu1 %vm670_vm1, %v23009_v6 }
0x12eb   : > { %20176 = vmatpush3.bf16.msra.mxu0 %v21035_v57  ;;  %20183 = vmatprep.mubr.msk.bf16.mxu0 %vm21710_vm0, %v21709_v2 }
0x12ec   : > { %20177 = vmatprep.subr.bf16.mxu0 %v21709_v2  ;;  %20189 = vmatprep.mubr.msk.bf16.mxu1 %vm21710_vm0, %v21709_v2 }
0x12ef   : > { %20178 = vmatpush3.bf16.msra.mxu0 %v21036_v7 }
0x12f0   : > { %20179 = vmatprep.subr.bf16.mxu0 %v21709_v2 }
0x12f3   : > { %20180 = vmatpush3.bf16.msra.mxu0 %v21037_v8 }
0x12f4   : > { %20181 = vmatprep.subr.bf16.mxu0 %v21709_v2 }
0x12f7   : > { %20182 = vmatpush3.bf16.msra.mxu0 %v21038_v10 }
0x12f8   : > { %20199 = vmatprep.subr.bf16.mxu0 %v21709_v2 }
0x12fa   : > { %20184 = vmatmul.mubr.msk.bf16.vlgmr.msra.gmra.mxu0 %vm670_vm1, %v23009_v6 }
0x12fb   : > { %20200 = vmatpush3.bf16.msra.mxu0 %v21039_v11  ;;  %20207 = vmatprep.mubr.msk.bf16.mxu0 %vm21710_vm0, %v21709_v2  ;;  %v21047_v11 = vld [vmem:[%s26222_s1 + $0xb8] sm:$0xff]  }
0x12fc   : > { %20201 = vmatprep.subr.bf16.mxu0 %v21709_v2 }
0x12ff   : > { %20202 = vmatpush3.bf16.msra.mxu0 %v21040_v15 }
0x1300   : > { %20203 = vmatprep.subr.bf16.mxu0 %v21709_v2 }
0x1303   : > { %20204 = vmatpush3.bf16.msra.mxu0 %v21041_v58  ;;  %v21048_v58 = vld [vmem:[%s26222_s1 + $0xb0] sm:$0xff]  }
0x1304   : > { %20205 = vmatprep.subr.bf16.mxu0 %v21709_v2 }
0x1307   : > { %20206 = vmatpush3.bf16.msra.mxu0 %v21042_v16  ;;  %v21049_v16 = vld [vmem:[%s26222_s1 + $0xa8] sm:$0xff]  }
0x1308   : > { %20223 = vmatprep.subr.bf16.mxu0 %v21709_v2 }
0x130a   : > { %20208 = vmatmul.mubr.msk.bf16.vlgmr.msra.gmra.mxu0 %vm670_vm1, %v23009_v6 }
0x130b   : > { %20224 = vmatpush3.bf16.msra.mxu0 %v21043_v17  ;;  %20231 = vmatprep.mubr.msk.bf16.mxu0 %vm21710_vm0, %v21709_v2  ;;  %v21050_v17 = vld [vmem:[%s26222_s1 + $0xa0] sm:$0xff]  }
0x130c   : > { %20225 = vmatprep.subr.bf16.mxu0 %v21709_v2 }
0x130f   : > { %20226 = vmatpush3.bf16.msra.mxu0 %v21044_v18 }
0x1310   : > { %20227 = vmatprep.subr.bf16.mxu0 %v21709_v2 }
0x1313   : > { %20228 = vmatpush3.bf16.msra.mxu0 %v21045_v19 }
0x1314   : > { %20229 = vmatprep.subr.bf16.mxu0 %v21709_v2 }
0x1317   : > { %20230 = vmatpush3.bf16.msra.mxu0 %v21046_v0 }
0x1318   : > { %20247 = vmatprep.subr.bf16.mxu0 %v21709_v2 }
0x131a   : > { %20232 = vmatmul.mubr.msk.bf16.vlgmr.msra.gmra.mxu0 %vm670_vm1, %v23009_v6 }
0x131b   : > { %20249 = vmatprep.mubr.msk.bf16.mxu0 %vm21710_vm0, %v21709_v2 }
0x13aa   : > { %v4576_v22 = vpop.f32.mrf.mxu0  ;;  %v4657_v61 = vpop.f32.mrf.mxu1 }
0x13ab   : > { %v4658_v14 = vadd.f32 %v16698_v21, %v4657_v61  ;;  %v4577_v62 = vadd.f32 %v16683_v28, %v4576_v22  ;;  %v16747_v22 = vld [vmem:[%s26177_s5 + $0x5] ss:$0 sm:$0xff] }
0x13ac   : > { %v20161_v23 = vpop.f32.mrf.mxu0  ;;  %v20173_v26 = vpop.f32.mrf.mxu1  ;;  %v16732_v28 = vld [vmem:[%s26227_s26 + $0x5] ss:$0 sm:$0xff] }
0x13ad   : > { %v4745_v27 = vpack.c.bf16 %v4658_v14, %v4658_v14  ;;  %v4744_v35 = vpack.c.bf16 %v4577_v62, %v4577_v62  ;;  %v16762_v23 = vld [vmem:[%s26179_s7 + $0x5] ss:$0 sm:$0xff] }
0x13ae   : > { %v4579_v29 = vpop.f32.mrf.mxu0  ;;  %v4660_v30 = vpop.f32.mrf.mxu1 }
0x13af   : > { %v4750_v31 = vsel %vm874_vm2, %v4745_v27, 0 }
0x13b0   : > { %v20162_v32 = vpop.f32.mrf.mxu0  ;;  %v20174_v20 = vpop.f32.mrf.mxu1  ;;  %20188 = vmatpush3.bf16.xpose.msra.mxu1 %v4750_v31 }
0x13b1   : > { %20193 = vmatprep.subr.bf16.mxu1 %v21709_v2 }
0x13b7   : > { %20190 = vmatmul.mubr.msk.bf16.vlgmr.msra.gmra.mxu1 %vm874_vm2, %v4744_v35 }
0x13b8   : > { %20195 = vmatprep.mubr.msk.bf16.mxu1 %vm21710_vm0, %v21709_v2 }
0x13ba   : > { %v4738_v36 = vpop.f32.mrf.mxu0 }
0x13bb   : > { %v4739_v37 = vadd.f32 %v16713_v4, %v4738_v36 }
0x13bc   : > { %v20185_v38 = vpop.f32.mrf.mxu0 }
0x13bd   : > { %v4804_v5 = vpack.c.bf16 %v4739_v37, %v4739_v37 }
0x13be   : > { %v4741_v13 = vpop.f32.mrf.mxu0 }
0x13bf   : > { %v4809_v39 = vsel %vm938_vm4, %v4804_v5, 0 }
0x13c0   : > { %v20186_v40 = vpop.f32.mrf.mxu0  ;;  %20194 = vmatpush3.bf16.msra.mxu1 %v4809_v39 }
0x13c1   : > { %20211 = vmatprep.subr.bf16.mxu1 %v21709_v2 }
0x13ca   : > { %v4930_v41 = vpop.f32.mrf.mxu0 }
0x13cb   : > { %v4931_v20 = vadd.f32 %v16732_v28, %v4930_v41  ;;  %v21064_v28 = vld [vmem:[%s26178_s6 + $0xc0] sm:$0xff]  }
0x13cc   : > { %v20209_v24 = vpop.f32.mrf.mxu0 }
0x13cd   : > { %v5098_v35 = vpack.c.bf16 %v4931_v20, %v4931_v20 }
0x13ce   : > { %v4933_v42 = vpop.f32.mrf.mxu0 }
0x13d0   : > { %v20210_v60 = vpop.f32.mrf.mxu0 }
0x13d1   : > { %v21056_v60 = vld [vmem:[%s26180_s8 + $0x28] sm:$0xff]  }
0x13d2   : > { %20248 = vmatpush3.bf16.msra.mxu0 %v21056_v60 }
0x13d3   : > { %20259 = vmatprep.subr.bf16.mxu0 %v21709_v2 }
0x13da   : > { %v5092_v43 = vpop.f32.mrf.mxu0 }
0x13db   : > { %v5093_v30 = vadd.f32 %v16762_v23, %v5092_v43 }
0x13dc   : > { %v20233_v25 = vpop.f32.mrf.mxu0 }
0x13dd   : > { %v5158_v62 = vpack.c.bf16 %v5093_v30, %v5093_v30 }
0x13de   : > { %v5095_v44 = vpop.f32.mrf.mxu0 }
0x13df   : > { %v5163_v4 = vsel %vm938_vm4, %v5158_v62, 0 }
0x13e0   : > { %v20234_v45 = vpop.f32.mrf.mxu0 }
0x13e1   : > { %v21051_v45 = vld [vmem:[%s26180_s8 + $0x20] sm:$0xff]  }
0x1477   : > { %v4786_v46 = vpop.f32.mrf.mxu1 }
0x1478   : > { %v4792_v48 = vsel %vm921_vm3, %v4786_v46, -inf }
0x1479   : > { %4793 = vmax.xlane.f32.xlu0 %v4792_v48  ;;  %v20191_v49 = vpop.f32.mrf.mxu1  ;;  %v21052_v48 = vld [vmem:[%s26222_s1 + $0xd8] sm:$0xff]  }
0x147b   : > { %v4789_v50 = vpop.f32.mrf.mxu1 }
0x147c   : > { %v21053_v50 = vld [vmem:[%s26222_s1 + $0xd0] sm:$0xff]  }
0x147d   : > { %v20192_v51 = vpop.f32.mrf.mxu1 }
0x147e   : > { %v21054_v51 = vld [vmem:[%s26222_s1 + $0xc8] sm:$0xff]  }
0x1502   : > { %v4794_v52 = vpop.xlane.xlu0 %4793 }
0x1503   : > { %v4795_v53 = vsub.f32 %v4786_v46, %v4794_v52  ;;  %v21055_v52 = vld [vmem:[%s26222_s1 + $0xc0] sm:$0xff]  }
0x1505   : > { %v4796_v54 = vmul.f32 1.442695, %v4795_v53 }
0x1507   : > { %21587 = vpow2.f32 %v4796_v54  ;;  %v21057_v54 = vld [vmem:[%s26223_s27 + $0xd8] sm:$0xff]  }
0x1514   : > { %v21588_v55 = vpop.eup %21587 }
0x1515   : > { %v4798_v57 = vsel %vm921_vm3, %v21588_v55, 0.0 }
0x1516   : > { %4799 = vadd.xlane.f32.xlu1 %v4798_v57 }
0x159f   : > { %v4800_v7 = vpop.xlane.xlu1 %4799 }
0x15a0   : > { %21589 = vrcp.f32 %v4800_v7 }
0x15ad   : > { %v21590_v8 = vpop.eup %21589 }
0x15ae   : > { %v4802_v10 = vmul.f32 %v21590_v8, %v21588_v55  ;;  %v21058_v8 = vld [vmem:[%s26223_s27 + $0xd0] sm:$0xff]  }
0x15b0   : > { %v4803_v15 = vpack.c.bf16 %v4802_v10, %v4802_v10 }
0x15b2   : > { %20196 = vmatmul.mubr.msk.bf16.vlgmr.msra.gmra.mxu1 %vm921_vm3, %v4803_v15  ;;  %v21059_v15 = vld [vmem:[%s26223_s27 + $0xc8] sm:$0xff]  }
0x15b3   : > { %20212 = vmatpush3.bf16.msra.mxu1 %v21047_v11  ;;  %20219 = vmatprep.mubr.msk.bf16.mxu1 %vm21710_vm0, %v21709_v2 }
0x15b4   : > { %20213 = vmatprep.subr.bf16.mxu1 %v21709_v2 }
0x15b7   : > { %20214 = vmatpush3.bf16.msra.mxu1 %v21048_v58 }
0x15b8   : > { %20215 = vmatprep.subr.bf16.mxu1 %v21709_v2 }
0x15bb   : > { %20216 = vmatpush3.bf16.msra.mxu1 %v21049_v16 }
0x15bc   : > { %20217 = vmatprep.subr.bf16.mxu1 %v21709_v2 }
0x15bf   : > { %20218 = vmatpush3.bf16.msra.mxu1 %v21050_v17  ;;  %v21060_v17 = vld [vmem:[%s26223_s27 + $0xc0] sm:$0xff]  }
0x15c0   : > { %20235 = vmatprep.subr.bf16.mxu1 %v21709_v2 }
0x15c2   : > { %20220 = vmatmul.mubr.msk.bf16.vlgmr.msra.gmra.mxu1 %vm670_vm1, %v23009_v6 }
0x15c3   : > { %20237 = vmatprep.mubr.msk.bf16.mxu1 %vm21710_vm0, %v21709_v2 }
0x1672   : > { %v4845_v18 = vpop.f32.mrf.mxu1 }
0x1673   : > { %v4851_v49 = vpack.c.bf16 %v4845_v18, %v4845_v18 }
0x1674   : > { %v20197_v19 = vpop.f32.mrf.mxu1 }
0x1675   : > { %v21061_v19 = vld [vmem:[%s26178_s6 + $0xd8] sm:$0xff]  }
0x1676   : > { %v4848_v0 = vpop.f32.mrf.mxu1 }
0x1677   : > { %v21062_v0 = vld [vmem:[%s26178_s6 + $0xd0] sm:$0xff]  }
0x1678   : > { %v20198_v21 = vpop.f32.mrf.mxu1 }
0x1679   : > { %v16800_v21 = vld [vmem:[%s26177_s5 + $0x6] ss:$0 sm:$0xff] }
0x1682   : > { %v5011_v61 = vpop.f32.mrf.mxu1 }
0x1683   : > { %v5012_v14 = vadd.f32 %v16747_v22, %v5011_v61  ;;  %v21063_v61 = vld [vmem:[%s26178_s6 + $0xc8] sm:$0xff]  }
0x1684   : > { %v20221_v26 = vpop.f32.mrf.mxu1 }
0x1685   : > { %v5099_v27 = vpack.c.bf16 %v5012_v14, %v5012_v14 }
0x1686   : > { %v5014_v29 = vpop.f32.mrf.mxu1 }
0x1687   : > { %v5104_v31 = vsel %vm874_vm2, %v5099_v27, 0 }
0x1688   : > { %v20222_v32 = vpop.f32.mrf.mxu1  ;;  %20236 = vmatpush3.bf16.xpose.msra.mxu1 %v5104_v31 }
0x1689   : > { %20241 = vmatprep.subr.bf16.mxu1 %v21709_v2 }
0x168f   : > { %20238 = vmatmul.mubr.msk.bf16.vlgmr.msra.gmra.mxu1 %vm874_vm2, %v5098_v35  ;;  %v16785_v35 = vld [vmem:[%s26227_s26 + $0x6] ss:$0 sm:$0xff] }
0x1690   : > { %20242 = vmatpush3.bf16.msra.mxu1 %v5163_v4  ;;  %20243 = vmatprep.mubr.msk.bf16.mxu1 %vm21710_vm0, %v21709_v2 }
0x1691   : > { %20253 = vmatprep.subr.bf16.mxu1 %v21709_v2 }
0x174f   : > { %v5140_v36 = vpop.f32.mrf.mxu1 }
0x1750   : > { %v5146_v37 = vsel %vm921_vm3, %v5140_v36, -inf }
0x1751   : > { %5147 = vmax.xlane.f32.xlu0 %v5146_v37  ;;  %v20239_v38 = vpop.f32.mrf.mxu1 }
0x1753   : > { %v5143_v5 = vpop.f32.mrf.mxu1 }
0x1755   : > { %v20240_v13 = vpop.f32.mrf.mxu1 }
0x17da   : > { %v5148_v39 = vpop.xlane.xlu0 %5147 }
0x17db   : > { %v5149_v40 = vsub.f32 %v5140_v36, %v5148_v39  ;;  %v16815_v39 = vld [vmem:[%s26179_s7 + $0x6] ss:$0 sm:$0xff] }
0x17dd   : > { %v5150_v41 = vmul.f32 1.442695, %v5149_v40 }
0x17df   : > { %21591 = vpow2.f32 %v5150_v41 }
0x17ec   : > { %v21592_v24 = vpop.eup %21591 }
0x17ed   : > { %v5152_v42 = vsel %vm921_vm3, %v21592_v24, 0.0 }
0x17ee   : > { %5153 = vadd.xlane.f32.xlu1 %v5152_v42 }
0x1877   : > { %v5154_v43 = vpop.xlane.xlu1 %5153 }
0x1878   : > { %21593 = vrcp.f32 %v5154_v43 }
0x1885   : > { %v21594_v25 = vpop.eup %21593 }
0x1886   : > { %v5156_v44 = vmul.f32 %v21594_v25, %v21592_v24 }
0x1888   : > { %v5157_v46 = vpack.c.bf16 %v5156_v44, %v5156_v44 }
0x188a   : > { %20244 = vmatmul.mubr.msk.bf16.vlgmr.msra.gmra.mxu1 %vm921_vm3, %v5157_v46 }
0x188b   : > { %20254 = vmatpush3.bf16.msra.mxu1 %v21051_v45  ;;  %20255 = vmatprep.mubr.msk.bf16.mxu1 %vm21710_vm0, %v21709_v2 }
0x188c   : > { %20271 = vmatprep.subr.bf16.mxu1 %v21709_v2 }
0x1892   : > { %20256 = vmatmul.mubr.msk.bf16.vlgmr.msra.gmra.mxu1 %vm874_vm2, %v4851_v49 }
0x1893   : > { %20272 = vmatpush3.bf16.msra.mxu1 %v21052_v48  ;;  %20279 = vmatprep.mubr.msk.bf16.mxu1 %vm21710_vm0, %v21709_v2 }
0x1894   : > { %20273 = vmatprep.subr.bf16.mxu1 %v21709_v2 }
0x1897   : > { %20274 = vmatpush3.bf16.msra.mxu1 %v21053_v50 }
0x1898   : > { %20275 = vmatprep.subr.bf16.mxu1 %v21709_v2 }
0x189b   : > { %20276 = vmatpush3.bf16.msra.mxu1 %v21054_v51 }
0x189c   : > { %20277 = vmatprep.subr.bf16.mxu1 %v21709_v2 }
0x189f   : > { %20278 = vmatpush3.bf16.msra.mxu1 %v21055_v52 }
0x18a0   : > { %20295 = vmatprep.subr.bf16.mxu1 %v21709_v2 }
0x18a2   : > { %20280 = vmatmul.mubr.msk.bf16.vlgmr.msra.gmra.mxu1 %vm670_vm1, %v23009_v6 }
0x18a3   : > { %20297 = vmatprep.mubr.msk.bf16.mxu1 %vm21710_vm0, %v21709_v2 }
0x194a   : > { %v5199_v53 = vpop.f32.mrf.mxu1 }
0x194b   : > { %v5205_v55 = vpack.c.bf16 %v5199_v53, %v5199_v53 }
0x194c   : > { %v20245_v57 = vpop.f32.mrf.mxu1 }
0x194d   : > { %20250 = vmatmul.mubr.msk.bf16.vlgmr.msra.gmra.mxu0 %vm874_vm2, %v5205_v55  ;;  %v21073_v55 = vld [vmem:[%s26180_s8 + $0x30] sm:$0xff]  }
0x194e   : > { %20260 = vmatpush3.bf16.msra.mxu0 %v21057_v54  ;;  %v5202_v7 = vpop.f32.mrf.mxu1  ;;  %20267 = vmatprep.mubr.msk.bf16.mxu0 %vm21710_vm0, %v21709_v2 }
0x194f   : > { %20261 = vmatprep.subr.bf16.mxu0 %v21709_v2 }
0x1950   : > { %v20246_v10 = vpop.f32.mrf.mxu1 }
0x1951   : > { %v21065_v10 = vld [vmem:[%s26223_s27 + $0xf8] sm:$0xff]  }
0x1952   : > { %20262 = vmatpush3.bf16.msra.mxu0 %v21058_v8  ;;  %v23179_v11 = vpop.f32.mrf.mxu1 }
0x1953   : > { %20263 = vmatprep.subr.bf16.mxu0 %v21709_v2 }
0x1954   : > { %v20257_v58 = vpop.f32.mrf.mxu1 }
0x1955   : > { %v21066_v58 = vld [vmem:[%s26223_s27 + $0xf0] sm:$0xff]  }
0x1956   : > { %20264 = vmatpush3.bf16.msra.mxu0 %v21059_v15  ;;  %v5304_v16 = vpop.f32.mrf.mxu1 }
0x1957   : > { %20265 = vmatprep.subr.bf16.mxu0 %v21709_v2  ;;  %v21067_v16 = vld [vmem:[%s26223_s27 + $0xe8] sm:$0xff]  }
0x1958   : > { %v20258_v18 = vpop.f32.mrf.mxu1 }
0x1959   : > { %v21069_v18 = vld [vmem:[%s26178_s6 + $0xf8] sm:$0xff]  }
0x195a   : > { %20266 = vmatpush3.bf16.msra.mxu0 %v21060_v17  ;;  %v21068_v17 = vld [vmem:[%s26223_s27 + $0xe0] sm:$0xff]  }
0x195b   : > { %20283 = vmatprep.subr.bf16.mxu0 %v21709_v2 }
0x195d   : > { %20268 = vmatmul.mubr.msk.bf16.vlgmr.msra.gmra.mxu0 %vm670_vm1, %v23009_v6 }
0x195e   : > { %20284 = vmatpush3.bf16.msra.mxu0 %v21061_v19  ;;  %20291 = vmatprep.mubr.msk.bf16.mxu0 %vm21710_vm0, %v21709_v2  ;;  %v21070_v19 = vld [vmem:[%s26178_s6 + $0xf0] sm:$0xff]  }
0x195f   : > { %20285 = vmatprep.subr.bf16.mxu0 %v21709_v2 }
0x1962   : > { %v5463_v22 = vpop.f32.mrf.mxu1  ;;  %20286 = vmatpush3.bf16.msra.mxu0 %v21062_v0  ;;  %v21071_v0 = vld [vmem:[%s26178_s6 + $0xe8] sm:$0xff]  }
0x1963   : > { %v5464_v14 = vadd.f32 %v16800_v21, %v5463_v22  ;;  %20287 = vmatprep.subr.bf16.mxu0 %v21709_v2  ;;  %v21072_v21 = vld [vmem:[%s26178_s6 + $0xe0] sm:$0xff]  }
0x1964   : > { %v20281_v23 = vpop.f32.mrf.mxu1 }
0x1965   : > { %v5551_v26 = vpack.c.bf16 %v5464_v14, %v5464_v14 }
0x1966   : > { %v5466_v27 = vpop.f32.mrf.mxu1  ;;  %20288 = vmatpush3.bf16.msra.mxu0 %v21063_v61  ;;  %v21074_v61 = vld [vmem:[%s26222_s1 + $0xf8] sm:$0xff]  }
0x1967   : > { %v5556_v29 = vsel %vm874_vm2, %v5551_v26, 0  ;;  %20289 = vmatprep.subr.bf16.mxu0 %v21709_v2  ;;  %v21075_v27 = vld [vmem:[%s26222_s1 + $0xf0] sm:$0xff]  }
0x1968   : > { %v20282_v30 = vpop.f32.mrf.mxu1  ;;  %20296 = vmatpush3.bf16.xpose.msra.mxu1 %v5556_v29  ;;  %v21076_v29 = vld [vmem:[%s26222_s1 + $0xe8] sm:$0xff]  }
0x1969   : > { %20301 = vmatprep.subr.bf16.mxu1 %v21709_v2  ;;  %v21077_v30 = vld [vmem:[%s26222_s1 + $0xe0] sm:$0xff]  }
0x196a   : > { %20290 = vmatpush3.bf16.msra.mxu0 %v21064_v28 }
0x196b   : > { %20307 = vmatprep.subr.bf16.mxu0 %v21709_v2 }
0x196d   : > { %20292 = vmatmul.mubr.msk.bf16.vlgmr.msra.gmra.mxu0 %vm670_vm1, %v23009_v6 }
0x196e   : > { %20309 = vmatprep.mubr.msk.bf16.mxu0 %vm21710_vm0, %v21709_v2  ;;  %20308 = vmatpush3.bf16.msra.mxu0 %v21073_v55 }
0x196f   : > { %20325 = vmatprep.subr.bf16.mxu0 %v21709_v2 }
0x1a0d   : > { %v23219_v31 = vpop.f32.mrf.mxu0 }
0x1a0f   : > { %v20251_v32 = vpop.f32.mrf.mxu0 }
0x1a11   : > { %v5255_v20 = vpop.f32.mrf.mxu0 }
0x1a13   : > { %v20252_v62 = vpop.f32.mrf.mxu0 }
0x1a1d   : > { %v5382_v4 = vpop.f32.mrf.mxu0 }
0x1a1e   : > { %v5383_v36 = vadd.f32 %v16785_v35, %v5382_v4 }
0x1a1f   : > { %v20269_v37 = vpop.f32.mrf.mxu0 }
0x1a20   : > { %v5550_v38 = vpack.c.bf16 %v5383_v36, %v5383_v36 }
0x1a21   : > { %v5385_v5 = vpop.f32.mrf.mxu0 }
0x1a22   : > { %20298 = vmatmul.mubr.msk.bf16.vlgmr.msra.gmra.mxu1 %vm874_vm2, %v5550_v38  ;;  %v5302_v5 = vadd.f32 %v23179_v11, %v23219_v31  ;;  %v16836_v11 = vld [vmem:[%s26227_s26 + $0x7] ss:$0 sm:$0xff] }
0x1a23   : > { %v20270_v13 = vpop.f32.mrf.mxu0  ;;  %20303 = vmatprep.mubr.msk.bf16.mxu1 %vm21710_vm0, %v21709_v2 }
0x1a2d   : > { %v5544_v40 = vpop.f32.mrf.mxu0 }
0x1a2e   : > { %v5545_v41 = vadd.f32 %v16815_v39, %v5544_v40 }
0x1a2f   : > { %v20293_v24 = vpop.f32.mrf.mxu0 }
0x1a30   : > { %v5610_v42 = vpack.c.bf16 %v5545_v41, %v5545_v41 }
0x1a31   : > { %v5547_v60 = vpop.f32.mrf.mxu0 }
0x1a32   : > { %v5615_v43 = vsel %vm938_vm4, %v5610_v42, 0 }
0x1a33   : > { %v20294_v25 = vpop.f32.mrf.mxu0  ;;  %20302 = vmatpush3.bf16.msra.mxu1 %v5615_v43  ;;  %v16866_v43 = vld [vmem:[%s26179_s7 + $0x7] ss:$0 sm:$0xff] }
0x1a34   : > { %20313 = vmatprep.subr.bf16.mxu1 %v21709_v2 }
0x1ae2   : > { %v5592_v44 = vpop.f32.mrf.mxu1 }
0x1ae3   : > { %v5598_v45 = vsel %vm921_vm3, %v5592_v44, -inf }
0x1ae4   : > { %5599 = vmax.xlane.f32.xlu0 %v5598_v45  ;;  %v20299_v46 = vpop.f32.mrf.mxu1 }
0x1ae6   : > { %v5595_v48 = vpop.f32.mrf.mxu1 }
0x1ae8   : > { %v20300_v49 = vpop.f32.mrf.mxu1 }
0x1b6d   : > { %v5600_v50 = vpop.xlane.xlu0 %5599 }
0x1b6e   : > { %v5601_v51 = vsub.f32 %v5592_v44, %v5600_v50 }
0x1b70   : > { %v5602_v52 = vmul.f32 1.442695, %v5601_v51 }
0x1b72   : > { %21595 = vpow2.f32 %v5602_v52 }
0x1b7f   : > { %v21596_v53 = vpop.eup %21595 }
0x1b80   : > { %v5604_v54 = vsel %vm921_vm3, %v21596_v53, 0.0 }
0x1b81   : > { %5605 = vadd.xlane.f32.xlu1 %v5604_v54 }
0x1c0a   : > { %v5606_v57 = vpop.xlane.xlu1 %5605 }
0x1c0b   : > { %21597 = vrcp.f32 %v5606_v57 }
0x1c18   : > { %v21598_v7 = vpop.eup %21597 }
0x1c19   : > { %v5608_v8 = vmul.f32 %v21598_v7, %v21596_v53 }
0x1c1b   : > { %v5609_v15 = vpack.c.bf16 %v5608_v8, %v5608_v8 }
0x1c1d   : > { %20304 = vmatmul.mubr.msk.bf16.vlgmr.msra.gmra.mxu1 %vm921_vm3, %v5609_v15 }
0x1c1e   : > { %20314 = vmatpush3.bf16.msra.mxu1 %v21065_v10  ;;  %20321 = vmatprep.mubr.msk.bf16.mxu1 %vm21710_vm0, %v21709_v2 }
0x1c1f   : > { %20315 = vmatprep.subr.bf16.mxu1 %v21709_v2 }
0x1c22   : > { %20316 = vmatpush3.bf16.msra.mxu1 %v21066_v58 }
0x1c23   : > { %20317 = vmatprep.subr.bf16.mxu1 %v21709_v2 }
0x1c26   : > { %20318 = vmatpush3.bf16.msra.mxu1 %v21067_v16 }
0x1c27   : > { %20319 = vmatprep.subr.bf16.mxu1 %v21709_v2 }
0x1c2a   : > { %20320 = vmatpush3.bf16.msra.mxu1 %v21068_v17 }
0x1c2b   : > { %20337 = vmatprep.subr.bf16.mxu1 %v21709_v2 }
0x1c2d   : > { %20322 = vmatmul.mubr.msk.bf16.vlgmr.msra.gmra.mxu1 %vm670_vm1, %v23009_v6 }
0x1c2e   : > { %20338 = vmatpush3.bf16.msra.mxu1 %v21069_v18  ;;  %20345 = vmatprep.mubr.msk.bf16.mxu1 %vm21710_vm0, %v21709_v2 }
0x1c2f   : > { %20339 = vmatprep.subr.bf16.mxu1 %v21709_v2 }
0x1c32   : > { %20340 = vmatpush3.bf16.msra.mxu1 %v21070_v19 }
0x1c33   : > { %20341 = vmatprep.subr.bf16.mxu1 %v21709_v2 }
0x1c36   : > { %20342 = vmatpush3.bf16.msra.mxu1 %v21071_v0 }
0x1c37   : > { %20343 = vmatprep.subr.bf16.mxu1 %v21709_v2 }
0x1c3a   : > { %20344 = vmatpush3.bf16.msra.mxu1 %v21072_v21  ;;  %v21078_v21 = vld [vmem:[%s26180_s8 + $0x38] sm:$0xff]  }
0x1c3b   : > { %20361 = vmatprep.subr.bf16.mxu1 %v21709_v2 }
0x1c3d   : > { %20346 = vmatmul.mubr.msk.bf16.vlgmr.msra.gmra.mxu1 %vm670_vm1, %v23009_v6 }
0x1c3e   : > { %20363 = vmatprep.mubr.msk.bf16.mxu1 %vm21710_vm0, %v21709_v2  ;;  %20362 = vmatpush3.bf16.msra.mxu1 %v21078_v21  ;;  %v16935_v21 = vld [vmem:[%s26184_s12 + $0x398] sm:$0xff] }
0x1cdd   : > { %v5651_v22 = vpop.f32.mrf.mxu1 }
0x1cde   : > { %v5657_v14 = vpack.c.bf16 %v5651_v22, %v5651_v22 }
0x1cdf   : > { %v20305_v23 = vpop.f32.mrf.mxu1 }
0x1ce0   : > { %20310 = vmatmul.mubr.msk.bf16.vlgmr.msra.gmra.mxu0 %vm874_vm2, %v5657_v14 }
0x1ce1   : > { %20326 = vmatpush3.bf16.msra.mxu0 %v21074_v61  ;;  %v5654_v26 = vpop.f32.mrf.mxu1  ;;  %20333 = vmatprep.mubr.msk.bf16.mxu0 %vm21710_vm0, %v21709_v2 }
0x1ce2   : > { %20327 = vmatprep.subr.bf16.mxu0 %v21709_v2 }
0x1ce3   : > { %v20306_v28 = vpop.f32.mrf.mxu1 }
0x1ce4   : > { %v16879_v28 = vld [vmem:[%s26181_s9 + $0x1] ss:$0 sm:$0xff] }
0x1ce5   : > { %20328 = vmatpush3.bf16.msra.mxu0 %v21075_v27 }
0x1ce6   : > { %20329 = vmatprep.subr.bf16.mxu0 %v21709_v2 }
0x1ce9   : > { %20330 = vmatpush3.bf16.msra.mxu0 %v21076_v29 }
0x1cea   : > { %20331 = vmatprep.subr.bf16.mxu0 %v21709_v2 }
0x1ced   : > { %v5786_v32 = vpop.f32.mrf.mxu1  ;;  %20332 = vmatpush3.bf16.msra.mxu0 %v21077_v30 }
0x1cee   : > { %20349 = vmatprep.subr.bf16.mxu0 %v21709_v2  ;;  %v5787_v49 = vadd.f32 %v16836_v11, %v5786_v32 }
0x1cef   : > { %v20323_v20 = vpop.f32.mrf.mxu1 }
0x1cf0   : > { %20334 = vmatmul.mubr.msk.bf16.vlgmr.msra.gmra.mxu0 %vm670_vm1, %v23009_v6  ;;  %v16851_v6 = vld [vmem:[%s26177_s5 + $0x7] ss:$0 sm:$0xff]  ;;  %v5954_v51 = vpack.c.bf16 %v5787_v49, %v5787_v49 }
0x1cf1   : > { %v5789_v62 = vpop.f32.mrf.mxu1  ;;  %20351 = vmatprep.mubr.msk.bf16.mxu0 %vm21710_vm0, %v21709_v2  ;;  %v16900_v49 = vld [vmem:[%s26184_s12 + $0x280] sm:$0xff] }
0x1cf3   : > { %v20324_v35 = vpop.f32.mrf.mxu1 }
0x1cfd   : > { %v5948_v4 = vpop.f32.mrf.mxu1 }
0x1cfe   : > { %v5949_v45 = vadd.f32 %v16866_v43, %v5948_v4  ;;  %v16916_v43 = vld [vmem:[%s26184_s12 + $0x300] sm:$0xff] }
0x1cff   : > { %v20347_v36 = vpop.f32.mrf.mxu1 }
0x1d00   : > { %v6014_v50 = vpack.c.bf16 %v5949_v45, %v5949_v45 }
0x1d01   : > { %v5951_v37 = vpop.f32.mrf.mxu1 }
0x1d02   : > { %v6019_v52 = vsel %vm938_vm4, %v6014_v50, 0  ;;  %v16908_v50 = vld [vmem:[%s26184_s12 + $0x2c0] sm:$0xff] }
0x1d03   : > { %v20348_v38 = vpop.f32.mrf.mxu1 }
0x1da0   : > { %v5704_v13 = vpop.f32.mrf.mxu0 }
0x1da1   : > { %v5710_v39 = vadd.f32 %v5704_v13, %v5302_v5 }
0x1da2   : > { %v20311_v40 = vpop.f32.mrf.mxu0 }
0x1da3   : > { %v16933_v40 = vld [vmem:[%s26184_s12 + $0x388] sm:$0xff] }
0x1da4   : > { %v5707_v41 = vpop.f32.mrf.mxu0 }
0x1da6   : > { %v20312_v24 = vpop.f32.mrf.mxu0 }
0x1da7   : > { %v16941_v24 = vld [vmem:[%s26184_s12 + $0x3c8] sm:$0xff] }
0x1db0   : > { %v5867_v42 = vpop.f32.mrf.mxu0 }
0x1db1   : > { %v5868_v60 = vadd.f32 %v16851_v6, %v5867_v42  ;;  %v17000_v42 = vcombine.low %v16933_v40, %v16941_v24 }
0x1db2   : > { %v20335_v25 = vpop.f32.mrf.mxu0 }
0x1db3   : > { %v5955_v44 = vpack.c.bf16 %v5868_v60, %v5868_v60  ;;  %v17001_v60 = vcombine.high %v16933_v40, %v16941_v24  ;;  %v16924_v25 = vld [vmem:[%s26184_s12 + $0x340] sm:$0xff]  ;;  %v16902_v40 = vld [vmem:[%s26184_s12 + $0x290] sm:$0xff]  ;;  %v16903_v24 = vld [vmem:[%s26184_s12 + $0x298] sm:$0xff] }
0x1db4   : > { %v5870_v31 = vpop.f32.mrf.mxu0  ;;  %v16983_v11 = vcombine.high %v16916_v43, %v16924_v25  ;;  %v16982_v45 = vcombine.low %v16916_v43, %v16924_v25 }
0x1db5   : > { %v5960_v46 = vsel %vm874_vm2, %v5955_v44, 0  ;;  %6679 = vmatprep.subr.bf16.mxu1 %v17001_v60  ;;  %v16917_v44 = vld [vmem:[%s26184_s12 + $0x308] sm:$0xff] }
0x1db6   : > { %v20336_v48 = vpop.f32.mrf.mxu0  ;;  %20350 = vmatpush3.bf16.xpose.msra.mxu0 %v5960_v46  ;;  %v16925_v31 = vld [vmem:[%s26184_s12 + $0x348] sm:$0xff] }
0x1db7   : > { %20355 = vmatprep.subr.bf16.mxu0 %v21709_v2  ;;  %v16984_v46 = vcombine.low %v16917_v44, %v16925_v31  ;;  %v16985_v48 = vcombine.high %v16917_v44, %v16925_v31  ;;  %v16886_v44 = vld [vmem:[%s26184_s12 + $0x210] sm:$0xff]  ;;  %v16887_v31 = vld [vmem:[%s26184_s12 + $0x218] sm:$0xff] }
0x1dbd   : > { %20352 = vmatmul.mubr.msk.bf16.vlgmr.msra.gmra.mxu0 %vm874_vm2, %v5954_v51  ;;  %v16901_v51 = vld [vmem:[%s26184_s12 + $0x288] sm:$0xff] }
0x1dbe   : > { %20356 = vmatpush3.bf16.msra.mxu0 %v6019_v52  ;;  %20357 = vmatprep.mubr.msk.bf16.mxu0 %vm21710_vm0, %v21709_v2  ;;  %v16967_v52 = vcombine.high %v16900_v49, %v16908_v50 }
0x1e7d   : > { %v5996_v53 = vpop.f32.mrf.mxu0 }
0x1e7e   : > { %v6002_v54 = vsel %vm921_vm3, %v5996_v53, -inf }
0x1e7f   : > { %6003 = vmax.xlane.f32.xlu0 %v6002_v54  ;;  %v20353_v55 = vpop.f32.mrf.mxu0  ;;  %v16966_v54 = vcombine.low %v16900_v49, %v16908_v50 }
0x1e81   : > { %v5999_v57 = vpop.f32.mrf.mxu0 }
0x1e83   : > { %v20354_v7 = vpop.f32.mrf.mxu0 }
0x1e84   : > { %v16884_v7 = vld [vmem:[%s26184_s12 + $0x200] sm:$0xff] }
0x1f08   : > { %v6004_v8 = vpop.xlane.xlu0 %6003 }
0x1f09   : > { %v6005_v10 = vsub.f32 %v5996_v53, %v6004_v8  ;;  %v16909_v53 = vld [vmem:[%s26184_s12 + $0x2c8] sm:$0xff]  ;;  %v16892_v8 = vld [vmem:[%s26184_s12 + $0x240] sm:$0xff] }
0x1f0a   : > { %v16968_v55 = vcombine.low %v16901_v51, %v16909_v53  ;;  %v16969_v57 = vcombine.high %v16901_v51, %v16909_v53  ;;  %v16936_v51 = vld [vmem:[%s26184_s12 + $0x3a0] sm:$0xff]  ;;  %v16937_v53 = vld [vmem:[%s26184_s12 + $0x3a8] sm:$0xff] }
0x1f0b   : > { %v6006_v15 = vmul.f32 1.442695, %v6005_v10  ;;  %v16885_v10 = vld [vmem:[%s26184_s12 + $0x208] sm:$0xff] }
0x1f0d   : > { %21599 = vpow2.f32 %v6006_v15  ;;  %v16951_v15 = vcombine.high %v16884_v7, %v16892_v8 }
0x1f1a   : > { %v21600_v58 = vpop.eup %21599 }
0x1f1b   : > { %v6008_v16 = vsel %vm921_vm3, %v21600_v58, 0.0 }
0x1f1c   : > { %6009 = vadd.xlane.f32.xlu1 %v6008_v16  ;;  %v16950_v16 = vcombine.low %v16884_v7, %v16892_v8 }
0x1fa5   : > { %v6010_v17 = vpop.xlane.xlu1 %6009 }
0x1fa6   : > { %21601 = vrcp.f32 %v6010_v17 }
0x1fb3   : > { %v21602_v18 = vpop.eup %21601 }
0x1fb4   : > { %v6012_v19 = vmul.f32 %v21602_v18, %v21600_v58  ;;  %v16893_v58 = vld [vmem:[%s26184_s12 + $0x248] sm:$0xff] }
0x1fb5   : > { %v16952_v17 = vcombine.low %v16885_v10, %v16893_v58  ;;  %v16953_v18 = vcombine.high %v16885_v10, %v16893_v58  ;;  %v16920_v10 = vld [vmem:[%s26184_s12 + $0x320] sm:$0xff]  ;;  %v16921_v58 = vld [vmem:[%s26184_s12 + $0x328] sm:$0xff] }
0x1fb6   : > { %v6013_v0 = vpack.c.bf16 %v6012_v19, %v6012_v19  ;;  %v16934_v19 = vld [vmem:[%s26184_s12 + $0x390] sm:$0xff] }
0x1fb8   : > { %20358 = vmatmul.mubr.msk.bf16.vlgmr.msra.gmra.mxu0 %vm921_vm3, %v6013_v0  ;;  %v16942_v0 = vld [vmem:[%s26184_s12 + $0x3d0] sm:$0xff] }
0x1fb9   : > { %6662 = vmatprep.mubr.bf16.mxu0 %v21711_v47 }
0x2078   : > { %v6055_v22 = vpop.f32.mrf.mxu0 }
0x2079   : > { %v6061_v61 = vpack.c.bf16 %v6055_v22, %v6055_v22  ;;  %v17003_v22 = vcombine.high %v16934_v19, %v16942_v0 }
0x207a   : > { %v20359_v14 = vpop.f32.mrf.mxu0 }
0x207b   : > { %20364 = vmatmul.mubr.msk.bf16.vlgmr.msra.gmra.mxu1 %vm874_vm2, %v6061_v61  ;;  %v16943_v61 = vld [vmem:[%s26184_s12 + $0x3d8] sm:$0xff]  ;;  %v17002_v14 = vcombine.low %v16934_v19, %v16942_v0 }
0x207c   : > { %v6058_v23 = vpop.f32.mrf.mxu0  ;;  %6703 = vmatprep.mubr.bf16.mxu1 %v21711_v47  ;;  %6680 = vmatpush1.bf16.msra.mxu1 %v17000_v42 }
0x207d   : > { %6681 = vmatprep.subr.bf16.mxu1 %v16985_v48  ;;  %v17004_v23 = vcombine.low %v16935_v21, %v16943_v61 }
0x207e   : > { %v20360_v26 = vpop.f32.mrf.mxu0 }
0x207f   : > { %v17005_v26 = vcombine.high %v16935_v21, %v16943_v61  ;;  %v16904_v21 = vld [vmem:[%s26184_s12 + $0x2a0] sm:$0xff]  ;;  %v16905_v61 = vld [vmem:[%s26184_s12 + $0x2a8] sm:$0xff] }
0x2080   : > { %6682 = vmatpush1.bf16.msra.mxu1 %v16984_v46 }
0x2081   : > { %6683 = vmatprep.subr.bf16.mxu1 %v16969_v57 }
0x2084   : > { %6684 = vmatpush1.bf16.msra.mxu1 %v16968_v55 }
0x2085   : > { %6685 = vmatprep.subr.bf16.mxu1 %v16953_v18 }
0x2088   : > { %6686 = vmatpush1.bf16.msra.mxu1 %v16952_v17 }
0x2089   : > { %6761 = vmatprep.subr.bf16.mxu1 %v17005_v26 }
0x213b   : > { %v6108_v27 = vpop.f32.mrf.mxu1 }
0x213c   : > { %v6114_v29 = vadd.f32 %v6108_v27, %v5710_v39  ;;  %v16932_v39 = vld [vmem:[%s26184_s12 + $0x380] sm:$0xff] }
0x213d   : > { %v20365_v30 = vpop.f32.mrf.mxu1 }
0x213e   : > { %v6123_v32 = vadd.f32 %v16879_v28, %v6114_v29 }
0x213f   : > { %v6111_v20 = vpop.f32.mrf.mxu1 }
0x2140   : > { %v6124_v62 = vadd.f32 %v6123_v32, %v23002_v56  ;;  %v16940_v56 = vld [vmem:[%s26184_s12 + $0x3c0] sm:$0xff] }
0x2141   : > { %v20366_v35 = vpop.f32.mrf.mxu1  ;;  %v16999_v41 = vcombine.high %v16932_v39, %v16940_v56  ;;  %v16998_v6 = vcombine.low %v16932_v39, %v16940_v56  ;;  %v16882_v32 = vld [vmem:[%s26182_s10 + $0x1] ss:$0 sm:$0xff] }
0x2142   : > { %v6129_v4 = vsel %vm670_vm1, %v6124_v62, 0.0 }
0x2143   : > { %6130 = vadd.xlane.f32.xlu0 %v6129_v4  ;;  %6638 = vmatprep.subr.bf16.mxu0 %v16999_v41  ;;  %v16918_v4 = vld [vmem:[%s26184_s12 + $0x310] sm:$0xff] }
0x2144   : > { %6639 = vmatpush1.bf16.msra.mxu0 %v16998_v6  ;;  %v16910_v41 = vld [vmem:[%s26184_s12 + $0x2d0] sm:$0xff]  ;;  %v16911_v6 = vld [vmem:[%s26184_s12 + $0x2d8] sm:$0xff] }
0x2145   : > { %6640 = vmatprep.subr.bf16.mxu0 %v16983_v11  ;;  %v16971_v43 = vcombine.high %v16902_v40, %v16910_v41  ;;  %v16973_v25 = vcombine.high %v16903_v24, %v16911_v6  ;;  %v16894_v11 = vld [vmem:[%s26184_s12 + $0x250] sm:$0xff]  ;;  %v16970_v46 = vcombine.low %v16902_v40, %v16910_v41  ;;  %v16972_v48 = vcombine.low %v16903_v24, %v16911_v6 }
0x2146   : > { %v16955_v49 = vcombine.high %v16886_v44, %v16894_v11  ;;  %v16954_v55 = vcombine.low %v16886_v44, %v16894_v11 }
0x2148   : > { %6641 = vmatpush1.bf16.msra.mxu0 %v16982_v45  ;;  %v16895_v45 = vld [vmem:[%s26184_s12 + $0x258] sm:$0xff] }
0x2149   : > { %6642 = vmatprep.subr.bf16.mxu0 %v16967_v52  ;;  %v16957_v50 = vcombine.high %v16887_v31, %v16895_v45  ;;  %v16944_v52 = vld [vmem:[%s26184_s12 + $0x3e0] sm:$0xff]  ;;  %v16956_v57 = vcombine.low %v16887_v31, %v16895_v45 }
0x214a   : > { %v17007_v7 = vcombine.high %v16936_v51, %v16944_v52  ;;  %v17006_v17 = vcombine.low %v16936_v51, %v16944_v52 }
0x214c   : > { %6643 = vmatpush1.bf16.msra.mxu0 %v16966_v54  ;;  %v16945_v54 = vld [vmem:[%s26184_s12 + $0x3e8] sm:$0xff] }
0x214d   : > { %6644 = vmatprep.subr.bf16.mxu0 %v16951_v15  ;;  %v17009_v8 = vcombine.high %v16937_v53, %v16945_v54  ;;  %v16928_v15 = vld [vmem:[%s26184_s12 + $0x360] sm:$0xff]  ;;  %v17008_v18 = vcombine.low %v16937_v53, %v16945_v54 }
0x214e   : > { %v16991_v19 = vcombine.high %v16920_v10, %v16928_v15 }
0x2150   : > { %6645 = vmatpush1.bf16.msra.mxu0 %v16950_v16  ;;  %v16929_v16 = vld [vmem:[%s26184_s12 + $0x368] sm:$0xff] }
0x2151   : > { %6720 = vmatprep.subr.bf16.mxu0 %v17003_v22  ;;  %v16993_v0 = vcombine.high %v16921_v58, %v16929_v16  ;;  %v16912_v22 = vld [vmem:[%s26184_s12 + $0x2e0] sm:$0xff]  ;;  %v16992_v26 = vcombine.low %v16921_v58, %v16929_v16 }
0x21cc   : > { %v6131_v36 = vpop.xlane.xlu0 %6130 }
0x21cd   : > { %v6132_v37 = vmul.f32 0.015625, %v6131_v36  ;;  %v16926_v36 = vld [vmem:[%s26184_s12 + $0x350] sm:$0xff] }
0x21ce   : > { %v16987_v39 = vcombine.high %v16918_v4, %v16926_v36  ;;  %v16986_v42 = vcombine.low %v16918_v4, %v16926_v36 }
0x21cf   : > { %v23335_v38 = vsub.f32 %v6124_v62, %v6132_v37  ;;  %v16883_v62 = vld [vmem:[%s26183_s11 + $0x1] ss:$0 sm:$0xff]  ;;  %v16919_v37 = vld [vmem:[%s26184_s12 + $0x318] sm:$0xff] }
0x21d1   : > { %v6134_v5 = vmul.f32 %v23335_v38, %v23335_v38 }
0x21d3   : > { %v6135_v13 = vsel %vm670_vm1, %v6134_v5, 0.0 }
0x21d4   : > { %6136 = vadd.xlane.f32.xlu1 %v6135_v13 }
0x225d   : > { %v6137_v27 = vpop.xlane.xlu1 %6136 }
0x225e   : > { %v6138_v28 = vmul.f32 0.015625, %v6137_v27  ;;  %v16975_v27 = vcombine.high %v16904_v21, %v16912_v22 }
0x2260   : > { %v6139_v29 = vadd.f32 1e-05, %v6138_v28 }
0x2262   : > { %21603 = vrsqrt.f32 %v6139_v29  ;;  %v16888_v29 = vld [vmem:[%s26184_s12 + $0x220] sm:$0xff] }
0x226f   : > { %v21604_v30 = vpop.eup %21603 }
0x2270   : > { %v6141_v20 = vmul.f32 %v21604_v30, %v23335_v38  ;;  %v16927_v38 = vld [vmem:[%s26184_s12 + $0x358] sm:$0xff]  ;;  %v16896_v30 = vld [vmem:[%s26184_s12 + $0x260] sm:$0xff] }
0x2271   : > { %v16989_v56 = vcombine.high %v16919_v37, %v16927_v38  ;;  %v16988_v60 = vcombine.low %v16919_v37, %v16927_v38  ;;  %v16959_v4 = vcombine.high %v16888_v29, %v16896_v30  ;;  %v16938_v37 = vld [vmem:[%s26184_s12 + $0x3b0] sm:$0xff]  ;;  %v16958_v40 = vcombine.low %v16888_v29, %v16896_v30  ;;  %v21090_v29 = vld [vmem:[%s26186_s14 + $0x4a8] sm:$0xff]   ;;  %v21091_v30 = vld [vmem:[%s26186_s14 + $0x460] sm:$0xff]  }
0x2272   : > { %v6148_v35 = vmul.f32 %v16882_v32, %v6141_v20  ;;  %v16889_v32 = vld [vmem:[%s26184_s12 + $0x228] sm:$0xff]  ;;  %v16946_v38 = vld [vmem:[%s26184_s12 + $0x3f0] sm:$0xff] }
0x2273   : > { %v16897_v20 = vld [vmem:[%s26184_s12 + $0x268] sm:$0xff]  ;;  %v17011_v24 = vcombine.high %v16938_v37, %v16946_v38  ;;  %v17010_v44 = vcombine.low %v16938_v37, %v16946_v38  ;;  %v21098_v37 = vld [vmem:[%s26186_s14 + $0x498] sm:$0xff]   ;;  %v21099_v38 = vld [vmem:[%s26186_s14 + $0x450] sm:$0xff]  }
0x2274   : > { %v23419_v5 = vadd.f32 %v16883_v62, %v6148_v35  ;;  %v16974_v62 = vcombine.low %v16904_v21, %v16912_v22  ;;  %v16961_v36 = vcombine.high %v16889_v32, %v16897_v20  ;;  %v16960_v41 = vcombine.low %v16889_v32, %v16897_v20  ;;  %v21081_v21 = vld [vmem:[%s26186_s14 + $0x438] sm:$0xff]   ;;  %v21092_v32 = vld [vmem:[%s26186_s14 + $0x4e0] sm:$0xff]  }
0x2275   : > { %v21082_v22 = vld [vmem:[%s26186_s14 + $0x4b8] sm:$0xff]   ;;  %v21093_v20 = vld [vmem:[%s26186_s14 + $0x420] sm:$0xff]  }
0x2276   : > { %v23423_v13 = vpack.c.bf16 %v23419_v5, %v23419_v5 }
0x2278   : > { %17014 = vmatmul.mubr.msk.bf16.vlgmr.msra.gmra.mxu0 %vm670_vm1, %v23423_v13  ;;  %17015 = vmatmul.mubr.msk.bf16.vlgmr.msra.gmra.mxu1 %vm670_vm1, %v23423_v13 }
0x2279   : > { %6721 = vmatpush1.bf16.msra.mxu0 %v17002_v14  ;;  %6762 = vmatpush1.bf16.msra.mxu1 %v17004_v23  ;;  %v16913_v14 = vld [vmem:[%s26184_s12 + $0x2e8] sm:$0xff]  ;;  %v16990_v23 = vcombine.low %v16920_v10, %v16928_v15 }
0x227a   : > { %6722 = vmatprep.subr.bf16.mxu0 %v16987_v39  ;;  %6763 = vmatprep.subr.bf16.mxu1 %v16989_v56  ;;  %v16977_v28 = vcombine.high %v16905_v61, %v16913_v14  ;;  %v16976_v35 = vcombine.low %v16905_v61, %v16913_v14  ;;  %v16939_v39 = vld [vmem:[%s26184_s12 + $0x3b8] sm:$0xff]  ;;  %v21083_v61 = vld [vmem:[%s26186_s14 + $0x470] sm:$0xff]  }
0x227b   : > { %6744 = vmatprep.mubr.bf16.mxu0 %v21711_v47  ;;  %6785 = vmatprep.mubr.bf16.mxu1 %v21711_v47  ;;  %v16947_v56 = vld [vmem:[%s26184_s12 + $0x3f8] sm:$0xff]  ;;  %v21084_v14 = vld [vmem:[%s26186_s14 + $0x4f0] sm:$0xff]  }
0x227c   : > { %v17013_v6 = vcombine.high %v16939_v39, %v16947_v56  ;;  %v17012_v11 = vcombine.low %v16939_v39, %v16947_v56  ;;  %v21100_v39 = vld [vmem:[%s26186_s14 + $0x4d0] sm:$0xff]  }
0x227d   : > { %6723 = vmatpush1.bf16.msra.mxu0 %v16986_v42  ;;  %6764 = vmatpush1.bf16.msra.mxu1 %v16988_v60  ;;  %v16922_v42 = vld [vmem:[%s26184_s12 + $0x330] sm:$0xff] }
0x227e   : > { %6724 = vmatprep.subr.bf16.mxu0 %v16971_v43  ;;  %6765 = vmatprep.subr.bf16.mxu1 %v16973_v25  ;;  %v16930_v60 = vld [vmem:[%s26184_s12 + $0x370] sm:$0xff]  ;;  %v16923_v43 = vld [vmem:[%s26184_s12 + $0x338] sm:$0xff] }
0x227f   : > { %v16931_v25 = vld [vmem:[%s26184_s12 + $0x378] sm:$0xff]  ;;  %v16995_v31 = vcombine.high %v16922_v42, %v16930_v60  ;;  %v16994_v51 = vcombine.low %v16922_v42, %v16930_v60  ;;  %v21101_v56 = vld [vmem:[%s26186_s14 + $0x410] sm:$0xff]   ;;  %v21106_v42 = vld [vmem:[%s26186_s14 + $0x488] sm:$0xff]  }
0x2280   : > { %v16997_v45 = vcombine.high %v16923_v43, %v16931_v25  ;;  %v16996_v52 = vcombine.low %v16923_v43, %v16931_v25  ;;  %v21107_v60 = vld [vmem:[%s26186_s14 + $0x440] sm:$0xff]  }
0x2281   : > { %6725 = vmatpush1.bf16.msra.mxu0 %v16970_v46  ;;  %6766 = vmatpush1.bf16.msra.mxu1 %v16972_v48  ;;  %v16906_v46 = vld [vmem:[%s26184_s12 + $0x2b0] sm:$0xff]  ;;  %v21108_v43 = vld [vmem:[%s26186_s14 + $0x4c0] sm:$0xff]  }
0x2282   : > { %6726 = vmatprep.subr.bf16.mxu0 %v16955_v49  ;;  %6767 = vmatprep.subr.bf16.mxu1 %v16957_v50  ;;  %v16914_v48 = vld [vmem:[%s26184_s12 + $0x2f0] sm:$0xff]  ;;  %v16907_v49 = vld [vmem:[%s26184_s12 + $0x2b8] sm:$0xff]  ;;  %v21109_v25 = vld [vmem:[%s26186_s14 + $0x400] sm:$0xff]  }
0x2283   : > { %v16915_v50 = vld [vmem:[%s26184_s12 + $0x2f8] sm:$0xff]  ;;  %v16979_v53 = vcombine.high %v16906_v46, %v16914_v48  ;;  %v16978_v10 = vcombine.low %v16906_v46, %v16914_v48 }
0x2284   : > { %v16981_v54 = vcombine.high %v16907_v49, %v16915_v50  ;;  %v16980_v15 = vcombine.low %v16907_v49, %v16915_v50 }
0x2285   : > { %6727 = vmatpush1.bf16.msra.mxu0 %v16954_v55  ;;  %6768 = vmatpush1.bf16.msra.mxu1 %v16956_v57  ;;  %v16890_v55 = vld [vmem:[%s26184_s12 + $0x230] sm:$0xff] }
0x2286   : > { %6802 = vmatprep.subr.bf16.mxu0 %v17007_v7  ;;  %6843 = vmatprep.subr.bf16.mxu1 %v17009_v8  ;;  %v16898_v57 = vld [vmem:[%s26184_s12 + $0x270] sm:$0xff]  ;;  %v16891_v7 = vld [vmem:[%s26184_s12 + $0x238] sm:$0xff] }
0x2287   : > { %v16899_v8 = vld [vmem:[%s26184_s12 + $0x278] sm:$0xff]  ;;  %v16963_v58 = vcombine.high %v16890_v55, %v16898_v57 }
0x2288   : > { %17016 = vmatmul.mubr.msk.bf16.vlgmr.msra.gmra.mxu0 %vm670_vm1, %v23423_v13  ;;  %17017 = vmatmul.mubr.msk.bf16.vlgmr.msra.gmra.mxu1 %vm670_vm1, %v23423_v13  ;;  %v16965_v16 = vcombine.high %v16891_v7, %v16899_v8 }
0x2289   : > { %6803 = vmatpush1.bf16.msra.mxu0 %v17006_v17  ;;  %6844 = vmatpush1.bf16.msra.mxu1 %v17008_v18  ;;  %v16962_v17 = vcombine.low %v16890_v55, %v16898_v57  ;;  %v16964_v18 = vcombine.low %v16891_v7, %v16899_v8 }
0x228a   : > { %6804 = vmatprep.subr.bf16.mxu0 %v16991_v19  ;;  %6845 = vmatprep.subr.bf16.mxu1 %v16993_v0  ;;  %v21079_v19 = vld [vmem:[%s26186_s14 + $0x478] sm:$0xff]  }
0x228b   : > { %6826 = vmatprep.mubr.bf16.mxu0 %v21711_v47  ;;  %6867 = vmatprep.mubr.bf16.mxu1 %v21711_v47  ;;  %v21080_v0 = vld [vmem:[%s26186_s14 + $0x4f8] sm:$0xff]  }
0x228d   : > { %6805 = vmatpush1.bf16.msra.mxu0 %v16990_v23  ;;  %6846 = vmatpush1.bf16.msra.mxu1 %v16992_v26  ;;  %v21085_v23 = vld [vmem:[%s26186_s14 + $0x430] sm:$0xff]  }
0x228e   : > { %6806 = vmatprep.subr.bf16.mxu0 %v16975_v27  ;;  %6847 = vmatprep.subr.bf16.mxu1 %v16977_v28  ;;  %v21086_v26 = vld [vmem:[%s26186_s14 + $0x4b0] sm:$0xff]   ;;  %v21087_v27 = vld [vmem:[%s26186_s14 + $0x468] sm:$0xff]  }
0x228f   : > { %v21089_v28 = vld [vmem:[%s26186_s14 + $0x428] sm:$0xff]  }
0x2291   : > { %6807 = vmatpush1.bf16.msra.mxu0 %v16974_v62  ;;  %6848 = vmatpush1.bf16.msra.mxu1 %v16976_v35  ;;  %v21094_v62 = vld [vmem:[%s26186_s14 + $0x4a0] sm:$0xff]   ;;  %v21095_v35 = vld [vmem:[%s26186_s14 + $0x458] sm:$0xff]  }
0x2292   : > { %6808 = vmatprep.subr.bf16.mxu0 %v16959_v4  ;;  %6849 = vmatprep.subr.bf16.mxu1 %v16961_v36  ;;  %v21096_v4 = vld [vmem:[%s26186_s14 + $0x4d8] sm:$0xff]  }
0x2293   : > { %v21097_v36 = vld [vmem:[%s26186_s14 + $0x418] sm:$0xff]  }
0x2295   : > { %6809 = vmatpush1.bf16.msra.mxu0 %v16958_v40  ;;  %6850 = vmatpush1.bf16.msra.mxu1 %v16960_v41  ;;  %v21102_v40 = vld [vmem:[%s26186_s14 + $0x490] sm:$0xff]   ;;  %v21103_v41 = vld [vmem:[%s26186_s14 + $0x448] sm:$0xff]  }
0x2296   : > { %6884 = vmatprep.subr.bf16.mxu0 %v17011_v24  ;;  %6925 = vmatprep.subr.bf16.mxu1 %v17013_v6  ;;  %v21104_v24 = vld [vmem:[%s26186_s14 + $0x4c8] sm:$0xff]  }
0x2297   : > { %v21105_v6 = vld [vmem:[%s26186_s14 + $0x408] sm:$0xff]  }
0x2298   : > { %17018 = vmatmul.mubr.msk.bf16.vlgmr.msra.gmra.mxu0 %vm670_vm1, %v23423_v13  ;;  %17019 = vmatmul.mubr.msk.bf16.vlgmr.msra.gmra.mxu1 %vm670_vm1, %v23423_v13 }
0x2299   : > { %6885 = vmatpush1.bf16.msra.mxu0 %v17010_v44  ;;  %6926 = vmatpush1.bf16.msra.mxu1 %v17012_v11  ;;  %v21110_v44 = vld [vmem:[%s26186_s14 + $0x480] sm:$0xff]   ;;  %v21111_v11 = vld [vmem:[%s26186_s14 + $0x578] sm:$0xff]  }
0x229a   : > { %6886 = vmatprep.subr.bf16.mxu0 %v16995_v31  ;;  %6927 = vmatprep.subr.bf16.mxu1 %v16997_v45  ;;  %v21112_v31 = vld [vmem:[%s26186_s14 + $0x5f8] sm:$0xff]   ;;  %v23672_v45 = vld [vmem:[%s26185_s13 + $0x10] sm:$0xff] }
0x229b   : > { %6908 = vmatprep.mubr.bf16.mxu0 %v21711_v47  ;;  %6949 = vmatprep.mubr.bf16.mxu1 %v21711_v47  ;;  %v6230_v46 = vrot.slane %v23672_v45, %v22593_v59  ;;  %v6238_v48 = vrot.slane %v23672_v45, %v22596_v63  ;;  %v6234_v49 = vrot.slane %v23672_v45, %v22604_v1 }
0x229c   : > { %v6242_v50 = vrot.slane %v23672_v45, %v22607_v3 }
0x229d   : > { %6887 = vmatpush1.bf16.msra.mxu0 %v16994_v51  ;;  %6928 = vmatpush1.bf16.msra.mxu1 %v16996_v52 }
0x229e   : > { %6888 = vmatprep.subr.bf16.mxu0 %v16979_v53  ;;  %6929 = vmatprep.subr.bf16.mxu1 %v16981_v54 }
0x22a1   : > { %6889 = vmatpush1.bf16.msra.mxu0 %v16978_v10  ;;  %6930 = vmatpush1.bf16.msra.mxu1 %v16980_v15 }
0x22a2   : > { %6890 = vmatprep.subr.bf16.mxu0 %v16963_v58  ;;  %6931 = vmatprep.subr.bf16.mxu1 %v16965_v16 }
0x22a5   : > { %6891 = vmatpush1.bf16.msra.mxu0 %v16962_v17  ;;  %6932 = vmatpush1.bf16.msra.mxu1 %v16964_v18 }
0x22a6   : > { %19237 = vmatprep.subr.bf16.mxu0 %v21079_v19  ;;  %19259 = vmatprep.subr.bf16.mxu1 %v21080_v0 }
0x22a8   : > { %17020 = vmatmul.mubr.msk.bf16.vlgmr.msra.gmra.mxu0 %vm670_vm1, %v23423_v13  ;;  %17021 = vmatmul.mubr.msk.bf16.vlgmr.msra.gmra.mxu1 %vm670_vm1, %v23423_v13  ;;  %v21088_v13 = vld [vmem:[%s26186_s14 + $0x4e8] sm:$0xff]  }
0x22a9   : > { %19238 = vmatpush3.bf16.msra.mxu0 %v21081_v21  ;;  %19260 = vmatpush3.bf16.msra.mxu1 %v21082_v22 }
0x22aa   : > { %19239 = vmatprep.subr.bf16.mxu0 %v21083_v61  ;;  %19261 = vmatprep.subr.bf16.mxu1 %v21084_v14  ;;  %v21113_v61 = vld [vmem:[%s26186_s14 + $0x538] sm:$0xff]  }
0x22ab   : > { %v21114_v14 = vld [vmem:[%s26186_s14 + $0x5b8] sm:$0xff]  }
0x22ad   : > { %19240 = vmatpush3.bf16.msra.mxu0 %v21085_v23  ;;  %19262 = vmatpush3.bf16.msra.mxu1 %v21086_v26 }
0x22ae   : > { %19241 = vmatprep.subr.bf16.mxu0 %v21087_v27  ;;  %19263 = vmatprep.subr.bf16.mxu1 %v21088_v13  ;;  %v21115_v27 = vld [vmem:[%s26186_s14 + $0x570] sm:$0xff]  }
0x22af   : > { %v21116_v13 = vld [vmem:[%s26186_s14 + $0x5f0] sm:$0xff]  }
0x22b1   : > { %19242 = vmatpush3.bf16.msra.mxu0 %v21089_v28  ;;  %19264 = vmatpush3.bf16.msra.mxu1 %v21090_v29  ;;  %v21117_v28 = vld [vmem:[%s26186_s14 + $0x530] sm:$0xff]  }
0x22b2   : > { %19243 = vmatprep.subr.bf16.mxu0 %v21091_v30  ;;  %19265 = vmatprep.subr.bf16.mxu1 %v21092_v32  ;;  %v21118_v29 = vld [vmem:[%s26186_s14 + $0x5b0] sm:$0xff]   ;;  %v21119_v30 = vld [vmem:[%s26186_s14 + $0x568] sm:$0xff]  }
0x22b3   : > { %v21120_v32 = vld [vmem:[%s26186_s14 + $0x5e8] sm:$0xff]  }
0x22b5   : > { %19244 = vmatpush3.bf16.msra.mxu0 %v21093_v20  ;;  %19266 = vmatpush3.bf16.msra.mxu1 %v21094_v62  ;;  %v6250_v20 = vrot.slane %v23672_v45, %v22636_v33  ;;  %v6258_v62 = vrot.slane %v23672_v45, %v22639_v34 }
0x22b6   : > { %19245 = vmatprep.subr.bf16.mxu0 %v21095_v35  ;;  %19267 = vmatprep.subr.bf16.mxu1 %v21096_v4  ;;  %v21121_v35 = vld [vmem:[%s26186_s14 + $0x528] sm:$0xff]  }
0x22b7   : > { %v21122_v4 = vld [vmem:[%s26186_s14 + $0x5a8] sm:$0xff]  }
0x22b9   : > { %19246 = vmatpush3.bf16.msra.mxu0 %v21097_v36  ;;  %19268 = vmatpush3.bf16.msra.mxu1 %v21098_v37 }
0x22ba   : > { %19247 = vmatprep.subr.bf16.mxu0 %v21099_v38  ;;  %19269 = vmatprep.subr.bf16.mxu1 %v21100_v39  ;;  %v21123_v38 = vld [vmem:[%s26186_s14 + $0x560] sm:$0xff]  }
0x22bb   : > { %v21124_v39 = vld [vmem:[%s26186_s14 + $0x5e0] sm:$0xff]  }
0x22bd   : > { %19248 = vmatpush3.bf16.msra.mxu0 %v21101_v56  ;;  %19270 = vmatpush3.bf16.msra.mxu1 %v21102_v40 }
0x22be   : > { %19249 = vmatprep.subr.bf16.mxu0 %v21103_v41  ;;  %19271 = vmatprep.subr.bf16.mxu1 %v21104_v24 }
0x22c1   : > { %19250 = vmatpush3.bf16.msra.mxu0 %v21105_v6  ;;  %19272 = vmatpush3.bf16.msra.mxu1 %v21106_v42  ;;  %v21125_v6 = vld [vmem:[%s26186_s14 + $0x520] sm:$0xff]  }
0x22c2   : > { %19251 = vmatprep.subr.bf16.mxu0 %v21107_v60  ;;  %19273 = vmatprep.subr.bf16.mxu1 %v21108_v43  ;;  %v21126_v42 = vld [vmem:[%s26186_s14 + $0x5a0] sm:$0xff]  }
0x22c5   : > { %19252 = vmatpush3.bf16.msra.mxu0 %v21109_v25  ;;  %19274 = vmatpush3.bf16.msra.mxu1 %v21110_v44  ;;  %v21127_v25 = vld [vmem:[%s26186_s14 + $0x558] sm:$0xff]  }
0x22c6   : > { %19281 = vmatprep.subr.bf16.mxu0 %v21111_v11  ;;  %19303 = vmatprep.subr.bf16.mxu1 %v21112_v31  ;;  %v21128_v44 = vld [vmem:[%s26186_s14 + $0x5d8] sm:$0xff]  }
0x2338   : > { %v6664_v51 = vpop.f32.mrf.mxu0  ;;  %v6705_v52 = vpop.f32.mrf.mxu1 }
0x2339   : > { %v6665_v53 = vadd.f32 %v6664_v51, %v6230_v46  ;;  %v6706_v54 = vadd.f32 %v6705_v52, %v6238_v48  ;;  %v21129_v51 = vld [vmem:[%s26186_s14 + $0x518] sm:$0xff]  }
0x233a   : > { %v6666_v55 = vpop.f32.mrf.mxu0  ;;  %v6707_v57 = vpop.f32.mrf.mxu1  ;;  %v21130_v52 = vld [vmem:[%s26186_s14 + $0x598] sm:$0xff]  }
0x233b   : > { %v6667_v7 = vadd.f32 %v6666_v55, %v6234_v49  ;;  %v6708_v8 = vadd.f32 %v6707_v57, %v6242_v50  ;;  %v6958_v10 = vmax.f32 %v6665_v53, 0.0  ;;  %v6960_v15 = vmax.f32 %v6706_v54, 0.0  ;;  %v21131_v53 = vld [vmem:[%s26186_s14 + $0x550] sm:$0xff]  }
0x233c   : > { %v6668_v58 = vpop.f32.mrf.mxu0  ;;  %v6709_v16 = vpop.f32.mrf.mxu1  ;;  %v21132_v54 = vld [vmem:[%s26186_s14 + $0x5d0] sm:$0xff]  }
0x233d   : > { %v6959_v17 = vmax.f32 %v6667_v7, 0.0  ;;  %v6961_v18 = vmax.f32 %v6708_v8, 0.0  ;;  %v6974_v23 = vpack.c.bf16 %v6958_v10, %v6958_v10  ;;  %v6976_v26 = vpack.c.bf16 %v6960_v15, %v6960_v15  ;;  %v21133_v55 = vld [vmem:[%s26186_s14 + $0x510] sm:$0xff]   ;;  %v21135_v10 = vld [vmem:[%s26186_s14 + $0x548] sm:$0xff]   ;;  %v23765_v58 = vld [vmem:[%s26185_s13 + $0x18] sm:$0xff] }
0x233e   : > { %v6669_v19 = vpop.f32.mrf.mxu0  ;;  %v6710_v0 = vpop.f32.mrf.mxu1  ;;  %v21134_v57 = vld [vmem:[%s26186_s14 + $0x590] sm:$0xff]   ;;  %v6246_v7 = vrot.slane %v23672_v45, %v22682_v12  ;;  %v6254_v8 = vrot.slane %v23672_v45, %v22685_v9  ;;  %v21136_v15 = vld [vmem:[%s26186_s14 + $0x5c8] sm:$0xff]   ;;  %v6266_v45 = vrot.slane %v23765_v58, %v22604_v1  ;;  %v6274_v16 = vrot.slane %v23765_v58, %v22607_v3 }
0x233f   : > { %v6975_v21 = vpack.c.bf16 %v6959_v17, %v6959_v17  ;;  %v6977_v22 = vpack.c.bf16 %v6961_v18, %v6961_v18  ;;  %v21137_v17 = vld [vmem:[%s26186_s14 + $0x508] sm:$0xff]  }
0x2340   : > { %v21138_v18 = vld [vmem:[%s26186_s14 + $0x588] sm:$0xff]  }
0x2341   : > { %8055 = vmatprep.mubr.bf16.mxu0 %v6975_v21  ;;  %8095 = vmatprep.mubr.bf16.mxu1 %v6977_v22 }
0x2342   : > { %8056 = vmatmul.mubr.bf16.vlgmr.msra.gmra.mxu0 %v6974_v23  ;;  %8096 = vmatmul.mubr.bf16.vlgmr.msra.gmra.mxu1 %v6976_v26 }
0x2343   : > { %19282 = vmatpush3.bf16.msra.mxu0 %v21113_v61  ;;  %19304 = vmatpush3.bf16.msra.mxu1 %v21114_v14  ;;  %v21139_v61 = vld [vmem:[%s26186_s14 + $0x540] sm:$0xff]  }
0x2344   : > { %19283 = vmatprep.subr.bf16.mxu0 %v21115_v27  ;;  %19305 = vmatprep.subr.bf16.mxu1 %v21116_v13  ;;  %v21140_v14 = vld [vmem:[%s26186_s14 + $0x5c0] sm:$0xff]  }
0x2347   : > { %19284 = vmatpush3.bf16.msra.mxu0 %v21117_v28  ;;  %19306 = vmatpush3.bf16.msra.mxu1 %v21118_v29  ;;  %v21141_v28 = vld [vmem:[%s26186_s14 + $0x500] sm:$0xff]  }
0x2348   : > { %v6746_v36 = vpop.f32.mrf.mxu0  ;;  %v6787_v37 = vpop.f32.mrf.mxu1  ;;  %19285 = vmatprep.subr.bf16.mxu0 %v21119_v30  ;;  %19307 = vmatprep.subr.bf16.mxu1 %v21120_v32  ;;  %v21142_v29 = vld [vmem:[%s26186_s14 + $0x580] sm:$0xff]  }
0x2349   : > { %v6747_v19 = vadd.f32 %v6746_v36, %v6246_v7  ;;  %v6788_v0 = vadd.f32 %v6787_v37, %v6254_v8  ;;  %v21158_v8 = vld [vmem:[%s26186_s14 + $0x6a0] sm:$0xff]  }
0x234a   : > { %v6748_v56 = vpop.f32.mrf.mxu0  ;;  %v6789_v40 = vpop.f32.mrf.mxu1 }
0x234b   : > { %v6749_v41 = vadd.f32 %v6748_v56, %v6250_v20  ;;  %v6790_v24 = vadd.f32 %v6789_v40, %v6258_v62  ;;  %19286 = vmatpush3.bf16.msra.mxu0 %v21121_v35  ;;  %19308 = vmatpush3.bf16.msra.mxu1 %v21122_v4  ;;  %v6962_v30 = vmax.f32 %v6747_v19, 0.0  ;;  %v6964_v32 = vmax.f32 %v6788_v0, 0.0  ;;  %v21143_v35 = vld [vmem:[%s26186_s14 + $0x678] sm:$0xff]   ;;  %v21163_v19 = vld [vmem:[%s26186_s14 + $0x650] sm:$0xff]  }
0x234c   : > { %v6750_v60 = vpop.f32.mrf.mxu0  ;;  %v6791_v43 = vpop.f32.mrf.mxu1  ;;  %19287 = vmatprep.subr.bf16.mxu0 %v21123_v38  ;;  %19309 = vmatprep.subr.bf16.mxu1 %v21124_v39  ;;  %v21144_v4 = vld [vmem:[%s26186_s14 + $0x6f8] sm:$0xff]   ;;  %v21164_v0 = vld [vmem:[%s26186_s14 + $0x6d0] sm:$0xff]  }
0x234d   : > { %v6963_v11 = vmax.f32 %v6749_v41, 0.0  ;;  %v6965_v31 = vmax.f32 %v6790_v24, 0.0  ;;  %v21145_v56 = vld [vmem:[%s26186_s14 + $0x638] sm:$0xff]   ;;  %v6978_v40 = vpack.c.bf16 %v6962_v30, %v6962_v30  ;;  %v6980_v41 = vpack.c.bf16 %v6964_v32, %v6964_v32  ;;  %v21148_v60 = vld [vmem:[%s26186_s14 + $0x6f0] sm:$0xff]   ;;  %v21169_v30 = vld [vmem:[%s26186_s14 + $0x608] sm:$0xff]  }
0x234e   : > { %v6751_v46 = vpop.f32.mrf.mxu0  ;;  %v6792_v48 = vpop.f32.mrf.mxu1  ;;  %v21146_v24 = vld [vmem:[%s26186_s14 + $0x6b8] sm:$0xff]  }
0x234f   : > { %v6979_v49 = vpack.c.bf16 %v6963_v11, %v6963_v11  ;;  %v6981_v50 = vpack.c.bf16 %v6965_v31, %v6965_v31  ;;  %19288 = vmatpush3.bf16.msra.mxu0 %v21125_v6  ;;  %19310 = vmatpush3.bf16.msra.mxu1 %v21126_v42  ;;  %v21147_v42 = vld [vmem:[%s26186_s14 + $0x670] sm:$0xff]   ;;  %v21151_v11 = vld [vmem:[%s26186_s14 + $0x668] sm:$0xff]  }
0x2350   : > { %19289 = vmatprep.subr.bf16.mxu0 %v21127_v25  ;;  %19311 = vmatprep.subr.bf16.mxu1 %v21128_v44  ;;  %v21149_v25 = vld [vmem:[%s26186_s14 + $0x630] sm:$0xff]   ;;  %v21152_v31 = vld [vmem:[%s26186_s14 + $0x6e8] sm:$0xff]  }
0x2351   : > { %8135 = vmatprep.mubr.bf16.mxu0 %v6979_v49  ;;  %8175 = vmatprep.mubr.bf16.mxu1 %v6981_v50  ;;  %v21150_v44 = vld [vmem:[%s26186_s14 + $0x6b0] sm:$0xff]   ;;  %v21153_v46 = vld [vmem:[%s26186_s14 + $0x628] sm:$0xff]  }
0x2352   : > { %v21154_v50 = vld [vmem:[%s26186_s14 + $0x6a8] sm:$0xff]  }
0x2353   : > { %19290 = vmatpush3.bf16.msra.mxu0 %v21129_v51  ;;  %19312 = vmatpush3.bf16.msra.mxu1 %v21130_v52  ;;  %v21155_v51 = vld [vmem:[%s26186_s14 + $0x660] sm:$0xff]  }
0x2354   : > { %19291 = vmatprep.subr.bf16.mxu0 %v21131_v53  ;;  %19313 = vmatprep.subr.bf16.mxu1 %v21132_v54  ;;  %v21156_v52 = vld [vmem:[%s26186_s14 + $0x6e0] sm:$0xff]  }
0x2357   : > { %19292 = vmatpush3.bf16.msra.mxu0 %v21133_v55  ;;  %19314 = vmatpush3.bf16.msra.mxu1 %v21134_v57  ;;  %v21157_v55 = vld [vmem:[%s26186_s14 + $0x620] sm:$0xff]  }
0x2358   : > { %v23777_v21 = vpop.f32.mrf.mxu0  ;;  %v23779_v22 = vpop.f32.mrf.mxu1  ;;  %19293 = vmatprep.subr.bf16.mxu0 %v21135_v10  ;;  %19315 = vmatprep.subr.bf16.mxu1 %v21136_v15  ;;  %v21159_v10 = vld [vmem:[%s26186_s14 + $0x658] sm:$0xff]  }
0x2359   : > { %v21160_v15 = vld [vmem:[%s26186_s14 + $0x6d8] sm:$0xff]  }
0x235a   : > { %v6830_v23 = vpop.f32.mrf.mxu0  ;;  %v6871_v26 = vpop.f32.mrf.mxu1 }
0x235b   : > { %v6831_v27 = vadd.f32 %v6830_v23, %v6266_v45  ;;  %v6872_v13 = vadd.f32 %v6871_v26, %v6274_v16  ;;  %19294 = vmatpush3.bf16.msra.mxu0 %v21137_v17  ;;  %19316 = vmatpush3.bf16.msra.mxu1 %v21138_v18  ;;  %v21161_v17 = vld [vmem:[%s26186_s14 + $0x618] sm:$0xff]   ;;  %v21166_v23 = vld [vmem:[%s26186_s14 + $0x690] sm:$0xff]   ;;  %v21167_v26 = vld [vmem:[%s26186_s14 + $0x648] sm:$0xff]  }
0x235c   : > { %v6832_v20 = vpop.f32.mrf.mxu0  ;;  %v6873_v62 = vpop.f32.mrf.mxu1  ;;  %19295 = vmatprep.subr.bf16.mxu0 %v21139_v61  ;;  %19317 = vmatprep.subr.bf16.mxu1 %v21140_v14  ;;  %v21162_v18 = vld [vmem:[%s26186_s14 + $0x698] sm:$0xff]   ;;  %v21165_v61 = vld [vmem:[%s26186_s14 + $0x610] sm:$0xff]   ;;  %v6262_v14 = vrot.slane %v23765_v58, %v22593_v59 }
0x235d   : > { %v6967_v36 = vmax.f32 %v6831_v27, 0.0  ;;  %v6969_v37 = vmax.f32 %v6872_v13, 0.0  ;;  %v6270_v27 = vrot.slane %v23765_v58, %v22596_v63  ;;  %v21168_v13 = vld [vmem:[%s26186_s14 + $0x6c8] sm:$0xff]   ;;  %v21171_v62 = vld [vmem:[%s26186_s14 + $0x640] sm:$0xff]  }
0x235e   : > { %v6833_v38 = vpop.f32.mrf.mxu0  ;;  %v6874_v39 = vpop.f32.mrf.mxu1  ;;  %v6829_v32 = vadd.f32 %v23777_v21, %v6262_v14  ;;  %v21170_v20 = vld [vmem:[%s26186_s14 + $0x688] sm:$0xff]   ;;  %v21173_v21 = vld [vmem:[%s26186_s14 + $0x600] sm:$0xff]  }
0x235f   : > { %19296 = vmatpush3.bf16.msra.mxu0 %v21141_v28  ;;  %19318 = vmatpush3.bf16.msra.mxu1 %v21142_v29  ;;  %v6983_v6 = vpack.c.bf16 %v6967_v36, %v6967_v36  ;;  %v6985_v43 = vpack.c.bf16 %v6969_v37, %v6969_v37  ;;  %v6282_v28 = vrot.slane %v23765_v58, %v22636_v33  ;;  %v21174_v39 = vld [vmem:[%s26186_s14 + $0x680] sm:$0xff]   ;;  %v21199_v14 = vld [vmem:[%s26186_s14 + $0x748] sm:$0xff]  }
0x2360   : > { %19325 = vmatprep.subr.bf16.mxu0 %v21143_v35  ;;  %19347 = vmatprep.subr.bf16.mxu1 %v21144_v4  ;;  %v6290_v29 = vrot.slane %v23765_v58, %v22639_v34  ;;  %v6870_v35 = vadd.f32 %v23779_v22, %v6270_v27  ;;  %v21172_v4 = vld [vmem:[%s26186_s14 + $0x6c0] sm:$0xff]   ;;  %v6966_v38 = vmax.f32 %v6829_v32, 0.0  ;;  %v21175_v22 = vld [vmem:[%s26186_s14 + $0x778] sm:$0xff]   ;;  %v21201_v27 = vld [vmem:[%s26186_s14 + $0x708] sm:$0xff]  }
0x2362   : > { %8136 = vmatmul.mubr.bf16.vlgmr.msra.gmra.mxu0 %v6978_v40  ;;  %8176 = vmatmul.mubr.bf16.vlgmr.msra.gmra.mxu1 %v6980_v41  ;;  %v21176_v40 = vld [vmem:[%s26186_s14 + $0x7f8] sm:$0xff]  }
0x2363   : > { %19326 = vmatpush3.bf16.msra.mxu0 %v21145_v56  ;;  %8215 = vmatprep.mubr.bf16.mxu0 %v6983_v6  ;;  %v6968_v56 = vmax.f32 %v6870_v35, 0.0  ;;  %v21177_v6 = vld [vmem:[%s26186_s14 + $0x738] sm:$0xff]  }
0x2364   : > { %19348 = vmatpush3.bf16.msra.mxu1 %v21146_v24  ;;  %8255 = vmatprep.mubr.bf16.mxu1 %v6985_v43 }
0x2365   : > { %19327 = vmatprep.subr.bf16.mxu0 %v21147_v42  ;;  %19349 = vmatprep.subr.bf16.mxu1 %v21148_v60  ;;  %v6982_v42 = vpack.c.bf16 %v6966_v38, %v6966_v38  ;;  %v21178_v60 = vld [vmem:[%s26186_s14 + $0x7b8] sm:$0xff]   ;;  %v6984_v43 = vpack.c.bf16 %v6968_v56, %v6968_v56 }
0x2367   : > { %19328 = vmatpush3.bf16.msra.mxu0 %v21149_v25  ;;  %v21179_v25 = vld [vmem:[%s26186_s14 + $0x770] sm:$0xff]  }
0x2368   : > { %19350 = vmatpush3.bf16.msra.mxu1 %v21150_v44  ;;  %v23826_v48 = vpop.f32.mrf.mxu0  ;;  %v23828_v49 = vpop.f32.mrf.mxu1  ;;  %19329 = vmatprep.subr.bf16.mxu0 %v21151_v11  ;;  %v21180_v11 = vld [vmem:[%s26186_s14 + $0x7f0] sm:$0xff]  }
0x2369   : > { %19351 = vmatprep.subr.bf16.mxu1 %v21152_v31 }
0x236a   : > { %v6912_v53 = vpop.f32.mrf.mxu0  ;;  %v6953_v54 = vpop.f32.mrf.mxu1 }
0x236b   : > { %19330 = vmatpush3.bf16.msra.mxu0 %v21153_v46  ;;  %v6913_v36 = vadd.f32 %v6912_v53, %v6282_v28  ;;  %v6954_v37 = vadd.f32 %v6953_v54, %v6290_v29  ;;  %v21181_v46 = vld [vmem:[%s26186_s14 + $0x730] sm:$0xff]   ;;  %v21185_v53 = vld [vmem:[%s26186_s14 + $0x728] sm:$0xff]  }
0x236c   : > { %19352 = vmatpush3.bf16.msra.mxu1 %v21154_v50  ;;  %v6914_v57 = vpop.f32.mrf.mxu0  ;;  %v6955_v7 = vpop.f32.mrf.mxu1  ;;  %19331 = vmatprep.subr.bf16.mxu0 %v21155_v51  ;;  %v21182_v50 = vld [vmem:[%s26186_s14 + $0x7b0] sm:$0xff]   ;;  %v21183_v51 = vld [vmem:[%s26186_s14 + $0x768] sm:$0xff]  }
0x236d   : > { %19353 = vmatprep.subr.bf16.mxu1 %v21156_v52  ;;  %v6971_v41 = vmax.f32 %v6913_v36, 0.0  ;;  %v6973_v24 = vmax.f32 %v6954_v37, 0.0  ;;  %v21184_v52 = vld [vmem:[%s26186_s14 + $0x7e8] sm:$0xff]   ;;  %v21188_v57 = vld [vmem:[%s26186_s14 + $0x7e0] sm:$0xff]  }
0x236e   : > { %v6915_v45 = vpop.f32.mrf.mxu0  ;;  %v6956_v16 = vpop.f32.mrf.mxu1  ;;  %v21186_v54 = vld [vmem:[%s26186_s14 + $0x7a8] sm:$0xff]   ;;  %v21189_v7 = vld [vmem:[%s26186_s14 + $0x720] sm:$0xff]  }
0x236f   : > { %19332 = vmatpush3.bf16.msra.mxu0 %v21157_v55  ;;  %v6987_v44 = vpack.c.bf16 %v6971_v41, %v6971_v41  ;;  %v6989_v31 = vpack.c.bf16 %v6973_v24, %v6973_v24  ;;  %v21187_v55 = vld [vmem:[%s26186_s14 + $0x760] sm:$0xff]   ;;  %v21193_v45 = vld [vmem:[%s26186_s14 + $0x718] sm:$0xff]   ;;  %v21202_v28 = vld [vmem:[%s26186_s14 + $0x788] sm:$0xff]  }
0x2370   : > { %19354 = vmatpush3.bf16.msra.mxu1 %v21158_v8  ;;  %19333 = vmatprep.subr.bf16.mxu0 %v21159_v10  ;;  %v21190_v8 = vld [vmem:[%s26186_s14 + $0x7a0] sm:$0xff]   ;;  %v21191_v10 = vld [vmem:[%s26186_s14 + $0x758] sm:$0xff]  }
0x2371   : > { %19355 = vmatprep.subr.bf16.mxu1 %v21160_v15  ;;  %v21192_v15 = vld [vmem:[%s26186_s14 + $0x7d8] sm:$0xff]   ;;  %v17279_v37 = vld [vmem:[%s26187_s15 + $0x1] ss:$0 sm:$0xff] }
0x2372   : > { %v21194_v16 = vld [vmem:[%s26186_s14 + $0x798] sm:$0xff]  }
0x2373   : > { %19334 = vmatpush3.bf16.msra.mxu0 %v21161_v17  ;;  %v21195_v17 = vld [vmem:[%s26186_s14 + $0x750] sm:$0xff]  }
0x2374   : > { %19356 = vmatpush3.bf16.msra.mxu1 %v21162_v18  ;;  %19335 = vmatprep.subr.bf16.mxu0 %v21163_v19  ;;  %v21196_v18 = vld [vmem:[%s26186_s14 + $0x7d0] sm:$0xff]  }
0x2375   : > { %19357 = vmatprep.subr.bf16.mxu1 %v21164_v0  ;;  %v21197_v19 = vld [vmem:[%s26186_s14 + $0x710] sm:$0xff]   ;;  %v6278_v0 = vrot.slane %v23765_v58, %v22682_v12 }
0x2377   : > { %19336 = vmatpush3.bf16.msra.mxu0 %v21165_v61  ;;  %v21198_v61 = vld [vmem:[%s26186_s14 + $0x790] sm:$0xff]  }
0x2378   : > { %19358 = vmatpush3.bf16.msra.mxu1 %v21166_v23  ;;  %19337 = vmatprep.subr.bf16.mxu0 %v21167_v26  ;;  %v6286_v23 = vrot.slane %v23765_v58, %v22685_v9  ;;  %v21200_v26 = vld [vmem:[%s26186_s14 + $0x7c8] sm:$0xff]   ;;  %v21203_v58 = vld [vmem:[%s26186_s14 + $0x740] sm:$0xff]  }
0x2379   : > { %19359 = vmatprep.subr.bf16.mxu1 %v21168_v13  ;;  %v6911_v13 = vadd.f32 %v23826_v48, %v6278_v0  ;;  %v21205_v48 = vld [vmem:[%s26186_s14 + $0x700] sm:$0xff]  }
0x237a   : > { %v6952_v29 = vadd.f32 %v23828_v49, %v6286_v23 }
0x237b   : > { %19338 = vmatpush3.bf16.msra.mxu0 %v21169_v30  ;;  %v21204_v30 = vld [vmem:[%s26186_s14 + $0x7c0] sm:$0xff]   ;;  %v6970_v32 = vmax.f32 %v6911_v13, 0.0 }
0x237c   : > { %19360 = vmatpush3.bf16.msra.mxu1 %v21170_v20  ;;  %19339 = vmatprep.subr.bf16.mxu0 %v21171_v62  ;;  %v21206_v20 = vld [vmem:[%s26186_s14 + $0x780] sm:$0xff]   ;;  %v6972_v62 = vmax.f32 %v6952_v29, 0.0 }
0x237d   : > { %19361 = vmatprep.subr.bf16.mxu1 %v21172_v4  ;;  %v6986_v49 = vpack.c.bf16 %v6970_v32, %v6970_v32 }
0x237e   : > { %v6988_v35 = vpack.c.bf16 %v6972_v62, %v6972_v62 }
0x237f   : > { %19340 = vmatpush3.bf16.msra.mxu0 %v21173_v21 }
0x2380   : > { %19362 = vmatpush3.bf16.msra.mxu1 %v21174_v39  ;;  %19369 = vmatprep.subr.bf16.mxu0 %v21175_v22 }
0x2381   : > { %19391 = vmatprep.subr.bf16.mxu1 %v21176_v40 }
0x2382   : > { %8216 = vmatmul.mubr.bf16.vlgmr.msra.gmra.mxu0 %v6982_v42 }
0x2383   : > { %8256 = vmatmul.mubr.bf16.vlgmr.msra.gmra.mxu1 %v6984_v43  ;;  %19370 = vmatpush3.bf16.msra.mxu0 %v21177_v6 }
0x2384   : > { %8295 = vmatprep.mubr.bf16.mxu0 %v6987_v44  ;;  %19392 = vmatpush3.bf16.msra.mxu1 %v21178_v60 }
0x2385   : > { %8335 = vmatprep.mubr.bf16.mxu1 %v6989_v31  ;;  %19371 = vmatprep.subr.bf16.mxu0 %v21179_v25 }
0x2386   : > { %19393 = vmatprep.subr.bf16.mxu1 %v21180_v11 }
0x2387   : > { %19372 = vmatpush3.bf16.msra.mxu0 %v21181_v46 }
0x2388   : > { %19394 = vmatpush3.bf16.msra.mxu1 %v21182_v50  ;;  %19373 = vmatprep.subr.bf16.mxu0 %v21183_v51 }
0x2389   : > { %19395 = vmatprep.subr.bf16.mxu1 %v21184_v52 }
0x238b   : > { %19374 = vmatpush3.bf16.msra.mxu0 %v21185_v53 }
0x238c   : > { %19396 = vmatpush3.bf16.msra.mxu1 %v21186_v54  ;;  %19375 = vmatprep.subr.bf16.mxu0 %v21187_v55 }
0x238d   : > { %19397 = vmatprep.subr.bf16.mxu1 %v21188_v57 }
0x238f   : > { %19376 = vmatpush3.bf16.msra.mxu0 %v21189_v7 }
0x2390   : > { %19398 = vmatpush3.bf16.msra.mxu1 %v21190_v8  ;;  %19377 = vmatprep.subr.bf16.mxu0 %v21191_v10 }
0x2391   : > { %19399 = vmatprep.subr.bf16.mxu1 %v21192_v15 }
0x2393   : > { %19378 = vmatpush3.bf16.msra.mxu0 %v21193_v45 }
0x2394   : > { %19400 = vmatpush3.bf16.msra.mxu1 %v21194_v16  ;;  %19379 = vmatprep.subr.bf16.mxu0 %v21195_v17 }
0x2395   : > { %19401 = vmatprep.subr.bf16.mxu1 %v21196_v18 }
0x2397   : > { %19380 = vmatpush3.bf16.msra.mxu0 %v21197_v19 }
0x2398   : > { %19402 = vmatpush3.bf16.msra.mxu1 %v21198_v61  ;;  %19381 = vmatprep.subr.bf16.mxu0 %v21199_v14 }
0x2399   : > { %19403 = vmatprep.subr.bf16.mxu1 %v21200_v26 }
0x239b   : > { %19382 = vmatpush3.bf16.msra.mxu0 %v21201_v27 }
0x239c   : > { %19404 = vmatpush3.bf16.msra.mxu1 %v21202_v28  ;;  %19383 = vmatprep.subr.bf16.mxu0 %v21203_v58 }
0x239d   : > { %19405 = vmatprep.subr.bf16.mxu1 %v21204_v30 }
0x239f   : > { %19384 = vmatpush3.bf16.msra.mxu0 %v21205_v48 }
0x23a0   : > { %19406 = vmatpush3.bf16.msra.mxu1 %v21206_v20  ;;  %20367 = vmatprep.subr.bf16.mxu0 %v21709_v2 }
0x23a1   : > { %20379 = vmatprep.subr.bf16.mxu1 %v21709_v2 }
0x23a2   : > { %8296 = vmatmul.mubr.bf16.vlgmr.msra.gmra.mxu0 %v6986_v49 }
0x23a3   : > { %8336 = vmatmul.mubr.bf16.vlgmr.msra.gmra.mxu1 %v6988_v35  ;;  %20375 = vmatprep.mubr.msk.bf16.mxu0 %vm21710_vm0, %v21709_v2 }
0x23a4   : > { %20387 = vmatprep.mubr.msk.bf16.mxu1 %vm21710_vm0, %v21709_v2 }
0x2402   : > { %v19253_v4 = vpop.f32.mrf.mxu0  ;;  %v19275_v36 = vpop.f32.mrf.mxu1 }
0x2404   : > { %v19254_v21 = vpop.f32.mrf.mxu0  ;;  %v19276_v38 = vpop.f32.mrf.mxu1 }
0x2405   : > { %v19255_v39 = vadd.f32 %v19254_v21, %v19253_v4  ;;  %v19277_v22 = vadd.f32 %v19276_v38, %v19275_v36  ;;  %v21207_v21 = vld [vmem:[%s26223_s27 + $0x118] sm:$0xff]  }
0x2406   : > { %v19256_v56 = vpop.f32.mrf.mxu0  ;;  %v19278_v40 = vpop.f32.mrf.mxu1  ;;  %v21208_v38 = vld [vmem:[%s26222_s1 + $0x118] sm:$0xff]   ;;  %20368 = vmatpush3.bf16.msra.mxu0 %v21207_v21 }
0x2407   : > { %v8058_v41 = vadd.f32 %v19255_v39, %v17279_v37  ;;  %20380 = vmatpush3.bf16.msra.mxu1 %v21208_v38  ;;  %20369 = vmatprep.subr.bf16.mxu0 %v21709_v2  ;;  %v21210_v39 = vld [vmem:[%s26222_s1 + $0x110] sm:$0xff]   ;;  %v21212_v56 = vld [vmem:[%s26222_s1 + $0x108] sm:$0xff]   ;;  %v21213_v40 = vld [vmem:[%s26223_s27 + $0x100] sm:$0xff]  }
0x2408   : > { %v19257_v24 = vpop.f32.mrf.mxu0  ;;  %v19279_v6 = vpop.f32.mrf.mxu1  ;;  %20381 = vmatprep.subr.bf16.mxu1 %v21709_v2 }
0x2409   : > { %v8098_v42 = vadd.f32 %v19277_v22, %v8058_v41  ;;  %v21211_v22 = vld [vmem:[%s26223_s27 + $0x108] sm:$0xff]   ;;  %v21214_v41 = vld [vmem:[%s26222_s1 + $0x100] sm:$0xff]  }
0x240b   : > { %20382 = vmatpush3.bf16.msra.mxu1 %v21210_v39 }
0x240c   : > { %20383 = vmatprep.subr.bf16.mxu1 %v21709_v2 }
0x240f   : > { %20384 = vmatpush3.bf16.msra.mxu1 %v21212_v56 }
0x2410   : > { %20385 = vmatprep.subr.bf16.mxu1 %v21709_v2 }
0x2413   : > { %20386 = vmatpush3.bf16.msra.mxu1 %v21214_v41 }
0x2414   : > { %20403 = vmatprep.subr.bf16.mxu1 %v21709_v2 }
0x2422   : > { %v19297_v60 = vpop.f32.mrf.mxu0  ;;  %v19319_v43 = vpop.f32.mrf.mxu1 }
0x2424   : > { %v19298_v25 = vpop.f32.mrf.mxu0  ;;  %v19320_v44 = vpop.f32.mrf.mxu1 }
0x2425   : > { %v19299_v10 = vadd.f32 %v19298_v25, %v19297_v60  ;;  %v19321_v45 = vadd.f32 %v19320_v44, %v19319_v43  ;;  %v17410_v43 = vld [vmem:[%s26188_s16 + $0x1] ss:$0 sm:$0xff] }
0x2426   : > { %v19300_v11 = vpop.f32.mrf.mxu0  ;;  %v19322_v31 = vpop.f32.mrf.mxu1  ;;  %v17411_v44 = vld [vmem:[%s26189_s17 + $0x1] ss:$0 sm:$0xff] }
0x2427   : > { %v8138_v15 = vadd.f32 %v19299_v10, %v8098_v42  ;;  %v21224_v10 = vld [vmem:[%s26178_s6 + $0x130] sm:$0xff]  }
0x2428   : > { %v19301_v46 = vpop.f32.mrf.mxu0  ;;  %v19323_v50 = vpop.f32.mrf.mxu1 }
0x2429   : > { %v8178_v17 = vadd.f32 %v19321_v45, %v8138_v15  ;;  %v21215_v46 = vld [vmem:[%s26178_s6 + $0x118] sm:$0xff]   ;;  %v21225_v15 = vld [vmem:[%s26178_s6 + $0x128] sm:$0xff]   ;;  %v21226_v45 = vld [vmem:[%s26178_s6 + $0x120] sm:$0xff]  }
0x2442   : > { %v19341_v51 = vpop.f32.mrf.mxu0 }
0x2443   : > { %v19363_v52 = vpop.f32.mrf.mxu1 }
0x2444   : > { %v19342_v53 = vpop.f32.mrf.mxu0 }
0x2445   : > { %v19364_v54 = vpop.f32.mrf.mxu1  ;;  %v19343_v16 = vadd.f32 %v19342_v53, %v19341_v51  ;;  %v21216_v51 = vld [vmem:[%s26178_s6 + $0x110] sm:$0xff]   ;;  %v21218_v53 = vld [vmem:[%s26178_s6 + $0x100] sm:$0xff]  }
0x2446   : > { %v19344_v55 = vpop.f32.mrf.mxu0  ;;  %v19365_v0 = vadd.f32 %v19364_v54, %v19363_v52  ;;  %v21217_v52 = vld [vmem:[%s26178_s6 + $0x108] sm:$0xff]   ;;  %v21219_v54 = vld [vmem:[%s26223_s27 + $0x138] sm:$0xff]  }
0x2447   : > { %v19366_v57 = vpop.f32.mrf.mxu1  ;;  %v8218_v18 = vadd.f32 %v19343_v16, %v8178_v17  ;;  %v21220_v55 = vld [vmem:[%s26223_s27 + $0x130] sm:$0xff]   ;;  %v17436_v16 = vld [vmem:[%s26177_s5 + $0x8] ss:$0 sm:$0xff] }
0x2448   : > { %v19345_v7 = vpop.f32.mrf.mxu0  ;;  %v21221_v57 = vld [vmem:[%s26223_s27 + $0x128] sm:$0xff]  }
0x2449   : > { %v19367_v8 = vpop.f32.mrf.mxu1  ;;  %v8258_v23 = vadd.f32 %v19365_v0, %v8218_v18  ;;  %v21222_v7 = vld [vmem:[%s26223_s27 + $0x120] sm:$0xff]  }
0x244a   : > { %v21223_v8 = vld [vmem:[%s26178_s6 + $0x138] sm:$0xff]  }
0x2462   : > { %v19385_v19 = vpop.f32.mrf.mxu0 }
0x2463   : > { %v19407_v61 = vpop.f32.mrf.mxu1 }
0x2464   : > { %v19386_v14 = vpop.f32.mrf.mxu0 }
0x2465   : > { %v19387_v26 = vadd.f32 %v19386_v14, %v19385_v19  ;;  %v19408_v27 = vpop.f32.mrf.mxu1 }
0x2466   : > { %v19388_v13 = vpop.f32.mrf.mxu0  ;;  %v19409_v58 = vadd.f32 %v19408_v27, %v19407_v61 }
0x2467   : > { %v8298_v28 = vadd.f32 %v19387_v26, %v8258_v23  ;;  %v19410_v29 = vpop.f32.mrf.mxu1  ;;  %v17421_v23 = vld [vmem:[%s26227_s26 + $0x8] ss:$0 sm:$0xff] }
0x2468   : > { %v19389_v30 = vpop.f32.mrf.mxu0 }
0x2469   : > { %v8338_v48 = vadd.f32 %v19409_v58, %v8298_v28  ;;  %v19411_v32 = vpop.f32.mrf.mxu1 }
0x246b   : > { %v8343_v20 = vadd.f32 %v8338_v48, %v23419_v5  ;;  %v21209_v5 = vld [vmem:[%s26223_s27 + $0x110] sm:$0xff]   ;;  %v17451_v48 = vld [vmem:[%s26179_s7 + $0x8] ss:$0 sm:$0xff] }
0x246c   : > { %20370 = vmatpush3.bf16.msra.mxu0 %v21209_v5 }
0x246d   : > { %v8348_v62 = vsel %vm670_vm1, %v8343_v20, 0.0  ;;  %20371 = vmatprep.subr.bf16.mxu0 %v21709_v2 }
0x246e   : > { %8349 = vadd.xlane.f32.xlu0 %v8348_v62 }
0x2470   : > { %20372 = vmatpush3.bf16.msra.mxu0 %v21211_v22 }
0x2471   : > { %20373 = vmatprep.subr.bf16.mxu0 %v21709_v2 }
0x2474   : > { %20374 = vmatpush3.bf16.msra.mxu0 %v21213_v40 }
0x2475   : > { %20391 = vmatprep.subr.bf16.mxu0 %v21709_v2 }
0x24f7   : > { %v8350_v49 = vpop.xlane.xlu0 %8349 }
0x24f8   : > { %v8351_v35 = vmul.f32 0.015625, %v8350_v49 }
0x24fa   : > { %v8352_v4 = vsub.f32 %v8343_v20, %v8351_v35 }
0x24fc   : > { %v8353_v36 = vmul.f32 %v8352_v4, %v8352_v4 }
0x24fe   : > { %v8354_v37 = vsel %vm670_vm1, %v8353_v36, 0.0 }
0x24ff   : > { %8355 = vadd.xlane.f32.xlu1 %v8354_v37 }
0x2588   : > { %v8356_v24 = vpop.xlane.xlu1 %8355 }
0x2589   : > { %v8357_v6 = vmul.f32 0.015625, %v8356_v24 }
0x258b   : > { %v8358_v42 = vadd.f32 1e-05, %v8357_v6 }
0x258d   : > { %21605 = vrsqrt.f32 %v8358_v42 }
0x259a   : > { %v21606_v60 = vpop.eup %21605 }
0x259b   : > { %v8360_v25 = vmul.f32 %v21606_v60, %v8352_v4 }
0x259d   : > { %v8367_v11 = vmul.f32 %v17410_v43, %v8360_v25 }
0x259f   : > { %v24055_v31 = vadd.f32 %v17411_v44, %v8367_v11 }
0x25a1   : > { %v24062_v50 = vpack.c.bf16 %v24055_v31, %v24055_v31 }
0x25a3   : > { %20376 = vmatmul.mubr.msk.bf16.vlgmr.msra.gmra.mxu0 %vm670_vm1, %v24062_v50  ;;  %20388 = vmatmul.mubr.msk.bf16.vlgmr.msra.gmra.mxu1 %vm670_vm1, %v24062_v50 }
0x25a4   : > { %20392 = vmatpush3.bf16.msra.mxu0 %v21215_v46  ;;  %20399 = vmatprep.mubr.msk.bf16.mxu0 %vm21710_vm0, %v21709_v2 }
0x25a5   : > { %20393 = vmatprep.subr.bf16.mxu0 %v21709_v2  ;;  %20405 = vmatprep.mubr.msk.bf16.mxu1 %vm21710_vm0, %v21709_v2 }
0x25a8   : > { %20394 = vmatpush3.bf16.msra.mxu0 %v21216_v51 }
0x25a9   : > { %20395 = vmatprep.subr.bf16.mxu0 %v21709_v2 }
0x25ac   : > { %20396 = vmatpush3.bf16.msra.mxu0 %v21217_v52 }
0x25ad   : > { %20397 = vmatprep.subr.bf16.mxu0 %v21709_v2 }
0x25b0   : > { %20398 = vmatpush3.bf16.msra.mxu0 %v21218_v53 }
0x25b1   : > { %20415 = vmatprep.subr.bf16.mxu0 %v21709_v2 }
0x25b3   : > { %20400 = vmatmul.mubr.msk.bf16.vlgmr.msra.gmra.mxu0 %vm670_vm1, %v24062_v50 }
0x25b4   : > { %20416 = vmatpush3.bf16.msra.mxu0 %v21219_v54  ;;  %20423 = vmatprep.mubr.msk.bf16.mxu0 %vm21710_vm0, %v21709_v2  ;;  %v21227_v54 = vld [vmem:[%s26222_s1 + $0x138] sm:$0xff]  }
0x25b5   : > { %20417 = vmatprep.subr.bf16.mxu0 %v21709_v2 }
0x25b8   : > { %20418 = vmatpush3.bf16.msra.mxu0 %v21220_v55 }
0x25b9   : > { %20419 = vmatprep.subr.bf16.mxu0 %v21709_v2 }
0x25bc   : > { %20420 = vmatpush3.bf16.msra.mxu0 %v21221_v57  ;;  %v21228_v57 = vld [vmem:[%s26222_s1 + $0x130] sm:$0xff]  }
0x25bd   : > { %20421 = vmatprep.subr.bf16.mxu0 %v21709_v2 }
0x25c0   : > { %20422 = vmatpush3.bf16.msra.mxu0 %v21222_v7  ;;  %v21229_v7 = vld [vmem:[%s26222_s1 + $0x128] sm:$0xff]  }
0x25c1   : > { %20439 = vmatprep.subr.bf16.mxu0 %v21709_v2 }
0x25c3   : > { %20424 = vmatmul.mubr.msk.bf16.vlgmr.msra.gmra.mxu0 %vm670_vm1, %v24062_v50 }
0x25c4   : > { %20440 = vmatpush3.bf16.msra.mxu0 %v21223_v8  ;;  %20447 = vmatprep.mubr.msk.bf16.mxu0 %vm21710_vm0, %v21709_v2  ;;  %v21230_v8 = vld [vmem:[%s26222_s1 + $0x120] sm:$0xff]  }
0x25c5   : > { %20441 = vmatprep.subr.bf16.mxu0 %v21709_v2 }
0x25c8   : > { %20442 = vmatpush3.bf16.msra.mxu0 %v21224_v10 }
0x25c9   : > { %20443 = vmatprep.subr.bf16.mxu0 %v21709_v2 }
0x25cc   : > { %20444 = vmatpush3.bf16.msra.mxu0 %v21225_v15 }
0x25cd   : > { %20445 = vmatprep.subr.bf16.mxu0 %v21709_v2 }
0x25d0   : > { %20446 = vmatpush3.bf16.msra.mxu0 %v21226_v45 }
0x25d1   : > { %20463 = vmatprep.subr.bf16.mxu0 %v21709_v2 }
0x25d3   : > { %20448 = vmatmul.mubr.msk.bf16.vlgmr.msra.gmra.mxu0 %vm670_vm1, %v24062_v50 }
0x25d4   : > { %20465 = vmatprep.mubr.msk.bf16.mxu0 %vm21710_vm0, %v21709_v2 }
0x2663   : > { %v8454_v17 = vpop.f32.mrf.mxu0  ;;  %v8535_v18 = vpop.f32.mrf.mxu1 }
0x2664   : > { %v8536_v19 = vadd.f32 %v17436_v16, %v8535_v18  ;;  %v8455_v29 = vadd.f32 %v17421_v23, %v8454_v17  ;;  %v17485_v17 = vld [vmem:[%s26177_s5 + $0x9] ss:$0 sm:$0xff] }
0x2665   : > { %v20377_v0 = vpop.f32.mrf.mxu0  ;;  %v20389_v61 = vpop.f32.mrf.mxu1  ;;  %v17470_v23 = vld [vmem:[%s26227_s26 + $0x9] ss:$0 sm:$0xff] }
0x2666   : > { %v8623_v14 = vpack.c.bf16 %v8536_v19, %v8536_v19  ;;  %v8622_v30 = vpack.c.bf16 %v8455_v29, %v8455_v29  ;;  %v17500_v0 = vld [vmem:[%s26179_s7 + $0x9] ss:$0 sm:$0xff] }
0x2667   : > { %v8457_v26 = vpop.f32.mrf.mxu0  ;;  %v8538_v27 = vpop.f32.mrf.mxu1 }
0x2668   : > { %v8628_v13 = vsel %vm874_vm2, %v8623_v14, 0 }
0x2669   : > { %v20378_v28 = vpop.f32.mrf.mxu0  ;;  %v20390_v58 = vpop.f32.mrf.mxu1  ;;  %20404 = vmatpush3.bf16.xpose.msra.mxu1 %v8628_v13 }
0x266a   : > { %20409 = vmatprep.subr.bf16.mxu1 %v21709_v2 }
0x2670   : > { %20406 = vmatmul.mubr.msk.bf16.vlgmr.msra.gmra.mxu1 %vm874_vm2, %v8622_v30 }
0x2671   : > { %20411 = vmatprep.mubr.msk.bf16.mxu1 %vm21710_vm0, %v21709_v2 }
0x2673   : > { %v8616_v32 = vpop.f32.mrf.mxu0 }
0x2674   : > { %v8617_v20 = vadd.f32 %v17451_v48, %v8616_v32 }
0x2675   : > { %v20401_v62 = vpop.f32.mrf.mxu0 }
0x2676   : > { %v8682_v49 = vpack.c.bf16 %v8617_v20, %v8617_v20 }
0x2677   : > { %v8619_v35 = vpop.f32.mrf.mxu0 }
0x2678   : > { %v8687_v4 = vsel %vm938_vm4, %v8682_v49, 0 }
0x2679   : > { %v20402_v36 = vpop.f32.mrf.mxu0  ;;  %20410 = vmatpush3.bf16.msra.mxu1 %v8687_v4 }
0x267a   : > { %20427 = vmatprep.subr.bf16.mxu1 %v21709_v2 }
0x2683   : > { %v8808_v37 = vpop.f32.mrf.mxu0 }
0x2684   : > { %v8809_v58 = vadd.f32 %v17470_v23, %v8808_v37  ;;  %v21244_v23 = vld [vmem:[%s26178_s6 + $0x140] sm:$0xff]  }
0x2685   : > { %v20425_v21 = vpop.f32.mrf.mxu0 }
0x2686   : > { %v8976_v30 = vpack.c.bf16 %v8809_v58, %v8809_v58 }
0x2687   : > { %v8811_v38 = vpop.f32.mrf.mxu0 }
0x2689   : > { %v20426_v5 = vpop.f32.mrf.mxu0 }
0x268a   : > { %v21236_v5 = vld [vmem:[%s26180_s8 + $0x48] sm:$0xff]  }
0x268b   : > { %20464 = vmatpush3.bf16.msra.mxu0 %v21236_v5 }
0x268c   : > { %20475 = vmatprep.subr.bf16.mxu0 %v21709_v2 }
0x2693   : > { %v8970_v39 = vpop.f32.mrf.mxu0 }
0x2694   : > { %v8971_v27 = vadd.f32 %v17500_v0, %v8970_v39 }
0x2695   : > { %v20449_v22 = vpop.f32.mrf.mxu0 }
0x2696   : > { %v9036_v29 = vpack.c.bf16 %v8971_v27, %v8971_v27 }
0x2697   : > { %v8973_v56 = vpop.f32.mrf.mxu0 }
0x2698   : > { %v9041_v48 = vsel %vm938_vm4, %v9036_v29, 0 }
0x2699   : > { %v20450_v40 = vpop.f32.mrf.mxu0 }
0x269a   : > { %v21231_v40 = vld [vmem:[%s26180_s8 + $0x40] sm:$0xff]  }
0x2730   : > { %v8664_v41 = vpop.f32.mrf.mxu1 }
0x2731   : > { %v8670_v24 = vsel %vm921_vm3, %v8664_v41, -inf }
0x2732   : > { %8671 = vmax.xlane.f32.xlu0 %v8670_v24  ;;  %v20407_v6 = vpop.f32.mrf.mxu1  ;;  %v21232_v24 = vld [vmem:[%s26222_s1 + $0x158] sm:$0xff]  }
0x2734   : > { %v8667_v42 = vpop.f32.mrf.mxu1 }
0x2735   : > { %v21233_v42 = vld [vmem:[%s26222_s1 + $0x150] sm:$0xff]  }
0x2736   : > { %v20408_v60 = vpop.f32.mrf.mxu1 }
0x2737   : > { %v21234_v60 = vld [vmem:[%s26222_s1 + $0x148] sm:$0xff]  }
0x27bb   : > { %v8672_v43 = vpop.xlane.xlu0 %8671 }
0x27bc   : > { %v8673_v25 = vsub.f32 %v8664_v41, %v8672_v43  ;;  %v21235_v43 = vld [vmem:[%s26222_s1 + $0x140] sm:$0xff]  }
0x27be   : > { %v8674_v44 = vmul.f32 1.442695, %v8673_v25 }
0x27c0   : > { %21607 = vpow2.f32 %v8674_v44  ;;  %v21237_v44 = vld [vmem:[%s26223_s27 + $0x158] sm:$0xff]  }
0x27cd   : > { %v21608_v11 = vpop.eup %21607 }
0x27ce   : > { %v8676_v46 = vsel %vm921_vm3, %v21608_v11, 0.0 }
0x27cf   : > { %8677 = vadd.xlane.f32.xlu1 %v8676_v46 }
0x2858   : > { %v8678_v51 = vpop.xlane.xlu1 %8677 }
0x2859   : > { %21609 = vrcp.f32 %v8678_v51 }
0x2866   : > { %v21610_v52 = vpop.eup %21609 }
0x2867   : > { %v8680_v53 = vmul.f32 %v21610_v52, %v21608_v11  ;;  %v21238_v52 = vld [vmem:[%s26223_s27 + $0x150] sm:$0xff]  }
0x2869   : > { %v8681_v55 = vpack.c.bf16 %v8680_v53, %v8680_v53 }
0x286b   : > { %20412 = vmatmul.mubr.msk.bf16.vlgmr.msra.gmra.mxu1 %vm921_vm3, %v8681_v55  ;;  %v21239_v55 = vld [vmem:[%s26223_s27 + $0x148] sm:$0xff]  }
0x286c   : > { %20428 = vmatpush3.bf16.msra.mxu1 %v21227_v54  ;;  %20435 = vmatprep.mubr.msk.bf16.mxu1 %vm21710_vm0, %v21709_v2 }
0x286d   : > { %20429 = vmatprep.subr.bf16.mxu1 %v21709_v2 }
0x2870   : > { %20430 = vmatpush3.bf16.msra.mxu1 %v21228_v57 }
0x2871   : > { %20431 = vmatprep.subr.bf16.mxu1 %v21709_v2 }
0x2874   : > { %20432 = vmatpush3.bf16.msra.mxu1 %v21229_v7 }
0x2875   : > { %20433 = vmatprep.subr.bf16.mxu1 %v21709_v2 }
0x2878   : > { %20434 = vmatpush3.bf16.msra.mxu1 %v21230_v8  ;;  %v21240_v8 = vld [vmem:[%s26223_s27 + $0x140] sm:$0xff]  }
0x2879   : > { %20451 = vmatprep.subr.bf16.mxu1 %v21709_v2 }
0x287b   : > { %20436 = vmatmul.mubr.msk.bf16.vlgmr.msra.gmra.mxu1 %vm670_vm1, %v24062_v50 }
0x287c   : > { %20453 = vmatprep.mubr.msk.bf16.mxu1 %vm21710_vm0, %v21709_v2 }
0x292b   : > { %v8723_v10 = vpop.f32.mrf.mxu1 }
0x292c   : > { %v8729_v6 = vpack.c.bf16 %v8723_v10, %v8723_v10 }
0x292d   : > { %v20413_v15 = vpop.f32.mrf.mxu1 }
0x292e   : > { %v21241_v15 = vld [vmem:[%s26178_s6 + $0x158] sm:$0xff]  }
0x292f   : > { %v8726_v45 = vpop.f32.mrf.mxu1 }
0x2930   : > { %v21242_v45 = vld [vmem:[%s26178_s6 + $0x150] sm:$0xff]  }
0x2931   : > { %v20414_v16 = vpop.f32.mrf.mxu1 }
0x2932   : > { %v17538_v16 = vld [vmem:[%s26177_s5 + $0xa] ss:$0 sm:$0xff] }
0x293b   : > { %v8889_v18 = vpop.f32.mrf.mxu1 }
0x293c   : > { %v8890_v19 = vadd.f32 %v17485_v17, %v8889_v18  ;;  %v21243_v18 = vld [vmem:[%s26178_s6 + $0x148] sm:$0xff]  }
0x293d   : > { %v20437_v61 = vpop.f32.mrf.mxu1 }
0x293e   : > { %v8977_v14 = vpack.c.bf16 %v8890_v19, %v8890_v19 }
0x293f   : > { %v8892_v26 = vpop.f32.mrf.mxu1 }
0x2940   : > { %v8982_v13 = vsel %vm874_vm2, %v8977_v14, 0 }
0x2941   : > { %v20438_v28 = vpop.f32.mrf.mxu1  ;;  %20452 = vmatpush3.bf16.xpose.msra.mxu1 %v8982_v13 }
0x2942   : > { %20457 = vmatprep.subr.bf16.mxu1 %v21709_v2 }
0x2948   : > { %20454 = vmatmul.mubr.msk.bf16.vlgmr.msra.gmra.mxu1 %vm874_vm2, %v8976_v30  ;;  %v17523_v30 = vld [vmem:[%s26227_s26 + $0xa] ss:$0 sm:$0xff] }
0x2949   : > { %20458 = vmatpush3.bf16.msra.mxu1 %v9041_v48  ;;  %20459 = vmatprep.mubr.msk.bf16.mxu1 %vm21710_vm0, %v21709_v2 }
0x294a   : > { %20469 = vmatprep.subr.bf16.mxu1 %v21709_v2 }
0x2a08   : > { %v9018_v32 = vpop.f32.mrf.mxu1 }
0x2a09   : > { %v9024_v20 = vsel %vm921_vm3, %v9018_v32, -inf }
0x2a0a   : > { %9025 = vmax.xlane.f32.xlu0 %v9024_v20  ;;  %v20455_v62 = vpop.f32.mrf.mxu1 }
0x2a0c   : > { %v9021_v49 = vpop.f32.mrf.mxu1 }
0x2a0e   : > { %v20456_v35 = vpop.f32.mrf.mxu1 }
0x2a93   : > { %v9026_v4 = vpop.xlane.xlu0 %9025 }
0x2a94   : > { %v9027_v36 = vsub.f32 %v9018_v32, %v9026_v4  ;;  %v17553_v4 = vld [vmem:[%s26179_s7 + $0xa] ss:$0 sm:$0xff] }
0x2a96   : > { %v9028_v37 = vmul.f32 1.442695, %v9027_v36 }
0x2a98   : > { %21611 = vpow2.f32 %v9028_v37 }
0x2aa5   : > { %v21612_v21 = vpop.eup %21611 }
0x2aa6   : > { %v9030_v38 = vsel %vm921_vm3, %v21612_v21, 0.0 }
0x2aa7   : > { %9031 = vadd.xlane.f32.xlu1 %v9030_v38 }
0x2b30   : > { %v9032_v39 = vpop.xlane.xlu1 %9031 }
0x2b31   : > { %21613 = vrcp.f32 %v9032_v39 }
0x2b3e   : > { %v21614_v22 = vpop.eup %21613 }
0x2b3f   : > { %v9034_v56 = vmul.f32 %v21614_v22, %v21612_v21 }
0x2b41   : > { %v9035_v41 = vpack.c.bf16 %v9034_v56, %v9034_v56 }
0x2b43   : > { %20460 = vmatmul.mubr.msk.bf16.vlgmr.msra.gmra.mxu1 %vm921_vm3, %v9035_v41 }
0x2b44   : > { %20470 = vmatpush3.bf16.msra.mxu1 %v21231_v40  ;;  %20471 = vmatprep.mubr.msk.bf16.mxu1 %vm21710_vm0, %v21709_v2 }
0x2b45   : > { %20487 = vmatprep.subr.bf16.mxu1 %v21709_v2 }
0x2b4b   : > { %20472 = vmatmul.mubr.msk.bf16.vlgmr.msra.gmra.mxu1 %vm874_vm2, %v8729_v6 }
0x2b4c   : > { %20488 = vmatpush3.bf16.msra.mxu1 %v21232_v24  ;;  %20495 = vmatprep.mubr.msk.bf16.mxu1 %vm21710_vm0, %v21709_v2 }
0x2b4d   : > { %20489 = vmatprep.subr.bf16.mxu1 %v21709_v2 }
0x2b50   : > { %20490 = vmatpush3.bf16.msra.mxu1 %v21233_v42 }
0x2b51   : > { %20491 = vmatprep.subr.bf16.mxu1 %v21709_v2 }
0x2b54   : > { %20492 = vmatpush3.bf16.msra.mxu1 %v21234_v60 }
0x2b55   : > { %20493 = vmatprep.subr.bf16.mxu1 %v21709_v2 }
0x2b58   : > { %20494 = vmatpush3.bf16.msra.mxu1 %v21235_v43 }
0x2b59   : > { %20511 = vmatprep.subr.bf16.mxu1 %v21709_v2 }
0x2b5b   : > { %20496 = vmatmul.mubr.msk.bf16.vlgmr.msra.gmra.mxu1 %vm670_vm1, %v24062_v50 }
0x2b5c   : > { %20513 = vmatprep.mubr.msk.bf16.mxu1 %vm21710_vm0, %v21709_v2 }
0x2c03   : > { %v9077_v25 = vpop.f32.mrf.mxu1 }
0x2c04   : > { %v9083_v11 = vpack.c.bf16 %v9077_v25, %v9077_v25 }
0x2c05   : > { %v20461_v46 = vpop.f32.mrf.mxu1 }
0x2c06   : > { %20466 = vmatmul.mubr.msk.bf16.vlgmr.msra.gmra.mxu0 %vm874_vm2, %v9083_v11  ;;  %v21253_v11 = vld [vmem:[%s26180_s8 + $0x50] sm:$0xff]  }
0x2c07   : > { %20476 = vmatpush3.bf16.msra.mxu0 %v21237_v44  ;;  %v9080_v51 = vpop.f32.mrf.mxu1  ;;  %20483 = vmatprep.mubr.msk.bf16.mxu0 %vm21710_vm0, %v21709_v2 }
0x2c08   : > { %20477 = vmatprep.subr.bf16.mxu0 %v21709_v2 }
0x2c09   : > { %v20462_v53 = vpop.f32.mrf.mxu1 }
0x2c0a   : > { %v21245_v53 = vld [vmem:[%s26223_s27 + $0x178] sm:$0xff]  }
0x2c0b   : > { %20478 = vmatpush3.bf16.msra.mxu0 %v21238_v52  ;;  %v24232_v54 = vpop.f32.mrf.mxu1 }
0x2c0c   : > { %20479 = vmatprep.subr.bf16.mxu0 %v21709_v2 }
0x2c0d   : > { %v20473_v57 = vpop.f32.mrf.mxu1 }
0x2c0e   : > { %v21246_v57 = vld [vmem:[%s26223_s27 + $0x170] sm:$0xff]  }
0x2c0f   : > { %20480 = vmatpush3.bf16.msra.mxu0 %v21239_v55  ;;  %v9182_v7 = vpop.f32.mrf.mxu1 }
0x2c10   : > { %20481 = vmatprep.subr.bf16.mxu0 %v21709_v2  ;;  %v21247_v7 = vld [vmem:[%s26223_s27 + $0x168] sm:$0xff]  }
0x2c11   : > { %v20474_v10 = vpop.f32.mrf.mxu1 }
0x2c12   : > { %v21249_v10 = vld [vmem:[%s26178_s6 + $0x178] sm:$0xff]  }
0x2c13   : > { %20482 = vmatpush3.bf16.msra.mxu0 %v21240_v8  ;;  %v21248_v8 = vld [vmem:[%s26223_s27 + $0x160] sm:$0xff]  }
0x2c14   : > { %20499 = vmatprep.subr.bf16.mxu0 %v21709_v2 }
0x2c16   : > { %20484 = vmatmul.mubr.msk.bf16.vlgmr.msra.gmra.mxu0 %vm670_vm1, %v24062_v50 }
0x2c17   : > { %20500 = vmatpush3.bf16.msra.mxu0 %v21241_v15  ;;  %20507 = vmatprep.mubr.msk.bf16.mxu0 %vm21710_vm0, %v21709_v2  ;;  %v21250_v15 = vld [vmem:[%s26178_s6 + $0x170] sm:$0xff]  }
0x2c18   : > { %20501 = vmatprep.subr.bf16.mxu0 %v21709_v2 }
0x2c1b   : > { %v9341_v17 = vpop.f32.mrf.mxu1  ;;  %20502 = vmatpush3.bf16.msra.mxu0 %v21242_v45  ;;  %v21251_v45 = vld [vmem:[%s26178_s6 + $0x168] sm:$0xff]  }
0x2c1c   : > { %v9342_v19 = vadd.f32 %v17538_v16, %v9341_v17  ;;  %20503 = vmatprep.subr.bf16.mxu0 %v21709_v2  ;;  %v21252_v16 = vld [vmem:[%s26178_s6 + $0x160] sm:$0xff]  }
0x2c1d   : > { %v20497_v0 = vpop.f32.mrf.mxu1 }
0x2c1e   : > { %v9429_v61 = vpack.c.bf16 %v9342_v19, %v9342_v19 }
0x2c1f   : > { %v9344_v14 = vpop.f32.mrf.mxu1  ;;  %20504 = vmatpush3.bf16.msra.mxu0 %v21243_v18  ;;  %v21254_v18 = vld [vmem:[%s26222_s1 + $0x178] sm:$0xff]  }
0x2c20   : > { %v9434_v26 = vsel %vm874_vm2, %v9429_v61, 0  ;;  %20505 = vmatprep.subr.bf16.mxu0 %v21709_v2  ;;  %v21255_v14 = vld [vmem:[%s26222_s1 + $0x170] sm:$0xff]  }
0x2c21   : > { %v20498_v27 = vpop.f32.mrf.mxu1  ;;  %20512 = vmatpush3.bf16.xpose.msra.mxu1 %v9434_v26  ;;  %v21256_v26 = vld [vmem:[%s26222_s1 + $0x168] sm:$0xff]  }
0x2c22   : > { %20517 = vmatprep.subr.bf16.mxu1 %v21709_v2  ;;  %v21257_v27 = vld [vmem:[%s26222_s1 + $0x160] sm:$0xff]  }
0x2c23   : > { %20506 = vmatpush3.bf16.msra.mxu0 %v21244_v23 }
0x2c24   : > { %20523 = vmatprep.subr.bf16.mxu0 %v21709_v2 }
0x2c26   : > { %20508 = vmatmul.mubr.msk.bf16.vlgmr.msra.gmra.mxu0 %vm670_vm1, %v24062_v50 }
0x2c27   : > { %20525 = vmatprep.mubr.msk.bf16.mxu0 %vm21710_vm0, %v21709_v2  ;;  %20524 = vmatpush3.bf16.msra.mxu0 %v21253_v11 }
0x2c28   : > { %20541 = vmatprep.subr.bf16.mxu0 %v21709_v2 }
0x2cc6   : > { %v24272_v13 = vpop.f32.mrf.mxu0 }
0x2cc8   : > { %v20467_v28 = vpop.f32.mrf.mxu0 }
0x2cca   : > { %v9133_v58 = vpop.f32.mrf.mxu0 }
0x2ccc   : > { %v20468_v29 = vpop.f32.mrf.mxu0 }
0x2cd6   : > { %v9260_v48 = vpop.f32.mrf.mxu0 }
0x2cd7   : > { %v9261_v32 = vadd.f32 %v17523_v30, %v9260_v48 }
0x2cd8   : > { %v20485_v20 = vpop.f32.mrf.mxu0 }
0x2cd9   : > { %v9428_v62 = vpack.c.bf16 %v9261_v32, %v9261_v32 }
0x2cda   : > { %v9263_v49 = vpop.f32.mrf.mxu0 }
0x2cdb   : > { %20514 = vmatmul.mubr.msk.bf16.vlgmr.msra.gmra.mxu1 %vm874_vm2, %v9428_v62  ;;  %v9180_v49 = vadd.f32 %v24232_v54, %v24272_v13  ;;  %v17574_v54 = vld [vmem:[%s26227_s26 + $0xb] ss:$0 sm:$0xff] }
0x2cdc   : > { %v20486_v35 = vpop.f32.mrf.mxu0  ;;  %20519 = vmatprep.mubr.msk.bf16.mxu1 %vm21710_vm0, %v21709_v2 }
0x2ce6   : > { %v9422_v36 = vpop.f32.mrf.mxu0 }
0x2ce7   : > { %v9423_v37 = vadd.f32 %v17553_v4, %v9422_v36 }
0x2ce8   : > { %v20509_v21 = vpop.f32.mrf.mxu0 }
0x2ce9   : > { %v9488_v38 = vpack.c.bf16 %v9423_v37, %v9423_v37 }
0x2cea   : > { %v9425_v5 = vpop.f32.mrf.mxu0 }
0x2ceb   : > { %v9493_v39 = vsel %vm938_vm4, %v9488_v38, 0 }
0x2cec   : > { %v20510_v22 = vpop.f32.mrf.mxu0  ;;  %20518 = vmatpush3.bf16.msra.mxu1 %v9493_v39  ;;  %v17604_v39 = vld [vmem:[%s26179_s7 + $0xb] ss:$0 sm:$0xff] }
0x2ced   : > { %20529 = vmatprep.subr.bf16.mxu1 %v21709_v2 }
0x2d9b   : > { %v9470_v56 = vpop.f32.mrf.mxu1 }
0x2d9c   : > { %v9476_v40 = vsel %vm921_vm3, %v9470_v56, -inf }
0x2d9d   : > { %9477 = vmax.xlane.f32.xlu0 %v9476_v40  ;;  %v20515_v41 = vpop.f32.mrf.mxu1 }
0x2d9f   : > { %v9473_v24 = vpop.f32.mrf.mxu1 }
0x2da1   : > { %v20516_v6 = vpop.f32.mrf.mxu1 }
0x2e26   : > { %v9478_v42 = vpop.xlane.xlu0 %9477 }
0x2e27   : > { %v9479_v60 = vsub.f32 %v9470_v56, %v9478_v42 }
0x2e29   : > { %v9480_v43 = vmul.f32 1.442695, %v9479_v60 }
0x2e2b   : > { %21615 = vpow2.f32 %v9480_v43 }
0x2e38   : > { %v21616_v25 = vpop.eup %21615 }
0x2e39   : > { %v9482_v44 = vsel %vm921_vm3, %v21616_v25, 0.0 }
0x2e3a   : > { %9483 = vadd.xlane.f32.xlu1 %v9482_v44 }
0x2ec3   : > { %v9484_v46 = vpop.xlane.xlu1 %9483 }
0x2ec4   : > { %21617 = vrcp.f32 %v9484_v46 }
0x2ed1   : > { %v21618_v51 = vpop.eup %21617 }
0x2ed2   : > { %v9486_v52 = vmul.f32 %v21618_v51, %v21616_v25 }
0x2ed4   : > { %v9487_v55 = vpack.c.bf16 %v9486_v52, %v9486_v52 }
0x2ed6   : > { %20520 = vmatmul.mubr.msk.bf16.vlgmr.msra.gmra.mxu1 %vm921_vm3, %v9487_v55 }
0x2ed7   : > { %20530 = vmatpush3.bf16.msra.mxu1 %v21245_v53  ;;  %20537 = vmatprep.mubr.msk.bf16.mxu1 %vm21710_vm0, %v21709_v2 }
0x2ed8   : > { %20531 = vmatprep.subr.bf16.mxu1 %v21709_v2 }
0x2edb   : > { %20532 = vmatpush3.bf16.msra.mxu1 %v21246_v57 }
0x2edc   : > { %20533 = vmatprep.subr.bf16.mxu1 %v21709_v2 }
0x2edf   : > { %20534 = vmatpush3.bf16.msra.mxu1 %v21247_v7 }
0x2ee0   : > { %20535 = vmatprep.subr.bf16.mxu1 %v21709_v2 }
0x2ee3   : > { %20536 = vmatpush3.bf16.msra.mxu1 %v21248_v8 }
0x2ee4   : > { %20553 = vmatprep.subr.bf16.mxu1 %v21709_v2 }
0x2ee6   : > { %20538 = vmatmul.mubr.msk.bf16.vlgmr.msra.gmra.mxu1 %vm670_vm1, %v24062_v50 }
0x2ee7   : > { %20554 = vmatpush3.bf16.msra.mxu1 %v21249_v10  ;;  %20561 = vmatprep.mubr.msk.bf16.mxu1 %vm21710_vm0, %v21709_v2 }
0x2ee8   : > { %20555 = vmatprep.subr.bf16.mxu1 %v21709_v2 }
0x2eeb   : > { %20556 = vmatpush3.bf16.msra.mxu1 %v21250_v15 }
0x2eec   : > { %20557 = vmatprep.subr.bf16.mxu1 %v21709_v2 }
0x2eef   : > { %20558 = vmatpush3.bf16.msra.mxu1 %v21251_v45 }
0x2ef0   : > { %20559 = vmatprep.subr.bf16.mxu1 %v21709_v2 }
0x2ef3   : > { %20560 = vmatpush3.bf16.msra.mxu1 %v21252_v16  ;;  %v21258_v16 = vld [vmem:[%s26180_s8 + $0x58] sm:$0xff]  }
0x2ef4   : > { %20577 = vmatprep.subr.bf16.mxu1 %v21709_v2 }
0x2ef6   : > { %20562 = vmatmul.mubr.msk.bf16.vlgmr.msra.gmra.mxu1 %vm670_vm1, %v24062_v50 }
0x2ef7   : > { %20579 = vmatprep.mubr.msk.bf16.mxu1 %vm21710_vm0, %v21709_v2  ;;  %20578 = vmatpush3.bf16.msra.mxu1 %v21258_v16  ;;  %v17673_v16 = vld [vmem:[%s26184_s12 + $0x598] sm:$0xff] }
0x2f96   : > { %v9529_v17 = vpop.f32.mrf.mxu1 }
0x2f97   : > { %v9535_v19 = vpack.c.bf16 %v9529_v17, %v9529_v17 }
0x2f98   : > { %v20521_v0 = vpop.f32.mrf.mxu1 }
0x2f99   : > { %20526 = vmatmul.mubr.msk.bf16.vlgmr.msra.gmra.mxu0 %vm874_vm2, %v9535_v19 }
0x2f9a   : > { %20542 = vmatpush3.bf16.msra.mxu0 %v21254_v18  ;;  %v9532_v61 = vpop.f32.mrf.mxu1  ;;  %20549 = vmatprep.mubr.msk.bf16.mxu0 %vm21710_vm0, %v21709_v2 }
0x2f9b   : > { %20543 = vmatprep.subr.bf16.mxu0 %v21709_v2 }
0x2f9c   : > { %v20522_v23 = vpop.f32.mrf.mxu1 }
0x2f9d   : > { %v17617_v23 = vld [vmem:[%s26181_s9 + $0x2] ss:$0 sm:$0xff] }
0x2f9e   : > { %20544 = vmatpush3.bf16.msra.mxu0 %v21255_v14 }
0x2f9f   : > { %20545 = vmatprep.subr.bf16.mxu0 %v21709_v2 }
0x2fa2   : > { %20546 = vmatpush3.bf16.msra.mxu0 %v21256_v26 }
0x2fa3   : > { %20547 = vmatprep.subr.bf16.mxu0 %v21709_v2 }
0x2fa6   : > { %v9664_v28 = vpop.f32.mrf.mxu1  ;;  %20548 = vmatpush3.bf16.msra.mxu0 %v21257_v27 }
0x2fa7   : > { %20565 = vmatprep.subr.bf16.mxu0 %v21709_v2  ;;  %v9665_v6 = vadd.f32 %v17574_v54, %v9664_v28 }
0x2fa8   : > { %v20539_v58 = vpop.f32.mrf.mxu1 }
0x2fa9   : > { %20550 = vmatmul.mubr.msk.bf16.vlgmr.msra.gmra.mxu0 %vm670_vm1, %v24062_v50  ;;  %v17589_v50 = vld [vmem:[%s26177_s5 + $0xb] ss:$0 sm:$0xff]  ;;  %v9832_v60 = vpack.c.bf16 %v9665_v6, %v9665_v6  ;;  %v17638_v6 = vld [vmem:[%s26184_s12 + $0x480] sm:$0xff] }
0x2faa   : > { %v9667_v29 = vpop.f32.mrf.mxu1  ;;  %20567 = vmatprep.mubr.msk.bf16.mxu0 %vm21710_vm0, %v21709_v2 }
0x2fac   : > { %v20540_v30 = vpop.f32.mrf.mxu1 }
0x2fb6   : > { %v9826_v48 = vpop.f32.mrf.mxu1 }
0x2fb7   : > { %v9827_v40 = vadd.f32 %v17604_v39, %v9826_v48  ;;  %v17654_v39 = vld [vmem:[%s26184_s12 + $0x500] sm:$0xff] }
0x2fb8   : > { %v20563_v32 = vpop.f32.mrf.mxu1 }
0x2fb9   : > { %v9892_v42 = vpack.c.bf16 %v9827_v40, %v9827_v40 }
0x2fba   : > { %v9829_v20 = vpop.f32.mrf.mxu1 }
0x2fbb   : > { %v9897_v43 = vsel %vm938_vm4, %v9892_v42, 0  ;;  %v17646_v42 = vld [vmem:[%s26184_s12 + $0x4c0] sm:$0xff] }
0x2fbc   : > { %v20564_v62 = vpop.f32.mrf.mxu1 }
0x3059   : > { %v9582_v35 = vpop.f32.mrf.mxu0 }
0x305a   : > { %v9588_v4 = vadd.f32 %v9582_v35, %v9180_v49 }
0x305b   : > { %v20527_v36 = vpop.f32.mrf.mxu0 }
0x305c   : > { %v17671_v36 = vld [vmem:[%s26184_s12 + $0x588] sm:$0xff] }
0x305d   : > { %v9585_v37 = vpop.f32.mrf.mxu0 }
0x305f   : > { %v20528_v21 = vpop.f32.mrf.mxu0 }
0x3060   : > { %v17679_v21 = vld [vmem:[%s26184_s12 + $0x5c8] sm:$0xff] }
0x3069   : > { %v9745_v38 = vpop.f32.mrf.mxu0 }
0x306a   : > { %v9746_v5 = vadd.f32 %v17589_v50, %v9745_v38  ;;  %v17738_v38 = vcombine.low %v17671_v36, %v17679_v21 }
0x306b   : > { %v20551_v22 = vpop.f32.mrf.mxu0 }
0x306c   : > { %v9833_v56 = vpack.c.bf16 %v9746_v5, %v9746_v5  ;;  %v17739_v5 = vcombine.high %v17671_v36, %v17679_v21  ;;  %v17662_v22 = vld [vmem:[%s26184_s12 + $0x540] sm:$0xff]  ;;  %v17640_v36 = vld [vmem:[%s26184_s12 + $0x490] sm:$0xff]  ;;  %v17641_v21 = vld [vmem:[%s26184_s12 + $0x498] sm:$0xff] }
0x306d   : > { %v9748_v13 = vpop.f32.mrf.mxu0  ;;  %v17721_v54 = vcombine.high %v17654_v39, %v17662_v22  ;;  %v17720_v40 = vcombine.low %v17654_v39, %v17662_v22 }
0x306e   : > { %v9838_v41 = vsel %vm874_vm2, %v9833_v56, 0  ;;  %10557 = vmatprep.subr.bf16.mxu1 %v17739_v5  ;;  %v17655_v56 = vld [vmem:[%s26184_s12 + $0x508] sm:$0xff] }
0x306f   : > { %v20552_v24 = vpop.f32.mrf.mxu0  ;;  %20566 = vmatpush3.bf16.xpose.msra.mxu0 %v9838_v41  ;;  %v17663_v13 = vld [vmem:[%s26184_s12 + $0x548] sm:$0xff] }
0x3070   : > { %20571 = vmatprep.subr.bf16.mxu0 %v21709_v2  ;;  %v17722_v41 = vcombine.low %v17655_v56, %v17663_v13  ;;  %v17723_v24 = vcombine.high %v17655_v56, %v17663_v13  ;;  %v17624_v56 = vld [vmem:[%s26184_s12 + $0x410] sm:$0xff]  ;;  %v17625_v13 = vld [vmem:[%s26184_s12 + $0x418] sm:$0xff] }
0x3076   : > { %20568 = vmatmul.mubr.msk.bf16.vlgmr.msra.gmra.mxu0 %vm874_vm2, %v9832_v60  ;;  %v17639_v60 = vld [vmem:[%s26184_s12 + $0x488] sm:$0xff] }
0x3077   : > { %20572 = vmatpush3.bf16.msra.mxu0 %v9897_v43  ;;  %20573 = vmatprep.mubr.msk.bf16.mxu0 %vm21710_vm0, %v21709_v2  ;;  %v17705_v43 = vcombine.high %v17638_v6, %v17646_v42 }
0x3136   : > { %v9874_v25 = vpop.f32.mrf.mxu0 }
0x3137   : > { %v9880_v44 = vsel %vm921_vm3, %v9874_v25, -inf }
0x3138   : > { %9881 = vmax.xlane.f32.xlu0 %v9880_v44  ;;  %v20569_v11 = vpop.f32.mrf.mxu0  ;;  %v17704_v44 = vcombine.low %v17638_v6, %v17646_v42 }
0x313a   : > { %v9877_v46 = vpop.f32.mrf.mxu0 }
0x313c   : > { %v20570_v51 = vpop.f32.mrf.mxu0 }
0x313d   : > { %v17622_v51 = vld [vmem:[%s26184_s12 + $0x400] sm:$0xff] }
0x31c1   : > { %v9882_v52 = vpop.xlane.xlu0 %9881 }
0x31c2   : > { %v9883_v53 = vsub.f32 %v9874_v25, %v9882_v52  ;;  %v17647_v25 = vld [vmem:[%s26184_s12 + $0x4c8] sm:$0xff]  ;;  %v17630_v52 = vld [vmem:[%s26184_s12 + $0x440] sm:$0xff] }
0x31c3   : > { %v17706_v11 = vcombine.low %v17639_v60, %v17647_v25  ;;  %v17707_v46 = vcombine.high %v17639_v60, %v17647_v25  ;;  %v17674_v60 = vld [vmem:[%s26184_s12 + $0x5a0] sm:$0xff]  ;;  %v17675_v25 = vld [vmem:[%s26184_s12 + $0x5a8] sm:$0xff] }
0x31c4   : > { %v9884_v55 = vmul.f32 1.442695, %v9883_v53  ;;  %v17623_v53 = vld [vmem:[%s26184_s12 + $0x408] sm:$0xff] }
0x31c6   : > { %21619 = vpow2.f32 %v9884_v55  ;;  %v17689_v55 = vcombine.high %v17622_v51, %v17630_v52 }
0x31d3   : > { %v21620_v57 = vpop.eup %21619 }
0x31d4   : > { %v9886_v7 = vsel %vm921_vm3, %v21620_v57, 0.0 }
0x31d5   : > { %9887 = vadd.xlane.f32.xlu1 %v9886_v7  ;;  %v17688_v7 = vcombine.low %v17622_v51, %v17630_v52 }
0x325e   : > { %v9888_v8 = vpop.xlane.xlu1 %9887 }
0x325f   : > { %21621 = vrcp.f32 %v9888_v8 }
0x326c   : > { %v21622_v10 = vpop.eup %21621 }
0x326d   : > { %v9890_v15 = vmul.f32 %v21622_v10, %v21620_v57  ;;  %v17631_v57 = vld [vmem:[%s26184_s12 + $0x448] sm:$0xff] }
0x326e   : > { %v17690_v8 = vcombine.low %v17623_v53, %v17631_v57  ;;  %v17691_v10 = vcombine.high %v17623_v53, %v17631_v57  ;;  %v17658_v53 = vld [vmem:[%s26184_s12 + $0x520] sm:$0xff]  ;;  %v17659_v57 = vld [vmem:[%s26184_s12 + $0x528] sm:$0xff] }
0x326f   : > { %v9891_v45 = vpack.c.bf16 %v9890_v15, %v9890_v15  ;;  %v17672_v15 = vld [vmem:[%s26184_s12 + $0x590] sm:$0xff] }
0x3271   : > { %20574 = vmatmul.mubr.msk.bf16.vlgmr.msra.gmra.mxu0 %vm921_vm3, %v9891_v45  ;;  %v17680_v45 = vld [vmem:[%s26184_s12 + $0x5d0] sm:$0xff] }
0x3272   : > { %10540 = vmatprep.mubr.bf16.mxu0 %v21711_v47 }
0x3331   : > { %v9933_v17 = vpop.f32.mrf.mxu0 }
0x3332   : > { %v9939_v18 = vpack.c.bf16 %v9933_v17, %v9933_v17  ;;  %v17741_v17 = vcombine.high %v17672_v15, %v17680_v45 }
0x3333   : > { %v20575_v19 = vpop.f32.mrf.mxu0 }
0x3334   : > { %20580 = vmatmul.mubr.msk.bf16.vlgmr.msra.gmra.mxu1 %vm874_vm2, %v9939_v18  ;;  %v17681_v18 = vld [vmem:[%s26184_s12 + $0x5d8] sm:$0xff]  ;;  %v17740_v19 = vcombine.low %v17672_v15, %v17680_v45 }
0x3335   : > { %v9936_v0 = vpop.f32.mrf.mxu0  ;;  %10581 = vmatprep.mubr.bf16.mxu1 %v21711_v47  ;;  %10558 = vmatpush1.bf16.msra.mxu1 %v17738_v38 }
0x3336   : > { %10559 = vmatprep.subr.bf16.mxu1 %v17723_v24  ;;  %v17742_v0 = vcombine.low %v17673_v16, %v17681_v18 }
0x3337   : > { %v20576_v61 = vpop.f32.mrf.mxu0 }
0x3338   : > { %v17743_v61 = vcombine.high %v17673_v16, %v17681_v18  ;;  %v17642_v16 = vld [vmem:[%s26184_s12 + $0x4a0] sm:$0xff]  ;;  %v17643_v18 = vld [vmem:[%s26184_s12 + $0x4a8] sm:$0xff] }
0x3339   : > { %10560 = vmatpush1.bf16.msra.mxu1 %v17722_v41 }
0x333a   : > { %10561 = vmatprep.subr.bf16.mxu1 %v17707_v46 }
0x333d   : > { %10562 = vmatpush1.bf16.msra.mxu1 %v17706_v11 }
0x333e   : > { %10563 = vmatprep.subr.bf16.mxu1 %v17691_v10 }
0x3341   : > { %10564 = vmatpush1.bf16.msra.mxu1 %v17690_v8 }
0x3342   : > { %10639 = vmatprep.subr.bf16.mxu1 %v17743_v61 }
0x33f4   : > { %v9986_v14 = vpop.f32.mrf.mxu1 }
0x33f5   : > { %v9992_v26 = vadd.f32 %v9986_v14, %v9588_v4  ;;  %v17670_v4 = vld [vmem:[%s26184_s12 + $0x580] sm:$0xff] }
0x33f6   : > { %v20581_v27 = vpop.f32.mrf.mxu1 }
0x33f7   : > { %v10001_v28 = vadd.f32 %v17617_v23, %v9992_v26 }
0x33f8   : > { %v9989_v58 = vpop.f32.mrf.mxu1 }
0x33f9   : > { %v10002_v29 = vadd.f32 %v10001_v28, %v24055_v31  ;;  %v17678_v31 = vld [vmem:[%s26184_s12 + $0x5c0] sm:$0xff] }
0x33fa   : > { %v20582_v30 = vpop.f32.mrf.mxu1  ;;  %v17737_v37 = vcombine.high %v17670_v4, %v17678_v31  ;;  %v17736_v50 = vcombine.low %v17670_v4, %v17678_v31  ;;  %v17620_v28 = vld [vmem:[%s26182_s10 + $0x2] ss:$0 sm:$0xff] }
0x33fb   : > { %v10007_v48 = vsel %vm670_vm1, %v10002_v29, 0.0 }
0x33fc   : > { %10008 = vadd.xlane.f32.xlu0 %v10007_v48  ;;  %10516 = vmatprep.subr.bf16.mxu0 %v17737_v37  ;;  %v17656_v48 = vld [vmem:[%s26184_s12 + $0x510] sm:$0xff] }
0x33fd   : > { %10517 = vmatpush1.bf16.msra.mxu0 %v17736_v50  ;;  %v17648_v37 = vld [vmem:[%s26184_s12 + $0x4d0] sm:$0xff]  ;;  %v17649_v50 = vld [vmem:[%s26184_s12 + $0x4d8] sm:$0xff] }
0x33fe   : > { %10518 = vmatprep.subr.bf16.mxu0 %v17721_v54  ;;  %v17709_v39 = vcombine.high %v17640_v36, %v17648_v37  ;;  %v17711_v22 = vcombine.high %v17641_v21, %v17649_v50  ;;  %v17632_v54 = vld [vmem:[%s26184_s12 + $0x450] sm:$0xff]  ;;  %v17708_v41 = vcombine.low %v17640_v36, %v17648_v37  ;;  %v17710_v24 = vcombine.low %v17641_v21, %v17649_v50 }
0x33ff   : > { %v17693_v6 = vcombine.high %v17624_v56, %v17632_v54  ;;  %v17692_v11 = vcombine.low %v17624_v56, %v17632_v54 }
0x3401   : > { %10519 = vmatpush1.bf16.msra.mxu0 %v17720_v40  ;;  %v17633_v40 = vld [vmem:[%s26184_s12 + $0x458] sm:$0xff] }
0x3402   : > { %10520 = vmatprep.subr.bf16.mxu0 %v17705_v43  ;;  %v17695_v42 = vcombine.high %v17625_v13, %v17633_v40  ;;  %v17682_v43 = vld [vmem:[%s26184_s12 + $0x5e0] sm:$0xff]  ;;  %v17694_v46 = vcombine.low %v17625_v13, %v17633_v40 }
0x3403   : > { %v17745_v51 = vcombine.high %v17674_v60, %v17682_v43  ;;  %v17744_v8 = vcombine.low %v17674_v60, %v17682_v43 }
0x3405   : > { %10521 = vmatpush1.bf16.msra.mxu0 %v17704_v44  ;;  %v17683_v44 = vld [vmem:[%s26184_s12 + $0x5e8] sm:$0xff] }
0x3406   : > { %10522 = vmatprep.subr.bf16.mxu0 %v17689_v55  ;;  %v17747_v52 = vcombine.high %v17675_v25, %v17683_v44  ;;  %v17666_v55 = vld [vmem:[%s26184_s12 + $0x560] sm:$0xff]  ;;  %v17746_v10 = vcombine.low %v17675_v25, %v17683_v44 }
0x3407   : > { %v17729_v15 = vcombine.high %v17658_v53, %v17666_v55 }
0x3409   : > { %10523 = vmatpush1.bf16.msra.mxu0 %v17688_v7  ;;  %v17667_v7 = vld [vmem:[%s26184_s12 + $0x568] sm:$0xff] }
0x340a   : > { %10598 = vmatprep.subr.bf16.mxu0 %v17741_v17  ;;  %v17731_v45 = vcombine.high %v17659_v57, %v17667_v7  ;;  %v17650_v17 = vld [vmem:[%s26184_s12 + $0x4e0] sm:$0xff]  ;;  %v17730_v61 = vcombine.low %v17659_v57, %v17667_v7 }
0x3485   : > { %v10009_v32 = vpop.xlane.xlu0 %10008 }
0x3486   : > { %v10010_v20 = vmul.f32 0.015625, %v10009_v32  ;;  %v17664_v32 = vld [vmem:[%s26184_s12 + $0x550] sm:$0xff] }
0x3487   : > { %v17725_v4 = vcombine.high %v17656_v48, %v17664_v32  ;;  %v17724_v38 = vcombine.low %v17656_v48, %v17664_v32 }
0x3488   : > { %v24388_v62 = vsub.f32 %v10002_v29, %v10010_v20  ;;  %v17621_v29 = vld [vmem:[%s26183_s11 + $0x2] ss:$0 sm:$0xff]  ;;  %v17657_v20 = vld [vmem:[%s26184_s12 + $0x518] sm:$0xff] }
0x348a   : > { %v10012_v49 = vmul.f32 %v24388_v62, %v24388_v62 }
0x348c   : > { %v10013_v35 = vsel %vm670_vm1, %v10012_v49, 0.0 }
0x348d   : > { %10014 = vadd.xlane.f32.xlu1 %v10013_v35 }
0x3516   : > { %v10015_v14 = vpop.xlane.xlu1 %10014 }
0x3517   : > { %v10016_v23 = vmul.f32 0.015625, %v10015_v14  ;;  %v17713_v14 = vcombine.high %v17642_v16, %v17650_v17 }
0x3519   : > { %v10017_v26 = vadd.f32 1e-05, %v10016_v23 }
0x351b   : > { %21623 = vrsqrt.f32 %v10017_v26  ;;  %v17626_v26 = vld [vmem:[%s26184_s12 + $0x420] sm:$0xff] }
0x3528   : > { %v21624_v27 = vpop.eup %21623 }
0x3529   : > { %v10019_v58 = vmul.f32 %v21624_v27, %v24388_v62  ;;  %v17665_v62 = vld [vmem:[%s26184_s12 + $0x558] sm:$0xff]  ;;  %v17634_v27 = vld [vmem:[%s26184_s12 + $0x460] sm:$0xff] }
0x352a   : > { %v17727_v31 = vcombine.high %v17657_v20, %v17665_v62  ;;  %v17726_v5 = vcombine.low %v17657_v20, %v17665_v62  ;;  %v17697_v48 = vcombine.high %v17626_v26, %v17634_v27  ;;  %v17676_v20 = vld [vmem:[%s26184_s12 + $0x5b0] sm:$0xff]  ;;  %v17696_v36 = vcombine.low %v17626_v26, %v17634_v27  ;;  %v21270_v26 = vld [vmem:[%s26186_s14 + $0x8a8] sm:$0xff]   ;;  %v21271_v27 = vld [vmem:[%s26186_s14 + $0x860] sm:$0xff]  }
0x352b   : > { %v10026_v30 = vmul.f32 %v17620_v28, %v10019_v58  ;;  %v17627_v28 = vld [vmem:[%s26184_s12 + $0x428] sm:$0xff]  ;;  %v17684_v62 = vld [vmem:[%s26184_s12 + $0x5f0] sm:$0xff] }
0x352c   : > { %v17635_v58 = vld [vmem:[%s26184_s12 + $0x468] sm:$0xff]  ;;  %v17749_v21 = vcombine.high %v17676_v20, %v17684_v62  ;;  %v17748_v56 = vcombine.low %v17676_v20, %v17684_v62  ;;  %v21278_v20 = vld [vmem:[%s26186_s14 + $0x898] sm:$0xff]   ;;  %v21279_v62 = vld [vmem:[%s26186_s14 + $0x850] sm:$0xff]  }
0x352d   : > { %v24472_v49 = vadd.f32 %v17621_v29, %v10026_v30  ;;  %v17712_v29 = vcombine.low %v17642_v16, %v17650_v17  ;;  %v17699_v32 = vcombine.high %v17627_v28, %v17635_v58  ;;  %v17698_v37 = vcombine.low %v17627_v28, %v17635_v58  ;;  %v21261_v16 = vld [vmem:[%s26186_s14 + $0x838] sm:$0xff]   ;;  %v21272_v28 = vld [vmem:[%s26186_s14 + $0x8e0] sm:$0xff]  }
0x352e   : > { %v21262_v17 = vld [vmem:[%s26186_s14 + $0x8b8] sm:$0xff]   ;;  %v21273_v58 = vld [vmem:[%s26186_s14 + $0x820] sm:$0xff]  }
0x352f   : > { %v24476_v35 = vpack.c.bf16 %v24472_v49, %v24472_v49 }
0x3531   : > { %17752 = vmatmul.mubr.msk.bf16.vlgmr.msra.gmra.mxu0 %vm670_vm1, %v24476_v35  ;;  %17753 = vmatmul.mubr.msk.bf16.vlgmr.msra.gmra.mxu1 %vm670_vm1, %v24476_v35 }
0x3532   : > { %10599 = vmatpush1.bf16.msra.mxu0 %v17740_v19  ;;  %10640 = vmatpush1.bf16.msra.mxu1 %v17742_v0  ;;  %v17651_v19 = vld [vmem:[%s26184_s12 + $0x4e8] sm:$0xff]  ;;  %v17728_v0 = vcombine.low %v17658_v53, %v17666_v55 }
0x3533   : > { %10600 = vmatprep.subr.bf16.mxu0 %v17725_v4  ;;  %10641 = vmatprep.subr.bf16.mxu1 %v17727_v31  ;;  %v17715_v23 = vcombine.high %v17643_v18, %v17651_v19  ;;  %v17714_v30 = vcombine.low %v17643_v18, %v17651_v19  ;;  %v17677_v4 = vld [vmem:[%s26184_s12 + $0x5b8] sm:$0xff]  ;;  %v21263_v18 = vld [vmem:[%s26186_s14 + $0x870] sm:$0xff]  }
0x3534   : > { %10622 = vmatprep.mubr.bf16.mxu0 %v21711_v47  ;;  %10663 = vmatprep.mubr.bf16.mxu1 %v21711_v47  ;;  %v17685_v31 = vld [vmem:[%s26184_s12 + $0x5f8] sm:$0xff]  ;;  %v21264_v19 = vld [vmem:[%s26186_s14 + $0x8f0] sm:$0xff]  }
0x3535   : > { %v17751_v50 = vcombine.high %v17677_v4, %v17685_v31  ;;  %v17750_v54 = vcombine.low %v17677_v4, %v17685_v31  ;;  %v21280_v4 = vld [vmem:[%s26186_s14 + $0x8d0] sm:$0xff]  }
0x3536   : > { %10601 = vmatpush1.bf16.msra.mxu0 %v17724_v38  ;;  %10642 = vmatpush1.bf16.msra.mxu1 %v17726_v5  ;;  %v17660_v38 = vld [vmem:[%s26184_s12 + $0x530] sm:$0xff] }
0x3537   : > { %10602 = vmatprep.subr.bf16.mxu0 %v17709_v39  ;;  %10643 = vmatprep.subr.bf16.mxu1 %v17711_v22  ;;  %v17668_v5 = vld [vmem:[%s26184_s12 + $0x570] sm:$0xff]  ;;  %v17661_v39 = vld [vmem:[%s26184_s12 + $0x538] sm:$0xff] }
0x3538   : > { %v17669_v22 = vld [vmem:[%s26184_s12 + $0x578] sm:$0xff]  ;;  %v17733_v13 = vcombine.high %v17660_v38, %v17668_v5  ;;  %v17732_v60 = vcombine.low %v17660_v38, %v17668_v5  ;;  %v21281_v31 = vld [vmem:[%s26186_s14 + $0x810] sm:$0xff]   ;;  %v21286_v38 = vld [vmem:[%s26186_s14 + $0x888] sm:$0xff]  }
0x3539   : > { %v17735_v40 = vcombine.high %v17661_v39, %v17669_v22  ;;  %v17734_v43 = vcombine.low %v17661_v39, %v17669_v22  ;;  %v21287_v5 = vld [vmem:[%s26186_s14 + $0x840] sm:$0xff]  }
0x353a   : > { %10603 = vmatpush1.bf16.msra.mxu0 %v17708_v41  ;;  %10644 = vmatpush1.bf16.msra.mxu1 %v17710_v24  ;;  %v17644_v41 = vld [vmem:[%s26184_s12 + $0x4b0] sm:$0xff]  ;;  %v21288_v39 = vld [vmem:[%s26186_s14 + $0x8c0] sm:$0xff]  }
0x353b   : > { %10604 = vmatprep.subr.bf16.mxu0 %v17693_v6  ;;  %10645 = vmatprep.subr.bf16.mxu1 %v17695_v42  ;;  %v17652_v24 = vld [vmem:[%s26184_s12 + $0x4f0] sm:$0xff]  ;;  %v17645_v6 = vld [vmem:[%s26184_s12 + $0x4b8] sm:$0xff]  ;;  %v21289_v22 = vld [vmem:[%s26186_s14 + $0x800] sm:$0xff]  }
0x353c   : > { %v17653_v42 = vld [vmem:[%s26184_s12 + $0x4f8] sm:$0xff]  ;;  %v17717_v25 = vcombine.high %v17644_v41, %v17652_v24  ;;  %v17716_v53 = vcombine.low %v17644_v41, %v17652_v24 }
0x353d   : > { %v17719_v44 = vcombine.high %v17645_v6, %v17653_v42  ;;  %v17718_v55 = vcombine.low %v17645_v6, %v17653_v42 }
0x353e   : > { %10605 = vmatpush1.bf16.msra.mxu0 %v17692_v11  ;;  %10646 = vmatpush1.bf16.msra.mxu1 %v17694_v46  ;;  %v17628_v11 = vld [vmem:[%s26184_s12 + $0x430] sm:$0xff] }
0x353f   : > { %10680 = vmatprep.subr.bf16.mxu0 %v17745_v51  ;;  %10721 = vmatprep.subr.bf16.mxu1 %v17747_v52  ;;  %v17636_v46 = vld [vmem:[%s26184_s12 + $0x470] sm:$0xff]  ;;  %v17629_v51 = vld [vmem:[%s26184_s12 + $0x438] sm:$0xff] }
0x3540   : > { %v17637_v52 = vld [vmem:[%s26184_s12 + $0x478] sm:$0xff]  ;;  %v17701_v57 = vcombine.high %v17628_v11, %v17636_v46 }
0x3541   : > { %17754 = vmatmul.mubr.msk.bf16.vlgmr.msra.gmra.mxu0 %vm670_vm1, %v24476_v35  ;;  %17755 = vmatmul.mubr.msk.bf16.vlgmr.msra.gmra.mxu1 %vm670_vm1, %v24476_v35  ;;  %v17703_v7 = vcombine.high %v17629_v51, %v17637_v52 }
0x3542   : > { %10681 = vmatpush1.bf16.msra.mxu0 %v17744_v8  ;;  %10722 = vmatpush1.bf16.msra.mxu1 %v17746_v10  ;;  %v17700_v8 = vcombine.low %v17628_v11, %v17636_v46  ;;  %v17702_v10 = vcombine.low %v17629_v51, %v17637_v52 }
0x3543   : > { %10682 = vmatprep.subr.bf16.mxu0 %v17729_v15  ;;  %10723 = vmatprep.subr.bf16.mxu1 %v17731_v45  ;;  %v21259_v15 = vld [vmem:[%s26186_s14 + $0x878] sm:$0xff]  }
0x3544   : > { %10704 = vmatprep.mubr.bf16.mxu0 %v21711_v47  ;;  %10745 = vmatprep.mubr.bf16.mxu1 %v21711_v47  ;;  %v21260_v45 = vld [vmem:[%s26186_s14 + $0x8f8] sm:$0xff]  }
0x3546   : > { %10683 = vmatpush1.bf16.msra.mxu0 %v17728_v0  ;;  %10724 = vmatpush1.bf16.msra.mxu1 %v17730_v61  ;;  %v21265_v0 = vld [vmem:[%s26186_s14 + $0x830] sm:$0xff]  }
0x3547   : > { %10684 = vmatprep.subr.bf16.mxu0 %v17713_v14  ;;  %10725 = vmatprep.subr.bf16.mxu1 %v17715_v23  ;;  %v21266_v61 = vld [vmem:[%s26186_s14 + $0x8b0] sm:$0xff]   ;;  %v21267_v14 = vld [vmem:[%s26186_s14 + $0x868] sm:$0xff]  }
0x3548   : > { %v21269_v23 = vld [vmem:[%s26186_s14 + $0x828] sm:$0xff]  }
0x354a   : > { %10685 = vmatpush1.bf16.msra.mxu0 %v17712_v29  ;;  %10726 = vmatpush1.bf16.msra.mxu1 %v17714_v30  ;;  %v21274_v29 = vld [vmem:[%s26186_s14 + $0x8a0] sm:$0xff]   ;;  %v21275_v30 = vld [vmem:[%s26186_s14 + $0x858] sm:$0xff]  }
0x354b   : > { %10686 = vmatprep.subr.bf16.mxu0 %v17697_v48  ;;  %10727 = vmatprep.subr.bf16.mxu1 %v17699_v32  ;;  %v21276_v48 = vld [vmem:[%s26186_s14 + $0x8d8] sm:$0xff]  }
0x354c   : > { %v21277_v32 = vld [vmem:[%s26186_s14 + $0x818] sm:$0xff]  }
0x354e   : > { %10687 = vmatpush1.bf16.msra.mxu0 %v17696_v36  ;;  %10728 = vmatpush1.bf16.msra.mxu1 %v17698_v37  ;;  %v21282_v36 = vld [vmem:[%s26186_s14 + $0x890] sm:$0xff]   ;;  %v21283_v37 = vld [vmem:[%s26186_s14 + $0x848] sm:$0xff]  }
0x354f   : > { %10762 = vmatprep.subr.bf16.mxu0 %v17749_v21  ;;  %10803 = vmatprep.subr.bf16.mxu1 %v17751_v50  ;;  %v21284_v21 = vld [vmem:[%s26186_s14 + $0x8c8] sm:$0xff]  }
0x3550   : > { %v21285_v50 = vld [vmem:[%s26186_s14 + $0x808] sm:$0xff]  }
0x3551   : > { %17756 = vmatmul.mubr.msk.bf16.vlgmr.msra.gmra.mxu0 %vm670_vm1, %v24476_v35  ;;  %17757 = vmatmul.mubr.msk.bf16.vlgmr.msra.gmra.mxu1 %vm670_vm1, %v24476_v35 }
0x3552   : > { %10763 = vmatpush1.bf16.msra.mxu0 %v17748_v56  ;;  %10804 = vmatpush1.bf16.msra.mxu1 %v17750_v54  ;;  %v21290_v56 = vld [vmem:[%s26186_s14 + $0x880] sm:$0xff]   ;;  %v21291_v54 = vld [vmem:[%s26186_s14 + $0x978] sm:$0xff]  }
0x3553   : > { %10764 = vmatprep.subr.bf16.mxu0 %v17733_v13  ;;  %10805 = vmatprep.subr.bf16.mxu1 %v17735_v40  ;;  %v21292_v13 = vld [vmem:[%s26186_s14 + $0x9f8] sm:$0xff]   ;;  %v24725_v40 = vld [vmem:[%s26185_s13 + $0x20] sm:$0xff] }
0x3554   : > { %10786 = vmatprep.mubr.bf16.mxu0 %v21711_v47  ;;  %10827 = vmatprep.mubr.bf16.mxu1 %v21711_v47  ;;  %v10108_v41 = vrot.slane %v24725_v40, %v22593_v59  ;;  %v10116_v24 = vrot.slane %v24725_v40, %v22596_v63  ;;  %v10112_v6 = vrot.slane %v24725_v40, %v22604_v1 }
0x3555   : > { %v10120_v42 = vrot.slane %v24725_v40, %v22607_v3 }
0x3556   : > { %10765 = vmatpush1.bf16.msra.mxu0 %v17732_v60  ;;  %10806 = vmatpush1.bf16.msra.mxu1 %v17734_v43 }
0x3557   : > { %10766 = vmatprep.subr.bf16.mxu0 %v17717_v25  ;;  %10807 = vmatprep.subr.bf16.mxu1 %v17719_v44 }
0x355a   : > { %10767 = vmatpush1.bf16.msra.mxu0 %v17716_v53  ;;  %10808 = vmatpush1.bf16.msra.mxu1 %v17718_v55 }
0x355b   : > { %10768 = vmatprep.subr.bf16.mxu0 %v17701_v57  ;;  %10809 = vmatprep.subr.bf16.mxu1 %v17703_v7 }
0x355e   : > { %10769 = vmatpush1.bf16.msra.mxu0 %v17700_v8  ;;  %10810 = vmatpush1.bf16.msra.mxu1 %v17702_v10 }
0x355f   : > { %19497 = vmatprep.subr.bf16.mxu0 %v21259_v15  ;;  %19519 = vmatprep.subr.bf16.mxu1 %v21260_v45 }
0x3561   : > { %17758 = vmatmul.mubr.msk.bf16.vlgmr.msra.gmra.mxu0 %vm670_vm1, %v24476_v35  ;;  %17759 = vmatmul.mubr.msk.bf16.vlgmr.msra.gmra.mxu1 %vm670_vm1, %v24476_v35  ;;  %v21268_v35 = vld [vmem:[%s26186_s14 + $0x8e8] sm:$0xff]  }
0x3562   : > { %19498 = vmatpush3.bf16.msra.mxu0 %v21261_v16  ;;  %19520 = vmatpush3.bf16.msra.mxu1 %v21262_v17 }
0x3563   : > { %19499 = vmatprep.subr.bf16.mxu0 %v21263_v18  ;;  %19521 = vmatprep.subr.bf16.mxu1 %v21264_v19  ;;  %v21293_v18 = vld [vmem:[%s26186_s14 + $0x938] sm:$0xff]  }
0x3564   : > { %v21294_v19 = vld [vmem:[%s26186_s14 + $0x9b8] sm:$0xff]  }
0x3566   : > { %19500 = vmatpush3.bf16.msra.mxu0 %v21265_v0  ;;  %19522 = vmatpush3.bf16.msra.mxu1 %v21266_v61 }
0x3567   : > { %19501 = vmatprep.subr.bf16.mxu0 %v21267_v14  ;;  %19523 = vmatprep.subr.bf16.mxu1 %v21268_v35  ;;  %v21295_v14 = vld [vmem:[%s26186_s14 + $0x970] sm:$0xff]  }
0x3568   : > { %v21296_v35 = vld [vmem:[%s26186_s14 + $0x9f0] sm:$0xff]  }
0x356a   : > { %19502 = vmatpush3.bf16.msra.mxu0 %v21269_v23  ;;  %19524 = vmatpush3.bf16.msra.mxu1 %v21270_v26  ;;  %v21297_v23 = vld [vmem:[%s26186_s14 + $0x930] sm:$0xff]  }
0x356b   : > { %19503 = vmatprep.subr.bf16.mxu0 %v21271_v27  ;;  %19525 = vmatprep.subr.bf16.mxu1 %v21272_v28  ;;  %v21298_v26 = vld [vmem:[%s26186_s14 + $0x9b0] sm:$0xff]   ;;  %v21299_v27 = vld [vmem:[%s26186_s14 + $0x968] sm:$0xff]  }
0x356c   : > { %v21300_v28 = vld [vmem:[%s26186_s14 + $0x9e8] sm:$0xff]  }
0x356e   : > { %19504 = vmatpush3.bf16.msra.mxu0 %v21273_v58  ;;  %19526 = vmatpush3.bf16.msra.mxu1 %v21274_v29  ;;  %v10128_v58 = vrot.slane %v24725_v40, %v22636_v33  ;;  %v10136_v29 = vrot.slane %v24725_v40, %v22639_v34 }
0x356f   : > { %19505 = vmatprep.subr.bf16.mxu0 %v21275_v30  ;;  %19527 = vmatprep.subr.bf16.mxu1 %v21276_v48  ;;  %v21301_v30 = vld [vmem:[%s26186_s14 + $0x928] sm:$0xff]  }
0x3570   : > { %v21302_v48 = vld [vmem:[%s26186_s14 + $0x9a8] sm:$0xff]  }
0x3572   : > { %19506 = vmatpush3.bf16.msra.mxu0 %v21277_v32  ;;  %19528 = vmatpush3.bf16.msra.mxu1 %v21278_v20 }
0x3573   : > { %19507 = vmatprep.subr.bf16.mxu0 %v21279_v62  ;;  %19529 = vmatprep.subr.bf16.mxu1 %v21280_v4  ;;  %v21303_v62 = vld [vmem:[%s26186_s14 + $0x960] sm:$0xff]  }
0x3574   : > { %v21304_v4 = vld [vmem:[%s26186_s14 + $0x9e0] sm:$0xff]  }
0x3576   : > { %19508 = vmatpush3.bf16.msra.mxu0 %v21281_v31  ;;  %19530 = vmatpush3.bf16.msra.mxu1 %v21282_v36 }
0x3577   : > { %19509 = vmatprep.subr.bf16.mxu0 %v21283_v37  ;;  %19531 = vmatprep.subr.bf16.mxu1 %v21284_v21 }
0x357a   : > { %19510 = vmatpush3.bf16.msra.mxu0 %v21285_v50  ;;  %19532 = vmatpush3.bf16.msra.mxu1 %v21286_v38  ;;  %v21305_v50 = vld [vmem:[%s26186_s14 + $0x920] sm:$0xff]  }
0x357b   : > { %19511 = vmatprep.subr.bf16.mxu0 %v21287_v5  ;;  %19533 = vmatprep.subr.bf16.mxu1 %v21288_v39  ;;  %v21306_v38 = vld [vmem:[%s26186_s14 + $0x9a0] sm:$0xff]  }
0x357e   : > { %19512 = vmatpush3.bf16.msra.mxu0 %v21289_v22  ;;  %19534 = vmatpush3.bf16.msra.mxu1 %v21290_v56  ;;  %v21307_v22 = vld [vmem:[%s26186_s14 + $0x958] sm:$0xff]  }
0x357f   : > { %19541 = vmatprep.subr.bf16.mxu0 %v21291_v54  ;;  %19563 = vmatprep.subr.bf16.mxu1 %v21292_v13  ;;  %v21308_v56 = vld [vmem:[%s26186_s14 + $0x9d8] sm:$0xff]  }
0x35f1   : > { %v10542_v60 = vpop.f32.mrf.mxu0  ;;  %v10583_v43 = vpop.f32.mrf.mxu1 }
0x35f2   : > { %v10543_v25 = vadd.f32 %v10542_v60, %v10108_v41  ;;  %v10584_v44 = vadd.f32 %v10583_v43, %v10116_v24  ;;  %v21309_v60 = vld [vmem:[%s26186_s14 + $0x918] sm:$0xff]  }
0x35f3   : > { %v10544_v11 = vpop.f32.mrf.mxu0  ;;  %v10585_v46 = vpop.f32.mrf.mxu1  ;;  %v21310_v43 = vld [vmem:[%s26186_s14 + $0x998] sm:$0xff]  }
0x35f4   : > { %v10545_v51 = vadd.f32 %v10544_v11, %v10112_v6  ;;  %v10586_v52 = vadd.f32 %v10585_v46, %v10120_v42  ;;  %v10836_v53 = vmax.f32 %v10543_v25, 0.0  ;;  %v10838_v55 = vmax.f32 %v10584_v44, 0.0  ;;  %v21311_v25 = vld [vmem:[%s26186_s14 + $0x950] sm:$0xff]  }
0x35f5   : > { %v10546_v57 = vpop.f32.mrf.mxu0  ;;  %v10587_v7 = vpop.f32.mrf.mxu1  ;;  %v21312_v44 = vld [vmem:[%s26186_s14 + $0x9d0] sm:$0xff]  }
0x35f6   : > { %v10837_v8 = vmax.f32 %v10545_v51, 0.0  ;;  %v10839_v10 = vmax.f32 %v10586_v52, 0.0  ;;  %v10852_v0 = vpack.c.bf16 %v10836_v53, %v10836_v53  ;;  %v10854_v61 = vpack.c.bf16 %v10838_v55, %v10838_v55  ;;  %v21313_v11 = vld [vmem:[%s26186_s14 + $0x910] sm:$0xff]   ;;  %v21315_v53 = vld [vmem:[%s26186_s14 + $0x948] sm:$0xff]  }
0x35f7   : > { %v10547_v15 = vpop.f32.mrf.mxu0  ;;  %v10588_v45 = vpop.f32.mrf.mxu1  ;;  %v21314_v46 = vld [vmem:[%s26186_s14 + $0x990] sm:$0xff]   ;;  %v10124_v51 = vrot.slane %v24725_v40, %v22682_v12  ;;  %v10132_v52 = vrot.slane %v24725_v40, %v22685_v9  ;;  %v21316_v55 = vld [vmem:[%s26186_s14 + $0x9c8] sm:$0xff]  }
0x35f8   : > { %v10853_v16 = vpack.c.bf16 %v10837_v8, %v10837_v8  ;;  %v10855_v17 = vpack.c.bf16 %v10839_v10, %v10839_v10  ;;  %v24818_v57 = vld [vmem:[%s26185_s13 + $0x28] sm:$0xff] }
0x35f9   : > { %v10144_v40 = vrot.slane %v24818_v57, %v22604_v1  ;;  %v10152_v7 = vrot.slane %v24818_v57, %v22607_v3  ;;  %v21317_v8 = vld [vmem:[%s26186_s14 + $0x908] sm:$0xff]  }
0x35fa   : > { %11933 = vmatprep.mubr.bf16.mxu0 %v10853_v16  ;;  %11973 = vmatprep.mubr.bf16.mxu1 %v10855_v17  ;;  %v21318_v10 = vld [vmem:[%s26186_s14 + $0x988] sm:$0xff]  }
0x35fb   : > { %11934 = vmatmul.mubr.bf16.vlgmr.msra.gmra.mxu0 %v10852_v0  ;;  %11974 = vmatmul.mubr.bf16.vlgmr.msra.gmra.mxu1 %v10854_v61 }
0x35fc   : > { %19542 = vmatpush3.bf16.msra.mxu0 %v21293_v18  ;;  %19564 = vmatpush3.bf16.msra.mxu1 %v21294_v19  ;;  %v21319_v18 = vld [vmem:[%s26186_s14 + $0x940] sm:$0xff]  }
0x35fd   : > { %19543 = vmatprep.subr.bf16.mxu0 %v21295_v14  ;;  %19565 = vmatprep.subr.bf16.mxu1 %v21296_v35  ;;  %v21320_v19 = vld [vmem:[%s26186_s14 + $0x9c0] sm:$0xff]  }
0x3600   : > { %19544 = vmatpush3.bf16.msra.mxu0 %v21297_v23  ;;  %19566 = vmatpush3.bf16.msra.mxu1 %v21298_v26  ;;  %v21321_v23 = vld [vmem:[%s26186_s14 + $0x900] sm:$0xff]  }
0x3601   : > { %v10624_v32 = vpop.f32.mrf.mxu0  ;;  %v10665_v20 = vpop.f32.mrf.mxu1  ;;  %19545 = vmatprep.subr.bf16.mxu0 %v21299_v27  ;;  %19567 = vmatprep.subr.bf16.mxu1 %v21300_v28  ;;  %v21322_v26 = vld [vmem:[%s26186_s14 + $0x980] sm:$0xff]  }
0x3602   : > { %v10625_v15 = vadd.f32 %v10624_v32, %v10124_v51  ;;  %v10666_v45 = vadd.f32 %v10665_v20, %v10132_v52  ;;  %v21338_v52 = vld [vmem:[%s26186_s14 + $0xaa0] sm:$0xff]  }
0x3603   : > { %v10626_v31 = vpop.f32.mrf.mxu0  ;;  %v10667_v36 = vpop.f32.mrf.mxu1 }
0x3604   : > { %v10627_v37 = vadd.f32 %v10626_v31, %v10128_v58  ;;  %v10668_v21 = vadd.f32 %v10667_v36, %v10136_v29  ;;  %19546 = vmatpush3.bf16.msra.mxu0 %v21301_v30  ;;  %19568 = vmatpush3.bf16.msra.mxu1 %v21302_v48  ;;  %v10840_v27 = vmax.f32 %v10625_v15, 0.0  ;;  %v10842_v28 = vmax.f32 %v10666_v45, 0.0  ;;  %v21323_v30 = vld [vmem:[%s26186_s14 + $0xa78] sm:$0xff]   ;;  %v21343_v15 = vld [vmem:[%s26186_s14 + $0xa50] sm:$0xff]  }
0x3605   : > { %v10628_v5 = vpop.f32.mrf.mxu0  ;;  %v10669_v39 = vpop.f32.mrf.mxu1  ;;  %19547 = vmatprep.subr.bf16.mxu0 %v21303_v62  ;;  %19569 = vmatprep.subr.bf16.mxu1 %v21304_v4  ;;  %v21324_v48 = vld [vmem:[%s26186_s14 + $0xaf8] sm:$0xff]   ;;  %v21344_v45 = vld [vmem:[%s26186_s14 + $0xad0] sm:$0xff]  }
0x3606   : > { %v10841_v54 = vmax.f32 %v10627_v37, 0.0  ;;  %v10843_v13 = vmax.f32 %v10668_v21, 0.0  ;;  %v21325_v31 = vld [vmem:[%s26186_s14 + $0xa38] sm:$0xff]   ;;  %v10856_v36 = vpack.c.bf16 %v10840_v27, %v10840_v27  ;;  %v10858_v37 = vpack.c.bf16 %v10842_v28, %v10842_v28  ;;  %v21328_v5 = vld [vmem:[%s26186_s14 + $0xaf0] sm:$0xff]   ;;  %v21349_v27 = vld [vmem:[%s26186_s14 + $0xa08] sm:$0xff]  }
0x3607   : > { %v10629_v41 = vpop.f32.mrf.mxu0  ;;  %v10670_v24 = vpop.f32.mrf.mxu1  ;;  %v21326_v21 = vld [vmem:[%s26186_s14 + $0xab8] sm:$0xff]  }
0x3608   : > { %v10857_v6 = vpack.c.bf16 %v10841_v54, %v10841_v54  ;;  %v10859_v42 = vpack.c.bf16 %v10843_v13, %v10843_v13  ;;  %19548 = vmatpush3.bf16.msra.mxu0 %v21305_v50  ;;  %19570 = vmatpush3.bf16.msra.mxu1 %v21306_v38  ;;  %v21327_v38 = vld [vmem:[%s26186_s14 + $0xa70] sm:$0xff]   ;;  %v21331_v54 = vld [vmem:[%s26186_s14 + $0xa68] sm:$0xff]  }
0x3609   : > { %19549 = vmatprep.subr.bf16.mxu0 %v21307_v22  ;;  %19571 = vmatprep.subr.bf16.mxu1 %v21308_v56  ;;  %v21329_v22 = vld [vmem:[%s26186_s14 + $0xa30] sm:$0xff]   ;;  %v21332_v13 = vld [vmem:[%s26186_s14 + $0xae8] sm:$0xff]  }
0x360a   : > { %12013 = vmatprep.mubr.bf16.mxu0 %v10857_v6  ;;  %12053 = vmatprep.mubr.bf16.mxu1 %v10859_v42  ;;  %v21330_v56 = vld [vmem:[%s26186_s14 + $0xab0] sm:$0xff]   ;;  %v21333_v41 = vld [vmem:[%s26186_s14 + $0xa28] sm:$0xff]  }
0x360b   : > { %v21334_v42 = vld [vmem:[%s26186_s14 + $0xaa8] sm:$0xff]  }
0x360c   : > { %19550 = vmatpush3.bf16.msra.mxu0 %v21309_v60  ;;  %19572 = vmatpush3.bf16.msra.mxu1 %v21310_v43  ;;  %v21335_v60 = vld [vmem:[%s26186_s14 + $0xa60] sm:$0xff]  }
0x360d   : > { %19551 = vmatprep.subr.bf16.mxu0 %v21311_v25  ;;  %19573 = vmatprep.subr.bf16.mxu1 %v21312_v44  ;;  %v21336_v43 = vld [vmem:[%s26186_s14 + $0xae0] sm:$0xff]  }
0x3610   : > { %19552 = vmatpush3.bf16.msra.mxu0 %v21313_v11  ;;  %19574 = vmatpush3.bf16.msra.mxu1 %v21314_v46  ;;  %v21337_v11 = vld [vmem:[%s26186_s14 + $0xa20] sm:$0xff]  }
0x3611   : > { %v24830_v16 = vpop.f32.mrf.mxu0  ;;  %v24832_v17 = vpop.f32.mrf.mxu1  ;;  %19553 = vmatprep.subr.bf16.mxu0 %v21315_v53  ;;  %19575 = vmatprep.subr.bf16.mxu1 %v21316_v55  ;;  %v21339_v53 = vld [vmem:[%s26186_s14 + $0xa58] sm:$0xff]  }
0x3612   : > { %v21340_v55 = vld [vmem:[%s26186_s14 + $0xad8] sm:$0xff]  }
0x3613   : > { %v10708_v0 = vpop.f32.mrf.mxu0  ;;  %v10749_v61 = vpop.f32.mrf.mxu1 }
0x3614   : > { %v10709_v14 = vadd.f32 %v10708_v0, %v10144_v40  ;;  %v10750_v35 = vadd.f32 %v10749_v61, %v10152_v7  ;;  %19554 = vmatpush3.bf16.msra.mxu0 %v21317_v8  ;;  %19576 = vmatpush3.bf16.msra.mxu1 %v21318_v10  ;;  %v21341_v8 = vld [vmem:[%s26186_s14 + $0xa18] sm:$0xff]   ;;  %v21346_v0 = vld [vmem:[%s26186_s14 + $0xa90] sm:$0xff]   ;;  %v21347_v61 = vld [vmem:[%s26186_s14 + $0xa48] sm:$0xff]  }
0x3615   : > { %v10710_v58 = vpop.f32.mrf.mxu0  ;;  %v10751_v29 = vpop.f32.mrf.mxu1  ;;  %19555 = vmatprep.subr.bf16.mxu0 %v21319_v18  ;;  %19577 = vmatprep.subr.bf16.mxu1 %v21320_v19  ;;  %v21342_v10 = vld [vmem:[%s26186_s14 + $0xa98] sm:$0xff]   ;;  %v21345_v18 = vld [vmem:[%s26186_s14 + $0xa10] sm:$0xff]   ;;  %v10140_v19 = vrot.slane %v24818_v57, %v22593_v59 }
0x3616   : > { %v10845_v32 = vmax.f32 %v10709_v14, 0.0  ;;  %v10847_v20 = vmax.f32 %v10750_v35, 0.0  ;;  %v10148_v14 = vrot.slane %v24818_v57, %v22596_v63  ;;  %v21348_v35 = vld [vmem:[%s26186_s14 + $0xac8] sm:$0xff]   ;;  %v21351_v29 = vld [vmem:[%s26186_s14 + $0xa40] sm:$0xff]  }
0x3617   : > { %v10711_v62 = vpop.f32.mrf.mxu0  ;;  %v10752_v4 = vpop.f32.mrf.mxu1  ;;  %v10707_v28 = vadd.f32 %v24830_v16, %v10140_v19  ;;  %v21350_v58 = vld [vmem:[%s26186_s14 + $0xa88] sm:$0xff]   ;;  %v21353_v16 = vld [vmem:[%s26186_s14 + $0xa00] sm:$0xff]  }
0x3618   : > { %19556 = vmatpush3.bf16.msra.mxu0 %v21321_v23  ;;  %19578 = vmatpush3.bf16.msra.mxu1 %v21322_v26  ;;  %v10861_v50 = vpack.c.bf16 %v10845_v32, %v10845_v32  ;;  %v10863_v39 = vpack.c.bf16 %v10847_v20, %v10847_v20  ;;  %v10160_v23 = vrot.slane %v24818_v57, %v22636_v33  ;;  %v21354_v4 = vld [vmem:[%s26186_s14 + $0xa80] sm:$0xff]   ;;  %v21379_v19 = vld [vmem:[%s26186_s14 + $0xb48] sm:$0xff]  }
0x3619   : > { %19585 = vmatprep.subr.bf16.mxu0 %v21323_v30  ;;  %19607 = vmatprep.subr.bf16.mxu1 %v21324_v48  ;;  %v10168_v26 = vrot.slane %v24818_v57, %v22639_v34  ;;  %v10748_v30 = vadd.f32 %v24832_v17, %v10148_v14  ;;  %v21352_v48 = vld [vmem:[%s26186_s14 + $0xac0] sm:$0xff]   ;;  %v10844_v62 = vmax.f32 %v10707_v28, 0.0  ;;  %v21355_v17 = vld [vmem:[%s26186_s14 + $0xb78] sm:$0xff]   ;;  %v21381_v14 = vld [vmem:[%s26186_s14 + $0xb08] sm:$0xff]  }
0x361b   : > { %12014 = vmatmul.mubr.bf16.vlgmr.msra.gmra.mxu0 %v10856_v36  ;;  %12054 = vmatmul.mubr.bf16.vlgmr.msra.gmra.mxu1 %v10858_v37  ;;  %v21356_v36 = vld [vmem:[%s26186_s14 + $0xbf8] sm:$0xff]  }
0x361c   : > { %19586 = vmatpush3.bf16.msra.mxu0 %v21325_v31  ;;  %12093 = vmatprep.mubr.bf16.mxu0 %v10861_v50  ;;  %v10846_v31 = vmax.f32 %v10748_v30, 0.0  ;;  %v21357_v50 = vld [vmem:[%s26186_s14 + $0xb38] sm:$0xff]  }
0x361d   : > { %19608 = vmatpush3.bf16.msra.mxu1 %v21326_v21  ;;  %12133 = vmatprep.mubr.bf16.mxu1 %v10863_v39 }
0x361e   : > { %19587 = vmatprep.subr.bf16.mxu0 %v21327_v38  ;;  %19609 = vmatprep.subr.bf16.mxu1 %v21328_v5  ;;  %v10860_v38 = vpack.c.bf16 %v10844_v62, %v10844_v62  ;;  %v21358_v5 = vld [vmem:[%s26186_s14 + $0xbb8] sm:$0xff]   ;;  %v10862_v39 = vpack.c.bf16 %v10846_v31, %v10846_v31 }
0x3620   : > { %19588 = vmatpush3.bf16.msra.mxu0 %v21329_v22  ;;  %v21359_v22 = vld [vmem:[%s26186_s14 + $0xb70] sm:$0xff]  }
0x3621   : > { %19610 = vmatpush3.bf16.msra.mxu1 %v21330_v56  ;;  %v24879_v24 = vpop.f32.mrf.mxu0  ;;  %v24881_v6 = vpop.f32.mrf.mxu1  ;;  %19589 = vmatprep.subr.bf16.mxu0 %v21331_v54  ;;  %v21360_v54 = vld [vmem:[%s26186_s14 + $0xbf0] sm:$0xff]  }
0x3622   : > { %19611 = vmatprep.subr.bf16.mxu1 %v21332_v13 }
0x3623   : > { %v10790_v25 = vpop.f32.mrf.mxu0  ;;  %v10831_v44 = vpop.f32.mrf.mxu1 }
0x3624   : > { %19590 = vmatpush3.bf16.msra.mxu0 %v21333_v41  ;;  %v10791_v32 = vadd.f32 %v10790_v25, %v10160_v23  ;;  %v10832_v20 = vadd.f32 %v10831_v44, %v10168_v26  ;;  %v21361_v41 = vld [vmem:[%s26186_s14 + $0xb30] sm:$0xff]   ;;  %v21365_v25 = vld [vmem:[%s26186_s14 + $0xb28] sm:$0xff]  }
0x3625   : > { %19612 = vmatpush3.bf16.msra.mxu1 %v21334_v42  ;;  %v10792_v46 = vpop.f32.mrf.mxu0  ;;  %v10833_v51 = vpop.f32.mrf.mxu1  ;;  %19591 = vmatprep.subr.bf16.mxu0 %v21335_v60  ;;  %v21362_v42 = vld [vmem:[%s26186_s14 + $0xbb0] sm:$0xff]   ;;  %v21363_v60 = vld [vmem:[%s26186_s14 + $0xb68] sm:$0xff]  }
0x3626   : > { %19613 = vmatprep.subr.bf16.mxu1 %v21336_v43  ;;  %v10849_v37 = vmax.f32 %v10791_v32, 0.0  ;;  %v10851_v21 = vmax.f32 %v10832_v20, 0.0  ;;  %v21364_v43 = vld [vmem:[%s26186_s14 + $0xbe8] sm:$0xff]   ;;  %v21368_v46 = vld [vmem:[%s26186_s14 + $0xbe0] sm:$0xff]  }
0x3627   : > { %v10793_v40 = vpop.f32.mrf.mxu0  ;;  %v10834_v7 = vpop.f32.mrf.mxu1  ;;  %v21366_v44 = vld [vmem:[%s26186_s14 + $0xba8] sm:$0xff]   ;;  %v21369_v51 = vld [vmem:[%s26186_s14 + $0xb20] sm:$0xff]  }
0x3628   : > { %19592 = vmatpush3.bf16.msra.mxu0 %v21337_v11  ;;  %v10865_v56 = vpack.c.bf16 %v10849_v37, %v10849_v37  ;;  %v10867_v13 = vpack.c.bf16 %v10851_v21, %v10851_v21  ;;  %v21367_v11 = vld [vmem:[%s26186_s14 + $0xb60] sm:$0xff]   ;;  %v21373_v40 = vld [vmem:[%s26186_s14 + $0xb18] sm:$0xff]   ;;  %v21382_v23 = vld [vmem:[%s26186_s14 + $0xb88] sm:$0xff]  }
0x3629   : > { %19614 = vmatpush3.bf16.msra.mxu1 %v21338_v52  ;;  %19593 = vmatprep.subr.bf16.mxu0 %v21339_v53  ;;  %v21370_v52 = vld [vmem:[%s26186_s14 + $0xba0] sm:$0xff]   ;;  %v21371_v53 = vld [vmem:[%s26186_s14 + $0xb58] sm:$0xff]  }
0x362a   : > { %19615 = vmatprep.subr.bf16.mxu1 %v21340_v55  ;;  %v21372_v55 = vld [vmem:[%s26186_s14 + $0xbd8] sm:$0xff]   ;;  %v18017_v20 = vld [vmem:[%s26187_s15 + $0x2] ss:$0 sm:$0xff] }
0x362b   : > { %v21374_v7 = vld [vmem:[%s26186_s14 + $0xb98] sm:$0xff]  }
0x362c   : > { %19594 = vmatpush3.bf16.msra.mxu0 %v21341_v8  ;;  %v21375_v8 = vld [vmem:[%s26186_s14 + $0xb50] sm:$0xff]  }
0x362d   : > { %19616 = vmatpush3.bf16.msra.mxu1 %v21342_v10  ;;  %19595 = vmatprep.subr.bf16.mxu0 %v21343_v15  ;;  %v21376_v10 = vld [vmem:[%s26186_s14 + $0xbd0] sm:$0xff]  }
0x362e   : > { %19617 = vmatprep.subr.bf16.mxu1 %v21344_v45  ;;  %v21377_v15 = vld [vmem:[%s26186_s14 + $0xb10] sm:$0xff]   ;;  %v10156_v45 = vrot.slane %v24818_v57, %v22682_v12 }
0x3630   : > { %19596 = vmatpush3.bf16.msra.mxu0 %v21345_v18  ;;  %v21378_v18 = vld [vmem:[%s26186_s14 + $0xb90] sm:$0xff]  }
0x3631   : > { %19618 = vmatpush3.bf16.msra.mxu1 %v21346_v0  ;;  %19597 = vmatprep.subr.bf16.mxu0 %v21347_v61  ;;  %v10164_v0 = vrot.slane %v24818_v57, %v22685_v9  ;;  %v21380_v61 = vld [vmem:[%s26186_s14 + $0xbc8] sm:$0xff]   ;;  %v21383_v57 = vld [vmem:[%s26186_s14 + $0xb40] sm:$0xff]  }
0x3632   : > { %19619 = vmatprep.subr.bf16.mxu1 %v21348_v35  ;;  %v10789_v35 = vadd.f32 %v24879_v24, %v10156_v45  ;;  %v21385_v24 = vld [vmem:[%s26186_s14 + $0xb00] sm:$0xff]  }
0x3633   : > { %v10830_v26 = vadd.f32 %v24881_v6, %v10164_v0 }
0x3634   : > { %19598 = vmatpush3.bf16.msra.mxu0 %v21349_v27  ;;  %v21384_v27 = vld [vmem:[%s26186_s14 + $0xbc0] sm:$0xff]   ;;  %v10848_v28 = vmax.f32 %v10789_v35, 0.0 }
0x3635   : > { %19620 = vmatpush3.bf16.msra.mxu1 %v21350_v58  ;;  %19599 = vmatprep.subr.bf16.mxu0 %v21351_v29  ;;  %v21386_v58 = vld [vmem:[%s26186_s14 + $0xb80] sm:$0xff]   ;;  %v10850_v29 = vmax.f32 %v10830_v26, 0.0 }
0x3636   : > { %19621 = vmatprep.subr.bf16.mxu1 %v21352_v48  ;;  %v10864_v6 = vpack.c.bf16 %v10848_v28, %v10848_v28 }
0x3637   : > { %v10866_v30 = vpack.c.bf16 %v10850_v29, %v10850_v29 }
0x3638   : > { %19600 = vmatpush3.bf16.msra.mxu0 %v21353_v16 }
0x3639   : > { %19622 = vmatpush3.bf16.msra.mxu1 %v21354_v4  ;;  %19629 = vmatprep.subr.bf16.mxu0 %v21355_v17 }
0x363a   : > { %19651 = vmatprep.subr.bf16.mxu1 %v21356_v36 }
0x363b   : > { %12094 = vmatmul.mubr.bf16.vlgmr.msra.gmra.mxu0 %v10860_v38 }
0x363c   : > { %12134 = vmatmul.mubr.bf16.vlgmr.msra.gmra.mxu1 %v10862_v39  ;;  %19630 = vmatpush3.bf16.msra.mxu0 %v21357_v50 }
0x363d   : > { %12173 = vmatprep.mubr.bf16.mxu0 %v10865_v56  ;;  %19652 = vmatpush3.bf16.msra.mxu1 %v21358_v5 }
0x363e   : > { %12213 = vmatprep.mubr.bf16.mxu1 %v10867_v13  ;;  %19631 = vmatprep.subr.bf16.mxu0 %v21359_v22 }
0x363f   : > { %19653 = vmatprep.subr.bf16.mxu1 %v21360_v54 }
0x3640   : > { %19632 = vmatpush3.bf16.msra.mxu0 %v21361_v41 }
0x3641   : > { %19654 = vmatpush3.bf16.msra.mxu1 %v21362_v42  ;;  %19633 = vmatprep.subr.bf16.mxu0 %v21363_v60 }
0x3642   : > { %19655 = vmatprep.subr.bf16.mxu1 %v21364_v43 }
0x3644   : > { %19634 = vmatpush3.bf16.msra.mxu0 %v21365_v25 }
0x3645   : > { %19656 = vmatpush3.bf16.msra.mxu1 %v21366_v44  ;;  %19635 = vmatprep.subr.bf16.mxu0 %v21367_v11 }
0x3646   : > { %19657 = vmatprep.subr.bf16.mxu1 %v21368_v46 }
0x3648   : > { %19636 = vmatpush3.bf16.msra.mxu0 %v21369_v51 }
0x3649   : > { %19658 = vmatpush3.bf16.msra.mxu1 %v21370_v52  ;;  %19637 = vmatprep.subr.bf16.mxu0 %v21371_v53 }
0x364a   : > { %19659 = vmatprep.subr.bf16.mxu1 %v21372_v55 }
0x364c   : > { %19638 = vmatpush3.bf16.msra.mxu0 %v21373_v40 }
0x364d   : > { %19660 = vmatpush3.bf16.msra.mxu1 %v21374_v7  ;;  %19639 = vmatprep.subr.bf16.mxu0 %v21375_v8 }
0x364e   : > { %19661 = vmatprep.subr.bf16.mxu1 %v21376_v10 }
0x3650   : > { %19640 = vmatpush3.bf16.msra.mxu0 %v21377_v15 }
0x3651   : > { %19662 = vmatpush3.bf16.msra.mxu1 %v21378_v18  ;;  %19641 = vmatprep.subr.bf16.mxu0 %v21379_v19 }
0x3652   : > { %19663 = vmatprep.subr.bf16.mxu1 %v21380_v61 }
0x3654   : > { %19642 = vmatpush3.bf16.msra.mxu0 %v21381_v14 }
0x3655   : > { %19664 = vmatpush3.bf16.msra.mxu1 %v21382_v23  ;;  %19643 = vmatprep.subr.bf16.mxu0 %v21383_v57 }
0x3656   : > { %19665 = vmatprep.subr.bf16.mxu1 %v21384_v27 }
0x3658   : > { %19644 = vmatpush3.bf16.msra.mxu0 %v21385_v24 }
0x3659   : > { %19666 = vmatpush3.bf16.msra.mxu1 %v21386_v58  ;;  %20583 = vmatprep.subr.bf16.mxu0 %v21709_v2 }
0x365a   : > { %20595 = vmatprep.subr.bf16.mxu1 %v21709_v2 }
0x365b   : > { %12174 = vmatmul.mubr.bf16.vlgmr.msra.gmra.mxu0 %v10864_v6 }
0x365c   : > { %12214 = vmatmul.mubr.bf16.vlgmr.msra.gmra.mxu1 %v10866_v30  ;;  %20591 = vmatprep.mubr.msk.bf16.mxu0 %vm21710_vm0, %v21709_v2 }
0x365d   : > { %20603 = vmatprep.mubr.msk.bf16.mxu1 %vm21710_vm0, %v21709_v2 }
0x36bb   : > { %v19513_v48 = vpop.f32.mrf.mxu0  ;;  %v19535_v32 = vpop.f32.mrf.mxu1 }
0x36bd   : > { %v19514_v16 = vpop.f32.mrf.mxu0  ;;  %v19536_v62 = vpop.f32.mrf.mxu1 }
0x36be   : > { %v19515_v4 = vadd.f32 %v19514_v16, %v19513_v48  ;;  %v19537_v17 = vadd.f32 %v19536_v62, %v19535_v32  ;;  %v21387_v16 = vld [vmem:[%s26223_s27 + $0x198] sm:$0xff]  }
0x36bf   : > { %v19516_v31 = vpop.f32.mrf.mxu0  ;;  %v19538_v36 = vpop.f32.mrf.mxu1  ;;  %v21388_v62 = vld [vmem:[%s26222_s1 + $0x198] sm:$0xff]   ;;  %20584 = vmatpush3.bf16.msra.mxu0 %v21387_v16 }
0x36c0   : > { %v11936_v37 = vadd.f32 %v19515_v4, %v18017_v20  ;;  %20596 = vmatpush3.bf16.msra.mxu1 %v21388_v62  ;;  %20585 = vmatprep.subr.bf16.mxu0 %v21709_v2  ;;  %v21390_v4 = vld [vmem:[%s26222_s1 + $0x190] sm:$0xff]   ;;  %v21392_v31 = vld [vmem:[%s26222_s1 + $0x188] sm:$0xff]   ;;  %v21393_v36 = vld [vmem:[%s26223_s27 + $0x180] sm:$0xff]  }
0x36c1   : > { %v19517_v21 = vpop.f32.mrf.mxu0  ;;  %v19539_v50 = vpop.f32.mrf.mxu1  ;;  %20597 = vmatprep.subr.bf16.mxu1 %v21709_v2 }
0x36c2   : > { %v11976_v38 = vadd.f32 %v19537_v17, %v11936_v37  ;;  %v21391_v17 = vld [vmem:[%s26223_s27 + $0x188] sm:$0xff]   ;;  %v21394_v37 = vld [vmem:[%s26222_s1 + $0x180] sm:$0xff]  }
0x36c4   : > { %20598 = vmatpush3.bf16.msra.mxu1 %v21390_v4 }
0x36c5   : > { %20599 = vmatprep.subr.bf16.mxu1 %v21709_v2 }
0x36c8   : > { %20600 = vmatpush3.bf16.msra.mxu1 %v21392_v31 }
0x36c9   : > { %20601 = vmatprep.subr.bf16.mxu1 %v21709_v2 }
0x36cc   : > { %20602 = vmatpush3.bf16.msra.mxu1 %v21394_v37 }
0x36cd   : > { %20619 = vmatprep.subr.bf16.mxu1 %v21709_v2 }
0x36db   : > { %v19557_v5 = vpop.f32.mrf.mxu0  ;;  %v19579_v39 = vpop.f32.mrf.mxu1 }
0x36dd   : > { %v19558_v22 = vpop.f32.mrf.mxu0  ;;  %v19580_v56 = vpop.f32.mrf.mxu1 }
0x36de   : > { %v19559_v53 = vadd.f32 %v19558_v22, %v19557_v5  ;;  %v19581_v40 = vadd.f32 %v19580_v56, %v19579_v39  ;;  %v18148_v39 = vld [vmem:[%s26188_s16 + $0x2] ss:$0 sm:$0xff] }
0x36df   : > { %v19560_v54 = vpop.f32.mrf.mxu0  ;;  %v19582_v13 = vpop.f32.mrf.mxu1  ;;  %v18149_v56 = vld [vmem:[%s26189_s17 + $0x2] ss:$0 sm:$0xff] }
0x36e0   : > { %v12016_v55 = vadd.f32 %v19559_v53, %v11976_v38  ;;  %v21404_v53 = vld [vmem:[%s26178_s6 + $0x1b0] sm:$0xff]  }
0x36e1   : > { %v19561_v41 = vpop.f32.mrf.mxu0  ;;  %v19583_v42 = vpop.f32.mrf.mxu1 }
0x36e2   : > { %v12056_v8 = vadd.f32 %v19581_v40, %v12016_v55  ;;  %v21395_v41 = vld [vmem:[%s26178_s6 + $0x198] sm:$0xff]   ;;  %v21405_v55 = vld [vmem:[%s26178_s6 + $0x1a8] sm:$0xff]   ;;  %v21406_v40 = vld [vmem:[%s26178_s6 + $0x1a0] sm:$0xff]  }
0x36fb   : > { %v19601_v60 = vpop.f32.mrf.mxu0 }
0x36fc   : > { %v19623_v43 = vpop.f32.mrf.mxu1 }
0x36fd   : > { %v19602_v25 = vpop.f32.mrf.mxu0 }
0x36fe   : > { %v19624_v44 = vpop.f32.mrf.mxu1  ;;  %v19603_v7 = vadd.f32 %v19602_v25, %v19601_v60  ;;  %v21396_v60 = vld [vmem:[%s26178_s6 + $0x190] sm:$0xff]   ;;  %v21398_v25 = vld [vmem:[%s26178_s6 + $0x180] sm:$0xff]  }
0x36ff   : > { %v19604_v11 = vpop.f32.mrf.mxu0  ;;  %v19625_v45 = vadd.f32 %v19624_v44, %v19623_v43  ;;  %v21397_v43 = vld [vmem:[%s26178_s6 + $0x188] sm:$0xff]   ;;  %v21399_v44 = vld [vmem:[%s26223_s27 + $0x1b8] sm:$0xff]  }
0x3700   : > { %v19626_v46 = vpop.f32.mrf.mxu1  ;;  %v12096_v10 = vadd.f32 %v19603_v7, %v12056_v8  ;;  %v21400_v11 = vld [vmem:[%s26223_s27 + $0x1b0] sm:$0xff]   ;;  %v18174_v7 = vld [vmem:[%s26177_s5 + $0xc] ss:$0 sm:$0xff] }
0x3701   : > { %v19605_v51 = vpop.f32.mrf.mxu0  ;;  %v21401_v46 = vld [vmem:[%s26223_s27 + $0x1a8] sm:$0xff]  }
0x3702   : > { %v19627_v52 = vpop.f32.mrf.mxu1  ;;  %v12136_v0 = vadd.f32 %v19625_v45, %v12096_v10  ;;  %v21402_v51 = vld [vmem:[%s26223_s27 + $0x1a0] sm:$0xff]  }
0x3703   : > { %v21403_v52 = vld [vmem:[%s26178_s6 + $0x1b8] sm:$0xff]  }
0x371b   : > { %v19645_v15 = vpop.f32.mrf.mxu0 }
0x371c   : > { %v19667_v18 = vpop.f32.mrf.mxu1 }
0x371d   : > { %v19646_v19 = vpop.f32.mrf.mxu0 }
0x371e   : > { %v19647_v61 = vadd.f32 %v19646_v19, %v19645_v15  ;;  %v19668_v14 = vpop.f32.mrf.mxu1 }
0x371f   : > { %v19648_v35 = vpop.f32.mrf.mxu0  ;;  %v19669_v57 = vadd.f32 %v19668_v14, %v19667_v18 }
0x3720   : > { %v12176_v23 = vadd.f32 %v19647_v61, %v12136_v0  ;;  %v19670_v26 = vpop.f32.mrf.mxu1  ;;  %v18159_v0 = vld [vmem:[%s26227_s26 + $0xc] ss:$0 sm:$0xff] }
0x3721   : > { %v19649_v27 = vpop.f32.mrf.mxu0 }
0x3722   : > { %v12216_v24 = vadd.f32 %v19669_v57, %v12176_v23  ;;  %v19671_v28 = vpop.f32.mrf.mxu1 }
0x3724   : > { %v12221_v58 = vadd.f32 %v12216_v24, %v24472_v49  ;;  %v21389_v49 = vld [vmem:[%s26223_s27 + $0x190] sm:$0xff]   ;;  %v18189_v24 = vld [vmem:[%s26179_s7 + $0xc] ss:$0 sm:$0xff] }
0x3725   : > { %20586 = vmatpush3.bf16.msra.mxu0 %v21389_v49 }
0x3726   : > { %v12226_v29 = vsel %vm670_vm1, %v12221_v58, 0.0  ;;  %20587 = vmatprep.subr.bf16.mxu0 %v21709_v2 }
0x3727   : > { %12227 = vadd.xlane.f32.xlu0 %v12226_v29 }
0x3729   : > { %20588 = vmatpush3.bf16.msra.mxu0 %v21391_v17 }
0x372a   : > { %20589 = vmatprep.subr.bf16.mxu0 %v21709_v2 }
0x372d   : > { %20590 = vmatpush3.bf16.msra.mxu0 %v21393_v36 }
0x372e   : > { %20607 = vmatprep.subr.bf16.mxu0 %v21709_v2 }
0x37b0   : > { %v12228_v6 = vpop.xlane.xlu0 %12227 }
0x37b1   : > { %v12229_v30 = vmul.f32 0.015625, %v12228_v6 }
0x37b3   : > { %v12230_v48 = vsub.f32 %v12221_v58, %v12229_v30 }
0x37b5   : > { %v12231_v32 = vmul.f32 %v12230_v48, %v12230_v48 }
0x37b7   : > { %v12232_v20 = vsel %vm670_vm1, %v12231_v32, 0.0 }
0x37b8   : > { %12233 = vadd.xlane.f32.xlu1 %v12232_v20 }
0x3841   : > { %v12234_v21 = vpop.xlane.xlu1 %12233 }
0x3842   : > { %v12235_v50 = vmul.f32 0.015625, %v12234_v21 }
0x3844   : > { %v12236_v38 = vadd.f32 1e-05, %v12235_v50 }
0x3846   : > { %21625 = vrsqrt.f32 %v12236_v38 }
0x3853   : > { %v21626_v5 = vpop.eup %21625 }
0x3854   : > { %v12238_v22 = vmul.f32 %v21626_v5, %v12230_v48 }
0x3856   : > { %v12245_v54 = vmul.f32 %v18148_v39, %v12238_v22 }
0x3858   : > { %v25108_v13 = vadd.f32 %v18149_v56, %v12245_v54 }
0x385a   : > { %v25115_v42 = vpack.c.bf16 %v25108_v13, %v25108_v13 }
0x385c   : > { %20592 = vmatmul.mubr.msk.bf16.vlgmr.msra.gmra.mxu0 %vm670_vm1, %v25115_v42  ;;  %20604 = vmatmul.mubr.msk.bf16.vlgmr.msra.gmra.mxu1 %vm670_vm1, %v25115_v42 }
0x385d   : > { %20608 = vmatpush3.bf16.msra.mxu0 %v21395_v41  ;;  %20615 = vmatprep.mubr.msk.bf16.mxu0 %vm21710_vm0, %v21709_v2 }
0x385e   : > { %20609 = vmatprep.subr.bf16.mxu0 %v21709_v2  ;;  %20621 = vmatprep.mubr.msk.bf16.mxu1 %vm21710_vm0, %v21709_v2 }
0x3861   : > { %20610 = vmatpush3.bf16.msra.mxu0 %v21396_v60 }
0x3862   : > { %20611 = vmatprep.subr.bf16.mxu0 %v21709_v2 }
0x3865   : > { %20612 = vmatpush3.bf16.msra.mxu0 %v21397_v43 }
0x3866   : > { %20613 = vmatprep.subr.bf16.mxu0 %v21709_v2 }
0x3869   : > { %20614 = vmatpush3.bf16.msra.mxu0 %v21398_v25 }
0x386a   : > { %20631 = vmatprep.subr.bf16.mxu0 %v21709_v2 }
0x386c   : > { %20616 = vmatmul.mubr.msk.bf16.vlgmr.msra.gmra.mxu0 %vm670_vm1, %v25115_v42 }
0x386d   : > { %20632 = vmatpush3.bf16.msra.mxu0 %v21399_v44  ;;  %20639 = vmatprep.mubr.msk.bf16.mxu0 %vm21710_vm0, %v21709_v2  ;;  %v21407_v44 = vld [vmem:[%s26222_s1 + $0x1b8] sm:$0xff]  }
0x386e   : > { %20633 = vmatprep.subr.bf16.mxu0 %v21709_v2 }
0x3871   : > { %20634 = vmatpush3.bf16.msra.mxu0 %v21400_v11 }
0x3872   : > { %20635 = vmatprep.subr.bf16.mxu0 %v21709_v2 }
0x3875   : > { %20636 = vmatpush3.bf16.msra.mxu0 %v21401_v46  ;;  %v21408_v46 = vld [vmem:[%s26222_s1 + $0x1b0] sm:$0xff]  }
0x3876   : > { %20637 = vmatprep.subr.bf16.mxu0 %v21709_v2 }
0x3879   : > { %20638 = vmatpush3.bf16.msra.mxu0 %v21402_v51  ;;  %v21409_v51 = vld [vmem:[%s26222_s1 + $0x1a8] sm:$0xff]  }
0x387a   : > { %20655 = vmatprep.subr.bf16.mxu0 %v21709_v2 }
0x387c   : > { %20640 = vmatmul.mubr.msk.bf16.vlgmr.msra.gmra.mxu0 %vm670_vm1, %v25115_v42 }
0x387d   : > { %20656 = vmatpush3.bf16.msra.mxu0 %v21403_v52  ;;  %20663 = vmatprep.mubr.msk.bf16.mxu0 %vm21710_vm0, %v21709_v2  ;;  %v21410_v52 = vld [vmem:[%s26222_s1 + $0x1a0] sm:$0xff]  }
0x387e   : > { %20657 = vmatprep.subr.bf16.mxu0 %v21709_v2 }
0x3881   : > { %20658 = vmatpush3.bf16.msra.mxu0 %v21404_v53 }
0x3882   : > { %20659 = vmatprep.subr.bf16.mxu0 %v21709_v2 }
0x3885   : > { %20660 = vmatpush3.bf16.msra.mxu0 %v21405_v55 }
0x3886   : > { %20661 = vmatprep.subr.bf16.mxu0 %v21709_v2 }
0x3889   : > { %20662 = vmatpush3.bf16.msra.mxu0 %v21406_v40 }
0x388a   : > { %20679 = vmatprep.subr.bf16.mxu0 %v21709_v2 }
0x388c   : > { %20664 = vmatmul.mubr.msk.bf16.vlgmr.msra.gmra.mxu0 %vm670_vm1, %v25115_v42 }
0x388d   : > { %20681 = vmatprep.mubr.msk.bf16.mxu0 %vm21710_vm0, %v21709_v2 }
0x391c   : > { %v12332_v8 = vpop.f32.mrf.mxu0  ;;  %v12413_v10 = vpop.f32.mrf.mxu1 }
0x391d   : > { %v12414_v15 = vadd.f32 %v18174_v7, %v12413_v10  ;;  %v12333_v26 = vadd.f32 %v18159_v0, %v12332_v8  ;;  %v18223_v8 = vld [vmem:[%s26177_s5 + $0xd] ss:$0 sm:$0xff] }
0x391e   : > { %v20593_v45 = vpop.f32.mrf.mxu0  ;;  %v20605_v18 = vpop.f32.mrf.mxu1  ;;  %v18208_v0 = vld [vmem:[%s26227_s26 + $0xd] ss:$0 sm:$0xff] }
0x391f   : > { %v12501_v19 = vpack.c.bf16 %v12414_v15, %v12414_v15  ;;  %v12500_v27 = vpack.c.bf16 %v12333_v26, %v12333_v26  ;;  %v18238_v45 = vld [vmem:[%s26179_s7 + $0xd] ss:$0 sm:$0xff] }
0x3920   : > { %v12335_v61 = vpop.f32.mrf.mxu0  ;;  %v12416_v14 = vpop.f32.mrf.mxu1 }
0x3921   : > { %v12506_v35 = vsel %vm874_vm2, %v12501_v19, 0 }
0x3922   : > { %v20594_v23 = vpop.f32.mrf.mxu0  ;;  %v20606_v57 = vpop.f32.mrf.mxu1  ;;  %20620 = vmatpush3.bf16.xpose.msra.mxu1 %v12506_v35 }
0x3923   : > { %20625 = vmatprep.subr.bf16.mxu1 %v21709_v2 }
0x3929   : > { %20622 = vmatmul.mubr.msk.bf16.vlgmr.msra.gmra.mxu1 %vm874_vm2, %v12500_v27 }
0x392a   : > { %20627 = vmatprep.mubr.msk.bf16.mxu1 %vm21710_vm0, %v21709_v2 }
0x392c   : > { %v12494_v28 = vpop.f32.mrf.mxu0 }
0x392d   : > { %v12495_v58 = vadd.f32 %v18189_v24, %v12494_v28 }
0x392e   : > { %v20617_v29 = vpop.f32.mrf.mxu0 }
0x392f   : > { %v12560_v6 = vpack.c.bf16 %v12495_v58, %v12495_v58 }
0x3930   : > { %v12497_v30 = vpop.f32.mrf.mxu0 }
0x3931   : > { %v12565_v48 = vsel %vm938_vm4, %v12560_v6, 0 }
0x3932   : > { %v20618_v32 = vpop.f32.mrf.mxu0  ;;  %20626 = vmatpush3.bf16.msra.mxu1 %v12565_v48 }
0x3933   : > { %20643 = vmatprep.subr.bf16.mxu1 %v21709_v2 }
0x393c   : > { %v12686_v20 = vpop.f32.mrf.mxu0 }
0x393d   : > { %v12687_v57 = vadd.f32 %v18208_v0, %v12686_v20  ;;  %v21424_v0 = vld [vmem:[%s26178_s6 + $0x1c0] sm:$0xff]  }
0x393e   : > { %v20641_v16 = vpop.f32.mrf.mxu0 }
0x393f   : > { %v12854_v27 = vpack.c.bf16 %v12687_v57, %v12687_v57 }
0x3940   : > { %v12689_v62 = vpop.f32.mrf.mxu0 }
0x3942   : > { %v20642_v49 = vpop.f32.mrf.mxu0 }
0x3943   : > { %v21416_v49 = vld [vmem:[%s26180_s8 + $0x68] sm:$0xff]  }
0x3944   : > { %20680 = vmatpush3.bf16.msra.mxu0 %v21416_v49 }
0x3945   : > { %20691 = vmatprep.subr.bf16.mxu0 %v21709_v2 }
0x394c   : > { %v12848_v4 = vpop.f32.mrf.mxu0 }
0x394d   : > { %v12849_v14 = vadd.f32 %v18238_v45, %v12848_v4 }
0x394e   : > { %v20665_v17 = vpop.f32.mrf.mxu0 }
0x394f   : > { %v12914_v26 = vpack.c.bf16 %v12849_v14, %v12849_v14 }
0x3950   : > { %v12851_v31 = vpop.f32.mrf.mxu0 }
0x3951   : > { %v12919_v24 = vsel %vm938_vm4, %v12914_v26, 0 }
0x3952   : > { %v20666_v36 = vpop.f32.mrf.mxu0 }
0x3953   : > { %v21411_v36 = vld [vmem:[%s26180_s8 + $0x60] sm:$0xff]  }
0x39e9   : > { %v12542_v37 = vpop.f32.mrf.mxu1 }
0x39ea   : > { %v12548_v21 = vsel %vm921_vm3, %v12542_v37, -inf }
0x39eb   : > { %12549 = vmax.xlane.f32.xlu0 %v12548_v21  ;;  %v20623_v50 = vpop.f32.mrf.mxu1  ;;  %v21412_v21 = vld [vmem:[%s26222_s1 + $0x1d8] sm:$0xff]  }
0x39ed   : > { %v12545_v38 = vpop.f32.mrf.mxu1 }
0x39ee   : > { %v21413_v38 = vld [vmem:[%s26222_s1 + $0x1d0] sm:$0xff]  }
0x39ef   : > { %v20624_v5 = vpop.f32.mrf.mxu1 }
0x39f0   : > { %v21414_v5 = vld [vmem:[%s26222_s1 + $0x1c8] sm:$0xff]  }
0x3a74   : > { %v12550_v39 = vpop.xlane.xlu0 %12549 }
0x3a75   : > { %v12551_v22 = vsub.f32 %v12542_v37, %v12550_v39  ;;  %v21415_v39 = vld [vmem:[%s26222_s1 + $0x1c0] sm:$0xff]  }
0x3a77   : > { %v12552_v56 = vmul.f32 1.442695, %v12551_v22 }
0x3a79   : > { %21627 = vpow2.f32 %v12552_v56  ;;  %v21417_v56 = vld [vmem:[%s26223_s27 + $0x1d8] sm:$0xff]  }
0x3a86   : > { %v21628_v54 = vpop.eup %21627 }
0x3a87   : > { %v12554_v41 = vsel %vm921_vm3, %v21628_v54, 0.0 }
0x3a88   : > { %12555 = vadd.xlane.f32.xlu1 %v12554_v41 }
0x3b11   : > { %v12556_v60 = vpop.xlane.xlu1 %12555 }
0x3b12   : > { %21629 = vrcp.f32 %v12556_v60 }
0x3b1f   : > { %v21630_v43 = vpop.eup %21629 }
0x3b20   : > { %v12558_v25 = vmul.f32 %v21630_v43, %v21628_v54  ;;  %v21418_v43 = vld [vmem:[%s26223_s27 + $0x1d0] sm:$0xff]  }
0x3b22   : > { %v12559_v11 = vpack.c.bf16 %v12558_v25, %v12558_v25 }
0x3b24   : > { %20628 = vmatmul.mubr.msk.bf16.vlgmr.msra.gmra.mxu1 %vm921_vm3, %v12559_v11  ;;  %v21419_v11 = vld [vmem:[%s26223_s27 + $0x1c8] sm:$0xff]  }
0x3b25   : > { %20644 = vmatpush3.bf16.msra.mxu1 %v21407_v44  ;;  %20651 = vmatprep.mubr.msk.bf16.mxu1 %vm21710_vm0, %v21709_v2 }
0x3b26   : > { %20645 = vmatprep.subr.bf16.mxu1 %v21709_v2 }
0x3b29   : > { %20646 = vmatpush3.bf16.msra.mxu1 %v21408_v46 }
0x3b2a   : > { %20647 = vmatprep.subr.bf16.mxu1 %v21709_v2 }
0x3b2d   : > { %20648 = vmatpush3.bf16.msra.mxu1 %v21409_v51 }
0x3b2e   : > { %20649 = vmatprep.subr.bf16.mxu1 %v21709_v2 }
0x3b31   : > { %20650 = vmatpush3.bf16.msra.mxu1 %v21410_v52  ;;  %v21420_v52 = vld [vmem:[%s26223_s27 + $0x1c0] sm:$0xff]  }
0x3b32   : > { %20667 = vmatprep.subr.bf16.mxu1 %v21709_v2 }
0x3b34   : > { %20652 = vmatmul.mubr.msk.bf16.vlgmr.msra.gmra.mxu1 %vm670_vm1, %v25115_v42 }
0x3b35   : > { %20669 = vmatprep.mubr.msk.bf16.mxu1 %vm21710_vm0, %v21709_v2 }
0x3be4   : > { %v12601_v53 = vpop.f32.mrf.mxu1 }
0x3be5   : > { %v12607_v50 = vpack.c.bf16 %v12601_v53, %v12601_v53 }
0x3be6   : > { %v20629_v55 = vpop.f32.mrf.mxu1 }
0x3be7   : > { %v21421_v55 = vld [vmem:[%s26178_s6 + $0x1d8] sm:$0xff]  }
0x3be8   : > { %v12604_v40 = vpop.f32.mrf.mxu1 }
0x3be9   : > { %v21422_v40 = vld [vmem:[%s26178_s6 + $0x1d0] sm:$0xff]  }
0x3bea   : > { %v20630_v7 = vpop.f32.mrf.mxu1 }
0x3beb   : > { %v18276_v7 = vld [vmem:[%s26177_s5 + $0xe] ss:$0 sm:$0xff] }
0x3bf4   : > { %v12767_v10 = vpop.f32.mrf.mxu1 }
0x3bf5   : > { %v12768_v15 = vadd.f32 %v18223_v8, %v12767_v10  ;;  %v21423_v10 = vld [vmem:[%s26178_s6 + $0x1c8] sm:$0xff]  }
0x3bf6   : > { %v20653_v18 = vpop.f32.mrf.mxu1 }
0x3bf7   : > { %v12855_v19 = vpack.c.bf16 %v12768_v15, %v12768_v15 }
0x3bf8   : > { %v12770_v61 = vpop.f32.mrf.mxu1 }
0x3bf9   : > { %v12860_v35 = vsel %vm874_vm2, %v12855_v19, 0 }
0x3bfa   : > { %v20654_v23 = vpop.f32.mrf.mxu1  ;;  %20668 = vmatpush3.bf16.xpose.msra.mxu1 %v12860_v35 }
0x3bfb   : > { %20673 = vmatprep.subr.bf16.mxu1 %v21709_v2 }
0x3c01   : > { %20670 = vmatmul.mubr.msk.bf16.vlgmr.msra.gmra.mxu1 %vm874_vm2, %v12854_v27  ;;  %v18261_v27 = vld [vmem:[%s26227_s26 + $0xe] ss:$0 sm:$0xff] }
0x3c02   : > { %20674 = vmatpush3.bf16.msra.mxu1 %v12919_v24  ;;  %20675 = vmatprep.mubr.msk.bf16.mxu1 %vm21710_vm0, %v21709_v2 }
0x3c03   : > { %20685 = vmatprep.subr.bf16.mxu1 %v21709_v2 }
0x3cc1   : > { %v12896_v28 = vpop.f32.mrf.mxu1 }
0x3cc2   : > { %v12902_v58 = vsel %vm921_vm3, %v12896_v28, -inf }
0x3cc3   : > { %12903 = vmax.xlane.f32.xlu0 %v12902_v58  ;;  %v20671_v29 = vpop.f32.mrf.mxu1 }
0x3cc5   : > { %v12899_v6 = vpop.f32.mrf.mxu1 }
0x3cc7   : > { %v20672_v30 = vpop.f32.mrf.mxu1 }
0x3d4c   : > { %v12904_v48 = vpop.xlane.xlu0 %12903 }
0x3d4d   : > { %v12905_v32 = vsub.f32 %v12896_v28, %v12904_v48  ;;  %v18291_v48 = vld [vmem:[%s26179_s7 + $0xe] ss:$0 sm:$0xff] }
0x3d4f   : > { %v12906_v20 = vmul.f32 1.442695, %v12905_v32 }
0x3d51   : > { %21631 = vpow2.f32 %v12906_v20 }
0x3d5e   : > { %v21632_v16 = vpop.eup %21631 }
0x3d5f   : > { %v12908_v62 = vsel %vm921_vm3, %v21632_v16, 0.0 }
0x3d60   : > { %12909 = vadd.xlane.f32.xlu1 %v12908_v62 }
0x3de9   : > { %v12910_v4 = vpop.xlane.xlu1 %12909 }
0x3dea   : > { %21633 = vrcp.f32 %v12910_v4 }
0x3df7   : > { %v21634_v17 = vpop.eup %21633 }
0x3df8   : > { %v12912_v31 = vmul.f32 %v21634_v17, %v21632_v16 }
0x3dfa   : > { %v12913_v37 = vpack.c.bf16 %v12912_v31, %v12912_v31 }
0x3dfc   : > { %20676 = vmatmul.mubr.msk.bf16.vlgmr.msra.gmra.mxu1 %vm921_vm3, %v12913_v37 }
0x3dfd   : > { %20686 = vmatpush3.bf16.msra.mxu1 %v21411_v36  ;;  %20687 = vmatprep.mubr.msk.bf16.mxu1 %vm21710_vm0, %v21709_v2 }
0x3dfe   : > { %20703 = vmatprep.subr.bf16.mxu1 %v21709_v2 }
0x3e04   : > { %20688 = vmatmul.mubr.msk.bf16.vlgmr.msra.gmra.mxu1 %vm874_vm2, %v12607_v50 }
0x3e05   : > { %20704 = vmatpush3.bf16.msra.mxu1 %v21412_v21  ;;  %20711 = vmatprep.mubr.msk.bf16.mxu1 %vm21710_vm0, %v21709_v2 }
0x3e06   : > { %20705 = vmatprep.subr.bf16.mxu1 %v21709_v2 }
0x3e09   : > { %20706 = vmatpush3.bf16.msra.mxu1 %v21413_v38 }
0x3e0a   : > { %20707 = vmatprep.subr.bf16.mxu1 %v21709_v2 }
0x3e0d   : > { %20708 = vmatpush3.bf16.msra.mxu1 %v21414_v5 }
0x3e0e   : > { %20709 = vmatprep.subr.bf16.mxu1 %v21709_v2 }
0x3e11   : > { %20710 = vmatpush3.bf16.msra.mxu1 %v21415_v39 }
0x3e12   : > { %20727 = vmatprep.subr.bf16.mxu1 %v21709_v2 }
0x3e14   : > { %20712 = vmatmul.mubr.msk.bf16.vlgmr.msra.gmra.mxu1 %vm670_vm1, %v25115_v42 }
0x3e15   : > { %20729 = vmatprep.mubr.msk.bf16.mxu1 %vm21710_vm0, %v21709_v2 }
0x3ebc   : > { %v12955_v22 = vpop.f32.mrf.mxu1 }
0x3ebd   : > { %v12961_v54 = vpack.c.bf16 %v12955_v22, %v12955_v22 }
0x3ebe   : > { %v20677_v41 = vpop.f32.mrf.mxu1 }
0x3ebf   : > { %20682 = vmatmul.mubr.msk.bf16.vlgmr.msra.gmra.mxu0 %vm874_vm2, %v12961_v54  ;;  %v21433_v54 = vld [vmem:[%s26180_s8 + $0x70] sm:$0xff]  }
0x3ec0   : > { %20692 = vmatpush3.bf16.msra.mxu0 %v21417_v56  ;;  %v12958_v60 = vpop.f32.mrf.mxu1  ;;  %20699 = vmatprep.mubr.msk.bf16.mxu0 %vm21710_vm0, %v21709_v2 }
0x3ec1   : > { %20693 = vmatprep.subr.bf16.mxu0 %v21709_v2 }
0x3ec2   : > { %v20678_v25 = vpop.f32.mrf.mxu1 }
0x3ec3   : > { %v21425_v25 = vld [vmem:[%s26223_s27 + $0x1f8] sm:$0xff]  }
0x3ec4   : > { %20694 = vmatpush3.bf16.msra.mxu0 %v21418_v43  ;;  %v25285_v44 = vpop.f32.mrf.mxu1 }
0x3ec5   : > { %20695 = vmatprep.subr.bf16.mxu0 %v21709_v2 }
0x3ec6   : > { %v20689_v46 = vpop.f32.mrf.mxu1 }
0x3ec7   : > { %v21426_v46 = vld [vmem:[%s26223_s27 + $0x1f0] sm:$0xff]  }
0x3ec8   : > { %20696 = vmatpush3.bf16.msra.mxu0 %v21419_v11  ;;  %v13060_v51 = vpop.f32.mrf.mxu1 }
0x3ec9   : > { %20697 = vmatprep.subr.bf16.mxu0 %v21709_v2  ;;  %v21427_v51 = vld [vmem:[%s26223_s27 + $0x1e8] sm:$0xff]  }
0x3eca   : > { %v20690_v53 = vpop.f32.mrf.mxu1 }
0x3ecb   : > { %v21429_v53 = vld [vmem:[%s26178_s6 + $0x1f8] sm:$0xff]  }
0x3ecc   : > { %20698 = vmatpush3.bf16.msra.mxu0 %v21420_v52  ;;  %v21428_v52 = vld [vmem:[%s26223_s27 + $0x1e0] sm:$0xff]  }
0x3ecd   : > { %20715 = vmatprep.subr.bf16.mxu0 %v21709_v2 }
0x3ecf   : > { %20700 = vmatmul.mubr.msk.bf16.vlgmr.msra.gmra.mxu0 %vm670_vm1, %v25115_v42 }
0x3ed0   : > { %20716 = vmatpush3.bf16.msra.mxu0 %v21421_v55  ;;  %20723 = vmatprep.mubr.msk.bf16.mxu0 %vm21710_vm0, %v21709_v2  ;;  %v21430_v55 = vld [vmem:[%s26178_s6 + $0x1f0] sm:$0xff]  }
0x3ed1   : > { %20717 = vmatprep.subr.bf16.mxu0 %v21709_v2 }
0x3ed4   : > { %v13219_v8 = vpop.f32.mrf.mxu1  ;;  %20718 = vmatpush3.bf16.msra.mxu0 %v21422_v40  ;;  %v21431_v40 = vld [vmem:[%s26178_s6 + $0x1e8] sm:$0xff]  }
0x3ed5   : > { %v13220_v15 = vadd.f32 %v18276_v7, %v13219_v8  ;;  %20719 = vmatprep.subr.bf16.mxu0 %v21709_v2  ;;  %v21432_v7 = vld [vmem:[%s26178_s6 + $0x1e0] sm:$0xff]  }
0x3ed6   : > { %v20713_v45 = vpop.f32.mrf.mxu1 }
0x3ed7   : > { %v13307_v18 = vpack.c.bf16 %v13220_v15, %v13220_v15 }
0x3ed8   : > { %v13222_v19 = vpop.f32.mrf.mxu1  ;;  %20720 = vmatpush3.bf16.msra.mxu0 %v21423_v10  ;;  %v21434_v10 = vld [vmem:[%s26222_s1 + $0x1f8] sm:$0xff]  }
0x3ed9   : > { %v13312_v61 = vsel %vm874_vm2, %v13307_v18, 0  ;;  %20721 = vmatprep.subr.bf16.mxu0 %v21709_v2  ;;  %v21435_v19 = vld [vmem:[%s26222_s1 + $0x1f0] sm:$0xff]  }
0x3eda   : > { %v20714_v14 = vpop.f32.mrf.mxu1  ;;  %20728 = vmatpush3.bf16.xpose.msra.mxu1 %v13312_v61  ;;  %v21436_v61 = vld [vmem:[%s26222_s1 + $0x1e8] sm:$0xff]  }
0x3edb   : > { %20733 = vmatprep.subr.bf16.mxu1 %v21709_v2  ;;  %v21437_v14 = vld [vmem:[%s26222_s1 + $0x1e0] sm:$0xff]  }
0x3edc   : > { %20722 = vmatpush3.bf16.msra.mxu0 %v21424_v0 }
0x3edd   : > { %20739 = vmatprep.subr.bf16.mxu0 %v21709_v2 }
0x3edf   : > { %20724 = vmatmul.mubr.msk.bf16.vlgmr.msra.gmra.mxu0 %vm670_vm1, %v25115_v42 }
0x3ee0   : > { %20741 = vmatprep.mubr.msk.bf16.mxu0 %vm21710_vm0, %v21709_v2  ;;  %20740 = vmatpush3.bf16.msra.mxu0 %v21433_v54 }
0x3ee1   : > { %20757 = vmatprep.subr.bf16.mxu0 %v21709_v2 }
0x3f7f   : > { %v25325_v35 = vpop.f32.mrf.mxu0 }
0x3f81   : > { %v20683_v23 = vpop.f32.mrf.mxu0 }
0x3f83   : > { %v13011_v57 = vpop.f32.mrf.mxu0 }
0x3f85   : > { %v20684_v26 = vpop.f32.mrf.mxu0 }
0x3f8f   : > { %v13138_v24 = vpop.f32.mrf.mxu0 }
0x3f90   : > { %v13139_v28 = vadd.f32 %v18261_v27, %v13138_v24 }
0x3f91   : > { %v20701_v58 = vpop.f32.mrf.mxu0 }
0x3f92   : > { %v13306_v29 = vpack.c.bf16 %v13139_v28, %v13139_v28 }
0x3f93   : > { %v13141_v6 = vpop.f32.mrf.mxu0 }
0x3f94   : > { %20730 = vmatmul.mubr.msk.bf16.vlgmr.msra.gmra.mxu1 %vm874_vm2, %v13306_v29  ;;  %v13058_v6 = vadd.f32 %v25285_v44, %v25325_v35  ;;  %v18312_v44 = vld [vmem:[%s26227_s26 + $0xf] ss:$0 sm:$0xff] }
0x3f95   : > { %v20702_v30 = vpop.f32.mrf.mxu0  ;;  %20735 = vmatprep.mubr.msk.bf16.mxu1 %vm21710_vm0, %v21709_v2 }
0x3f9f   : > { %v13300_v32 = vpop.f32.mrf.mxu0 }
0x3fa0   : > { %v13301_v20 = vadd.f32 %v18291_v48, %v13300_v32 }
0x3fa1   : > { %v20725_v16 = vpop.f32.mrf.mxu0 }
0x3fa2   : > { %v13366_v62 = vpack.c.bf16 %v13301_v20, %v13301_v20 }
0x3fa3   : > { %v13303_v49 = vpop.f32.mrf.mxu0 }
0x3fa4   : > { %v13371_v4 = vsel %vm938_vm4, %v13366_v62, 0 }
0x3fa5   : > { %v20726_v17 = vpop.f32.mrf.mxu0  ;;  %20734 = vmatpush3.bf16.msra.mxu1 %v13371_v4  ;;  %v18342_v4 = vld [vmem:[%s26179_s7 + $0xf] ss:$0 sm:$0xff] }
0x3fa6   : > { %20745 = vmatprep.subr.bf16.mxu1 %v21709_v2 }
0x4054   : > { %v13348_v31 = vpop.f32.mrf.mxu1 }
0x4055   : > { %v13354_v36 = vsel %vm921_vm3, %v13348_v31, -inf }
0x4056   : > { %13355 = vmax.xlane.f32.xlu0 %v13354_v36  ;;  %v20731_v37 = vpop.f32.mrf.mxu1 }
0x4058   : > { %v13351_v21 = vpop.f32.mrf.mxu1 }
0x405a   : > { %v20732_v50 = vpop.f32.mrf.mxu1 }
0x40df   : > { %v13356_v38 = vpop.xlane.xlu0 %13355 }
0x40e0   : > { %v13357_v5 = vsub.f32 %v13348_v31, %v13356_v38 }
0x40e2   : > { %v13358_v39 = vmul.f32 1.442695, %v13357_v5 }
0x40e4   : > { %21635 = vpow2.f32 %v13358_v39 }
0x40f1   : > { %v21636_v22 = vpop.eup %21635 }
0x40f2   : > { %v13360_v56 = vsel %vm921_vm3, %v21636_v22, 0.0 }
0x40f3   : > { %13361 = vadd.xlane.f32.xlu1 %v13360_v56 }
0x417c   : > { %v13362_v41 = vpop.xlane.xlu1 %13361 }
0x417d   : > { %21637 = vrcp.f32 %v13362_v41 }
0x418a   : > { %v21638_v60 = vpop.eup %21637 }
0x418b   : > { %v13364_v43 = vmul.f32 %v21638_v60, %v21636_v22 }
0x418d   : > { %v13365_v11 = vpack.c.bf16 %v13364_v43, %v13364_v43 }
0x418f   : > { %20736 = vmatmul.mubr.msk.bf16.vlgmr.msra.gmra.mxu1 %vm921_vm3, %v13365_v11 }
0x4190   : > { %20746 = vmatpush3.bf16.msra.mxu1 %v21425_v25  ;;  %20753 = vmatprep.mubr.msk.bf16.mxu1 %vm21710_vm0, %v21709_v2 }
0x4191   : > { %20747 = vmatprep.subr.bf16.mxu1 %v21709_v2 }
0x4194   : > { %20748 = vmatpush3.bf16.msra.mxu1 %v21426_v46 }
0x4195   : > { %20749 = vmatprep.subr.bf16.mxu1 %v21709_v2 }
0x4198   : > { %20750 = vmatpush3.bf16.msra.mxu1 %v21427_v51 }
0x4199   : > { %20751 = vmatprep.subr.bf16.mxu1 %v21709_v2 }
0x419c   : > { %20752 = vmatpush3.bf16.msra.mxu1 %v21428_v52 }
0x419d   : > { %20769 = vmatprep.subr.bf16.mxu1 %v21709_v2 }
0x419f   : > { %20754 = vmatmul.mubr.msk.bf16.vlgmr.msra.gmra.mxu1 %vm670_vm1, %v25115_v42 }
0x41a0   : > { %20770 = vmatpush3.bf16.msra.mxu1 %v21429_v53  ;;  %20777 = vmatprep.mubr.msk.bf16.mxu1 %vm21710_vm0, %v21709_v2 }
0x41a1   : > { %20771 = vmatprep.subr.bf16.mxu1 %v21709_v2 }
0x41a4   : > { %20772 = vmatpush3.bf16.msra.mxu1 %v21430_v55 }
0x41a5   : > { %20773 = vmatprep.subr.bf16.mxu1 %v21709_v2 }
0x41a8   : > { %20774 = vmatpush3.bf16.msra.mxu1 %v21431_v40 }
0x41a9   : > { %20775 = vmatprep.subr.bf16.mxu1 %v21709_v2 }
0x41ac   : > { %20776 = vmatpush3.bf16.msra.mxu1 %v21432_v7  ;;  %v21438_v7 = vld [vmem:[%s26180_s8 + $0x78] sm:$0xff]  }
0x41ad   : > { %20793 = vmatprep.subr.bf16.mxu1 %v21709_v2 }
0x41af   : > { %20778 = vmatmul.mubr.msk.bf16.vlgmr.msra.gmra.mxu1 %vm670_vm1, %v25115_v42 }
0x41b0   : > { %20795 = vmatprep.mubr.msk.bf16.mxu1 %vm21710_vm0, %v21709_v2  ;;  %20794 = vmatpush3.bf16.msra.mxu1 %v21438_v7  ;;  %v18411_v7 = vld [vmem:[%s26184_s12 + $0x798] sm:$0xff] }
0x424f   : > { %v13407_v8 = vpop.f32.mrf.mxu1 }
0x4250   : > { %v13413_v15 = vpack.c.bf16 %v13407_v8, %v13407_v8 }
0x4251   : > { %v20737_v45 = vpop.f32.mrf.mxu1 }
0x4252   : > { %20742 = vmatmul.mubr.msk.bf16.vlgmr.msra.gmra.mxu0 %vm874_vm2, %v13413_v15 }
0x4253   : > { %20758 = vmatpush3.bf16.msra.mxu0 %v21434_v10  ;;  %v13410_v18 = vpop.f32.mrf.mxu1  ;;  %20765 = vmatprep.mubr.msk.bf16.mxu0 %vm21710_vm0, %v21709_v2 }
0x4254   : > { %20759 = vmatprep.subr.bf16.mxu0 %v21709_v2 }
0x4255   : > { %v20738_v0 = vpop.f32.mrf.mxu1 }
0x4256   : > { %v18355_v0 = vld [vmem:[%s26181_s9 + $0x3] ss:$0 sm:$0xff] }
0x4257   : > { %20760 = vmatpush3.bf16.msra.mxu0 %v21435_v19 }
0x4258   : > { %20761 = vmatprep.subr.bf16.mxu0 %v21709_v2 }
0x425b   : > { %20762 = vmatpush3.bf16.msra.mxu0 %v21436_v61 }
0x425c   : > { %20763 = vmatprep.subr.bf16.mxu0 %v21709_v2 }
0x425f   : > { %v13542_v23 = vpop.f32.mrf.mxu1  ;;  %20764 = vmatpush3.bf16.msra.mxu0 %v21437_v14 }
0x4260   : > { %20781 = vmatprep.subr.bf16.mxu0 %v21709_v2  ;;  %v13543_v50 = vadd.f32 %v18312_v44, %v13542_v23 }
0x4261   : > { %v20755_v57 = vpop.f32.mrf.mxu1 }
0x4262   : > { %20766 = vmatmul.mubr.msk.bf16.vlgmr.msra.gmra.mxu0 %vm670_vm1, %v25115_v42  ;;  %v18327_v42 = vld [vmem:[%s26177_s5 + $0xf] ss:$0 sm:$0xff]  ;;  %v13710_v5 = vpack.c.bf16 %v13543_v50, %v13543_v50  ;;  %v18376_v50 = vld [vmem:[%s26184_s12 + $0x680] sm:$0xff] }
0x4263   : > { %v13545_v26 = vpop.f32.mrf.mxu1  ;;  %20783 = vmatprep.mubr.msk.bf16.mxu0 %vm21710_vm0, %v21709_v2 }
0x4265   : > { %v20756_v27 = vpop.f32.mrf.mxu1 }
0x426f   : > { %v13704_v24 = vpop.f32.mrf.mxu1 }
0x4270   : > { %v13705_v36 = vadd.f32 %v18342_v4, %v13704_v24  ;;  %v18392_v4 = vld [vmem:[%s26184_s12 + $0x700] sm:$0xff] }
0x4271   : > { %v20779_v28 = vpop.f32.mrf.mxu1 }
0x4272   : > { %v13770_v38 = vpack.c.bf16 %v13705_v36, %v13705_v36 }
0x4273   : > { %v13707_v58 = vpop.f32.mrf.mxu1 }
0x4274   : > { %v13775_v39 = vsel %vm938_vm4, %v13770_v38, 0  ;;  %v18384_v38 = vld [vmem:[%s26184_s12 + $0x6c0] sm:$0xff] }
0x4275   : > { %v20780_v29 = vpop.f32.mrf.mxu1 }
0x4312   : > { %v13460_v30 = vpop.f32.mrf.mxu0 }
0x4313   : > { %v13466_v48 = vadd.f32 %v13460_v30, %v13058_v6 }
0x4314   : > { %v20743_v32 = vpop.f32.mrf.mxu0 }
0x4315   : > { %v18409_v32 = vld [vmem:[%s26184_s12 + $0x788] sm:$0xff] }
0x4316   : > { %v13463_v20 = vpop.f32.mrf.mxu0 }
0x4318   : > { %v20744_v16 = vpop.f32.mrf.mxu0 }
0x4319   : > { %v18417_v16 = vld [vmem:[%s26184_s12 + $0x7c8] sm:$0xff] }
0x4322   : > { %v13623_v62 = vpop.f32.mrf.mxu0 }
0x4323   : > { %v13624_v49 = vadd.f32 %v18327_v42, %v13623_v62  ;;  %v18476_v62 = vcombine.low %v18409_v32, %v18417_v16 }
0x4324   : > { %v20767_v17 = vpop.f32.mrf.mxu0 }
0x4325   : > { %v13711_v31 = vpack.c.bf16 %v13624_v49, %v13624_v49  ;;  %v18477_v49 = vcombine.high %v18409_v32, %v18417_v16  ;;  %v18400_v17 = vld [vmem:[%s26184_s12 + $0x740] sm:$0xff]  ;;  %v18378_v32 = vld [vmem:[%s26184_s12 + $0x690] sm:$0xff]  ;;  %v18379_v16 = vld [vmem:[%s26184_s12 + $0x698] sm:$0xff] }
0x4326   : > { %v13626_v35 = vpop.f32.mrf.mxu0  ;;  %v18459_v44 = vcombine.high %v18392_v4, %v18400_v17  ;;  %v18458_v36 = vcombine.low %v18392_v4, %v18400_v17 }
0x4327   : > { %v13716_v37 = vsel %vm874_vm2, %v13711_v31, 0  ;;  %14435 = vmatprep.subr.bf16.mxu1 %v18477_v49  ;;  %v18393_v31 = vld [vmem:[%s26184_s12 + $0x708] sm:$0xff] }
0x4328   : > { %v20768_v21 = vpop.f32.mrf.mxu0  ;;  %20782 = vmatpush3.bf16.xpose.msra.mxu0 %v13716_v37  ;;  %v18401_v35 = vld [vmem:[%s26184_s12 + $0x748] sm:$0xff] }
0x4329   : > { %20787 = vmatprep.subr.bf16.mxu0 %v21709_v2  ;;  %v18460_v37 = vcombine.low %v18393_v31, %v18401_v35  ;;  %v18461_v21 = vcombine.high %v18393_v31, %v18401_v35  ;;  %v18362_v31 = vld [vmem:[%s26184_s12 + $0x610] sm:$0xff]  ;;  %v18363_v35 = vld [vmem:[%s26184_s12 + $0x618] sm:$0xff] }
0x432f   : > { %20784 = vmatmul.mubr.msk.bf16.vlgmr.msra.gmra.mxu0 %vm874_vm2, %v13710_v5  ;;  %v18377_v5 = vld [vmem:[%s26184_s12 + $0x688] sm:$0xff] }
0x4330   : > { %20788 = vmatpush3.bf16.msra.mxu0 %v13775_v39  ;;  %20789 = vmatprep.mubr.msk.bf16.mxu0 %vm21710_vm0, %v21709_v2  ;;  %v18443_v39 = vcombine.high %v18376_v50, %v18384_v38 }
0x43ef   : > { %v13752_v22 = vpop.f32.mrf.mxu0 }
0x43f0   : > { %v13758_v56 = vsel %vm921_vm3, %v13752_v22, -inf }
0x43f1   : > { %13759 = vmax.xlane.f32.xlu0 %v13758_v56  ;;  %v20785_v54 = vpop.f32.mrf.mxu0  ;;  %v18442_v56 = vcombine.low %v18376_v50, %v18384_v38 }
0x43f3   : > { %v13755_v41 = vpop.f32.mrf.mxu0 }
0x43f5   : > { %v20786_v60 = vpop.f32.mrf.mxu0 }
0x43f6   : > { %v18360_v60 = vld [vmem:[%s26184_s12 + $0x600] sm:$0xff] }
0x447a   : > { %v13760_v43 = vpop.xlane.xlu0 %13759 }
0x447b   : > { %v13761_v25 = vsub.f32 %v13752_v22, %v13760_v43  ;;  %v18385_v22 = vld [vmem:[%s26184_s12 + $0x6c8] sm:$0xff]  ;;  %v18368_v43 = vld [vmem:[%s26184_s12 + $0x640] sm:$0xff] }
0x447c   : > { %v18444_v54 = vcombine.low %v18377_v5, %v18385_v22  ;;  %v18445_v41 = vcombine.high %v18377_v5, %v18385_v22  ;;  %v18412_v5 = vld [vmem:[%s26184_s12 + $0x7a0] sm:$0xff]  ;;  %v18413_v22 = vld [vmem:[%s26184_s12 + $0x7a8] sm:$0xff] }
0x447d   : > { %v13762_v11 = vmul.f32 1.442695, %v13761_v25  ;;  %v18361_v25 = vld [vmem:[%s26184_s12 + $0x608] sm:$0xff] }
0x447f   : > { %21639 = vpow2.f32 %v13762_v11  ;;  %v18427_v11 = vcombine.high %v18360_v60, %v18368_v43 }
0x448c   : > { %v21640_v46 = vpop.eup %21639 }
0x448d   : > { %v13764_v51 = vsel %vm921_vm3, %v21640_v46, 0.0 }
0x448e   : > { %13765 = vadd.xlane.f32.xlu1 %v13764_v51  ;;  %v18426_v51 = vcombine.low %v18360_v60, %v18368_v43 }
0x4517   : > { %v13766_v52 = vpop.xlane.xlu1 %13765 }
0x4518   : > { %21641 = vrcp.f32 %v13766_v52 }
0x4525   : > { %v21642_v53 = vpop.eup %21641 }
0x4526   : > { %v13768_v55 = vmul.f32 %v21642_v53, %v21640_v46  ;;  %v18369_v46 = vld [vmem:[%s26184_s12 + $0x648] sm:$0xff] }
0x4527   : > { %v18428_v52 = vcombine.low %v18361_v25, %v18369_v46  ;;  %v18429_v53 = vcombine.high %v18361_v25, %v18369_v46  ;;  %v18396_v25 = vld [vmem:[%s26184_s12 + $0x720] sm:$0xff]  ;;  %v18397_v46 = vld [vmem:[%s26184_s12 + $0x728] sm:$0xff] }
0x4528   : > { %v13769_v40 = vpack.c.bf16 %v13768_v55, %v13768_v55  ;;  %v18410_v55 = vld [vmem:[%s26184_s12 + $0x790] sm:$0xff] }
0x452a   : > { %20790 = vmatmul.mubr.msk.bf16.vlgmr.msra.gmra.mxu0 %vm921_vm3, %v13769_v40  ;;  %v18418_v40 = vld [vmem:[%s26184_s12 + $0x7d0] sm:$0xff] }
0x452b   : > { %14418 = vmatprep.mubr.bf16.mxu0 %v21711_v47 }
0x45ea   : > { %v13811_v8 = vpop.f32.mrf.mxu0 }
0x45eb   : > { %v13817_v10 = vpack.c.bf16 %v13811_v8, %v13811_v8  ;;  %v18479_v8 = vcombine.high %v18410_v55, %v18418_v40 }
0x45ec   : > { %v20791_v15 = vpop.f32.mrf.mxu0 }
0x45ed   : > { %20796 = vmatmul.mubr.msk.bf16.vlgmr.msra.gmra.mxu1 %vm874_vm2, %v13817_v10  ;;  %v18419_v10 = vld [vmem:[%s26184_s12 + $0x7d8] sm:$0xff]  ;;  %v18478_v15 = vcombine.low %v18410_v55, %v18418_v40 }
0x45ee   : > { %v13814_v45 = vpop.f32.mrf.mxu0  ;;  %14459 = vmatprep.mubr.bf16.mxu1 %v21711_v47  ;;  %14436 = vmatpush1.bf16.msra.mxu1 %v18476_v62 }
0x45ef   : > { %14437 = vmatprep.subr.bf16.mxu1 %v18461_v21  ;;  %v18480_v45 = vcombine.low %v18411_v7, %v18419_v10 }
0x45f0   : > { %v20792_v18 = vpop.f32.mrf.mxu0 }
0x45f1   : > { %v18481_v18 = vcombine.high %v18411_v7, %v18419_v10  ;;  %v18380_v7 = vld [vmem:[%s26184_s12 + $0x6a0] sm:$0xff]  ;;  %v18381_v10 = vld [vmem:[%s26184_s12 + $0x6a8] sm:$0xff] }
0x45f2   : > { %14438 = vmatpush1.bf16.msra.mxu1 %v18460_v37 }
0x45f3   : > { %14439 = vmatprep.subr.bf16.mxu1 %v18445_v41 }
0x45f6   : > { %14440 = vmatpush1.bf16.msra.mxu1 %v18444_v54 }
0x45f7   : > { %14441 = vmatprep.subr.bf16.mxu1 %v18429_v53 }
0x45fa   : > { %14442 = vmatpush1.bf16.msra.mxu1 %v18428_v52 }
0x45fb   : > { %14517 = vmatprep.subr.bf16.mxu1 %v18481_v18 }
0x46ad   : > { %v13864_v19 = vpop.f32.mrf.mxu1 }
0x46ae   : > { %v13870_v61 = vadd.f32 %v13864_v19, %v13466_v48  ;;  %v18408_v48 = vld [vmem:[%s26184_s12 + $0x780] sm:$0xff] }
0x46af   : > { %v20797_v14 = vpop.f32.mrf.mxu1 }
0x46b0   : > { %v13879_v23 = vadd.f32 %v18355_v0, %v13870_v61 }
0x46b1   : > { %v13867_v57 = vpop.f32.mrf.mxu1 }
0x46b2   : > { %v13880_v26 = vadd.f32 %v13879_v23, %v25108_v13  ;;  %v18416_v13 = vld [vmem:[%s26184_s12 + $0x7c0] sm:$0xff] }
0x46b3   : > { %v20798_v27 = vpop.f32.mrf.mxu1  ;;  %v18475_v20 = vcombine.high %v18408_v48, %v18416_v13  ;;  %v18474_v42 = vcombine.low %v18408_v48, %v18416_v13  ;;  %v18358_v23 = vld [vmem:[%s26182_s10 + $0x3] ss:$0 sm:$0xff] }
0x46b4   : > { %v13885_v24 = vsel %vm670_vm1, %v13880_v26, 0.0 }
0x46b5   : > { %13886 = vadd.xlane.f32.xlu0 %v13885_v24  ;;  %14394 = vmatprep.subr.bf16.mxu0 %v18475_v20  ;;  %v18394_v24 = vld [vmem:[%s26184_s12 + $0x710] sm:$0xff] }
0x46b6   : > { %14395 = vmatpush1.bf16.msra.mxu0 %v18474_v42  ;;  %v18386_v20 = vld [vmem:[%s26184_s12 + $0x6d0] sm:$0xff]  ;;  %v18387_v42 = vld [vmem:[%s26184_s12 + $0x6d8] sm:$0xff] }
0x46b7   : > { %14396 = vmatprep.subr.bf16.mxu0 %v18459_v44  ;;  %v18447_v4 = vcombine.high %v18378_v32, %v18386_v20  ;;  %v18449_v17 = vcombine.high %v18379_v16, %v18387_v42  ;;  %v18370_v44 = vld [vmem:[%s26184_s12 + $0x650] sm:$0xff]  ;;  %v18446_v37 = vcombine.low %v18378_v32, %v18386_v20  ;;  %v18448_v21 = vcombine.low %v18379_v16, %v18387_v42 }
0x46b8   : > { %v18431_v50 = vcombine.high %v18362_v31, %v18370_v44  ;;  %v18430_v54 = vcombine.low %v18362_v31, %v18370_v44 }
0x46ba   : > { %14397 = vmatpush1.bf16.msra.mxu0 %v18458_v36  ;;  %v18371_v36 = vld [vmem:[%s26184_s12 + $0x658] sm:$0xff] }
0x46bb   : > { %14398 = vmatprep.subr.bf16.mxu0 %v18443_v39  ;;  %v18433_v38 = vcombine.high %v18363_v35, %v18371_v36  ;;  %v18420_v39 = vld [vmem:[%s26184_s12 + $0x7e0] sm:$0xff]  ;;  %v18432_v41 = vcombine.low %v18363_v35, %v18371_v36 }
0x46bc   : > { %v18483_v60 = vcombine.high %v18412_v5, %v18420_v39  ;;  %v18482_v52 = vcombine.low %v18412_v5, %v18420_v39 }
0x46be   : > { %14399 = vmatpush1.bf16.msra.mxu0 %v18442_v56  ;;  %v18421_v56 = vld [vmem:[%s26184_s12 + $0x7e8] sm:$0xff] }
0x46bf   : > { %14400 = vmatprep.subr.bf16.mxu0 %v18427_v11  ;;  %v18485_v43 = vcombine.high %v18413_v22, %v18421_v56  ;;  %v18404_v11 = vld [vmem:[%s26184_s12 + $0x760] sm:$0xff]  ;;  %v18484_v53 = vcombine.low %v18413_v22, %v18421_v56 }
0x46c0   : > { %v18467_v55 = vcombine.high %v18396_v25, %v18404_v11 }
0x46c2   : > { %14401 = vmatpush1.bf16.msra.mxu0 %v18426_v51  ;;  %v18405_v51 = vld [vmem:[%s26184_s12 + $0x768] sm:$0xff] }
0x46c3   : > { %14476 = vmatprep.subr.bf16.mxu0 %v18479_v8  ;;  %v18469_v40 = vcombine.high %v18397_v46, %v18405_v51  ;;  %v18388_v8 = vld [vmem:[%s26184_s12 + $0x6e0] sm:$0xff]  ;;  %v18468_v18 = vcombine.low %v18397_v46, %v18405_v51 }
0x473e   : > { %v13887_v28 = vpop.xlane.xlu0 %13886 }
0x473f   : > { %v13888_v58 = vmul.f32 0.015625, %v13887_v28  ;;  %v18402_v28 = vld [vmem:[%s26184_s12 + $0x750] sm:$0xff] }
0x4740   : > { %v18463_v48 = vcombine.high %v18394_v24, %v18402_v28  ;;  %v18462_v62 = vcombine.low %v18394_v24, %v18402_v28 }
0x4741   : > { %v25441_v29 = vsub.f32 %v13880_v26, %v13888_v58  ;;  %v18359_v26 = vld [vmem:[%s26183_s11 + $0x3] ss:$0 sm:$0xff]  ;;  %v18395_v58 = vld [vmem:[%s26184_s12 + $0x718] sm:$0xff] }
0x4743   : > { %v13890_v6 = vmul.f32 %v25441_v29, %v25441_v29 }
0x4745   : > { %v13891_v30 = vsel %vm670_vm1, %v13890_v6, 0.0 }
0x4746   : > { %13892 = vadd.xlane.f32.xlu1 %v13891_v30 }
0x47cf   : > { %v13893_v19 = vpop.xlane.xlu1 %13892 }
0x47d0   : > { %v13894_v0 = vmul.f32 0.015625, %v13893_v19  ;;  %v18451_v19 = vcombine.high %v18380_v7, %v18388_v8 }
0x47d2   : > { %v13895_v61 = vadd.f32 1e-05, %v13894_v0 }
0x47d4   : > { %21643 = vrsqrt.f32 %v13895_v61  ;;  %v18364_v61 = vld [vmem:[%s26184_s12 + $0x620] sm:$0xff] }
0x47e1   : > { %v21644_v14 = vpop.eup %21643 }
0x47e2   : > { %v13897_v57 = vmul.f32 %v21644_v14, %v25441_v29  ;;  %v18403_v29 = vld [vmem:[%s26184_s12 + $0x758] sm:$0xff]  ;;  %v18372_v14 = vld [vmem:[%s26184_s12 + $0x660] sm:$0xff] }
0x47e3   : > { %v18465_v13 = vcombine.high %v18395_v58, %v18403_v29  ;;  %v18464_v49 = vcombine.low %v18395_v58, %v18403_v29  ;;  %v18435_v24 = vcombine.high %v18364_v61, %v18372_v14  ;;  %v18414_v58 = vld [vmem:[%s26184_s12 + $0x7b0] sm:$0xff]  ;;  %v18434_v32 = vcombine.low %v18364_v61, %v18372_v14  ;;  %v21451_v61 = vld [vmem:[%s26186_s14 + $0xc60] sm:$0xff]  }
0x47e4   : > { %v13904_v27 = vmul.f32 %v18358_v23, %v13897_v57  ;;  %v18365_v23 = vld [vmem:[%s26184_s12 + $0x628] sm:$0xff]  ;;  %v18422_v29 = vld [vmem:[%s26184_s12 + $0x7f0] sm:$0xff]  ;;  %v21452_v14 = vld [vmem:[%s26186_s14 + $0xce0] sm:$0xff]  }
0x47e5   : > { %v18373_v57 = vld [vmem:[%s26184_s12 + $0x668] sm:$0xff]  ;;  %v18487_v16 = vcombine.high %v18414_v58, %v18422_v29  ;;  %v18486_v31 = vcombine.low %v18414_v58, %v18422_v29  ;;  %v21459_v58 = vld [vmem:[%s26186_s14 + $0xc50] sm:$0xff]  }
0x47e6   : > { %v25525_v6 = vadd.f32 %v18359_v26, %v13904_v27  ;;  %v18450_v26 = vcombine.low %v18380_v7, %v18388_v8  ;;  %v18437_v28 = vcombine.high %v18365_v23, %v18373_v57  ;;  %v18436_v20 = vcombine.low %v18365_v23, %v18373_v57  ;;  %v21442_v7 = vld [vmem:[%s26186_s14 + $0xcb8] sm:$0xff]   ;;  %v21443_v8 = vld [vmem:[%s26186_s14 + $0xc70] sm:$0xff]   ;;  %v21453_v23 = vld [vmem:[%s26186_s14 + $0xc20] sm:$0xff]  }
0x47e7   : > { %v21454_v57 = vld [vmem:[%s26186_s14 + $0xca0] sm:$0xff]   ;;  %v21460_v29 = vld [vmem:[%s26186_s14 + $0xcd0] sm:$0xff]  }
0x47e8   : > { %v25529_v30 = vpack.c.bf16 %v25525_v6, %v25525_v6 }
0x47ea   : > { %18490 = vmatmul.mubr.msk.bf16.vlgmr.msra.gmra.mxu0 %vm670_vm1, %v25529_v30  ;;  %18491 = vmatmul.mubr.msk.bf16.vlgmr.msra.gmra.mxu1 %vm670_vm1, %v25529_v30 }
0x47eb   : > { %14477 = vmatpush1.bf16.msra.mxu0 %v18478_v15  ;;  %14518 = vmatpush1.bf16.msra.mxu1 %v18480_v45  ;;  %v18389_v15 = vld [vmem:[%s26184_s12 + $0x6e8] sm:$0xff]  ;;  %v18466_v45 = vcombine.low %v18396_v25, %v18404_v11 }
0x47ec   : > { %14478 = vmatprep.subr.bf16.mxu0 %v18463_v48  ;;  %14519 = vmatprep.subr.bf16.mxu1 %v18465_v13  ;;  %v18453_v0 = vcombine.high %v18381_v10, %v18389_v15  ;;  %v18452_v27 = vcombine.low %v18381_v10, %v18389_v15  ;;  %v18415_v48 = vld [vmem:[%s26184_s12 + $0x7b8] sm:$0xff]  ;;  %v21444_v10 = vld [vmem:[%s26186_s14 + $0xcf0] sm:$0xff]  }
0x47ed   : > { %14500 = vmatprep.mubr.bf16.mxu0 %v21711_v47  ;;  %14541 = vmatprep.mubr.bf16.mxu1 %v21711_v47  ;;  %v18423_v13 = vld [vmem:[%s26184_s12 + $0x7f8] sm:$0xff]  ;;  %v21445_v15 = vld [vmem:[%s26186_s14 + $0xc30] sm:$0xff]  }
0x47ee   : > { %v18489_v42 = vcombine.high %v18415_v48, %v18423_v13  ;;  %v18488_v44 = vcombine.low %v18415_v48, %v18423_v13  ;;  %v21461_v48 = vld [vmem:[%s26186_s14 + $0xc10] sm:$0xff]  }
0x47ef   : > { %14479 = vmatpush1.bf16.msra.mxu0 %v18462_v62  ;;  %14520 = vmatpush1.bf16.msra.mxu1 %v18464_v49  ;;  %v18398_v62 = vld [vmem:[%s26184_s12 + $0x730] sm:$0xff] }
0x47f0   : > { %14480 = vmatprep.subr.bf16.mxu0 %v18447_v4  ;;  %14521 = vmatprep.subr.bf16.mxu1 %v18449_v17  ;;  %v18406_v49 = vld [vmem:[%s26184_s12 + $0x770] sm:$0xff]  ;;  %v18399_v4 = vld [vmem:[%s26184_s12 + $0x738] sm:$0xff] }
0x47f1   : > { %v18407_v17 = vld [vmem:[%s26184_s12 + $0x778] sm:$0xff]  ;;  %v18471_v35 = vcombine.high %v18398_v62, %v18406_v49  ;;  %v18470_v5 = vcombine.low %v18398_v62, %v18406_v49  ;;  %v21462_v13 = vld [vmem:[%s26186_s14 + $0xc90] sm:$0xff]   ;;  %v21467_v62 = vld [vmem:[%s26186_s14 + $0xc40] sm:$0xff]  }
0x47f2   : > { %v18473_v36 = vcombine.high %v18399_v4, %v18407_v17  ;;  %v18472_v39 = vcombine.low %v18399_v4, %v18407_v17  ;;  %v21468_v49 = vld [vmem:[%s26186_s14 + $0xcc0] sm:$0xff]  }
0x47f3   : > { %14481 = vmatpush1.bf16.msra.mxu0 %v18446_v37  ;;  %14522 = vmatpush1.bf16.msra.mxu1 %v18448_v21  ;;  %v18382_v37 = vld [vmem:[%s26184_s12 + $0x6b0] sm:$0xff]  ;;  %v21469_v4 = vld [vmem:[%s26186_s14 + $0xc00] sm:$0xff]  }
0x47f4   : > { %14482 = vmatprep.subr.bf16.mxu0 %v18431_v50  ;;  %14523 = vmatprep.subr.bf16.mxu1 %v18433_v38  ;;  %v18390_v21 = vld [vmem:[%s26184_s12 + $0x6f0] sm:$0xff]  ;;  %v18383_v50 = vld [vmem:[%s26184_s12 + $0x6b8] sm:$0xff]  ;;  %v21470_v17 = vld [vmem:[%s26186_s14 + $0xc80] sm:$0xff]  }
0x47f5   : > { %v18391_v38 = vld [vmem:[%s26184_s12 + $0x6f8] sm:$0xff]  ;;  %v18455_v22 = vcombine.high %v18382_v37, %v18390_v21  ;;  %v18454_v25 = vcombine.low %v18382_v37, %v18390_v21 }
0x47f6   : > { %v18457_v56 = vcombine.high %v18383_v50, %v18391_v38  ;;  %v18456_v11 = vcombine.low %v18383_v50, %v18391_v38 }
0x47f7   : > { %14483 = vmatpush1.bf16.msra.mxu0 %v18430_v54  ;;  %14524 = vmatpush1.bf16.msra.mxu1 %v18432_v41  ;;  %v18366_v54 = vld [vmem:[%s26184_s12 + $0x630] sm:$0xff] }
0x47f8   : > { %14558 = vmatprep.subr.bf16.mxu0 %v18483_v60  ;;  %14599 = vmatprep.subr.bf16.mxu1 %v18485_v43  ;;  %v18374_v41 = vld [vmem:[%s26184_s12 + $0x670] sm:$0xff]  ;;  %v18367_v60 = vld [vmem:[%s26184_s12 + $0x638] sm:$0xff] }
0x47f9   : > { %v18375_v43 = vld [vmem:[%s26184_s12 + $0x678] sm:$0xff]  ;;  %v18439_v46 = vcombine.high %v18366_v54, %v18374_v41 }
0x47fa   : > { %18492 = vmatmul.mubr.msk.bf16.vlgmr.msra.gmra.mxu0 %vm670_vm1, %v25529_v30  ;;  %18493 = vmatmul.mubr.msk.bf16.vlgmr.msra.gmra.mxu1 %vm670_vm1, %v25529_v30  ;;  %v18441_v51 = vcombine.high %v18367_v60, %v18375_v43 }
0x47fb   : > { %14559 = vmatpush1.bf16.msra.mxu0 %v18482_v52  ;;  %14600 = vmatpush1.bf16.msra.mxu1 %v18484_v53  ;;  %v18438_v52 = vcombine.low %v18366_v54, %v18374_v41  ;;  %v18440_v53 = vcombine.low %v18367_v60, %v18375_v43 }
0x47fc   : > { %14560 = vmatprep.subr.bf16.mxu0 %v18467_v55  ;;  %14601 = vmatprep.subr.bf16.mxu1 %v18469_v40  ;;  %v21439_v55 = vld [vmem:[%s26186_s14 + $0xc78] sm:$0xff]  }
0x47fd   : > { %14582 = vmatprep.mubr.bf16.mxu0 %v21711_v47  ;;  %14623 = vmatprep.mubr.bf16.mxu1 %v21711_v47  ;;  %v21441_v40 = vld [vmem:[%s26186_s14 + $0xc38] sm:$0xff]  }
0x47ff   : > { %14561 = vmatpush1.bf16.msra.mxu0 %v18466_v45  ;;  %14602 = vmatpush1.bf16.msra.mxu1 %v18468_v18  ;;  %v21446_v45 = vld [vmem:[%s26186_s14 + $0xcb0] sm:$0xff]   ;;  %v21447_v18 = vld [vmem:[%s26186_s14 + $0xc68] sm:$0xff]  }
0x4800   : > { %14562 = vmatprep.subr.bf16.mxu0 %v18451_v19  ;;  %14603 = vmatprep.subr.bf16.mxu1 %v18453_v0  ;;  %v21449_v19 = vld [vmem:[%s26186_s14 + $0xc28] sm:$0xff]  }
0x4801   : > { %v21450_v0 = vld [vmem:[%s26186_s14 + $0xca8] sm:$0xff]  }
0x4803   : > { %14563 = vmatpush1.bf16.msra.mxu0 %v18450_v26  ;;  %14604 = vmatpush1.bf16.msra.mxu1 %v18452_v27  ;;  %v21455_v26 = vld [vmem:[%s26186_s14 + $0xc58] sm:$0xff]  }
0x4804   : > { %14564 = vmatprep.subr.bf16.mxu0 %v18435_v24  ;;  %14605 = vmatprep.subr.bf16.mxu1 %v18437_v28  ;;  %v21456_v27 = vld [vmem:[%s26186_s14 + $0xcd8] sm:$0xff]  }
0x4805   : > { %v21457_v24 = vld [vmem:[%s26186_s14 + $0xc18] sm:$0xff]  }
0x4806   : > { %v21458_v28 = vld [vmem:[%s26186_s14 + $0xc98] sm:$0xff]  }
0x4807   : > { %14565 = vmatpush1.bf16.msra.mxu0 %v18434_v32  ;;  %14606 = vmatpush1.bf16.msra.mxu1 %v18436_v20  ;;  %v21463_v32 = vld [vmem:[%s26186_s14 + $0xc48] sm:$0xff]  }
0x4808   : > { %14640 = vmatprep.subr.bf16.mxu0 %v18487_v16  ;;  %14681 = vmatprep.subr.bf16.mxu1 %v18489_v42  ;;  %v21464_v20 = vld [vmem:[%s26186_s14 + $0xcc8] sm:$0xff]  }
0x4809   : > { %v21465_v16 = vld [vmem:[%s26186_s14 + $0xc08] sm:$0xff]  }
0x480a   : > { %18494 = vmatmul.mubr.msk.bf16.vlgmr.msra.gmra.mxu0 %vm670_vm1, %v25529_v30  ;;  %18495 = vmatmul.mubr.msk.bf16.vlgmr.msra.gmra.mxu1 %vm670_vm1, %v25529_v30  ;;  %v21466_v42 = vld [vmem:[%s26186_s14 + $0xc88] sm:$0xff]  }
0x480b   : > { %14641 = vmatpush1.bf16.msra.mxu0 %v18486_v31  ;;  %14682 = vmatpush1.bf16.msra.mxu1 %v18488_v44  ;;  %v21471_v31 = vld [vmem:[%s26186_s14 + $0xd78] sm:$0xff]  }
0x480c   : > { %14642 = vmatprep.subr.bf16.mxu0 %v18471_v35  ;;  %14683 = vmatprep.subr.bf16.mxu1 %v18473_v36  ;;  %v21472_v44 = vld [vmem:[%s26186_s14 + $0xdf8] sm:$0xff]   ;;  %v25778_v35 = vld [vmem:[%s26185_s13 + $0x30] sm:$0xff] }
0x480d   : > { %14664 = vmatprep.mubr.bf16.mxu0 %v21711_v47  ;;  %14705 = vmatprep.mubr.bf16.mxu1 %v21711_v47  ;;  %v21440_v47 = vld [vmem:[%s26186_s14 + $0xcf8] sm:$0xff]   ;;  %v13986_v36 = vrot.slane %v25778_v35, %v22593_v59  ;;  %v13994_v37 = vrot.slane %v25778_v35, %v22596_v63  ;;  %v13990_v21 = vrot.slane %v25778_v35, %v22604_v1 }
0x480e   : > { %v13998_v50 = vrot.slane %v25778_v35, %v22607_v3 }
0x480f   : > { %14643 = vmatpush1.bf16.msra.mxu0 %v18470_v5  ;;  %14684 = vmatpush1.bf16.msra.mxu1 %v18472_v39 }
0x4810   : > { %14644 = vmatprep.subr.bf16.mxu0 %v18455_v22  ;;  %14685 = vmatprep.subr.bf16.mxu1 %v18457_v56 }
0x4813   : > { %14645 = vmatpush1.bf16.msra.mxu0 %v18454_v25  ;;  %14686 = vmatpush1.bf16.msra.mxu1 %v18456_v11 }
0x4814   : > { %14646 = vmatprep.subr.bf16.mxu0 %v18439_v46  ;;  %14687 = vmatprep.subr.bf16.mxu1 %v18441_v51 }
0x4817   : > { %14647 = vmatpush1.bf16.msra.mxu0 %v18438_v52  ;;  %14688 = vmatpush1.bf16.msra.mxu1 %v18440_v53 }
0x4818   : > { %19757 = vmatprep.subr.bf16.mxu0 %v21439_v55  ;;  %19779 = vmatprep.subr.bf16.mxu1 %v21440_v47 }
0x481a   : > { %18496 = vmatmul.mubr.msk.bf16.vlgmr.msra.gmra.mxu0 %vm670_vm1, %v25529_v30  ;;  %18497 = vmatmul.mubr.msk.bf16.vlgmr.msra.gmra.mxu1 %vm670_vm1, %v25529_v30  ;;  %v21448_v30 = vld [vmem:[%s26186_s14 + $0xce8] sm:$0xff]  }
0x481b   : > { %19758 = vmatpush3.bf16.msra.mxu0 %v21441_v40  ;;  %19780 = vmatpush3.bf16.msra.mxu1 %v21442_v7  ;;  %v21473_v7 = vld [vmem:[%s26186_s14 + $0xd38] sm:$0xff]  }
0x481c   : > { %19759 = vmatprep.subr.bf16.mxu0 %v21443_v8  ;;  %19781 = vmatprep.subr.bf16.mxu1 %v21444_v10  ;;  %v21474_v8 = vld [vmem:[%s26186_s14 + $0xdb8] sm:$0xff]  }
0x481f   : > { %19760 = vmatpush3.bf16.msra.mxu0 %v21445_v15  ;;  %19782 = vmatpush3.bf16.msra.mxu1 %v21446_v45  ;;  %v21475_v45 = vld [vmem:[%s26186_s14 + $0xd70] sm:$0xff]  }
0x4820   : > { %19761 = vmatprep.subr.bf16.mxu0 %v21447_v18  ;;  %19783 = vmatprep.subr.bf16.mxu1 %v21448_v30  ;;  %v21476_v18 = vld [vmem:[%s26186_s14 + $0xdf0] sm:$0xff]  }
0x4821   : > { %v21477_v30 = vld [vmem:[%s26186_s14 + $0xd30] sm:$0xff]  }
0x4823   : > { %19762 = vmatpush3.bf16.msra.mxu0 %v21449_v19  ;;  %19784 = vmatpush3.bf16.msra.mxu1 %v21450_v0  ;;  %v21478_v19 = vld [vmem:[%s26186_s14 + $0xdb0] sm:$0xff]   ;;  %v21479_v0 = vld [vmem:[%s26186_s14 + $0xd68] sm:$0xff]  }
0x4824   : > { %19763 = vmatprep.subr.bf16.mxu0 %v21451_v61  ;;  %19785 = vmatprep.subr.bf16.mxu1 %v21452_v14  ;;  %v21480_v61 = vld [vmem:[%s26186_s14 + $0xde8] sm:$0xff]   ;;  %v14006_v14 = vrot.slane %v25778_v35, %v22636_v33 }
0x4827   : > { %19764 = vmatpush3.bf16.msra.mxu0 %v21453_v23  ;;  %19786 = vmatpush3.bf16.msra.mxu1 %v21454_v57  ;;  %v14014_v23 = vrot.slane %v25778_v35, %v22639_v34  ;;  %v21481_v57 = vld [vmem:[%s26186_s14 + $0xd28] sm:$0xff]  }
0x4828   : > { %19765 = vmatprep.subr.bf16.mxu0 %v21455_v26  ;;  %19787 = vmatprep.subr.bf16.mxu1 %v21456_v27  ;;  %v21482_v26 = vld [vmem:[%s26186_s14 + $0xda8] sm:$0xff]  }
0x482b   : > { %19766 = vmatpush3.bf16.msra.mxu0 %v21457_v24  ;;  %19788 = vmatpush3.bf16.msra.mxu1 %v21458_v28  ;;  %v21483_v28 = vld [vmem:[%s26186_s14 + $0xd60] sm:$0xff]  }
0x482c   : > { %19767 = vmatprep.subr.bf16.mxu0 %v21459_v58  ;;  %19789 = vmatprep.subr.bf16.mxu1 %v21460_v29  ;;  %v21484_v58 = vld [vmem:[%s26186_s14 + $0xde0] sm:$0xff]  }
0x482f   : > { %19768 = vmatpush3.bf16.msra.mxu0 %v21461_v48  ;;  %19790 = vmatpush3.bf16.msra.mxu1 %v21462_v13 }
0x4830   : > { %19769 = vmatprep.subr.bf16.mxu0 %v21463_v32  ;;  %19791 = vmatprep.subr.bf16.mxu1 %v21464_v20  ;;  %v21485_v20 = vld [vmem:[%s26186_s14 + $0xd20] sm:$0xff]  }
0x4833   : > { %19770 = vmatpush3.bf16.msra.mxu0 %v21465_v16  ;;  %19792 = vmatpush3.bf16.msra.mxu1 %v21466_v42  ;;  %v21486_v16 = vld [vmem:[%s26186_s14 + $0xda0] sm:$0xff]  }
0x4834   : > { %19771 = vmatprep.subr.bf16.mxu0 %v21467_v62  ;;  %19793 = vmatprep.subr.bf16.mxu1 %v21468_v49  ;;  %v21487_v49 = vld [vmem:[%s26186_s14 + $0xd58] sm:$0xff]  }
0x4837   : > { %19772 = vmatpush3.bf16.msra.mxu0 %v21469_v4  ;;  %19794 = vmatpush3.bf16.msra.mxu1 %v21470_v17  ;;  %v21488_v4 = vld [vmem:[%s26186_s14 + $0xdd8] sm:$0xff]  }
0x4838   : > { %19801 = vmatprep.subr.bf16.mxu0 %v21471_v31  ;;  %19823 = vmatprep.subr.bf16.mxu1 %v21472_v44 }
0x48aa   : > { %v14420_v38 = vpop.f32.mrf.mxu0  ;;  %v14461_v5 = vpop.f32.mrf.mxu1 }
0x48ab   : > { %v14421_v39 = vadd.f32 %v14420_v38, %v13986_v36  ;;  %v14462_v22 = vadd.f32 %v14461_v5, %v13994_v37  ;;  %v21490_v38 = vld [vmem:[%s26186_s14 + $0xd98] sm:$0xff]   ;;  %v21491_v5 = vld [vmem:[%s26186_s14 + $0xd50] sm:$0xff]  }
0x48ac   : > { %v14422_v56 = vpop.f32.mrf.mxu0  ;;  %v14463_v54 = vpop.f32.mrf.mxu1 }
0x48ad   : > { %v14423_v41 = vadd.f32 %v14422_v56, %v13990_v21  ;;  %v14464_v60 = vadd.f32 %v14463_v54, %v13998_v50  ;;  %v14714_v43 = vmax.f32 %v14421_v39, 0.0  ;;  %v14716_v25 = vmax.f32 %v14462_v22, 0.0  ;;  %v21489_v50 = vld [vmem:[%s26186_s14 + $0xd18] sm:$0xff]   ;;  %v21492_v39 = vld [vmem:[%s26186_s14 + $0xdd0] sm:$0xff]  }
0x48ae   : > { %v14424_v11 = vpop.f32.mrf.mxu0  ;;  %v14465_v46 = vpop.f32.mrf.mxu1  ;;  %v21493_v22 = vld [vmem:[%s26186_s14 + $0xd10] sm:$0xff]   ;;  %v14002_v54 = vrot.slane %v25778_v35, %v22682_v12 }
0x48af   : > { %v14715_v51 = vmax.f32 %v14423_v41, 0.0  ;;  %v14717_v52 = vmax.f32 %v14464_v60, 0.0  ;;  %v14730_v10 = vpack.c.bf16 %v14714_v43, %v14714_v43  ;;  %v14732_v15 = vpack.c.bf16 %v14716_v25, %v14716_v25  ;;  %v21494_v56 = vld [vmem:[%s26186_s14 + $0xd90] sm:$0xff]   ;;  %v21495_v60 = vld [vmem:[%s26186_s14 + $0xd48] sm:$0xff]   ;;  %v25871_v25 = vld [vmem:[%s26185_s13 + $0x38] sm:$0xff] }
0x48b0   : > { %v14425_v53 = vpop.f32.mrf.mxu0  ;;  %v14466_v55 = vpop.f32.mrf.mxu1  ;;  %v14010_v41 = vrot.slane %v25778_v35, %v22685_v9  ;;  %v21496_v43 = vld [vmem:[%s26186_s14 + $0xdc8] sm:$0xff]   ;;  %v14022_v35 = vrot.slane %v25871_v25, %v22604_v1  ;;  %v14030_v11 = vrot.slane %v25871_v25, %v22607_v3  ;;  %v21499_v1 = vld [vmem:[%s26186_s14 + $0xd40] sm:$0xff]  }
0x48b1   : > { %v14731_v47 = vpack.c.bf16 %v14715_v51, %v14715_v51  ;;  %v14733_v40 = vpack.c.bf16 %v14717_v52, %v14717_v52  ;;  %v21497_v46 = vld [vmem:[%s26186_s14 + $0xd08] sm:$0xff]   ;;  %v21500_v3 = vld [vmem:[%s26186_s14 + $0xdc0] sm:$0xff]  }
0x48b2   : > { %v21498_v51 = vld [vmem:[%s26186_s14 + $0xd88] sm:$0xff]  }
0x48b3   : > { %15811 = vmatprep.mubr.bf16.mxu0 %v14731_v47  ;;  %15851 = vmatprep.mubr.bf16.mxu1 %v14733_v40 }
0x48b4   : > { %15812 = vmatmul.mubr.bf16.vlgmr.msra.gmra.mxu0 %v14730_v10  ;;  %15852 = vmatmul.mubr.bf16.vlgmr.msra.gmra.mxu1 %v14732_v15  ;;  %v21501_v15 = vld [vmem:[%s26186_s14 + $0xd00] sm:$0xff]  }
0x48b5   : > { %19802 = vmatpush3.bf16.msra.mxu0 %v21473_v7  ;;  %19824 = vmatpush3.bf16.msra.mxu1 %v21474_v8 }
0x48b6   : > { %19803 = vmatprep.subr.bf16.mxu0 %v21475_v45  ;;  %19825 = vmatprep.subr.bf16.mxu1 %v21476_v18  ;;  %v21502_v45 = vld [vmem:[%s26186_s14 + $0xd80] sm:$0xff]  }
0x48b9   : > { %19804 = vmatpush3.bf16.msra.mxu0 %v21477_v30  ;;  %19826 = vmatpush3.bf16.msra.mxu1 %v21478_v19 }
0x48ba   : > { %v14502_v27 = vpop.f32.mrf.mxu0  ;;  %v14543_v24 = vpop.f32.mrf.mxu1  ;;  %19805 = vmatprep.subr.bf16.mxu0 %v21479_v0  ;;  %19827 = vmatprep.subr.bf16.mxu1 %v21480_v61  ;;  %v21503_v61 = vld [vmem:[%s26186_s14 + $0xe78] sm:$0xff]  }
0x48bb   : > { %v14503_v52 = vadd.f32 %v14502_v27, %v14002_v54  ;;  %v14544_v53 = vadd.f32 %v14543_v24, %v14010_v41  ;;  %v21505_v24 = vld [vmem:[%s26186_s14 + $0xe38] sm:$0xff]  }
0x48bc   : > { %v14504_v29 = vpop.f32.mrf.mxu0  ;;  %v14545_v48 = vpop.f32.mrf.mxu1  ;;  %v21520_v54 = vld [vmem:[%s26186_s14 + $0xed8] sm:$0xff]  }
0x48bd   : > { %v14505_v13 = vadd.f32 %v14504_v29, %v14006_v14  ;;  %v14546_v32 = vadd.f32 %v14545_v48, %v14014_v23  ;;  %19806 = vmatpush3.bf16.msra.mxu0 %v21481_v57  ;;  %19828 = vmatpush3.bf16.msra.mxu1 %v21482_v26  ;;  %v14718_v18 = vmax.f32 %v14503_v52, 0.0  ;;  %v14720_v30 = vmax.f32 %v14544_v53, 0.0  ;;  %v21504_v14 = vld [vmem:[%s26186_s14 + $0xef8] sm:$0xff]   ;;  %v21526_v53 = vld [vmem:[%s26186_s14 + $0xe90] sm:$0xff]  }
0x48be   : > { %v14506_v42 = vpop.f32.mrf.mxu0  ;;  %v14547_v62 = vpop.f32.mrf.mxu1  ;;  %19807 = vmatprep.subr.bf16.mxu0 %v21483_v28  ;;  %19829 = vmatprep.subr.bf16.mxu1 %v21484_v58  ;;  %v21506_v29 = vld [vmem:[%s26186_s14 + $0xeb8] sm:$0xff]   ;;  %v14018_v52 = vrot.slane %v25871_v25, %v22593_v59 }
0x48bf   : > { %v14719_v17 = vmax.f32 %v14505_v13, 0.0  ;;  %v14721_v31 = vmax.f32 %v14546_v32, 0.0  ;;  %v14734_v28 = vpack.c.bf16 %v14718_v18, %v14718_v18  ;;  %v14736_v58 = vpack.c.bf16 %v14720_v30, %v14720_v30  ;;  %v21507_v13 = vld [vmem:[%s26186_s14 + $0xe70] sm:$0xff]   ;;  %v21511_v62 = vld [vmem:[%s26186_s14 + $0xe68] sm:$0xff]  }
0x48c0   : > { %v14507_v44 = vpop.f32.mrf.mxu0  ;;  %v14548_v36 = vpop.f32.mrf.mxu1  ;;  %v21508_v32 = vld [vmem:[%s26186_s14 + $0xef0] sm:$0xff]  }
0x48c1   : > { %v14735_v37 = vpack.c.bf16 %v14719_v17, %v14719_v17  ;;  %v14737_v21 = vpack.c.bf16 %v14721_v31, %v14721_v31  ;;  %19808 = vmatpush3.bf16.msra.mxu0 %v21485_v20  ;;  %19830 = vmatpush3.bf16.msra.mxu1 %v21486_v16  ;;  %v21509_v16 = vld [vmem:[%s26186_s14 + $0xe30] sm:$0xff]   ;;  %v21514_v44 = vld [vmem:[%s26186_s14 + $0xea8] sm:$0xff]   ;;  %v21515_v36 = vld [vmem:[%s26186_s14 + $0xe60] sm:$0xff]  }
0x48c2   : > { %19809 = vmatprep.subr.bf16.mxu0 %v21487_v49  ;;  %19831 = vmatprep.subr.bf16.mxu1 %v21488_v4  ;;  %v21510_v42 = vld [vmem:[%s26186_s14 + $0xeb0] sm:$0xff]   ;;  %v21512_v49 = vld [vmem:[%s26186_s14 + $0xee8] sm:$0xff]  }
0x48c3   : > { %15891 = vmatprep.mubr.bf16.mxu0 %v14735_v37  ;;  %15931 = vmatprep.mubr.bf16.mxu1 %v14737_v21  ;;  %v21513_v4 = vld [vmem:[%s26186_s14 + $0xe28] sm:$0xff]   ;;  %v21516_v37 = vld [vmem:[%s26186_s14 + $0xee0] sm:$0xff]  }
0x48c5   : > { %19810 = vmatpush3.bf16.msra.mxu0 %v21489_v50  ;;  %19832 = vmatpush3.bf16.msra.mxu1 %v21490_v38  ;;  %v21517_v38 = vld [vmem:[%s26186_s14 + $0xe20] sm:$0xff]  }
0x48c6   : > { %19811 = vmatprep.subr.bf16.mxu0 %v21491_v5  ;;  %19833 = vmatprep.subr.bf16.mxu1 %v21492_v39 }
0x48c9   : > { %19812 = vmatpush3.bf16.msra.mxu0 %v21493_v22  ;;  %19834 = vmatpush3.bf16.msra.mxu1 %v21494_v56  ;;  %v21518_v22 = vld [vmem:[%s26186_s14 + $0xea0] sm:$0xff]   ;;  %v21519_v56 = vld [vmem:[%s26186_s14 + $0xe58] sm:$0xff]  }
0x48ca   : > { %v25883_v55 = vpop.f32.mrf.mxu0  ;;  %v25885_v47 = vpop.f32.mrf.mxu1  ;;  %19813 = vmatprep.subr.bf16.mxu0 %v21495_v60  ;;  %19835 = vmatprep.subr.bf16.mxu1 %v21496_v43  ;;  %v21521_v43 = vld [vmem:[%s26186_s14 + $0xe18] sm:$0xff]  }
0x48cc   : > { %v14586_v40 = vpop.f32.mrf.mxu0  ;;  %v14627_v7 = vpop.f32.mrf.mxu1 }
0x48cd   : > { %v14587_v8 = vadd.f32 %v14586_v40, %v14022_v35  ;;  %v14628_v10 = vadd.f32 %v14627_v7, %v14030_v11  ;;  %19814 = vmatpush3.bf16.msra.mxu0 %v21497_v46  ;;  %19836 = vmatpush3.bf16.msra.mxu1 %v21498_v51  ;;  %v21522_v35 = vld [vmem:[%s26186_s14 + $0xe98] sm:$0xff]   ;;  %v21523_v11 = vld [vmem:[%s26186_s14 + $0xe50] sm:$0xff]   ;;  %v21528_v40 = vld [vmem:[%s26186_s14 + $0xec8] sm:$0xff]   ;;  %v14038_v7 = vrot.slane %v25871_v25, %v22636_v33 }
0x48ce   : > { %v14588_v19 = vpop.f32.mrf.mxu0  ;;  %v14629_v0 = vpop.f32.mrf.mxu1  ;;  %19815 = vmatprep.subr.bf16.mxu0 %v21499_v1  ;;  %19837 = vmatprep.subr.bf16.mxu1 %v21500_v3  ;;  %v21524_v46 = vld [vmem:[%s26186_s14 + $0xed0] sm:$0xff]   ;;  %v21527_v1 = vld [vmem:[%s26186_s14 + $0xe48] sm:$0xff]   ;;  %v14026_v3 = vrot.slane %v25871_v25, %v22596_v63  ;;  %v21531_v33 = vld [vmem:[%s26186_s14 + $0xe40] sm:$0xff]  }
0x48cf   : > { %v14723_v23 = vmax.f32 %v14587_v8, 0.0  ;;  %v14725_v57 = vmax.f32 %v14628_v10, 0.0  ;;  %v21525_v51 = vld [vmem:[%s26186_s14 + $0xe10] sm:$0xff]   ;;  %v14046_v8 = vrot.slane %v25871_v25, %v22639_v34  ;;  %v21529_v10 = vld [vmem:[%s26186_s14 + $0xe08] sm:$0xff]   ;;  %v21532_v34 = vld [vmem:[%s26186_s14 + $0xec0] sm:$0xff]  }
0x48d0   : > { %v14589_v26 = vpop.f32.mrf.mxu0  ;;  %v14630_v27 = vpop.f32.mrf.mxu1  ;;  %v21530_v63 = vld [vmem:[%s26186_s14 + $0xe88] sm:$0xff]   ;;  %v21534_v0 = vld [vmem:[%s26186_s14 + $0xe80] sm:$0xff]  }
0x48d1   : > { %19816 = vmatpush3.bf16.msra.mxu0 %v21501_v15  ;;  %19838 = vmatpush3.bf16.msra.mxu1 %v21502_v45  ;;  %v14739_v48 = vpack.c.bf16 %v14723_v23, %v14723_v23  ;;  %v14741_v20 = vpack.c.bf16 %v14725_v57, %v14725_v57  ;;  %v14585_v15 = vadd.f32 %v25883_v55, %v14018_v52  ;;  %v21533_v55 = vld [vmem:[%s26186_s14 + $0xe00] sm:$0xff]   ;;  %v21537_v26 = vld [vmem:[%s26186_s14 + $0xf38] sm:$0xff]  }
0x48d2   : > { %19845 = vmatprep.subr.bf16.mxu0 %v21503_v61  ;;  %19867 = vmatprep.subr.bf16.mxu1 %v21504_v14  ;;  %v14626_v45 = vadd.f32 %v25885_v47, %v14026_v3  ;;  %v21535_v47 = vld [vmem:[%s26186_s14 + $0xf78] sm:$0xff]  }
0x48d3   : > { %v14722_v19 = vmax.f32 %v14585_v15, 0.0  ;;  %v21536_v14 = vld [vmem:[%s26186_s14 + $0xff8] sm:$0xff]  }
0x48d4   : > { %15892 = vmatmul.mubr.bf16.vlgmr.msra.gmra.mxu0 %v14734_v28  ;;  %15932 = vmatmul.mubr.bf16.vlgmr.msra.gmra.mxu1 %v14736_v58  ;;  %v14724_v61 = vmax.f32 %v14626_v45, 0.0  ;;  %v21539_v58 = vld [vmem:[%s26186_s14 + $0xf70] sm:$0xff]  }
0x48d5   : > { %19846 = vmatpush3.bf16.msra.mxu0 %v21505_v24  ;;  %15971 = vmatprep.mubr.bf16.mxu0 %v14739_v48  ;;  %v14738_v27 = vpack.c.bf16 %v14722_v19, %v14722_v19  ;;  %v21538_v24 = vld [vmem:[%s26186_s14 + $0xfb8] sm:$0xff]   ;;  %v21540_v48 = vld [vmem:[%s26186_s14 + $0xff0] sm:$0xff]  }
0x48d6   : > { %19868 = vmatpush3.bf16.msra.mxu1 %v21506_v29  ;;  %16011 = vmatprep.mubr.bf16.mxu1 %v14741_v20  ;;  %v14740_v28 = vpack.c.bf16 %v14724_v61, %v14724_v61  ;;  %v21542_v20 = vld [vmem:[%s26186_s14 + $0xfb0] sm:$0xff]  }
0x48d7   : > { %19847 = vmatprep.subr.bf16.mxu0 %v21507_v13  ;;  %19869 = vmatprep.subr.bf16.mxu1 %v21508_v32  ;;  %v21541_v32 = vld [vmem:[%s26186_s14 + $0xf30] sm:$0xff]  }
0x48d9   : > { %19848 = vmatpush3.bf16.msra.mxu0 %v21509_v16  ;;  %v21543_v16 = vld [vmem:[%s26186_s14 + $0xf68] sm:$0xff]  }
0x48da   : > { %19870 = vmatpush3.bf16.msra.mxu1 %v21510_v42  ;;  %v25932_v17 = vpop.f32.mrf.mxu0  ;;  %v25934_v31 = vpop.f32.mrf.mxu1  ;;  %19849 = vmatprep.subr.bf16.mxu0 %v21511_v62  ;;  %v21544_v42 = vld [vmem:[%s26186_s14 + $0xfe8] sm:$0xff]  }
0x48db   : > { %19871 = vmatprep.subr.bf16.mxu1 %v21512_v49  ;;  %v21545_v62 = vld [vmem:[%s26186_s14 + $0xf28] sm:$0xff]  }
0x48dc   : > { %v14668_v21 = vpop.f32.mrf.mxu0  ;;  %v14709_v50 = vpop.f32.mrf.mxu1  ;;  %v21546_v49 = vld [vmem:[%s26186_s14 + $0xfa8] sm:$0xff]  }
0x48dd   : > { %19850 = vmatpush3.bf16.msra.mxu0 %v21513_v4  ;;  %v14669_v18 = vadd.f32 %v14668_v21, %v14038_v7  ;;  %v14710_v30 = vadd.f32 %v14709_v50, %v14046_v8  ;;  %v21547_v4 = vld [vmem:[%s26186_s14 + $0xf60] sm:$0xff]   ;;  %v21551_v21 = vld [vmem:[%s26186_s14 + $0xf58] sm:$0xff]  }
0x48de   : > { %19872 = vmatpush3.bf16.msra.mxu1 %v21514_v44  ;;  %v14670_v5 = vpop.f32.mrf.mxu0  ;;  %v14711_v39 = vpop.f32.mrf.mxu1  ;;  %19851 = vmatprep.subr.bf16.mxu0 %v21515_v36  ;;  %v21548_v44 = vld [vmem:[%s26186_s14 + $0xfe0] sm:$0xff]   ;;  %v21552_v50 = vld [vmem:[%s26186_s14 + $0xfd8] sm:$0xff]  }
0x48df   : > { %19873 = vmatprep.subr.bf16.mxu1 %v21516_v37  ;;  %v14727_v23 = vmax.f32 %v14669_v18, 0.0  ;;  %v14729_v57 = vmax.f32 %v14710_v30, 0.0  ;;  %v21549_v36 = vld [vmem:[%s26186_s14 + $0xf20] sm:$0xff]   ;;  %v21554_v5 = vld [vmem:[%s26186_s14 + $0xf98] sm:$0xff]   ;;  %v21555_v39 = vld [vmem:[%s26186_s14 + $0xf50] sm:$0xff]  }
0x48e0   : > { %v14671_v41 = vpop.f32.mrf.mxu0  ;;  %v14712_v60 = vpop.f32.mrf.mxu1  ;;  %v21550_v37 = vld [vmem:[%s26186_s14 + $0xfa0] sm:$0xff]  }
0x48e1   : > { %19852 = vmatpush3.bf16.msra.mxu0 %v21517_v38  ;;  %v14743_v29 = vpack.c.bf16 %v14727_v23, %v14727_v23  ;;  %v14745_v13 = vpack.c.bf16 %v14729_v57, %v14729_v57  ;;  %v21553_v38 = vld [vmem:[%s26186_s14 + $0xf18] sm:$0xff]   ;;  %v21558_v41 = vld [vmem:[%s26186_s14 + $0xf90] sm:$0xff]   ;;  %v21559_v60 = vld [vmem:[%s26186_s14 + $0xf48] sm:$0xff]  }
0x48e2   : > { %19874 = vmatpush3.bf16.msra.mxu1 %v21518_v22  ;;  %19853 = vmatprep.subr.bf16.mxu0 %v21519_v56  ;;  %v21556_v22 = vld [vmem:[%s26186_s14 + $0xfd0] sm:$0xff]   ;;  %v18755_v8 = vld [vmem:[%s26187_s15 + $0x3] ss:$0 sm:$0xff] }
0x48e3   : > { %19875 = vmatprep.subr.bf16.mxu1 %v21520_v54  ;;  %v21557_v56 = vld [vmem:[%s26186_s14 + $0xf10] sm:$0xff]   ;;  %v14034_v54 = vrot.slane %v25871_v25, %v22682_v12  ;;  %v21561_v12 = vld [vmem:[%s26186_s14 + $0xf08] sm:$0xff]  }
0x48e5   : > { %19854 = vmatpush3.bf16.msra.mxu0 %v21521_v43  ;;  %v14042_v43 = vrot.slane %v25871_v25, %v22685_v9  ;;  %v21563_v9 = vld [vmem:[%s26186_s14 + $0xf40] sm:$0xff]  }
0x48e6   : > { %19876 = vmatpush3.bf16.msra.mxu1 %v21522_v35  ;;  %19855 = vmatprep.subr.bf16.mxu0 %v21523_v11  ;;  %v21560_v35 = vld [vmem:[%s26186_s14 + $0xfc8] sm:$0xff]   ;;  %v14667_v11 = vadd.f32 %v25932_v17, %v14034_v54  ;;  %v21565_v17 = vld [vmem:[%s26186_s14 + $0xf00] sm:$0xff]  }
0x48e7   : > { %19877 = vmatprep.subr.bf16.mxu1 %v21524_v46  ;;  %v21562_v46 = vld [vmem:[%s26186_s14 + $0xf88] sm:$0xff]   ;;  %v14708_v25 = vadd.f32 %v25934_v31, %v14042_v43 }
0x48e8   : > { %v14726_v52 = vmax.f32 %v14667_v11, 0.0 }
0x48e9   : > { %19856 = vmatpush3.bf16.msra.mxu0 %v21525_v51  ;;  %v21564_v51 = vld [vmem:[%s26186_s14 + $0xfc0] sm:$0xff]  }
0x48ea   : > { %19878 = vmatpush3.bf16.msra.mxu1 %v21526_v53  ;;  %19857 = vmatprep.subr.bf16.mxu0 %v21527_v1  ;;  %v21566_v53 = vld [vmem:[%s26186_s14 + $0xf80] sm:$0xff]   ;;  %v14728_v1 = vmax.f32 %v14708_v25, 0.0  ;;  %v14742_v31 = vpack.c.bf16 %v14726_v52, %v14726_v52 }
0x48eb   : > { %19879 = vmatprep.subr.bf16.mxu1 %v21528_v40 }
0x48ec   : > { %v14744_v3 = vpack.c.bf16 %v14728_v1, %v14728_v1 }
0x48ed   : > { %19858 = vmatpush3.bf16.msra.mxu0 %v21529_v10 }
0x48ee   : > { %19880 = vmatpush3.bf16.msra.mxu1 %v21530_v63  ;;  %19859 = vmatprep.subr.bf16.mxu0 %v21531_v33 }
0x48ef   : > { %19881 = vmatprep.subr.bf16.mxu1 %v21532_v34 }
0x48f1   : > { %19860 = vmatpush3.bf16.msra.mxu0 %v21533_v55 }
0x48f2   : > { %19882 = vmatpush3.bf16.msra.mxu1 %v21534_v0  ;;  %19889 = vmatprep.subr.bf16.mxu0 %v21535_v47 }
0x48f3   : > { %19911 = vmatprep.subr.bf16.mxu1 %v21536_v14 }
0x48f4   : > { %15972 = vmatmul.mubr.bf16.vlgmr.msra.gmra.mxu0 %v14738_v27 }
0x48f5   : > { %16012 = vmatmul.mubr.bf16.vlgmr.msra.gmra.mxu1 %v14740_v28  ;;  %19890 = vmatpush3.bf16.msra.mxu0 %v21537_v26 }
0x48f6   : > { %16051 = vmatprep.mubr.bf16.mxu0 %v14743_v29  ;;  %19912 = vmatpush3.bf16.msra.mxu1 %v21538_v24 }
0x48f7   : > { %16091 = vmatprep.mubr.bf16.mxu1 %v14745_v13  ;;  %19891 = vmatprep.subr.bf16.mxu0 %v21539_v58 }
0x48f8   : > { %19913 = vmatprep.subr.bf16.mxu1 %v21540_v48 }
0x48f9   : > { %19892 = vmatpush3.bf16.msra.mxu0 %v21541_v32 }
0x48fa   : > { %19914 = vmatpush3.bf16.msra.mxu1 %v21542_v20  ;;  %19893 = vmatprep.subr.bf16.mxu0 %v21543_v16 }
0x48fb   : > { %19915 = vmatprep.subr.bf16.mxu1 %v21544_v42 }
0x48fd   : > { %19894 = vmatpush3.bf16.msra.mxu0 %v21545_v62 }
0x48fe   : > { %19916 = vmatpush3.bf16.msra.mxu1 %v21546_v49  ;;  %19895 = vmatprep.subr.bf16.mxu0 %v21547_v4 }
0x48ff   : > { %19917 = vmatprep.subr.bf16.mxu1 %v21548_v44 }
0x4901   : > { %19896 = vmatpush3.bf16.msra.mxu0 %v21549_v36 }
0x4902   : > { %19918 = vmatpush3.bf16.msra.mxu1 %v21550_v37  ;;  %19897 = vmatprep.subr.bf16.mxu0 %v21551_v21 }
0x4903   : > { %19919 = vmatprep.subr.bf16.mxu1 %v21552_v50 }
0x4905   : > { %19898 = vmatpush3.bf16.msra.mxu0 %v21553_v38 }
0x4906   : > { %19920 = vmatpush3.bf16.msra.mxu1 %v21554_v5  ;;  %19899 = vmatprep.subr.bf16.mxu0 %v21555_v39 }
0x4907   : > { %19921 = vmatprep.subr.bf16.mxu1 %v21556_v22 }
0x4909   : > { %19900 = vmatpush3.bf16.msra.mxu0 %v21557_v56 }
0x490a   : > { %19922 = vmatpush3.bf16.msra.mxu1 %v21558_v41  ;;  %19901 = vmatprep.subr.bf16.mxu0 %v21559_v60 }
0x490b   : > { %19923 = vmatprep.subr.bf16.mxu1 %v21560_v35 }
0x490d   : > { %19902 = vmatpush3.bf16.msra.mxu0 %v21561_v12 }
0x490e   : > { %19924 = vmatpush3.bf16.msra.mxu1 %v21562_v46  ;;  %19903 = vmatprep.subr.bf16.mxu0 %v21563_v9 }
0x490f   : > { %19925 = vmatprep.subr.bf16.mxu1 %v21564_v51 }
0x4911   : > { %19904 = vmatpush3.bf16.msra.mxu0 %v21565_v17  ;;  %v16132_v17 = vld [vmem:[#allocation2] sm:$0x1] }
0x4912   : > { %19926 = vmatpush3.bf16.msra.mxu1 %v21566_v53  ;;  %20799 = vmatprep.subr.mxu0 %v21709_v2 }
0x4914   : > { %16052 = vmatmul.mubr.bf16.vlgmr.msra.gmra.mxu0 %v14742_v31 }
0x4915   : > { %16092 = vmatmul.mubr.bf16.vlgmr.msra.gmra.mxu1 %v14744_v3  ;;  %20801 = vmatprep.mubr.msk.f32.mxu0 %vm21710_vm0, %v21709_v2 }
0x4974   : > { %v19773_v40 = vpop.f32.mrf.mxu0  ;;  %v19795_v7 = vpop.f32.mrf.mxu1 }
0x4976   : > { %v19774_v10 = vpop.f32.mrf.mxu0  ;;  %v19796_v15 = vpop.f32.mrf.mxu1 }
0x4977   : > { %v19775_v63 = vadd.f32 %v19774_v10, %v19773_v40  ;;  %v19797_v33 = vadd.f32 %v19796_v15, %v19795_v7  ;;  %v18887_v40 = vld [vmem:[%s26189_s17 + $0x3] ss:$0 sm:$0xff]  ;;  %v16131_v10 = vld [vmem:[%s26228_s30] sm:$0x1]  ;;  %s21653_s30 = scalar_lea.vmem %s21652_s29, 32 }
0x4978   : > { %v19776_v45 = vpop.f32.mrf.mxu0  ;;  %v19798_v34 = vpop.f32.mrf.mxu1  ;;  %p21655_p1 = scmp.lt.s32.totalorder %s21653_s30, %s21647_s25 }
0x4979   : > { %v15814_v18 = vadd.f32 %v19775_v63, %v18755_v8 }
0x497a   : > { %v19777_v30 = vpop.f32.mrf.mxu0  ;;  %v19799_v55 = vpop.f32.mrf.mxu1  ;;  %p21656_p2 = por %p21655_p1, %p21654_p0 }
0x497b   : > { %v15854_v19 = vadd.f32 %v19797_v33, %v15814_v18 }
0x497c   : > { %p21657_p3 = pnand %p21656_p2, %p21650_p13 }
0x4994   : > { %v19817_v0 = vpop.f32.mrf.mxu0  ;;  %v19839_v47 = vpop.f32.mrf.mxu1 }
0x4996   : > { %v19818_v61 = vpop.f32.mrf.mxu0  ;;  %v19840_v2 = vpop.f32.mrf.mxu1 }
0x4997   : > { %v19819_v20 = vadd.f32 %v19818_v61, %v19817_v0  ;;  %v19841_v42 = vadd.f32 %v19840_v2, %v19839_v47 }
0x4998   : > { %v19820_v14 = vpop.f32.mrf.mxu0  ;;  %v19842_v23 = vpop.f32.mrf.mxu1 }
0x4999   : > { %v15894_v16 = vadd.f32 %v19819_v20, %v15854_v19 }
0x499a   : > { %v19821_v57 = vpop.f32.mrf.mxu0  ;;  %v19843_v26 = vpop.f32.mrf.mxu1 }
0x499b   : > { %v15934_v49 = vadd.f32 %v19841_v42, %v15894_v16 }
0x49b4   : > { %v19861_v27 = vpop.f32.mrf.mxu0 }
0x49b5   : > { %v19883_v24 = vpop.f32.mrf.mxu1 }
0x49b6   : > { %v19862_v28 = vpop.f32.mrf.mxu0 }
0x49b7   : > { %v19884_v58 = vpop.f32.mrf.mxu1  ;;  %v19863_v62 = vadd.f32 %v19862_v28, %v19861_v27 }
0x49b8   : > { %v19864_v29 = vpop.f32.mrf.mxu0  ;;  %v19885_v36 = vadd.f32 %v19884_v58, %v19883_v24 }
0x49b9   : > { %v19886_v48 = vpop.f32.mrf.mxu1  ;;  %v15974_v4 = vadd.f32 %v19863_v62, %v15934_v49 }
0x49ba   : > { %v19865_v13 = vpop.f32.mrf.mxu0 }
0x49bb   : > { %v19887_v32 = vpop.f32.mrf.mxu1  ;;  %v16014_v50 = vadd.f32 %v19885_v36, %v15974_v4 }
0x49d4   : > { %v19905_v44 = vpop.f32.mrf.mxu0 }
0x49d5   : > { %v19927_v37 = vpop.f32.mrf.mxu1 }
0x49d6   : > { %v19906_v21 = vpop.f32.mrf.mxu0 }
0x49d7   : > { %v19907_v38 = vadd.f32 %v19906_v21, %v19905_v44  ;;  %v19928_v5 = vpop.f32.mrf.mxu1 }
0x49d8   : > { %v19908_v39 = vpop.f32.mrf.mxu0  ;;  %v19929_v56 = vadd.f32 %v19928_v5, %v19927_v37 }
0x49d9   : > { %v16054_v22 = vadd.f32 %v19907_v38, %v16014_v50  ;;  %v19930_v54 = vpop.f32.mrf.mxu1 }
0x49da   : > { %v19909_v41 = vpop.f32.mrf.mxu0 }
0x49db   : > { %v16094_v60 = vadd.f32 %v19929_v56, %v16054_v22  ;;  %v19931_v43 = vpop.f32.mrf.mxu1 }
0x49dd   : > { %v16099_v35 = vadd.f32 %v16094_v60, %v25525_v6  ;;  %v18886_v6 = vld [vmem:[%s26188_s16 + $0x3] ss:$0 sm:$0xff] }
0x49df   : > { %v16104_v12 = vsel %vm670_vm1, %v16099_v35, 0.0 }
0x49e0   : > { %16105 = vadd.xlane.f32.xlu0 %v16104_v12 }
0x49f6   : > { %16135 = vperm.xlu0 %20846, %v16132_v17  }
0x4a69   : > { %v16106_v11 = vpop.xlane.xlu0 %16105 }
0x4a6a   : > { %v16107_v46 = vmul.f32 0.015625, %v16106_v11 }
0x4a6c   : > { %v16108_v9 = vsub.f32 %v16099_v35, %v16107_v46 }
0x4a6e   : > { %v16109_v25 = vmul.f32 %v16108_v9, %v16108_v9 }
0x4a70   : > { %v16110_v51 = vsel %vm670_vm1, %v16109_v25, 0.0 }
0x4a71   : > { %16111 = vadd.xlane.f32.xlu1 %v16110_v51  ;;  %v16136_v15 = vpop.permute.xlu0 %16135 }
0x4a72   : > { %v16141_v63 = vrot.slane %v16136_v15, %v22593_v59 }
0x4afa   : > { %v16112_v52 = vpop.xlane.xlu1 %16111 }
0x4afb   : > { %v16113_v53 = vmul.f32 0.015625, %v16112_v52 }
0x4afd   : > { %v16114_v1 = vadd.f32 1e-05, %v16113_v53 }
0x4aff   : > { %21645 = vrsqrt.f32 %v16114_v1 }
0x4b0c   : > { %v21646_v31 = vpop.eup %21645 }
0x4b0d   : > { %v16116_v3 = vmul.f32 %v21646_v31, %v16108_v9 }
0x4b0f   : > { %v16123_v7 = vmul.f32 %v18886_v6, %v16116_v3 }
0x4b11   : > { %v16130_v8 = vadd.f32 %v18887_v40, %v16123_v7 }
0x4b13   : > { %20800 = vmatpush3.xpose.msk.msra.mxu0 %vm670_vm1, %v16130_v8 }
0x4b16   : > { %20802 = vmatmul.mubr.msk.f32.vlgmr.msra.gmra.mxu0 %vm670_vm1, %v16131_v10 }
0x4bd6   : > { %v16214_v33 = vpop.f32.mrf.mxu0 }
0x4bd7   : > { %v16215_v45 = vadd.f32 %v16214_v33, %v16141_v63 }
0x4bd8   : > { %v20803_v34 = vpop.f32.mrf.mxu0 }
0x4bd9   : > { %16219 = vst.msk [vmem:[%s621_s4] sm:$0x1] %vm16218_vm5, %v16215_v45 }
0x4bda   : > { %21660 = shalt.err (!%p21657_p3)
}
0x4bdb   : > { %s21661_s21 = scalar_lea.hbm %s26137_s23, 16  ;;  %s21665_s3 = scalar_lea.hbm %s26230_s20, 32 }
0x4bdc   : > { %p21662_p4 = scmp.ne.s32.totalorder %s26137_s23, %s21661_s21  ;;  %p21666_p9 = scmp.lt.s32.totalorder %s26137_s23, %s26230_s20 }
0x4bdd   : > { %p21667_p10 = scmp.lt.s32.totalorder %s21665_s3, %s21661_s21 }
0x4bde   : > { %p21663_p7 = pnand %p21662_p4, %p21859_p5 }
0x4bdf   : > { %p21668_p11 = por %p21667_p10, %p21666_p9 }
0x4be0   : > { %p21664_p8 = pneg %p21663_p7 }
0x4be2   : > { %p21669_p12 = pnand %p21668_p11, %p21664_p8 }
0x4be4   : > { %21672 = shalt.err (!%p21669_p12)
}
0x4be5   : > { %20804 = dma.vmem_to_hbm [thread:$0]  (%p21859_p5), %s16234_s22, 16, %s26137_s23, %s16221_s2  }
0x4be6 PF: > { %s26231_s25 = sld [smem:[#allocation8_spill]] }
0x4be7   : > { %s26232_s29 = sld [smem:[#allocation6_spill]] }
0x4bec   : > { %p20810_p13 = scmp.ge.s32.totalorder %s26231_s25, 2 }
0x4bed   : > { %s16245_s1 = sand.u32 1, %s26232_s29  }
0x4bee   : > { %p20807_p0 = pnand %p20810_p13, %p21863_p6  ;;  %s16246_s28 = scalar_lea.sflag [#allocation4], %s16245_s1 }
0x4bf0   : > { %p20808_p1 = pneg %p20807_p0 }
0x4bf2   : > { %21690 = dma.done.wait (%p20808_p1), %s16246_s28, 16  }
0x4bf3   : > { %21692 = vsyncadd (%p20808_p1), %s16246_s28, 4294967280  ;;  %s26234_s25 = sld [smem:[#allocation9_spill]]  ;;  %s26237_s23 = smov %s21699_s24 }
0x4bf4   : > { %s26235_s21 = sld [smem:[#allocation7_spill]] }
0x4bf5   : > { %s26236_s2 = sld [smem:[#allocation10_spill]] }
0x4bf9   : > { %p32_p2 = scmp.ge.s32.totalorder %s26234_s25, 4  }
0x4bfa   : > { %s26238_s24 = smov %s26235_s21 }
0x4bfb   :  { %34 = sbr.rel (!%p32_p2) target bundleno = 11 (0xb), region = 267 }
0x4c00   :  { %16250 = vsyncpa [#allocation4], 1 }
0x4c01   :  { %16252 = vsyncpa [#allocation4 + $0x1], 1 }

</bundles_post_ra>
